<compile_context>
chip_gen: v7x
topology: tpu7x:2x2x1
jax: 0.10.0
libtpu: 0.0.40
codegen_flags: <defaults>
</compile_context>

<pallas_src>
import numpy as np

import jax
import jax.numpy as jnp
from jax.experimental import pallas as pl
from jax.experimental.pallas import tpu as pltpu

_K = 5        # both convs are 5x5, stride 1, 'valid'
_EPS = 1e-5   # PyTorch BatchNorm default eps


# ------------------------------ fused kernel ------------------------------- #

def _lenet_fused_kernel(x_ref,
                        wp1_ref, b1l_ref, g1l_ref, t1l_ref, p1_ref,
                        wp2_ref, b2l_ref, g2l_ref, t2l_ref, p2_ref,
                        wfc_ref, bfc_ref,
                        out_ref):
    f32 = jnp.float32

    def stage(act, wp_ref, b_l, g_l, t_l, p_ref):
        # conv (x_flat @ pooled-Toeplitz operator, all channels at once)
        # -> 2x2 maxpool (elementwise max of the 4 candidate matmuls)
        # -> + per-channel bias (constant within a pooling window, so it
        #    commutes with the max) -> relu.
        m = jnp.maximum(
            jnp.maximum(jnp.dot(act, wp_ref[0], preferred_element_type=f32),
                        jnp.dot(act, wp_ref[1], preferred_element_type=f32)),
            jnp.maximum(jnp.dot(act, wp_ref[2], preferred_element_type=f32),
                        jnp.dot(act, wp_ref[3], preferred_element_type=f32)))
        a = jnp.maximum(m + b_l, 0.0)                    # (B, C * Hp * Wp)

        # Training-mode BatchNorm2d with batched per-channel statistics:
        # p_ref is block-diagonal with 1/(Hp*Wp) inside each channel block, so
        # sublane-sum + one matmul gives the per-channel spatial mean already
        # broadcast to every lane of its channel; divide by B for the batch.
        inv_b = 1.0 / a.shape[0]
        mean_l = jnp.dot(jnp.sum(a, axis=0, keepdims=True), p_ref[...],
                         preferred_element_type=f32) * inv_b
        xm = a - mean_l
        var_l = jnp.dot(jnp.sum(xm * xm, axis=0, keepdims=True), p_ref[...],
                        preferred_element_type=f32) * inv_b
        return xm * jax.lax.rsqrt(var_l + _EPS) * g_l + t_l

    # stage 1: conv1 -> pool -> relu -> bn1       (B, 784)   -> (B, n1*144)
    y1 = stage(x_ref[...], wp1_ref, b1l_ref[...], g1l_ref[...], t1l_ref[...],
               p1_ref)
    # stage 2: conv2 -> pool -> relu -> bn2       (B, n1*144) -> (B, n2*16)
    y2 = stage(y1, wp2_ref, b2l_ref[...], g2l_ref[...], t2l_ref[...], p2_ref)

    # y2's lane order is already PyTorch's NCHW flatten (c*16 + h*4 + w); the
    # whole FC head (c5 -> f6 -> out7, no nonlinearities) is pre-folded into a
    # single (n2*16, 10) affine map.
    out_ref[...] = (jnp.dot(y2, wfc_ref[...], preferred_element_type=f32)
                    + bfc_ref[...]).astype(out_ref.dtype)


# --------------------------- host-side operator prep ----------------------- #

def _conv_as_matrix(w, h_in, w_in):
    """Dense operator M with x_flat @ M == flatten_NCHW(conv2d(x, w)).

    Rows indexed c*h_in*w_in + h*w_in + wc; cols indexed o*h_out*w_out +
    oh*w_out + ow.  w: (Cout, Cin, K, K) numpy float32.
    """
    w = np.asarray(w, np.float32)
    cout, cin, k, _ = w.shape
    h_out, w_out = h_in - k + 1, w_in - k + 1
    m = np.zeros((cin * h_in * w_in, cout * h_out * w_out), np.float32)
    oh = np.arange(h_out)[:, None]
    ow = np.arange(w_out)[None, :]
    cols_base = (oh * w_out + ow).ravel()
    for o in range(cout):
        for c in range(cin):
            for ki in range(k):
                for kj in range(k):
                    rows = (c * h_in * w_in + (oh + ki) * w_in + (ow + kj)).ravel()
                    m[rows, o * h_out * w_out + cols_base] += w[o, c, ki, kj]
    return m


def _pooled_conv_matrices(w, h_in, w_in):
    """4 operators; candidate s of the 2x2/stride-2 pool of the conv output.

    Each is (Cin*h_in*w_in, Cout*Hp*Wp) with columns ordered (o, ph, pw), i.e.
    exactly PyTorch's NCHW flatten of the pooled map.
    """
    m = _conv_as_matrix(w, h_in, w_in)
    cout, _, k, _ = np.asarray(w).shape
    h_out, w_out = h_in - k + 1, w_in - k + 1
    assert h_out % 2 == 0 and w_out % 2 == 0, "MaxPool2d(2) needs even dims"
    hp, wp = h_out // 2, w_out // 2
    o = np.arange(cout)[:, None, None]
    ph = np.arange(hp)[None, :, None]
    pw = np.arange(wp)[None, None, :]
    mats = []
    for si in range(2):
        for sj in range(2):
            cols = (o * h_out * w_out + (2 * ph + si) * w_out
                    + (2 * pw + sj)).ravel()
            mats.append(m[:, cols])
    return np.stack(mats, axis=0)          # (4, Cin*h_in*w_in, Cout*hp*wp)


def _channel_avg_operator(n_ch, lanes_per_ch):
    """Block-diagonal (C*L, C*L) operator with 1/L inside each channel block."""
    n = n_ch * lanes_per_ch
    ch = np.arange(n) // lanes_per_ch
    return (ch[:, None] == ch[None, :]).astype(np.float32) / float(lanes_per_ch)


def prepare_kernel_params(params):
    """One-time packing of torch-layout params into kernel operands."""
    wp1 = _pooled_conv_matrices(np.asarray(params["c1_w"]), 28, 28)  # (4,784,n1*144)
    wp2 = _pooled_conv_matrices(np.asarray(params["c3_w"]), 12, 12)  # (4,n1*144,n2*16)

    def lanes(v, rep):
        return np.repeat(np.asarray(v, np.float32), rep)[None, :]

    n1 = int(params["c1_w"].shape[0])
    n2 = int(params["c3_w"].shape[0])
    p1 = _channel_avg_operator(n1, 12 * 12)
    p2 = _channel_avg_operator(n2, 4 * 4)

    # FC head fold (c5 -> f6 -> out7 has no nonlinearities):
    #   y = x @ (W5^T W6^T W7^T) + ((b5 W6^T + b6) W7^T + b7)
    w5 = np.asarray(params["c5_w"], np.float32)
    b5 = np.asarray(params["c5_b"], np.float32)
    w6 = np.asarray(params["f6_w"], np.float32)
    b6 = np.asarray(params["f6_b"], np.float32)
    w7 = np.asarray(params["out7_w"], np.float32)
    b7 = np.asarray(params["out7_b"], np.float32)
    wfc = w5.T @ w6.T @ w7.T                        # (n2*16, 10)
    bfc = ((b5 @ w6.T + b6) @ w7.T + b7)[None, :]   # (1, 10)

    packed = dict(
        wp1=wp1, b1l=lanes(params["c1_b"], 144), g1l=lanes(params["bn1_g"], 144),
        t1l=lanes(params["bn1_b"], 144), p1=p1,
        wp2=wp2, b2l=lanes(params["c3_b"], 16), g2l=lanes(params["bn2_g"], 16),
        t2l=lanes(params["bn2_b"], 16), p2=p2,
        wfc=wfc, bfc=bfc)
    return {k: jnp.asarray(v, jnp.float32) for k, v in packed.items()}


def lenet_forward(x_nchw, kp):
    """x_nchw: (B, 1, 28, 28) float32; kp: output of prepare_kernel_params."""
    B, C, H, W = x_nchw.shape
    assert C == 1 and H == 28 and W == 28, "Lenet expects (B, 1, 28, 28)"
    x_flat = x_nchw.reshape(B, H * W)               # lane-dense (B, 784)
    n_cls = kp["wfc"].shape[1]
    vmem = pl.BlockSpec(memory_space=pltpu.MemorySpace.VMEM)
    return pl.pallas_call(
        _lenet_fused_kernel,
        out_shape=jax.ShapeDtypeStruct((B, n_cls), jnp.float32),
        in_specs=[vmem] * 13,
        out_specs=vmem,
        compiler_params=pltpu.CompilerParams(vmem_limit_bytes=48 * 1024 * 1024),
    )(x_flat,
      kp["wp1"], kp["b1l"], kp["g1l"], kp["t1l"], kp["p1"],
      kp["wp2"], kp["b2l"], kp["g2l"], kp["t2l"], kp["p2"],
      kp["wfc"], kp["bfc"])


# ------------------------------ reference & init --------------------------- #

def _reference_forward(x, params):
    """float64 numpy reference of the PyTorch forward (training-mode BN)."""
    def conv(x, w, b):
        B, Cin, H, W = x.shape
        Cout, _, K, _ = w.shape
        Ho, Wo = H - K + 1, W - K + 1
        out = np.zeros((B, Cout, Ho, Wo), np.float64)
        for ki in range(K):
            for kj in range(K):
                out += np.einsum('bchw,oc->bohw', x[:, :, ki:ki + Ho, kj:kj + Wo],
                                 w[:, :, ki, kj])
        return out + b[None, :, None, None]

    def pool(x):
        B, C, H, W = x.shape
        return x.reshape(B, C, H // 2, 2, W // 2, 2).max(axis=(3, 5))

    def bn(x, g, b):
        mean = x.mean(axis=(0, 2, 3), keepdims=True)
        var = x.var(axis=(0, 2, 3), keepdims=True)          # biased
        return ((x - mean) / np.sqrt(var + _EPS) * g[None, :, None, None]
                + b[None, :, None, None])

    p = {k: np.asarray(v, np.float64) for k, v in params.items()}
    h = np.asarray(x, np.float64)
    h = bn(np.maximum(pool(conv(h, p["c1_w"], p["c1_b"])), 0.0),
           p["bn1_g"], p["bn1_b"])
    h = bn(np.maximum(pool(conv(h, p["c3_w"], p["c3_b"])), 0.0),
           p["bn2_g"], p["bn2_b"])
    h = h.reshape(h.shape[0], -1)
    h = h @ p["c5_w"].T + p["c5_b"]
    h = h @ p["f6_w"].T + p["f6_b"]
    return h @ p["out7_w"].T + p["out7_b"]


def init_params(key, n1, n2, fc1, fc2):
    ks = jax.random.split(key, 10)

    def lin(k, shape, fan_in):
        return (jax.random.normal(k, shape, jnp.float32)
                / jnp.sqrt(fan_in)).astype(jnp.float32)

    return {
        "c1_w": lin(ks[0], (n1, 1, 5, 5), 1 * 25),
        "c1_b": lin(ks[1], (n1,), 1 * 25),
        "bn1_g": jnp.ones((n1,), jnp.float32) * 1.1,
        "bn1_b": jnp.full((n1,), 0.05, jnp.float32),
        "c3_w": lin(ks[2], (n2, n1, 5, 5), n1 * 25),
        "c3_b": lin(ks[3], (n2,), n1 * 25),
        "bn2_g": jnp.ones((n2,), jnp.float32) * 0.9,
        "bn2_b": jnp.full((n2,), -0.05, jnp.float32),
        "c5_w": lin(ks[4], (fc1, n2 * 4 * 4), n2 * 16),
        "c5_b": lin(ks[5], (fc1,), n2 * 16),
        "f6_w": lin(ks[6], (fc2, fc1), fc1),
        "f6_b": lin(ks[7], (fc2,), fc1),
        "out7_w": lin(ks[8], (10, fc2), fc2),
        "out7_b": lin(ks[9], (10,), fc2),
    }


if __name__ == "__main__":
    nodesNum1, nodesNum2, nodesFc1, nodesFc2 = 4, 8, 32, 16
    B = 2

    key = jax.random.PRNGKey(0)
    kx, kparam = jax.random.split(key)
    x = jax.random.normal(kx, (B, 1, 28, 28), jnp.float32)   # MNIST-shaped input
    params = init_params(kparam, nodesNum1, nodesNum2, nodesFc1, nodesFc2)
    kparams = prepare_kernel_params(params)                  # one-time packing

    fwd = jax.jit(lenet_forward)
    logits = fwd(x, kparams)
    jax.block_until_ready(logits)
    assert logits.shape == (B, 10) and logits.dtype == jnp.float32

    ref = _reference_forward(np.asarray(x), params)
    max_err = float(np.max(np.abs(np.asarray(logits) - ref)))
    assert np.isfinite(max_err) and max_err < 5e-2, f"max abs error {max_err}"
    print("KERNEL_OK")
</pallas_src>

<mosaic_0001>
module attributes {stable_mosaic.version = 11 : i64} {
  func.func @_lenet_fused_kernel(%arg0: memref<2x784xf32, #tpu.memory_space<vmem>>, %arg1: memref<4x784x576xf32, #tpu.memory_space<vmem>>, %arg2: memref<1x576xf32, #tpu.memory_space<vmem>>, %arg3: memref<1x576xf32, #tpu.memory_space<vmem>>, %arg4: memref<1x576xf32, #tpu.memory_space<vmem>>, %arg5: memref<576x576xf32, #tpu.memory_space<vmem>>, %arg6: memref<4x576x128xf32, #tpu.memory_space<vmem>>, %arg7: memref<1x128xf32, #tpu.memory_space<vmem>>, %arg8: memref<1x128xf32, #tpu.memory_space<vmem>>, %arg9: memref<1x128xf32, #tpu.memory_space<vmem>>, %arg10: memref<128x128xf32, #tpu.memory_space<vmem>>, %arg11: memref<128x10xf32, #tpu.memory_space<vmem>>, %arg12: memref<1x10xf32, #tpu.memory_space<vmem>>, %arg13: memref<2x10xf32, #tpu.memory_space<vmem>>) attributes {dimension_semantics = [], scalar_prefetch = 0 : i64, scratch_operands = 0 : i64, tpu.core_type = #tpu.core_type<tc>} {
    %c0 = arith.constant 0 : index
    %c0_0 = arith.constant 0 : index
    %0 = vector.load %arg0[%c0, %c0_0] : memref<2x784xf32, #tpu.memory_space<vmem>>, vector<2x784xf32>
    %c0_1 = arith.constant 0 : index
    %c0_2 = arith.constant 0 : index
    %1 = vector.load %arg2[%c0_1, %c0_2] : memref<1x576xf32, #tpu.memory_space<vmem>>, vector<1x576xf32>
    %c0_3 = arith.constant 0 : index
    %c0_4 = arith.constant 0 : index
    %2 = vector.load %arg3[%c0_3, %c0_4] : memref<1x576xf32, #tpu.memory_space<vmem>>, vector<1x576xf32>
    %c0_5 = arith.constant 0 : index
    %c0_6 = arith.constant 0 : index
    %3 = vector.load %arg4[%c0_5, %c0_6] : memref<1x576xf32, #tpu.memory_space<vmem>>, vector<1x576xf32>
    %c0_7 = arith.constant 0 : index
    %c0_8 = arith.constant 0 : index
    %c0_9 = arith.constant 0 : index
    %4 = vector.load %arg1[%c0_7, %c0_8, %c0_9] : memref<4x784x576xf32, #tpu.memory_space<vmem>>, vector<1x784x576xf32>
    %5 = vector.shape_cast %4 : vector<1x784x576xf32> to vector<784x576xf32>
    %cst = arith.constant dense<0.000000e+00> : vector<2x576xf32>
    %6 = tpu.matmul %0, %5, %cst {dimension_numbers = #tpu.dot_dimension_numbers<[1], [0], [0], [1], [0, 0, 1, 1], [], []>} : vector<2x784xf32>, vector<784x576xf32>, vector<2x576xf32> -> vector<2x576xf32>
    %c1 = arith.constant 1 : index
    %c0_10 = arith.constant 0 : index
    %c0_11 = arith.constant 0 : index
    %7 = vector.load %arg1[%c1, %c0_10, %c0_11] : memref<4x784x576xf32, #tpu.memory_space<vmem>>, vector<1x784x576xf32>
    %8 = vector.shape_cast %7 : vector<1x784x576xf32> to vector<784x576xf32>
    %cst_12 = arith.constant dense<0.000000e+00> : vector<2x576xf32>
    %9 = tpu.matmul %0, %8, %cst_12 {dimension_numbers = #tpu.dot_dimension_numbers<[1], [0], [0], [1], [0, 0, 1, 1], [], []>} : vector<2x784xf32>, vector<784x576xf32>, vector<2x576xf32> -> vector<2x576xf32>
    %10 = arith.maximumf %6, %9 : vector<2x576xf32>
    %c2 = arith.constant 2 : index
    %c0_13 = arith.constant 0 : index
    %c0_14 = arith.constant 0 : index
    %11 = vector.load %arg1[%c2, %c0_13, %c0_14] : memref<4x784x576xf32, #tpu.memory_space<vmem>>, vector<1x784x576xf32>
    %12 = vector.shape_cast %11 : vector<1x784x576xf32> to vector<784x576xf32>
    %cst_15 = arith.constant dense<0.000000e+00> : vector<2x576xf32>
    %13 = tpu.matmul %0, %12, %cst_15 {dimension_numbers = #tpu.dot_dimension_numbers<[1], [0], [0], [1], [0, 0, 1, 1], [], []>} : vector<2x784xf32>, vector<784x576xf32>, vector<2x576xf32> -> vector<2x576xf32>
    %c3 = arith.constant 3 : index
    %c0_16 = arith.constant 0 : index
    %c0_17 = arith.constant 0 : index
    %14 = vector.load %arg1[%c3, %c0_16, %c0_17] : memref<4x784x576xf32, #tpu.memory_space<vmem>>, vector<1x784x576xf32>
    %15 = vector.shape_cast %14 : vector<1x784x576xf32> to vector<784x576xf32>
    %cst_18 = arith.constant dense<0.000000e+00> : vector<2x576xf32>
    %16 = tpu.matmul %0, %15, %cst_18 {dimension_numbers = #tpu.dot_dimension_numbers<[1], [0], [0], [1], [0, 0, 1, 1], [], []>} : vector<2x784xf32>, vector<784x576xf32>, vector<2x576xf32> -> vector<2x576xf32>
    %17 = arith.maximumf %13, %16 : vector<2x576xf32>
    %18 = arith.maximumf %10, %17 : vector<2x576xf32>
    %19 = vector.broadcast %1 : vector<1x576xf32> to vector<2x576xf32>
    %20 = arith.addf %18, %19 : vector<2x576xf32>
    %cst_19 = arith.constant 0.000000e+00 : f32
    %21 = vector.broadcast %cst_19 : f32 to vector<2x576xf32>
    %22 = arith.maximumf %20, %21 : vector<2x576xf32>
    %cst_20 = arith.constant dense<0.000000e+00> : vector<576xf32>
    %23 = vector.multi_reduction <add>, %22, %cst_20 [0] : vector<2x576xf32> to vector<576xf32>
    %24 = vector.shape_cast %23 : vector<576xf32> to vector<1x576xf32>
    %c0_21 = arith.constant 0 : index
    %c0_22 = arith.constant 0 : index
    %25 = vector.load %arg5[%c0_21, %c0_22] : memref<576x576xf32, #tpu.memory_space<vmem>>, vector<576x576xf32>
    %cst_23 = arith.constant dense<0.000000e+00> : vector<1x576xf32>
    %26 = tpu.matmul %24, %25, %cst_23 {dimension_numbers = #tpu.dot_dimension_numbers<[1], [0], [0], [1], [0, 0, 1, 1], [], []>} : vector<1x576xf32>, vector<576x576xf32>, vector<1x576xf32> -> vector<1x576xf32>
    %cst_24 = arith.constant 5.000000e-01 : f32
    %27 = vector.broadcast %cst_24 : f32 to vector<1x576xf32>
    %28 = arith.mulf %26, %27 : vector<1x576xf32>
    %29 = vector.broadcast %28 : vector<1x576xf32> to vector<2x576xf32>
    %30 = arith.subf %22, %29 : vector<2x576xf32>
    %31 = arith.mulf %30, %30 : vector<2x576xf32>
    %cst_25 = arith.constant dense<0.000000e+00> : vector<576xf32>
    %32 = vector.multi_reduction <add>, %31, %cst_25 [0] : vector<2x576xf32> to vector<576xf32>
    %33 = vector.shape_cast %32 : vector<576xf32> to vector<1x576xf32>
    %c0_26 = arith.constant 0 : index
    %c0_27 = arith.constant 0 : index
    %34 = vector.load %arg5[%c0_26, %c0_27] : memref<576x576xf32, #tpu.memory_space<vmem>>, vector<576x576xf32>
    %cst_28 = arith.constant dense<0.000000e+00> : vector<1x576xf32>
    %35 = tpu.matmul %33, %34, %cst_28 {dimension_numbers = #tpu.dot_dimension_numbers<[1], [0], [0], [1], [0, 0, 1, 1], [], []>} : vector<1x576xf32>, vector<576x576xf32>, vector<1x576xf32> -> vector<1x576xf32>
    %cst_29 = arith.constant 5.000000e-01 : f32
    %36 = vector.broadcast %cst_29 : f32 to vector<1x576xf32>
    %37 = arith.mulf %35, %36 : vector<1x576xf32>
    %cst_30 = arith.constant 9.99999974E-6 : f32
    %38 = vector.broadcast %cst_30 : f32 to vector<1x576xf32>
    %39 = arith.addf %37, %38 : vector<1x576xf32>
    %40 = math.rsqrt %39 : vector<1x576xf32>
    %41 = vector.broadcast %40 : vector<1x576xf32> to vector<2x576xf32>
    %42 = arith.mulf %30, %41 : vector<2x576xf32>
    %43 = vector.broadcast %2 : vector<1x576xf32> to vector<2x576xf32>
    %44 = arith.mulf %42, %43 : vector<2x576xf32>
    %45 = vector.broadcast %3 : vector<1x576xf32> to vector<2x576xf32>
    %46 = arith.addf %44, %45 : vector<2x576xf32>
    %c0_31 = arith.constant 0 : index
    %c0_32 = arith.constant 0 : index
    %47 = vector.load %arg7[%c0_31, %c0_32] : memref<1x128xf32, #tpu.memory_space<vmem>>, vector<1x128xf32>
    %c0_33 = arith.constant 0 : index
    %c0_34 = arith.constant 0 : index
    %48 = vector.load %arg8[%c0_33, %c0_34] : memref<1x128xf32, #tpu.memory_space<vmem>>, vector<1x128xf32>
    %c0_35 = arith.constant 0 : index
    %c0_36 = arith.constant 0 : index
    %49 = vector.load %arg9[%c0_35, %c0_36] : memref<1x128xf32, #tpu.memory_space<vmem>>, vector<1x128xf32>
    %c0_37 = arith.constant 0 : index
    %c0_38 = arith.constant 0 : index
    %c0_39 = arith.constant 0 : index
    %50 = vector.load %arg6[%c0_37, %c0_38, %c0_39] : memref<4x576x128xf32, #tpu.memory_space<vmem>>, vector<1x576x128xf32>
    %51 = vector.shape_cast %50 : vector<1x576x128xf32> to vector<576x128xf32>
    %cst_40 = arith.constant dense<0.000000e+00> : vector<2x128xf32>
    %52 = tpu.matmul %46, %51, %cst_40 {dimension_numbers = #tpu.dot_dimension_numbers<[1], [0], [0], [1], [0, 0, 1, 1], [], []>} : vector<2x576xf32>, vector<576x128xf32>, vector<2x128xf32> -> vector<2x128xf32>
    %c1_41 = arith.constant 1 : index
    %c0_42 = arith.constant 0 : index
    %c0_43 = arith.constant 0 : index
    %53 = vector.load %arg6[%c1_41, %c0_42, %c0_43] : memref<4x576x128xf32, #tpu.memory_space<vmem>>, vector<1x576x128xf32>
    %54 = vector.shape_cast %53 : vector<1x576x128xf32> to vector<576x128xf32>
    %cst_44 = arith.constant dense<0.000000e+00> : vector<2x128xf32>
    %55 = tpu.matmul %46, %54, %cst_44 {dimension_numbers = #tpu.dot_dimension_numbers<[1], [0], [0], [1], [0, 0, 1, 1], [], []>} : vector<2x576xf32>, vector<576x128xf32>, vector<2x128xf32> -> vector<2x128xf32>
    %56 = arith.maximumf %52, %55 : vector<2x128xf32>
    %c2_45 = arith.constant 2 : index
    %c0_46 = arith.constant 0 : index
    %c0_47 = arith.constant 0 : index
    %57 = vector.load %arg6[%c2_45, %c0_46, %c0_47] : memref<4x576x128xf32, #tpu.memory_space<vmem>>, vector<1x576x128xf32>
    %58 = vector.shape_cast %57 : vector<1x576x128xf32> to vector<576x128xf32>
    %cst_48 = arith.constant dense<0.000000e+00> : vector<2x128xf32>
    %59 = tpu.matmul %46, %58, %cst_48 {dimension_numbers = #tpu.dot_dimension_numbers<[1], [0], [0], [1], [0, 0, 1, 1], [], []>} : vector<2x576xf32>, vector<576x128xf32>, vector<2x128xf32> -> vector<2x128xf32>
    %c3_49 = arith.constant 3 : index
    %c0_50 = arith.constant 0 : index
    %c0_51 = arith.constant 0 : index
    %60 = vector.load %arg6[%c3_49, %c0_50, %c0_51] : memref<4x576x128xf32, #tpu.memory_space<vmem>>, vector<1x576x128xf32>
    %61 = vector.shape_cast %60 : vector<1x576x128xf32> to vector<576x128xf32>
    %cst_52 = arith.constant dense<0.000000e+00> : vector<2x128xf32>
    %62 = tpu.matmul %46, %61, %cst_52 {dimension_numbers = #tpu.dot_dimension_numbers<[1], [0], [0], [1], [0, 0, 1, 1], [], []>} : vector<2x576xf32>, vector<576x128xf32>, vector<2x128xf32> -> vector<2x128xf32>
    %63 = arith.maximumf %59, %62 : vector<2x128xf32>
    %64 = arith.maximumf %56, %63 : vector<2x128xf32>
    %65 = vector.broadcast %47 : vector<1x128xf32> to vector<2x128xf32>
    %66 = arith.addf %64, %65 : vector<2x128xf32>
    %cst_53 = arith.constant 0.000000e+00 : f32
    %67 = vector.broadcast %cst_53 : f32 to vector<2x128xf32>
    %68 = arith.maximumf %66, %67 : vector<2x128xf32>
    %cst_54 = arith.constant dense<0.000000e+00> : vector<128xf32>
    %69 = vector.multi_reduction <add>, %68, %cst_54 [0] : vector<2x128xf32> to vector<128xf32>
    %70 = vector.shape_cast %69 : vector<128xf32> to vector<1x128xf32>
    %c0_55 = arith.constant 0 : index
    %c0_56 = arith.constant 0 : index
    %71 = vector.load %arg10[%c0_55, %c0_56] : memref<128x128xf32, #tpu.memory_space<vmem>>, vector<128x128xf32>
    %cst_57 = arith.constant dense<0.000000e+00> : vector<1x128xf32>
    %72 = tpu.matmul %70, %71, %cst_57 {dimension_numbers = #tpu.dot_dimension_numbers<[1], [0], [0], [1], [0, 0, 1, 1], [], []>} : vector<1x128xf32>, vector<128x128xf32>, vector<1x128xf32> -> vector<1x128xf32>
    %cst_58 = arith.constant 5.000000e-01 : f32
    %73 = vector.broadcast %cst_58 : f32 to vector<1x128xf32>
    %74 = arith.mulf %72, %73 : vector<1x128xf32>
    %75 = vector.broadcast %74 : vector<1x128xf32> to vector<2x128xf32>
    %76 = arith.subf %68, %75 : vector<2x128xf32>
    %77 = arith.mulf %76, %76 : vector<2x128xf32>
    %cst_59 = arith.constant dense<0.000000e+00> : vector<128xf32>
    %78 = vector.multi_reduction <add>, %77, %cst_59 [0] : vector<2x128xf32> to vector<128xf32>
    %79 = vector.shape_cast %78 : vector<128xf32> to vector<1x128xf32>
    %c0_60 = arith.constant 0 : index
    %c0_61 = arith.constant 0 : index
    %80 = vector.load %arg10[%c0_60, %c0_61] : memref<128x128xf32, #tpu.memory_space<vmem>>, vector<128x128xf32>
    %cst_62 = arith.constant dense<0.000000e+00> : vector<1x128xf32>
    %81 = tpu.matmul %79, %80, %cst_62 {dimension_numbers = #tpu.dot_dimension_numbers<[1], [0], [0], [1], [0, 0, 1, 1], [], []>} : vector<1x128xf32>, vector<128x128xf32>, vector<1x128xf32> -> vector<1x128xf32>
    %cst_63 = arith.constant 5.000000e-01 : f32
    %82 = vector.broadcast %cst_63 : f32 to vector<1x128xf32>
    %83 = arith.mulf %81, %82 : vector<1x128xf32>
    %cst_64 = arith.constant 9.99999974E-6 : f32
    %84 = vector.broadcast %cst_64 : f32 to vector<1x128xf32>
    %85 = arith.addf %83, %84 : vector<1x128xf32>
    %86 = math.rsqrt %85 : vector<1x128xf32>
    %87 = vector.broadcast %86 : vector<1x128xf32> to vector<2x128xf32>
    %88 = arith.mulf %76, %87 : vector<2x128xf32>
    %89 = vector.broadcast %48 : vector<1x128xf32> to vector<2x128xf32>
    %90 = arith.mulf %88, %89 : vector<2x128xf32>
    %91 = vector.broadcast %49 : vector<1x128xf32> to vector<2x128xf32>
    %92 = arith.addf %90, %91 : vector<2x128xf32>
    %c0_65 = arith.constant 0 : index
    %c0_66 = arith.constant 0 : index
    %93 = vector.load %arg11[%c0_65, %c0_66] : memref<128x10xf32, #tpu.memory_space<vmem>>, vector<128x10xf32>
    %cst_67 = arith.constant dense<0.000000e+00> : vector<2x10xf32>
    %94 = tpu.matmul %92, %93, %cst_67 {dimension_numbers = #tpu.dot_dimension_numbers<[1], [0], [0], [1], [0, 0, 1, 1], [], []>} : vector<2x128xf32>, vector<128x10xf32>, vector<2x10xf32> -> vector<2x10xf32>
    %c0_68 = arith.constant 0 : index
    %c0_69 = arith.constant 0 : index
    %95 = vector.load %arg12[%c0_68, %c0_69] : memref<1x10xf32, #tpu.memory_space<vmem>>, vector<1x10xf32>
    %96 = vector.broadcast %95 : vector<1x10xf32> to vector<2x10xf32>
    %97 = arith.addf %94, %96 : vector<2x10xf32>
    %c0_70 = arith.constant 0 : index
    %c0_71 = arith.constant 0 : index
    %98 = vector.load %arg13[%c0_70, %c0_71] : memref<2x10xf32, #tpu.memory_space<vmem>>, vector<2x10xf32>
    tpu.vector_store %arg13[%c0_70, %c0_71], %97 {strides = array<i32>} : memref<2x10xf32, #tpu.memory_space<vmem>>, vector<2x10xf32>,
    return
  }
}

</mosaic_0001>

<bundles_post_ra>
// kernel: lenet_forward.1
= control target key start
LH: loop header
LB: loop body
LE: loop exit
PB: predicated region body
PF: predicated region fallthrough
CT: control target
= control target key end

     0   :  { %18 = vsyncpa [#allocation3], 0  ;;  %s15178_s0 = inlined_call_operand.vmem [shape: f32[2,784], index: 0, kind: input, shape index: {}]   ;;  %s15179_s1 = inlined_call_operand.hbm [shape: f32[4,784,576], index: 1, kind: input, shape index: {}]   ;;  %s15180_s2 = inlined_call_operand.hbm [shape: f32[1,576], index: 2, kind: input, shape index: {}]   ;;  %s15181_s3 = inlined_call_operand.hbm [shape: f32[1,576], index: 3, kind: input, shape index: {}]   ;;  %s15182_s4 = inlined_call_operand.hbm [shape: f32[1,576], index: 4, kind: input, shape index: {}]   ;;  %s15183_s5 = inlined_call_operand.hbm [shape: f32[576,576], index: 5, kind: input, shape index: {}]   ;;  %s15184_s6 = inlined_call_operand.hbm [shape: f32[4,576,128], index: 6, kind: input, shape index: {}]   ;;  %s15185_s7 = inlined_call_operand.hbm [shape: f32[1,128], index: 7, kind: input, shape index: {}]   ;;  %s15186_s8 = inlined_call_operand.hbm [shape: f32[1,128], index: 8, kind: input, shape index: {}]   ;;  %s15187_s9 = inlined_call_operand.hbm [shape: f32[1,128], index: 9, kind: input, shape index: {}]   ;;  %s15188_s10 = inlined_call_operand.hbm [shape: f32[128,128], index: 10, kind: input, shape index: {}]   ;;  %s15189_s11 = inlined_call_operand.vmem [shape: f32[128,10], index: 11, kind: input, shape index: {}]   ;;  %s15190_s12 = inlined_call_operand.hbm [shape: f32[1,10], index: 12, kind: input, shape index: {}]   ;;  %s15191_s13 = inlined_call_operand.hbm [shape: f32[2,10], index: 13, kind: output, shape index: {}]  }
   0x1   :  { %19 = vsyncpa [#allocation6], 0 }
   0x2   :  { %20 = vsyncpa [#allocation9], 0 }
   0x3   :  { %21 = vsyncpa [#allocation12], 0 }
   0x4   :  { %22 = vsyncpa [#allocation15], 0 }
   0x5   :  { %23 = vsyncpa [#allocation18], 0 }
   0x6   :  { %24 = vsyncpa [#allocation4], 0  ;;  %s13619_s25 = smov [#allocation5]   ;;  %s13620_s27 = smov [#allocation8]  }
   0x7   :  { %s45_s26 = sshll.u32 %s13619_s25, 4  ;;  %s65_s28 = sshll.u32 %s13620_s27, 4  ;;  %s46_s26 = int_to_ptr.vmem [resolvable:$true] %s45_s26  ;;  %s66_s28 = int_to_ptr.vmem [resolvable:$true] %s65_s28 }
   0x8   :  { %s13341_s14 = scalar_lea.hbm %s15180_s2, 80 }
   0x9   :  { %p13342_p0 = scmp.ne.s32.totalorder %s15180_s2, %s13341_s14  ;;  %p13345_p1 = scmp.lt.u32.totalorder %s13341_s14, %s15180_s2 }
   0xb   :  { %p13347_p2 = pnand %p13345_p1, %p13342_p0 }
   0xd   :  { %13350 = shalt.err (!%p13347_p2)
}
   0xe   :  { %s13351_s19 = scalar_lea.vmem %s46_s26, 80  ;;  %s13355_s20 = scalar_lea.vmem %s46_s26, 96 }
   0xf   :  { %p13352_p3 = scmp.ne.s32.totalorder %s46_s26, %s13351_s19  ;;  %p13356_p4 = scmp.lt.s32.totalorder %s46_s26, %s46_s26 }
  0x10   :  { %p13357_p5 = scmp.lt.s32.totalorder %s13355_s20, %s13351_s19 }
  0x12   :  { %p13358_p6 = por %p13357_p5, %p13356_p4 }
  0x14   :  { %p13359_p7 = pnand %p13358_p6, %p13352_p3 }
  0x16   :  { %13362 = shalt.err (!%p13359_p7)
}
  0x17   :  { %48 = dma.hbm_to_vmem [thread:$0]  %s15180_s2, 80, %s46_s26, [#allocation6]  }
  0x18   :  { %s13363_s25 = scalar_lea.hbm %s15182_s4, 80 }
  0x19   :  { %p13364_p8 = scmp.ne.s32.totalorder %s15182_s4, %s13363_s25  ;;  %p13367_p9 = scmp.lt.u32.totalorder %s13363_s25, %s15182_s4 }
  0x1b   :  { %p13369_p10 = pnand %p13367_p9, %p13364_p8 }
  0x1d   :  { %13372 = shalt.err (!%p13369_p10)
}
  0x1e   :  { %s13373_s15 = scalar_lea.vmem %s66_s28, 80  ;;  %s13377_s16 = scalar_lea.vmem %s66_s28, 96 }
  0x1f   :  { %p13374_p11 = scmp.ne.s32.totalorder %s66_s28, %s13373_s15  ;;  %p13378_p12 = scmp.lt.s32.totalorder %s66_s28, %s66_s28 }
  0x20   :  { %p13379_p13 = scmp.lt.s32.totalorder %s13377_s16, %s13373_s15 }
  0x22   :  { %p13380_p0 = por %p13379_p13, %p13378_p12 }
  0x24   :  { %p13381_p1 = pnand %p13380_p0, %p13374_p11 }
  0x26   :  { %13384 = shalt.err (!%p13381_p1)
}
  0x27   :  { %68 = dma.hbm_to_vmem [thread:$0]  %s15182_s4, 80, %s66_s28, [#allocation9]  }
  0x28   :  { %s13621_s17 = smov [#allocation11]   ;;  %s13385_s21 = scalar_lea.hbm %s15184_s6, 36864 }
  0x29   :  { %s86_s18 = sshll.u32 %s13621_s17, 4  ;;  %p13386_p2 = scmp.ne.s32.totalorder %s15184_s6, %s13385_s21  ;;  %s87_s18 = int_to_ptr.vmem [resolvable:$true] %s86_s18 }
  0x2a   :  { %p13389_p3 = scmp.lt.u32.totalorder %s13385_s21, %s15184_s6 }
  0x2c   :  { %p13391_p4 = pnand %p13389_p3, %p13386_p2 }
  0x2e   :  { %13394 = shalt.err (!%p13391_p4)
}
  0x2f   :  { %s13395_s27 = scalar_lea.vmem %s87_s18, 36864  ;;  %p13400_p6 = scmp.lt.s32.totalorder %s87_s18, %s87_s18 }
  0x30   :  { %p13396_p5 = scmp.ne.s32.totalorder %s87_s18, %s13395_s27  ;;  %p13401_p7 = scmp.lt.s32.totalorder %s13395_s27, %s13395_s27 }
  0x32   :  { %p13402_p8 = por %p13401_p7, %p13400_p6 }
  0x34   :  { %p13403_p9 = pnand %p13402_p8, %p13396_p5 }
  0x36   :  { %13406 = shalt.err (!%p13403_p9)
}
  0x37   :  { %s13622_s4 = smov 128   ;;  %s13623_s28 = smov 8  }
  0x38   :  { %92 = dma.hbm_to_vmem [thread:$0]  %s15184_s6, 36864, %s87_s18, [#allocation12], %s13622_s4, %s13622_s4, %s13623_s28  }
  0x39   :  { %s13624_s14 = smov [#allocation14]   ;;  %s13625_s16 = smov [#allocation17]  }
  0x3a   :  { %s109_s15 = sshll.u32 %s13624_s14, 4  ;;  %s128_s2 = sshll.u32 %s13625_s16, 4  ;;  %s110_s15 = int_to_ptr.vmem [resolvable:$true] %s109_s15  ;;  %s129_s2 = int_to_ptr.vmem [resolvable:$true] %s128_s2 }
  0x3b   :  { %s13407_s19 = scalar_lea.hbm %s15186_s8, 16 }
  0x3c   :  { %p13408_p10 = scmp.ne.s32.totalorder %s15186_s8, %s13407_s19  ;;  %p13411_p11 = scmp.lt.u32.totalorder %s13407_s19, %s15186_s8 }
  0x3e   :  { %p13413_p12 = pnand %p13411_p11, %p13408_p10 }
  0x40   :  { %13416 = shalt.err (!%p13413_p12)
}
  0x41   :  { %s13417_s6 = scalar_lea.vmem %s110_s15, 16  ;;  %s13421_s18 = scalar_lea.vmem %s110_s15, 32 }
  0x42   :  { %p13418_p13 = scmp.ne.s32.totalorder %s110_s15, %s13417_s6  ;;  %p13422_p0 = scmp.lt.s32.totalorder %s110_s15, %s110_s15 }
  0x43   :  { %p13423_p1 = scmp.lt.s32.totalorder %s13421_s18, %s13417_s6 }
  0x45   :  { %p13424_p2 = por %p13423_p1, %p13422_p0 }
  0x47   :  { %p13425_p3 = pnand %p13424_p2, %p13418_p13 }
  0x49   :  { %13428 = shalt.err (!%p13425_p3)
}
  0x4a   :  { %112 = dma.hbm_to_vmem [thread:$0]  %s15186_s8, 16, %s110_s15, [#allocation15]  }
  0x4b   :  { %s13429_s30 = scalar_lea.hbm %s15188_s10, 2048 }
  0x4c   :  { %p13430_p4 = scmp.ne.s32.totalorder %s15188_s10, %s13429_s30  ;;  %p13433_p5 = scmp.lt.u32.totalorder %s13429_s30, %s15188_s10 }
  0x4e   :  { %p13435_p6 = pnand %p13433_p5, %p13430_p4 }
  0x50   :  { %13438 = shalt.err (!%p13435_p6)
}
  0x51   :  { %s13439_s19 = scalar_lea.vmem %s129_s2, 2048  ;;  %p13444_p8 = scmp.lt.s32.totalorder %s129_s2, %s129_s2 }
  0x52   :  { %p13440_p7 = scmp.ne.s32.totalorder %s129_s2, %s13439_s19  ;;  %p13445_p9 = scmp.lt.s32.totalorder %s13439_s19, %s13439_s19 }
  0x54   :  { %p13446_p10 = por %p13445_p9, %p13444_p8 }
  0x56   :  { %p13447_p11 = pnand %p13446_p10, %p13440_p7 }
  0x58   :  { %13450 = shalt.err (!%p13447_p11)
}
  0x59   :  { %134 = dma.hbm_to_vmem [thread:$0]  %s15188_s10, 2048, %s129_s2, [#allocation18], %s13622_s4, %s13622_s4, %s13623_s28  }
  0x5a   :  { %s13626_s20 = smov [#allocation2]   ;;  %s13451_s6 = scalar_lea.hbm %s15179_s1, 250880 }
  0x5b   :  { %s32_s21 = sshll.u32 %s13626_s20, 4  ;;  %p13452_p12 = scmp.ne.s32.totalorder %s15179_s1, %s13451_s6  ;;  %s33_s21 = int_to_ptr.vmem [resolvable:$true] %s32_s21 }
  0x5c   :  { %p13455_p13 = scmp.lt.u32.totalorder %s13451_s6, %s15179_s1 }
  0x5e   :  { %p13457_p0 = pnand %p13455_p13, %p13452_p12 }
  0x60   :  { %13460 = shalt.err (!%p13457_p0)
}
  0x61   :  { %s13461_s29 = scalar_lea.vmem %s33_s21, 250880  ;;  %p13466_p2 = scmp.lt.s32.totalorder %s33_s21, %s33_s21 }
  0x62   :  { %p13462_p1 = scmp.ne.s32.totalorder %s33_s21, %s13461_s29  ;;  %p13467_p3 = scmp.lt.s32.totalorder %s13461_s29, %s13461_s29 }
  0x64   :  { %p13468_p4 = por %p13467_p3, %p13466_p2 }
  0x66   :  { %p13469_p5 = pnand %p13468_p4, %p13462_p1 }
  0x68   :  { %13472 = shalt.err (!%p13469_p5)
}
  0x69   :  { %s13627_s10 = smov 640   ;;  %s13628_s4 = smov 40  }
  0x6a   :  { %38 = dma.hbm_to_vmem [thread:$0]  %s15179_s1, 250880, %s33_s21, [#allocation3], %s13627_s10, %s13627_s10, %s13628_s4  }
  0x6b   :  { %s13629_s30 = smov [#allocation7]   ;;  %s13630_s16 = smov [#allocation10]  }
  0x6c   :  { %s55_s14 = sshll.u32 %s13629_s30, 4  ;;  %s74_s26 = sshll.u32 %s13630_s16, 4  ;;  %s56_s14 = int_to_ptr.vmem [resolvable:$true] %s55_s14  ;;  %s13790_s26 = int_to_ptr.vmem [resolvable:$true] %s74_s26 }
  0x6d   :  { %s13473_s8 = scalar_lea.hbm %s15181_s3, 80 }
  0x6e   :  { %p13474_p6 = scmp.ne.s32.totalorder %s15181_s3, %s13473_s8  ;;  %p13477_p7 = scmp.lt.u32.totalorder %s13473_s8, %s15181_s3 }
  0x70   :  { %p13479_p8 = pnand %p13477_p7, %p13474_p6 }
  0x72   :  { %13482 = shalt.err (!%p13479_p8)
}
  0x73   :  { %s13483_s1 = scalar_lea.vmem %s56_s14, 80  ;;  %s13487_s21 = scalar_lea.vmem %s56_s14, 96 }
  0x74   :  { %p13484_p9 = scmp.ne.s32.totalorder %s56_s14, %s13483_s1  ;;  %p13488_p10 = scmp.lt.s32.totalorder %s56_s14, %s56_s14 }
  0x75   :  { %p13489_p11 = scmp.lt.s32.totalorder %s13487_s21, %s13483_s1 }
  0x77   :  { %p13490_p12 = por %p13489_p11, %p13488_p10 }
  0x79   :  { %p13491_p13 = pnand %p13490_p12, %p13484_p9 }
  0x7b   :  { %13494 = shalt.err (!%p13491_p13)
}
  0x7c   :  { %58 = dma.hbm_to_vmem [thread:$0]  %s15181_s3, 80, %s56_s14, [#allocation6]  }
  0x7d   :  { %s13495_s27 = scalar_lea.hbm %s15183_s5, 46080 }
  0x7e   :  { %p13496_p0 = scmp.ne.s32.totalorder %s15183_s5, %s13495_s27  ;;  %p13499_p1 = scmp.lt.u32.totalorder %s13495_s27, %s15183_s5 }
  0x80   :  { %p13501_p2 = pnand %p13499_p1, %p13496_p0 }
  0x82   :  { %13504 = shalt.err (!%p13501_p2)
}
  0x83   :  { %s13505_s16 = scalar_lea.vmem %s13790_s26, 46080  ;;  %p13510_p4 = scmp.lt.s32.totalorder %s13790_s26, %s13790_s26 }
  0x84   :  { %p13506_p3 = scmp.ne.s32.totalorder %s13790_s26, %s13505_s16  ;;  %p13511_p5 = scmp.lt.s32.totalorder %s13505_s16, %s13505_s16 }
  0x86   :  { %p13512_p6 = por %p13511_p5, %p13510_p4 }
  0x88   :  { %p13513_p7 = pnand %p13512_p6, %p13506_p3 }
  0x8a   :  { %13516 = shalt.err (!%p13513_p7)
}
  0x8b   :  { %80 = dma.hbm_to_vmem [thread:$0]  %s15183_s5, 46080, %s13790_s26, [#allocation9], %s13627_s10, %s13627_s10, %s13628_s4  }
  0x8c   :  { %s13631_s17 = smov [#allocation13]   ;;  %s13632_s8 = smov [#allocation16]  }
  0x8d   :  { %s99_s19 = sshll.u32 %s13631_s17, 4  ;;  %s119_s15 = sshll.u32 %s13632_s8, 4  ;;  %s100_s19 = int_to_ptr.vmem [resolvable:$true] %s99_s19  ;;  %s120_s15 = int_to_ptr.vmem [resolvable:$true] %s119_s15 }
  0x8e   :  { %s13517_s23 = scalar_lea.hbm %s15185_s7, 16 }
  0x8f   :  { %p13518_p8 = scmp.ne.s32.totalorder %s15185_s7, %s13517_s23  ;;  %p13521_p9 = scmp.lt.u32.totalorder %s13517_s23, %s15185_s7 }
  0x91   :  { %p13523_p10 = pnand %p13521_p9, %p13518_p8 }
  0x93   :  { %13526 = shalt.err (!%p13523_p10)
}
  0x94   :  { %s13527_s5 = scalar_lea.vmem %s100_s19, 16  ;;  %s13531_s10 = scalar_lea.vmem %s100_s19, 32 }
  0x95   :  { %p13528_p11 = scmp.ne.s32.totalorder %s100_s19, %s13527_s5  ;;  %p13532_p12 = scmp.lt.s32.totalorder %s100_s19, %s100_s19 }
  0x96   :  { %p13533_p13 = scmp.lt.s32.totalorder %s13531_s10, %s13527_s5 }
  0x98   :  { %p13534_p0 = por %p13533_p13, %p13532_p12 }
  0x9a   :  { %p13535_p1 = pnand %p13534_p0, %p13528_p11 }
  0x9c   :  { %13538 = shalt.err (!%p13535_p1)
}
  0x9d   :  { %102 = dma.hbm_to_vmem [thread:$0]  %s15185_s7, 16, %s100_s19, [#allocation12]  }
  0x9e   :  { %s13539_s27 = scalar_lea.hbm %s15187_s9, 16 }
  0x9f   :  { %p13540_p2 = scmp.ne.s32.totalorder %s15187_s9, %s13539_s27  ;;  %p13543_p3 = scmp.lt.u32.totalorder %s13539_s27, %s15187_s9 }
  0xa1   :  { %p13545_p4 = pnand %p13543_p3, %p13540_p2 }
  0xa3   :  { %13548 = shalt.err (!%p13545_p4)
}
  0xa4   :  { %s13549_s16 = scalar_lea.vmem %s120_s15, 16  ;;  %s13553_s3 = scalar_lea.vmem %s120_s15, 32 }
  0xa5   :  { %p13550_p5 = scmp.ne.s32.totalorder %s120_s15, %s13549_s16  ;;  %p13554_p6 = scmp.lt.s32.totalorder %s120_s15, %s120_s15 }
  0xa6   :  { %p13555_p7 = scmp.lt.s32.totalorder %s13553_s3, %s13549_s16 }
  0xa8   :  { %p13556_p8 = por %p13555_p7, %p13554_p6 }
  0xaa   :  { %p13557_p9 = pnand %p13556_p8, %p13550_p5 }
  0xac   :  { %13560 = shalt.err (!%p13557_p9)
}
  0xad   :  { %122 = dma.hbm_to_vmem [thread:$0]  %s15187_s9, 16, %s120_s15, [#allocation15]  }
  0xae   :  { %s13633_s17 = smov [#allocation19]   ;;  %s13561_s22 = scalar_lea.hbm %s15190_s12, 16 }
  0xaf   :  { %s143_s19 = sshll.u32 %s13633_s17, 4  ;;  %p13562_p10 = scmp.ne.s32.totalorder %s15190_s12, %s13561_s22  ;;  %s144_s19 = int_to_ptr.vmem [resolvable:$true] %s143_s19 }
  0xb0   :  { %p13565_p11 = scmp.lt.u32.totalorder %s13561_s22, %s15190_s12 }
  0xb2   :  { %p13567_p12 = pnand %p13565_p11, %p13562_p10 }
  0xb4   :  { %13570 = shalt.err (!%p13567_p12)
}
  0xb5   :  { %s13571_s18 = scalar_lea.vmem %s144_s19, 16  ;;  %s13575_s9 = scalar_lea.vmem %s144_s19, 32 }
  0xb6   :  { %p13572_p13 = scmp.ne.s32.totalorder %s144_s19, %s13571_s18  ;;  %p13576_p0 = scmp.lt.s32.totalorder %s144_s19, %s144_s19 }
  0xb7   :  { %p13577_p1 = scmp.lt.s32.totalorder %s13575_s9, %s13571_s18 }
  0xb9   :  { %p13578_p2 = por %p13577_p1, %p13576_p0 }
  0xbb   :  { %p13579_p3 = pnand %p13578_p2, %p13572_p13 }
  0xbd   :  { %13582 = shalt.err (!%p13579_p3)
}
  0xbe   :  { %146 = dma.hbm_to_vmem [thread:$0]  %s15190_s12, 16, %s144_s19, [#allocation18]  }
  0xbf   :  { %13605 = dma.done.wait [#allocation3], 250880  }
  0xc0   :  { %13606 = vsyncadd [#allocation3], 4294716416 }
  0xc1   :  { %13607 = dma.done.wait [#allocation6], 160  }
  0xc2   :  { %13608 = vsyncadd [#allocation6], 4294967136 }
  0xc3   :  { %13609 = dma.done.wait [#allocation9], 46160  }
  0xc4   :  { %13610 = vsyncadd [#allocation9], 4294921136 }
  0xc5   :  { %13611 = dma.done.wait [#allocation12], 36880  }
  0xc6   :  { %13612 = vsyncadd [#allocation12], 4294930416 }
  0xc7   :  { %13613 = dma.done.wait [#allocation15], 32  }
  0xc8   :  { %13614 = vsyncadd [#allocation15], 4294967264 }
  0xc9   :  { %13615 = dma.done.wait [#allocation18], 2064  }
  0xca   :  { %13616 = vsyncadd [#allocation18], 4294965232  ;;  %v186_v0 = vld [vmem:[#allocation2 + $0x8] sm:$0xff]  ;;  %v191_v1 = vld [vmem:[#allocation2 + $0x30] sm:$0xff]  ;;  %vm716_vm0 = vcmask 130048   ;;  %vm13637_vm1 = vmmov 0  }
  0xcb   :  { %v188_v2 = vld [vmem:[#allocation2 + $0x18] sm:$0xff]  ;;  %v10175_v3 = vpack.c.bf16 %v191_v1, %v186_v0  ;;  %v193_v4 = vld [vmem:[#allocation2 + $0x40] sm:$0xff]  ;;  %v190_v6 = vld [vmem:[#allocation2 + $0x28] sm:$0xff]  ;;  %vm5635_vm2 = vcmask 1041408   ;;  %vm5664_vm3 = vcmask 517120   ;;  %vm6032_vm4 = vcmask 523264  }
  0xcc   :  { %v185_v5 = vld [vmem:[#allocation2] sm:$0xff]  ;;  %v10371_v7 = vpack.c.bf16 %v193_v4, %v188_v2  ;;  %v187_v9 = vld [vmem:[#allocation2 + $0x10] sm:$0xff]  ;;  %v192_v10 = vld [vmem:[#allocation2 + $0x38] sm:$0xff]  ;;  %vm8923_vm5 = vcmask 74752  }
  0xcd   :  { %v10177_v8 = vpack.c.bf16 %v190_v6, %v185_v5  ;;  %v196_v11 = vld [vmem:[#allocation2 + $0x58] sm:$0xff]  ;;  %10176 = vmatprep.subr.bf16.mxu0 %v10175_v3  ;;  %v10373_v12 = vpack.c.bf16 %v192_v10, %v187_v9  ;;  %v201_v13 = vld [vmem:[#allocation2 + $0x80] sm:$0xff]  ;;  %v198_v14 = vld [vmem:[#allocation2 + $0x68] sm:$0xff] }
  0xce   :  { %v203_v15 = vld [vmem:[#allocation2 + $0x90] sm:$0xff]  ;;  %10372 = vmatprep.subr.bf16.mxu1 %v10371_v7  ;;  %v10179_v16 = vpack.c.bf16 %v201_v13, %v196_v11  ;;  %v200_v19 = vld [vmem:[#allocation2 + $0x78] sm:$0xff]  ;;  %v197_v20 = vld [vmem:[#allocation2 + $0x60] sm:$0xff] }
  0xcf   :  { %10178 = vmatpush1.bf16.msra.mxu0 %v10177_v8  ;;  %v10375_v17 = vpack.c.bf16 %v203_v15, %v198_v14  ;;  %v195_v18 = vld [vmem:[#allocation2 + $0x50] sm:$0xff]  ;;  %10374 = vmatpush1.bf16.msra.mxu1 %v10373_v12  ;;  %v202_v22 = vld [vmem:[#allocation2 + $0x88] sm:$0xff]  ;;  %v208_v27 = vld [vmem:[#allocation2 + $0xb8] sm:$0xff] }
  0xd0   :  { %v10181_v21 = vpack.c.bf16 %v200_v19, %v195_v18  ;;  %v206_v23 = vld [vmem:[#allocation2 + $0xa8] sm:$0xff]  ;;  %v211_v24 = vld [vmem:[#allocation2 + $0xd0] sm:$0xff]  ;;  %10180 = vmatprep.subr.bf16.mxu0 %v10179_v16  ;;  %v10377_v25 = vpack.c.bf16 %v202_v22, %v197_v20  ;;  %v213_v28 = vld [vmem:[#allocation2 + $0xe0] sm:$0xff] }
  0xd1   :  { %10376 = vmatprep.subr.bf16.mxu1 %v10375_v17  ;;  %v10183_v26 = vpack.c.bf16 %v211_v24, %v206_v23  ;;  %v205_v29 = vld [vmem:[#allocation2 + $0xa0] sm:$0xff]  ;;  %v10379_v30 = vpack.c.bf16 %v213_v28, %v208_v27  ;;  %v210_v31 = vld [vmem:[#allocation2 + $0xc8] sm:$0xff]  ;;  %v207_v32 = vld [vmem:[#allocation2 + $0xb0] sm:$0xff] }
  0xd2   :  { %v212_v33 = vld [vmem:[#allocation2 + $0xd8] sm:$0xff]  ;;  %v10185_v34 = vpack.c.bf16 %v210_v31, %v205_v29  ;;  %v221_v36 = vld [vmem:[#allocation2 + $0x120] sm:$0xff]  ;;  %v218_v37 = vld [vmem:[#allocation2 + $0x108] sm:$0xff] }
  0xd3   :  { %10182 = vmatpush1.bf16.msra.mxu0 %v10181_v21  ;;  %v216_v35 = vld [vmem:[#allocation2 + $0xf8] sm:$0xff]  ;;  %10378 = vmatpush1.bf16.msra.mxu1 %v10377_v25  ;;  %v10381_v38 = vpack.c.bf16 %v212_v33, %v207_v32  ;;  %v223_v40 = vld [vmem:[#allocation2 + $0x130] sm:$0xff]  ;;  %v217_v44 = vld [vmem:[#allocation2 + $0x100] sm:$0xff] }
  0xd4   :  { %10184 = vmatprep.subr.bf16.mxu0 %v10183_v26  ;;  %v10187_v39 = vpack.c.bf16 %v221_v36, %v216_v35  ;;  %v215_v41 = vld [vmem:[#allocation2 + $0xf0] sm:$0xff]  ;;  %v220_v42 = vld [vmem:[#allocation2 + $0x118] sm:$0xff]  ;;  %10380 = vmatprep.subr.bf16.mxu1 %v10379_v30  ;;  %v10383_v43 = vpack.c.bf16 %v223_v40, %v218_v37  ;;  %v222_v45 = vld [vmem:[#allocation2 + $0x128] sm:$0xff] }
  0xd5   :  { %v226_v46 = vld [vmem:[#allocation2 + $0x148] sm:$0xff]  ;;  %v231_v47 = vld [vmem:[#allocation2 + $0x170] sm:$0xff]  ;;  %v228_v48 = vld [vmem:[#allocation2 + $0x158] sm:$0xff]  ;;  %v10189_v50 = vpack.c.bf16 %v220_v42, %v215_v41  ;;  %v10385_v51 = vpack.c.bf16 %v222_v45, %v217_v44 }
  0xd6   :  { %v233_v49 = vld [vmem:[#allocation2 + $0x180] sm:$0xff]  ;;  %v10191_v52 = vpack.c.bf16 %v231_v47, %v226_v46  ;;  %v230_v54 = vld [vmem:[#allocation2 + $0x168] sm:$0xff]  ;;  %v227_v55 = vld [vmem:[#allocation2 + $0x150] sm:$0xff]  ;;  %v13634_v46 = vmov 1983009808  }
  0xd7   :  { %10186 = vmatpush1.bf16.msra.mxu0 %v10185_v34  ;;  %10382 = vmatpush1.bf16.msra.mxu1 %v10381_v38  ;;  %v225_v53 = vld [vmem:[#allocation2 + $0x140] sm:$0xff]  ;;  %v10387_v56 = vpack.c.bf16 %v233_v49, %v228_v48  ;;  %v232_v57 = vld [vmem:[#allocation2 + $0x178] sm:$0xff]  ;;  %v238_v60 = vld [vmem:[#allocation2 + $0x1a8] sm:$0xff]  ;;  %v679_v47 = vunpack.c.l.s4 %v13634_v46  ;;  %v681_v48 = vlaneseq }
  0xd8   :  { %10188 = vmatprep.subr.bf16.mxu0 %v10187_v39  ;;  %10384 = vmatprep.subr.bf16.mxu1 %v10383_v43  ;;  %v236_v58 = vld [vmem:[#allocation2 + $0x198] sm:$0xff]  ;;  %v241_v59 = vld [vmem:[#allocation2 + $0x1c0] sm:$0xff]  ;;  %v243_v61 = vld [vmem:[#allocation2 + $0x1d0] sm:$0xff]  ;;  %v10193_v62 = vpack.c.bf16 %v230_v54, %v225_v53  ;;  %v10389_v63 = vpack.c.bf16 %v232_v57, %v227_v55 }
  0xd9   :  { %v10195_v0 = vpack.c.bf16 %v241_v59, %v236_v58  ;;  %v235_v1 = vld [vmem:[#allocation2 + $0x190] sm:$0xff]  ;;  %v240_v2 = vld [vmem:[#allocation2 + $0x1b8] sm:$0xff]  ;;  %v237_v3 = vld [vmem:[#allocation2 + $0x1a0] sm:$0xff]  ;;  %v10391_v4 = vpack.c.bf16 %v243_v61, %v238_v60  ;;  %v680_v61 = vunpack.c.0.s8 %v679_v47 }
  0xda   :  { %v242_v5 = vld [vmem:[#allocation2 + $0x1c8] sm:$0xff]  ;;  %v251_v7 = vld [vmem:[#allocation2 + $0x210] sm:$0xff]  ;;  %v248_v8 = vld [vmem:[#allocation2 + $0x1f8] sm:$0xff]  ;;  %v10197_v10 = vpack.c.bf16 %v240_v2, %v235_v1 }
  0xdb   :  { %10190 = vmatpush1.bf16.msra.mxu0 %v10189_v50  ;;  %10386 = vmatpush1.bf16.msra.mxu1 %v10385_v51  ;;  %v246_v6 = vld [vmem:[#allocation2 + $0x1e8] sm:$0xff]  ;;  %v253_v9 = vld [vmem:[#allocation2 + $0x220] sm:$0xff]  ;;  %v10393_v11 = vpack.c.bf16 %v242_v5, %v237_v3  ;;  %v247_v15 = vld [vmem:[#allocation2 + $0x1f0] sm:$0xff] }
  0xdc   :  { %10192 = vmatprep.subr.bf16.mxu0 %v10191_v52  ;;  %10388 = vmatprep.subr.bf16.mxu1 %v10387_v56  ;;  %v10199_v12 = vpack.c.bf16 %v251_v7, %v246_v6  ;;  %v245_v13 = vld [vmem:[#allocation2 + $0x1e0] sm:$0xff]  ;;  %v250_v14 = vld [vmem:[#allocation2 + $0x208] sm:$0xff]  ;;  %v10395_v16 = vpack.c.bf16 %v253_v9, %v248_v8  ;;  %v252_v17 = vld [vmem:[#allocation2 + $0x218] sm:$0xff] }
  0xdd   :  { %v256_v18 = vld [vmem:[#allocation2 + $0x238] sm:$0xff]  ;;  %v261_v19 = vld [vmem:[#allocation2 + $0x260] sm:$0xff]  ;;  %v258_v20 = vld [vmem:[#allocation2 + $0x248] sm:$0xff]  ;;  %v10201_v22 = vpack.c.bf16 %v250_v14, %v245_v13  ;;  %v10397_v23 = vpack.c.bf16 %v252_v17, %v247_v15 }
  0xde   :  { %v263_v21 = vld [vmem:[#allocation2 + $0x270] sm:$0xff]  ;;  %v10203_v24 = vpack.c.bf16 %v261_v19, %v256_v18  ;;  %v260_v26 = vld [vmem:[#allocation2 + $0x258] sm:$0xff]  ;;  %v257_v27 = vld [vmem:[#allocation2 + $0x240] sm:$0xff] }
  0xdf   :  { %10194 = vmatpush1.bf16.msra.mxu0 %v10193_v62  ;;  %10390 = vmatpush1.bf16.msra.mxu1 %v10389_v63  ;;  %v255_v25 = vld [vmem:[#allocation2 + $0x230] sm:$0xff]  ;;  %v10399_v28 = vpack.c.bf16 %v263_v21, %v258_v20  ;;  %v262_v29 = vld [vmem:[#allocation2 + $0x268] sm:$0xff]  ;;  %v268_v32 = vld [vmem:[#allocation2 + $0x298] sm:$0xff]  ;;  %v13860_v62 = vshrl.u32 %v681_v48, 7 }
  0xe0   :  { %10196 = vmatprep.subr.bf16.mxu0 %v10195_v0  ;;  %10392 = vmatprep.subr.bf16.mxu1 %v10391_v4  ;;  %v266_v30 = vld [vmem:[#allocation2 + $0x288] sm:$0xff]  ;;  %v271_v31 = vld [vmem:[#allocation2 + $0x2b0] sm:$0xff]  ;;  %v273_v33 = vld [vmem:[#allocation2 + $0x2c0] sm:$0xff]  ;;  %v10205_v34 = vpack.c.bf16 %v260_v26, %v255_v25  ;;  %v10401_v35 = vpack.c.bf16 %v262_v29, %v257_v27 }
  0xe1   :  { %v10207_v36 = vpack.c.bf16 %v271_v31, %v266_v30  ;;  %v265_v37 = vld [vmem:[#allocation2 + $0x280] sm:$0xff]  ;;  %v270_v38 = vld [vmem:[#allocation2 + $0x2a8] sm:$0xff]  ;;  %v267_v39 = vld [vmem:[#allocation2 + $0x290] sm:$0xff]  ;;  %v10403_v40 = vpack.c.bf16 %v273_v33, %v268_v32 }
  0xe2   :  { %v272_v41 = vld [vmem:[#allocation2 + $0x2b8] sm:$0xff]  ;;  %v281_v43 = vld [vmem:[#allocation2 + $0x300] sm:$0xff]  ;;  %v278_v44 = vld [vmem:[#allocation2 + $0x2e8] sm:$0xff]  ;;  %v10209_v49 = vpack.c.bf16 %v270_v38, %v265_v37 }
  0xe3   :  { %10198 = vmatpush1.bf16.msra.mxu0 %v10197_v10  ;;  %10394 = vmatpush1.bf16.msra.mxu1 %v10393_v11  ;;  %v276_v42 = vld [vmem:[#allocation2 + $0x2d8] sm:$0xff]  ;;  %v283_v45 = vld [vmem:[#allocation2 + $0x310] sm:$0xff]  ;;  %v10405_v50 = vpack.c.bf16 %v272_v41, %v267_v39  ;;  %v277_v54 = vld [vmem:[#allocation2 + $0x2e0] sm:$0xff]  ;;  %v13863_v11 = vsub.s32 %v680_v61, %v13860_v62 }
  0xe4   :  { %10200 = vmatprep.subr.bf16.mxu0 %v10199_v12  ;;  %10396 = vmatprep.subr.bf16.mxu1 %v10395_v16  ;;  %v10211_v51 = vpack.c.bf16 %v281_v43, %v276_v42  ;;  %v275_v52 = vld [vmem:[#allocation2 + $0x2d0] sm:$0xff]  ;;  %v280_v53 = vld [vmem:[#allocation2 + $0x2f8] sm:$0xff]  ;;  %v10407_v55 = vpack.c.bf16 %v283_v45, %v278_v44  ;;  %v282_v56 = vld [vmem:[#allocation2 + $0x308] sm:$0xff] }
  0xe5   :  { %v286_v57 = vld [vmem:[#allocation2 + $0x328] sm:$0xff]  ;;  %v291_v58 = vld [vmem:[#allocation2 + $0x350] sm:$0xff]  ;;  %v288_v59 = vld [vmem:[#allocation2 + $0x338] sm:$0xff]  ;;  %v10213_v63 = vpack.c.bf16 %v280_v53, %v275_v52  ;;  %v10409_v0 = vpack.c.bf16 %v282_v56, %v277_v54 }
  0xe6   :  { %v293_v60 = vld [vmem:[#allocation2 + $0x360] sm:$0xff]  ;;  %v10215_v1 = vpack.c.bf16 %v291_v58, %v286_v57  ;;  %v290_v3 = vld [vmem:[#allocation2 + $0x348] sm:$0xff]  ;;  %v287_v4 = vld [vmem:[#allocation2 + $0x330] sm:$0xff] }
  0xe7   :  { %10202 = vmatpush1.bf16.msra.mxu0 %v10201_v22  ;;  %10398 = vmatpush1.bf16.msra.mxu1 %v10397_v23  ;;  %v285_v2 = vld [vmem:[#allocation2 + $0x320] sm:$0xff]  ;;  %v10411_v5 = vpack.c.bf16 %v293_v60, %v288_v59  ;;  %v292_v6 = vld [vmem:[#allocation2 + $0x358] sm:$0xff]  ;;  %v298_v9 = vld [vmem:[#allocation2 + $0x388] sm:$0xff] }
  0xe8   :  { %10204 = vmatprep.subr.bf16.mxu0 %v10203_v24  ;;  %10400 = vmatprep.subr.bf16.mxu1 %v10399_v28  ;;  %v296_v7 = vld [vmem:[#allocation2 + $0x378] sm:$0xff]  ;;  %v301_v8 = vld [vmem:[#allocation2 + $0x3a0] sm:$0xff]  ;;  %v303_v10 = vld [vmem:[#allocation2 + $0x3b0] sm:$0xff]  ;;  %v10217_v12 = vpack.c.bf16 %v290_v3, %v285_v2  ;;  %v10413_v14 = vpack.c.bf16 %v292_v6, %v287_v4 }
  0xe9   :  { %v295_v13 = vld [vmem:[#allocation2 + $0x370] sm:$0xff]  ;;  %v10219_v15 = vpack.c.bf16 %v301_v8, %v296_v7  ;;  %v300_v16 = vld [vmem:[#allocation2 + $0x398] sm:$0xff]  ;;  %v297_v17 = vld [vmem:[#allocation2 + $0x380] sm:$0xff]  ;;  %v10415_v19 = vpack.c.bf16 %v303_v10, %v298_v9 }
  0xea   :  { %v302_v18 = vld [vmem:[#allocation2 + $0x3a8] sm:$0xff]  ;;  %v311_v21 = vld [vmem:[#allocation2 + $0x3f0] sm:$0xff]  ;;  %v13868_v22 = vld [vmem:[%s15178_s0] sm:$0xff]  ;;  %v10221_v26 = vpack.c.bf16 %v300_v16, %v295_v13 }
  0xeb   :  { %10206 = vmatpush1.bf16.msra.mxu0 %v10205_v34  ;;  %10402 = vmatpush1.bf16.msra.mxu1 %v10401_v35  ;;  %v306_v20 = vld [vmem:[#allocation2 + $0x3c8] sm:$0xff]  ;;  %v308_v23 = vld [vmem:[#allocation2 + $0x3d8] sm:$0xff]  ;;  %v313_v24 = vld [vmem:[#allocation2 + $0x400] sm:$0xff]  ;;  %v13872_v25 = vrot.slane %v13868_v22, %v13863_v11  ;;  %v10417_v27 = vpack.c.bf16 %v302_v18, %v297_v17  ;;  %v677_v10 = vcombine.high %v13868_v22, %v13868_v22 }
  0xec   :  { %10208 = vmatprep.subr.bf16.mxu0 %v10207_v36  ;;  %10404 = vmatprep.subr.bf16.mxu1 %v10403_v40  ;;  %v10223_v28 = vpack.c.bf16 %v311_v21, %v306_v20  ;;  %v305_v29 = vld [vmem:[#allocation2 + $0x3c0] sm:$0xff]  ;;  %v310_v30 = vld [vmem:[#allocation2 + $0x3e8] sm:$0xff]  ;;  %v307_v31 = vld [vmem:[#allocation2 + $0x3d0] sm:$0xff]  ;;  %v10419_v33 = vpack.c.bf16 %v313_v24, %v308_v23 }
  0xed   :  { %v13876_v32 = vcombine.high %v13872_v25, %v13872_v25  ;;  %v312_v34 = vld [vmem:[#allocation2 + $0x3f8] sm:$0xff]  ;;  %v321_v36 = vld [vmem:[#allocation2 + $0x440] sm:$0xff]  ;;  %v318_v37 = vld [vmem:[#allocation2 + $0x428] sm:$0xff]  ;;  %v10225_v39 = vpack.c.bf16 %v310_v30, %v305_v29 }
  0xee   :  { %v316_v35 = vld [vmem:[#allocation2 + $0x418] sm:$0xff]  ;;  %v323_v38 = vld [vmem:[#allocation2 + $0x450] sm:$0xff]  ;;  %v10421_v40 = vpack.c.bf16 %v312_v34, %v307_v31  ;;  %v317_v44 = vld [vmem:[#allocation2 + $0x420] sm:$0xff] }
  0xef   :  { %10210 = vmatpush1.bf16.msra.mxu0 %v10209_v49  ;;  %10406 = vmatpush1.bf16.msra.mxu1 %v10405_v50  ;;  %v10227_v41 = vpack.c.bf16 %v321_v36, %v316_v35  ;;  %v315_v42 = vld [vmem:[#allocation2 + $0x410] sm:$0xff]  ;;  %v320_v43 = vld [vmem:[#allocation2 + $0x438] sm:$0xff]  ;;  %v10423_v45 = vpack.c.bf16 %v323_v38, %v318_v37  ;;  %v322_v46 = vld [vmem:[#allocation2 + $0x448] sm:$0xff] }
  0xf0   :  { %10212 = vmatprep.subr.bf16.mxu0 %v10211_v51  ;;  %10408 = vmatprep.subr.bf16.mxu1 %v10407_v55  ;;  %v326_v47 = vld [vmem:[#allocation2 + $0x468] sm:$0xff]  ;;  %v331_v48 = vld [vmem:[#allocation2 + $0x490] sm:$0xff]  ;;  %v328_v49 = vld [vmem:[#allocation2 + $0x478] sm:$0xff]  ;;  %v10229_v51 = vpack.c.bf16 %v320_v43, %v315_v42  ;;  %v10425_v52 = vpack.c.bf16 %v322_v46, %v317_v44 }
  0xf1   :  { %783 = vmatprep.mubr.f32.mxu0 %v13876_v32  ;;  %1067 = vmatprep.mubr.f32.mxu1 %v13876_v32  ;;  %v333_v50 = vld [vmem:[#allocation2 + $0x4a0] sm:$0xff]  ;;  %v10231_v53 = vpack.c.bf16 %v331_v48, %v326_v47  ;;  %v330_v55 = vld [vmem:[#allocation2 + $0x488] sm:$0xff]  ;;  %v327_v56 = vld [vmem:[#allocation2 + $0x470] sm:$0xff] }
  0xf2   :  { %v325_v54 = vld [vmem:[#allocation2 + $0x460] sm:$0xff]  ;;  %v10427_v57 = vpack.c.bf16 %v333_v50, %v328_v49  ;;  %v332_v58 = vld [vmem:[#allocation2 + $0x498] sm:$0xff]  ;;  %v338_v61 = vld [vmem:[#allocation2 + $0x4c8] sm:$0xff] }
  0xf3   :  { %10214 = vmatpush1.bf16.msra.mxu0 %v10213_v63  ;;  %10410 = vmatpush1.bf16.msra.mxu1 %v10409_v0  ;;  %v336_v59 = vld [vmem:[#allocation2 + $0x4b8] sm:$0xff]  ;;  %v341_v60 = vld [vmem:[#allocation2 + $0x4e0] sm:$0xff]  ;;  %v343_v63 = vld [vmem:[#allocation2 + $0x4f0] sm:$0xff]  ;;  %v10233_v0 = vpack.c.bf16 %v330_v55, %v325_v54 }
  0xf4   :  { %10216 = vmatprep.subr.bf16.mxu0 %v10215_v1  ;;  %10412 = vmatprep.subr.bf16.mxu1 %v10411_v5  ;;  %v10429_v1 = vpack.c.bf16 %v332_v58, %v327_v56  ;;  %v10235_v2 = vpack.c.bf16 %v341_v60, %v336_v59  ;;  %v335_v3 = vld [vmem:[#allocation2 + $0x4b0] sm:$0xff]  ;;  %v340_v4 = vld [vmem:[#allocation2 + $0x4d8] sm:$0xff]  ;;  %v337_v5 = vld [vmem:[#allocation2 + $0x4c0] sm:$0xff]  ;;  %v10431_v6 = vpack.c.bf16 %v343_v63, %v338_v61 }
  0xf5   :  { %v342_v7 = vld [vmem:[#allocation2 + $0x4e8] sm:$0xff]  ;;  %v351_v9 = vld [vmem:[#allocation2 + $0x530] sm:$0xff]  ;;  %v353_v13 = vld [vmem:[#allocation2 + $0x540] sm:$0xff] }
  0xf6   :  { %v346_v8 = vld [vmem:[#allocation2 + $0x508] sm:$0xff]  ;;  %v345_v17 = vld [vmem:[#allocation2 + $0x500] sm:$0xff]  ;;  %v352_v21 = vld [vmem:[#allocation2 + $0x538] sm:$0xff] }
  0xf7   :  { %10218 = vmatpush1.bf16.msra.mxu0 %v10217_v12  ;;  %10414 = vmatpush1.bf16.msra.mxu1 %v10413_v14  ;;  %v348_v12 = vld [vmem:[#allocation2 + $0x518] sm:$0xff]  ;;  %v10237_v14 = vpack.c.bf16 %v340_v4, %v335_v3  ;;  %v10239_v16 = vpack.c.bf16 %v351_v9, %v346_v8  ;;  %v350_v18 = vld [vmem:[#allocation2 + $0x528] sm:$0xff]  ;;  %v361_v24 = vld [vmem:[#allocation2 + $0x580] sm:$0xff] }
  0xf8   :  { %10220 = vmatprep.subr.bf16.mxu0 %v10219_v15  ;;  %10416 = vmatprep.subr.bf16.mxu1 %v10415_v19  ;;  %v10433_v15 = vpack.c.bf16 %v342_v7, %v337_v5  ;;  %v347_v19 = vld [vmem:[#allocation2 + $0x510] sm:$0xff]  ;;  %v10435_v20 = vpack.c.bf16 %v353_v13, %v348_v12  ;;  %v356_v23 = vld [vmem:[#allocation2 + $0x558] sm:$0xff]  ;;  %v358_v22 = vld [vmem:[#allocation2 + $0x568] sm:$0xff] }
  0xf9   :  { %v10437_v29 = vpack.c.bf16 %v352_v21, %v347_v19  ;;  %v10243_v30 = vpack.c.bf16 %v361_v24, %v356_v23  ;;  %v355_v31 = vld [vmem:[#allocation2 + $0x550] sm:$0xff]  ;;  %v357_v34 = vld [vmem:[#allocation2 + $0x560] sm:$0xff]  ;;  %v362_v36 = vld [vmem:[#allocation2 + $0x588] sm:$0xff] }
  0xfa   :  { %v366_v37 = vld [vmem:[#allocation2 + $0x5a8] sm:$0xff]  ;;  %v371_v38 = vld [vmem:[#allocation2 + $0x5d0] sm:$0xff]  ;;  %v10441_v43 = vpack.c.bf16 %v362_v36, %v357_v34  ;;  %v372_v49 = vld [vmem:[#allocation2 + $0x5d8] sm:$0xff] }
  0xfb   :  { %10222 = vmatpush1.bf16.msra.mxu0 %v10221_v26  ;;  %10418 = vmatpush1.bf16.msra.mxu1 %v10417_v27  ;;  %v13883_v26 = vrot.slane %v677_v10, %v13863_v11  ;;  %v363_v27 = vld [vmem:[#allocation2 + $0x590] sm:$0xff]  ;;  %v10247_v44 = vpack.c.bf16 %v371_v38, %v366_v37  ;;  %v370_v46 = vld [vmem:[#allocation2 + $0x5c8] sm:$0xff]  ;;  %v376_v50 = vld [vmem:[#allocation2 + $0x5f8] sm:$0xff] }
  0xfc   :  { %10224 = vmatprep.subr.bf16.mxu0 %v10223_v28  ;;  %10420 = vmatprep.subr.bf16.mxu1 %v10419_v33  ;;  %v10241_v28 = vpack.c.bf16 %v350_v18, %v345_v17  ;;  %v360_v33 = vld [vmem:[#allocation2 + $0x578] sm:$0xff]  ;;  %v10439_v35 = vpack.c.bf16 %v363_v27, %v358_v22  ;;  %v367_v47 = vld [vmem:[#allocation2 + $0x5b0] sm:$0xff]  ;;  %v377_v59 = vld [vmem:[#allocation2 + $0x600] sm:$0xff] }
  0xfd   :  { %v10245_v42 = vpack.c.bf16 %v360_v33, %v355_v31  ;;  %v10445_v55 = vpack.c.bf16 %v372_v49, %v367_v47  ;;  %v380_v58 = vld [vmem:[#allocation2 + $0x618] sm:$0xff]  ;;  %v382_v61 = vld [vmem:[#allocation2 + $0x628] sm:$0xff]  ;;  %v387_v8 = vld [vmem:[#allocation2 + $0x650] sm:$0xff] }
  0xfe   :  { %v386_v63 = vld [vmem:[#allocation2 + $0x648] sm:$0xff]  ;;  %v10449_v4 = vpack.c.bf16 %v382_v61, %v377_v59  ;;  %v392_v10 = vld [vmem:[#allocation2 + $0x678] sm:$0xff]  ;;  %v401_v13 = vld [vmem:[#allocation2 + $0x6c0] sm:$0xff] }
  0xff   :  { %10226 = vmatpush1.bf16.msra.mxu0 %v10225_v39  ;;  %10422 = vmatpush1.bf16.msra.mxu1 %v10421_v40  ;;  %v13887_v39 = vcombine.high %v13883_v26, %v13883_v26  ;;  %v368_v40 = vld [vmem:[#allocation2 + $0x5b8] sm:$0xff]  ;;  %v390_v7 = vld [vmem:[#allocation2 + $0x668] sm:$0xff]  ;;  %v10453_v17 = vpack.c.bf16 %v392_v10, %v387_v8  ;;  %v395_v19 = vld [vmem:[#allocation2 + $0x690] sm:$0xff] }
 0x100   :  { %10228 = vmatprep.subr.bf16.mxu0 %v10227_v41  ;;  %10424 = vmatprep.subr.bf16.mxu1 %v10423_v45  ;;  %v373_v41 = vld [vmem:[#allocation2 + $0x5e0] sm:$0xff]  ;;  %v396_v12 = vld [vmem:[#allocation2 + $0x698] sm:$0xff]  ;;  %v402_v24 = vld [vmem:[#allocation2 + $0x6c8] sm:$0xff] }
 0x101   :  { %v365_v45 = vld [vmem:[#allocation2 + $0x5a0] sm:$0xff]  ;;  %v10443_v48 = vpack.c.bf16 %v373_v41, %v368_v40  ;;  %v10259_v18 = vpack.c.bf16 %v401_v13, %v396_v12  ;;  %v406_v22 = vld [vmem:[#allocation2 + $0x6e8] sm:$0xff]  ;;  %v411_v27 = vld [vmem:[#allocation2 + $0x710] sm:$0xff] }
 0x102   :  { %v10249_v54 = vpack.c.bf16 %v370_v46, %v365_v45  ;;  %v397_v21 = vld [vmem:[#allocation2 + $0x6a0] sm:$0xff]  ;;  %v10263_v33 = vpack.c.bf16 %v411_v27, %v406_v22  ;;  %v407_v36 = vld [vmem:[#allocation2 + $0x6f0] sm:$0xff]  ;;  %v412_v38 = vld [vmem:[#allocation2 + $0x718] sm:$0xff] }
 0x103   :  { %10230 = vmatpush1.bf16.msra.mxu0 %v10229_v51  ;;  %10426 = vmatpush1.bf16.msra.mxu1 %v10425_v52  ;;  %v381_v51 = vld [vmem:[#allocation2 + $0x620] sm:$0xff]  ;;  %v378_v52 = vld [vmem:[#allocation2 + $0x608] sm:$0xff]  ;;  %v10457_v31 = vpack.c.bf16 %v402_v24, %v397_v21  ;;  %v416_v40 = vld [vmem:[#allocation2 + $0x738] sm:$0xff]  ;;  %v10461_v45 = vpack.c.bf16 %v412_v38, %v407_v36 }
 0x104   :  { %10232 = vmatprep.subr.bf16.mxu0 %v10231_v53  ;;  %10428 = vmatprep.subr.bf16.mxu1 %v10427_v57  ;;  %v383_v53 = vld [vmem:[#allocation2 + $0x630] sm:$0xff]  ;;  %v10251_v56 = vpack.c.bf16 %v381_v51, %v376_v50  ;;  %v405_v34 = vld [vmem:[#allocation2 + $0x6e0] sm:$0xff]  ;;  %v422_v51 = vld [vmem:[#allocation2 + $0x768] sm:$0xff] }
 0x105   :  { %v375_v57 = vld [vmem:[#allocation2 + $0x5f0] sm:$0xff]  ;;  %v10447_v60 = vpack.c.bf16 %v383_v53, %v378_v52  ;;  %v421_v41 = vld [vmem:[#allocation2 + $0x760] sm:$0xff]  ;;  %v426_v52 = vld [vmem:[#allocation2 + $0x788] sm:$0xff] }
 0x106   :  { %v10253_v3 = vpack.c.bf16 %v380_v58, %v375_v57  ;;  %v10267_v46 = vpack.c.bf16 %v421_v41, %v416_v40  ;;  %v415_v47 = vld [vmem:[#allocation2 + $0x730] sm:$0xff]  ;;  %v417_v49 = vld [vmem:[#allocation2 + $0x740] sm:$0xff]  ;;  %v442_v13 = vld [vmem:[#allocation2 + $0x808] sm:$0xff] }
 0x107   :  { %10234 = vmatpush1.bf16.msra.mxu0 %v10233_v0  ;;  %10430 = vmatpush1.bf16.msra.mxu1 %v10429_v1  ;;  %v391_v0 = vld [vmem:[#allocation2 + $0x670] sm:$0xff]  ;;  %v388_v1 = vld [vmem:[#allocation2 + $0x658] sm:$0xff]  ;;  %v10465_v57 = vpack.c.bf16 %v422_v51, %v417_v49  ;;  %v425_v59 = vld [vmem:[#allocation2 + $0x780] sm:$0xff] }
 0x108   :  { %10236 = vmatprep.subr.bf16.mxu0 %v10235_v2  ;;  %10432 = vmatprep.subr.bf16.mxu1 %v10431_v6  ;;  %v393_v2 = vld [vmem:[#allocation2 + $0x680] sm:$0xff]  ;;  %v10255_v5 = vpack.c.bf16 %v391_v0, %v386_v63  ;;  %v431_v53 = vld [vmem:[#allocation2 + $0x7b0] sm:$0xff]  ;;  %v432_v0 = vld [vmem:[#allocation2 + $0x7b8] sm:$0xff] }
 0x109   :  { %v385_v6 = vld [vmem:[#allocation2 + $0x640] sm:$0xff]  ;;  %v10451_v9 = vpack.c.bf16 %v393_v2, %v388_v1  ;;  %v10271_v58 = vpack.c.bf16 %v431_v53, %v426_v52  ;;  %v427_v61 = vld [vmem:[#allocation2 + $0x790] sm:$0xff]  ;;  %v436_v1 = vld [vmem:[#allocation2 + $0x7d8] sm:$0xff] }
 0x10a   :  { %v441_v2 = vld [vmem:[#allocation2 + $0x800] sm:$0xff]  ;;  %v435_v8 = vld [vmem:[#allocation2 + $0x7d0] sm:$0xff]  ;;  %v452_v27 = vld [vmem:[#allocation2 + $0x858] sm:$0xff] }
 0x10b   :  { %10238 = vmatpush1.bf16.msra.mxu0 %v10237_v14  ;;  %10434 = vmatpush1.bf16.msra.mxu1 %v10433_v15  ;;  %v398_v14 = vld [vmem:[#allocation2 + $0x6a8] sm:$0xff]  ;;  %v403_v15 = vld [vmem:[#allocation2 + $0x6d0] sm:$0xff]  ;;  %v437_v10 = vld [vmem:[#allocation2 + $0x7e0] sm:$0xff] }
 0x10c   :  { %10240 = vmatprep.subr.bf16.mxu0 %v10239_v16  ;;  %10436 = vmatprep.subr.bf16.mxu1 %v10435_v20  ;;  %v10257_v16 = vpack.c.bf16 %v390_v7, %v385_v6  ;;  %v400_v20 = vld [vmem:[#allocation2 + $0x6b8] sm:$0xff]  ;;  %v10455_v23 = vpack.c.bf16 %v403_v15, %v398_v14  ;;  %v10469_v6 = vpack.c.bf16 %v432_v0, %v427_v61  ;;  %v446_v14 = vld [vmem:[#allocation2 + $0x828] sm:$0xff]  ;;  %v451_v15 = vld [vmem:[#allocation2 + $0x850] sm:$0xff] }
 0x10d   :  { %v10275_v7 = vpack.c.bf16 %v441_v2, %v436_v1  ;;  %v445_v21 = vld [vmem:[#allocation2 + $0x820] sm:$0xff]  ;;  %v447_v24 = vld [vmem:[#allocation2 + $0x830] sm:$0xff]  ;;  %v462_v41 = vld [vmem:[#allocation2 + $0x8a8] sm:$0xff] }
 0x10e   :  { %784 = vmatmul.mubr.f32.vlgmr.msra.gmra.mrb[0].mxu0 %v13872_v25  ;;  %1068 = vmatmul.mubr.f32.vlgmr.msra.gmra.mrb[0].mxu1 %v13872_v25  ;;  %v455_v36 = vld [vmem:[#allocation2 + $0x870] sm:$0xff]  ;;  %v457_v38 = vld [vmem:[#allocation2 + $0x880] sm:$0xff]  ;;  %v472_v53 = vld [vmem:[#allocation2 + $0x8f8] sm:$0xff] }
 0x10f   :  { %10242 = vmatpush1.bf16.msra.mxu0 %v10241_v28  ;;  %10438 = vmatpush1.bf16.msra.mxu1 %v10437_v29  ;;  %v408_v28 = vld [vmem:[#allocation2 + $0x6f8] sm:$0xff]  ;;  %v413_v29 = vld [vmem:[#allocation2 + $0x720] sm:$0xff]  ;;  %v467_v51 = vld [vmem:[#allocation2 + $0x8d0] sm:$0xff] }
 0x110   :  { %10244 = vmatprep.subr.bf16.mxu0 %v10243_v30  ;;  %10440 = vmatprep.subr.bf16.mxu1 %v10439_v35  ;;  %v10261_v30 = vpack.c.bf16 %v400_v20, %v395_v19  ;;  %v410_v35 = vld [vmem:[#allocation2 + $0x708] sm:$0xff]  ;;  %v10459_v37 = vpack.c.bf16 %v413_v29, %v408_v28  ;;  %v10473_v19 = vpack.c.bf16 %v442_v13, %v437_v10  ;;  %v456_v28 = vld [vmem:[#allocation2 + $0x878] sm:$0xff]  ;;  %v461_v29 = vld [vmem:[#allocation2 + $0x8a0] sm:$0xff] }
 0x111   :  { %854 = vmatprep.mubr.f32.mxu0 %v13887_v39  ;;  %1138 = vmatprep.mubr.f32.mxu1 %v13887_v39  ;;  %v10279_v20 = vpack.c.bf16 %v451_v15, %v446_v14  ;;  %v465_v49 = vld [vmem:[#allocation2 + $0x8c0] sm:$0xff]  ;;  %v475_v61 = vld [vmem:[#allocation2 + $0x910] sm:$0xff]  ;;  %v482_v2 = vld [vmem:[#allocation2 + $0x948] sm:$0xff] }
 0x112   :  { %v477_v0 = vld [vmem:[#allocation2 + $0x920] sm:$0xff]  ;;  %v487_v13 = vld [vmem:[#allocation2 + $0x970] sm:$0xff]  ;;  %v492_v15 = vld [vmem:[#allocation2 + $0x998] sm:$0xff] }
 0x113   :  { %10246 = vmatpush1.bf16.msra.mxu0 %v10245_v42  ;;  %10442 = vmatpush1.bf16.msra.mxu1 %v10441_v43  ;;  %v418_v42 = vld [vmem:[#allocation2 + $0x748] sm:$0xff]  ;;  %v423_v43 = vld [vmem:[#allocation2 + $0x770] sm:$0xff]  ;;  %v485_v10 = vld [vmem:[#allocation2 + $0x960] sm:$0xff] }
 0x114   :  { %10248 = vmatprep.subr.bf16.mxu0 %v10247_v44  ;;  %10444 = vmatprep.subr.bf16.mxu1 %v10443_v48  ;;  %v10265_v44 = vpack.c.bf16 %v410_v35, %v405_v34  ;;  %v420_v48 = vld [vmem:[#allocation2 + $0x758] sm:$0xff]  ;;  %v10463_v50 = vpack.c.bf16 %v423_v43, %v418_v42  ;;  %v10477_v34 = vpack.c.bf16 %v452_v27, %v447_v24  ;;  %v466_v42 = vld [vmem:[#allocation2 + $0x8c8] sm:$0xff]  ;;  %v471_v43 = vld [vmem:[#allocation2 + $0x8f0] sm:$0xff] }
 0x115   :  { %v10283_v35 = vpack.c.bf16 %v461_v29, %v456_v28  ;;  %v495_v24 = vld [vmem:[#allocation2 + $0x9b0] sm:$0xff]  ;;  %v497_v27 = vld [vmem:[#allocation2 + $0x9c0] sm:$0xff]  ;;  %v502_v29 = vld [vmem:[#allocation2 + $0x9e8] sm:$0xff] }
 0x117   :  { %10250 = vmatpush1.bf16.msra.mxu0 %v10249_v54  ;;  %10446 = vmatpush1.bf16.msra.mxu1 %v10445_v55  ;;  %v428_v54 = vld [vmem:[#allocation2 + $0x798] sm:$0xff]  ;;  %v433_v55 = vld [vmem:[#allocation2 + $0x7c0] sm:$0xff] }
 0x118   :  { %10252 = vmatprep.subr.bf16.mxu0 %v10251_v56  ;;  %10448 = vmatprep.subr.bf16.mxu1 %v10447_v60  ;;  %v10269_v56 = vpack.c.bf16 %v420_v48, %v415_v47  ;;  %v430_v60 = vld [vmem:[#allocation2 + $0x7a8] sm:$0xff]  ;;  %v10467_v63 = vpack.c.bf16 %v433_v55, %v428_v54  ;;  %v10481_v47 = vpack.c.bf16 %v462_v41, %v457_v38  ;;  %v476_v54 = vld [vmem:[#allocation2 + $0x918] sm:$0xff]  ;;  %v481_v55 = vld [vmem:[#allocation2 + $0x940] sm:$0xff] }
 0x119   :  { %v10287_v48 = vpack.c.bf16 %v471_v43, %v466_v42  ;;  %v505_v38 = vld [vmem:[#allocation2 + $0xa00] sm:$0xff]  ;;  %v507_v41 = vld [vmem:[#allocation2 + $0xa10] sm:$0xff]  ;;  %v512_v43 = vld [vmem:[#allocation2 + $0xa38] sm:$0xff] }
 0x11b   :  { %10254 = vmatpush1.bf16.msra.mxu0 %v10253_v3  ;;  %10450 = vmatpush1.bf16.msra.mxu1 %v10449_v4  ;;  %v438_v3 = vld [vmem:[#allocation2 + $0x7e8] sm:$0xff]  ;;  %v443_v4 = vld [vmem:[#allocation2 + $0x810] sm:$0xff] }
 0x11c   :  { %10256 = vmatprep.subr.bf16.mxu0 %v10255_v5  ;;  %10452 = vmatprep.subr.bf16.mxu1 %v10451_v9  ;;  %v10273_v5 = vpack.c.bf16 %v430_v60, %v425_v59  ;;  %v440_v9 = vld [vmem:[#allocation2 + $0x7f8] sm:$0xff]  ;;  %v10471_v12 = vpack.c.bf16 %v443_v4, %v438_v3  ;;  %v10485_v59 = vpack.c.bf16 %v472_v53, %v467_v51  ;;  %v486_v3 = vld [vmem:[#allocation2 + $0x968] sm:$0xff]  ;;  %v491_v4 = vld [vmem:[#allocation2 + $0x990] sm:$0xff] }
 0x11d   :  { %v10291_v60 = vpack.c.bf16 %v481_v55, %v476_v54  ;;  %v520_v53 = vld [vmem:[#allocation2 + $0xa78] sm:$0xff]  ;;  %v517_v54 = vld [vmem:[#allocation2 + $0xa60] sm:$0xff] }
 0x11f   :  { %10258 = vmatpush1.bf16.msra.mxu0 %v10257_v16  ;;  %10454 = vmatpush1.bf16.msra.mxu1 %v10453_v17  ;;  %v448_v16 = vld [vmem:[#allocation2 + $0x838] sm:$0xff]  ;;  %v453_v17 = vld [vmem:[#allocation2 + $0x860] sm:$0xff] }
 0x120   :  { %10260 = vmatprep.subr.bf16.mxu0 %v10259_v18  ;;  %10456 = vmatprep.subr.bf16.mxu1 %v10455_v23  ;;  %v10277_v18 = vpack.c.bf16 %v440_v9, %v435_v8  ;;  %v450_v23 = vld [vmem:[#allocation2 + $0x848] sm:$0xff]  ;;  %v10475_v22 = vpack.c.bf16 %v453_v17, %v448_v16  ;;  %v10489_v8 = vpack.c.bf16 %v482_v2, %v477_v0  ;;  %v496_v16 = vld [vmem:[#allocation2 + $0x9b8] sm:$0xff]  ;;  %v501_v17 = vld [vmem:[#allocation2 + $0x9e0] sm:$0xff] }
 0x121   :  { %v10295_v9 = vpack.c.bf16 %v491_v4, %v486_v3  ;;  %v525_v3 = vld [vmem:[#allocation2 + $0xaa0] sm:$0xff]  ;;  %v530_v4 = vld [vmem:[#allocation2 + $0xac8] sm:$0xff] }
 0x123   :  { %10262 = vmatpush1.bf16.msra.mxu0 %v10261_v30  ;;  %10458 = vmatpush1.bf16.msra.mxu1 %v10457_v31  ;;  %v458_v30 = vld [vmem:[#allocation2 + $0x888] sm:$0xff]  ;;  %v463_v31 = vld [vmem:[#allocation2 + $0x8b0] sm:$0xff] }
 0x124   :  { %10264 = vmatprep.subr.bf16.mxu0 %v10263_v33  ;;  %10460 = vmatprep.subr.bf16.mxu1 %v10459_v37  ;;  %v10281_v33 = vpack.c.bf16 %v450_v23, %v445_v21  ;;  %v460_v37 = vld [vmem:[#allocation2 + $0x898] sm:$0xff]  ;;  %v10479_v40 = vpack.c.bf16 %v463_v31, %v458_v30  ;;  %v10493_v21 = vpack.c.bf16 %v492_v15, %v487_v13  ;;  %v506_v30 = vld [vmem:[#allocation2 + $0xa08] sm:$0xff]  ;;  %v511_v31 = vld [vmem:[#allocation2 + $0xa30] sm:$0xff] }
 0x125   :  { %v10299_v23 = vpack.c.bf16 %v501_v17, %v496_v16  ;;  %v10313_v13 = vpack.c.bf16 %v530_v4, %v525_v3  ;;  %v535_v16 = vld [vmem:[#allocation2 + $0xaf0] sm:$0xff]  ;;  %v540_v17 = vld [vmem:[#allocation2 + $0xb18] sm:$0xff]  ;;  %v578_v3 = vld [vmem:[#allocation2 + $0xc48] sm:$0xff] }
 0x126   :  { %v583_v4 = vld [vmem:[#allocation2 + $0xc70] sm:$0xff] }
 0x127   :  { %10266 = vmatpush1.bf16.msra.mxu0 %v10265_v44  ;;  %10462 = vmatpush1.bf16.msra.mxu1 %v10461_v45  ;;  %v468_v44 = vld [vmem:[#allocation2 + $0x8d8] sm:$0xff]  ;;  %v473_v45 = vld [vmem:[#allocation2 + $0x900] sm:$0xff] }
 0x128   :  { %10268 = vmatprep.subr.bf16.mxu0 %v10267_v46  ;;  %10464 = vmatprep.subr.bf16.mxu1 %v10463_v50  ;;  %v10285_v46 = vpack.c.bf16 %v460_v37, %v455_v36  ;;  %v470_v50 = vld [vmem:[#allocation2 + $0x8e8] sm:$0xff]  ;;  %v10483_v52 = vpack.c.bf16 %v473_v45, %v468_v44  ;;  %v10497_v36 = vpack.c.bf16 %v502_v29, %v497_v27  ;;  %v516_v44 = vld [vmem:[#allocation2 + $0xa58] sm:$0xff]  ;;  %v521_v45 = vld [vmem:[#allocation2 + $0xa80] sm:$0xff] }
 0x129   :  { %v10303_v37 = vpack.c.bf16 %v511_v31, %v506_v30  ;;  %v10307_v51 = vpack.c.bf16 %v521_v45, %v516_v44  ;;  %v10317_v27 = vpack.c.bf16 %v540_v17, %v535_v16  ;;  %v545_v30 = vld [vmem:[#allocation2 + $0xb40] sm:$0xff]  ;;  %v550_v31 = vld [vmem:[#allocation2 + $0xb68] sm:$0xff]  ;;  %v555_v44 = vld [vmem:[#allocation2 + $0xb90] sm:$0xff] }
 0x12a   :  { %v560_v45 = vld [vmem:[#allocation2 + $0xbb8] sm:$0xff]  ;;  %v593_v17 = vld [vmem:[#allocation2 + $0xcc0] sm:$0xff] }
 0x12b   :  { %10270 = vmatpush1.bf16.msra.mxu0 %v10269_v56  ;;  %10466 = vmatpush1.bf16.msra.mxu1 %v10465_v57  ;;  %v478_v56 = vld [vmem:[#allocation2 + $0x928] sm:$0xff]  ;;  %v483_v57 = vld [vmem:[#allocation2 + $0x950] sm:$0xff]  ;;  %v588_v16 = vld [vmem:[#allocation2 + $0xc98] sm:$0xff] }
 0x12c   :  { %10272 = vmatprep.subr.bf16.mxu0 %v10271_v58  ;;  %10468 = vmatprep.subr.bf16.mxu1 %v10467_v63  ;;  %v10289_v58 = vpack.c.bf16 %v470_v50, %v465_v49  ;;  %v480_v63 = vld [vmem:[#allocation2 + $0x938] sm:$0xff]  ;;  %v10487_v1 = vpack.c.bf16 %v483_v57, %v478_v56  ;;  %v13896_v49 = vld [vmem:[%s15178_s0 + $0x8] sm:$0x3f]  ;;  %v10501_v50 = vpack.c.bf16 %v512_v43, %v507_v41 }
 0x12d   :  { %v13900_v55 = vrot.slane %v13896_v49, %v13863_v11  ;;  %v522_v57 = vld [vmem:[#allocation2 + $0xa88] sm:$0xff]  ;;  %v10321_v41 = vpack.c.bf16 %v550_v31, %v545_v30  ;;  %v603_v31 = vld [vmem:[#allocation2 + $0xd10] sm:$0xff] }
 0x12e   :  { %v598_v30 = vld [vmem:[#allocation2 + $0xce8] sm:$0xff] }
 0x12f   :  { %10274 = vmatpush1.bf16.msra.mxu0 %v10273_v5  ;;  %10470 = vmatpush1.bf16.msra.mxu1 %v10469_v6  ;;  %v488_v5 = vld [vmem:[#allocation2 + $0x978] sm:$0xff]  ;;  %v493_v6 = vld [vmem:[#allocation2 + $0x9a0] sm:$0xff] }
 0x130   :  { %10276 = vmatprep.subr.bf16.mxu0 %v10275_v7  ;;  %10472 = vmatprep.subr.bf16.mxu1 %v10471_v12  ;;  %v10293_v7 = vpack.c.bf16 %v480_v63, %v475_v61  ;;  %v490_v12 = vld [vmem:[#allocation2 + $0x988] sm:$0xff]  ;;  %v10491_v14 = vpack.c.bf16 %v493_v6, %v488_v5  ;;  %v533_v61 = vld [vmem:[#allocation2 + $0xae0] sm:$0xff]  ;;  %v13905_v63 = vcombine.high %v13900_v55, %v13900_v55  ;;  %v527_v5 = vld [vmem:[#allocation2 + $0xab0] sm:$0xff] }
 0x133   :  { %10278 = vmatpush1.bf16.msra.mxu0 %v10277_v18  ;;  %10474 = vmatpush1.bf16.msra.mxu1 %v10473_v19  ;;  %v498_v18 = vld [vmem:[#allocation2 + $0x9c8] sm:$0xff]  ;;  %v503_v19 = vld [vmem:[#allocation2 + $0x9f0] sm:$0xff] }
 0x134   :  { %10280 = vmatprep.subr.bf16.mxu0 %v10279_v20  ;;  %10476 = vmatprep.subr.bf16.mxu1 %v10475_v22  ;;  %v10297_v20 = vpack.c.bf16 %v490_v12, %v485_v10  ;;  %v500_v22 = vld [vmem:[#allocation2 + $0x9d8] sm:$0xff]  ;;  %v10495_v28 = vpack.c.bf16 %v503_v19, %v498_v18  ;;  %v538_v10 = vld [vmem:[#allocation2 + $0xb08] sm:$0xff]  ;;  %v543_v12 = vld [vmem:[#allocation2 + $0xb30] sm:$0xff] }
 0x135   :  { %v537_v18 = vld [vmem:[#allocation2 + $0xb00] sm:$0xff]  ;;  %v10511_v19 = vpack.c.bf16 %v543_v12, %v538_v10  ;;  %v10527_v12 = vpack.c.bf16 %v583_v4, %v578_v3 }
 0x136   :  { %v577_v10 = vld [vmem:[#allocation2 + $0xc40] sm:$0xff] }
 0x137   :  { %10282 = vmatpush1.bf16.msra.mxu0 %v10281_v33  ;;  %10478 = vmatpush1.bf16.msra.mxu1 %v10477_v34  ;;  %v508_v33 = vld [vmem:[#allocation2 + $0xa18] sm:$0xff]  ;;  %v513_v34 = vld [vmem:[#allocation2 + $0xa40] sm:$0xff] }
 0x138   :  { %10284 = vmatprep.subr.bf16.mxu0 %v10283_v35  ;;  %10480 = vmatprep.subr.bf16.mxu1 %v10479_v40  ;;  %v10301_v35 = vpack.c.bf16 %v500_v22, %v495_v24  ;;  %v510_v40 = vld [vmem:[#allocation2 + $0xa28] sm:$0xff]  ;;  %v10499_v42 = vpack.c.bf16 %v513_v34, %v508_v33  ;;  %v548_v24 = vld [vmem:[#allocation2 + $0xb58] sm:$0xff]  ;;  %v553_v22 = vld [vmem:[#allocation2 + $0xb80] sm:$0xff] }
 0x139   :  { %v547_v33 = vld [vmem:[#allocation2 + $0xb50] sm:$0xff]  ;;  %v10515_v34 = vpack.c.bf16 %v553_v22, %v548_v24  ;;  %v10531_v22 = vpack.c.bf16 %v593_v17, %v588_v16  ;;  %v617_v3 = vld [vmem:[#allocation2 + $0xd80] sm:$0xff] }
 0x13a   :  { %v587_v24 = vld [vmem:[#allocation2 + $0xc90] sm:$0xff] }
 0x13b   :  { %10286 = vmatpush1.bf16.msra.mxu0 %v10285_v46  ;;  %10482 = vmatpush1.bf16.msra.mxu1 %v10481_v47  ;;  %v518_v46 = vld [vmem:[#allocation2 + $0xa68] sm:$0xff]  ;;  %v523_v47 = vld [vmem:[#allocation2 + $0xa90] sm:$0xff] }
 0x13c   :  { %10288 = vmatprep.subr.bf16.mxu0 %v10287_v48  ;;  %10484 = vmatprep.subr.bf16.mxu1 %v10483_v52  ;;  %v10305_v48 = vpack.c.bf16 %v510_v40, %v505_v38  ;;  %v515_v52 = vld [vmem:[#allocation2 + $0xa50] sm:$0xff]  ;;  %v10503_v56 = vpack.c.bf16 %v523_v47, %v518_v46  ;;  %v558_v38 = vld [vmem:[#allocation2 + $0xba8] sm:$0xff]  ;;  %v557_v46 = vld [vmem:[#allocation2 + $0xba0] sm:$0xff] }
 0x13d   :  { %v10309_v0 = vpack.c.bf16 %v520_v53, %v515_v52  ;;  %v563_v40 = vld [vmem:[#allocation2 + $0xbd0] sm:$0xff]  ;;  %v568_v52 = vld [vmem:[#allocation2 + $0xbf8] sm:$0xff]  ;;  %v573_v53 = vld [vmem:[#allocation2 + $0xc20] sm:$0xff] }
 0x13e   :  { %v10519_v47 = vpack.c.bf16 %v563_v40, %v558_v38  ;;  %v597_v38 = vld [vmem:[#allocation2 + $0xce0] sm:$0xff]  ;;  %v10535_v40 = vpack.c.bf16 %v603_v31, %v598_v30  ;;  %v627_v16 = vld [vmem:[#allocation2 + $0xdd0] sm:$0xff] }
 0x13f   :  { %10290 = vmatpush1.bf16.msra.mxu0 %v10289_v58  ;;  %10486 = vmatpush1.bf16.msra.mxu1 %v10485_v59  ;;  %v526_v58 = vld [vmem:[#allocation2 + $0xaa8] sm:$0xff]  ;;  %v531_v59 = vld [vmem:[#allocation2 + $0xad0] sm:$0xff]  ;;  %v637_v30 = vld [vmem:[#allocation2 + $0xe20] sm:$0xff] }
 0x140   :  { %10292 = vmatprep.subr.bf16.mxu0 %v10291_v60  ;;  %10488 = vmatprep.subr.bf16.mxu1 %v10487_v1  ;;  %v528_v60 = vld [vmem:[#allocation2 + $0xab8] sm:$0xff]  ;;  %v10505_v1 = vpack.c.bf16 %v522_v57, %v517_v54  ;;  %v10311_v2 = vpack.c.bf16 %v531_v59, %v526_v58  ;;  %v10325_v54 = vpack.c.bf16 %v560_v45, %v555_v44  ;;  %v565_v58 = vld [vmem:[#allocation2 + $0xbe0] sm:$0xff]  ;;  %v570_v59 = vld [vmem:[#allocation2 + $0xc08] sm:$0xff] }
 0x141   :  { %v10507_v6 = vpack.c.bf16 %v533_v61, %v528_v60  ;;  %v567_v60 = vld [vmem:[#allocation2 + $0xbf0] sm:$0xff]  ;;  %v10523_v61 = vpack.c.bf16 %v573_v53, %v568_v52  ;;  %v608_v44 = vld [vmem:[#allocation2 + $0xd38] sm:$0xff]  ;;  %v613_v45 = vld [vmem:[#allocation2 + $0xd60] sm:$0xff] }
 0x142   :  { %v607_v52 = vld [vmem:[#allocation2 + $0xd30] sm:$0xff]  ;;  %v10539_v53 = vpack.c.bf16 %v613_v45, %v608_v44 }
 0x143   :  { %10294 = vmatpush1.bf16.msra.mxu0 %v10293_v7  ;;  %10490 = vmatpush1.bf16.msra.mxu1 %v10489_v8  ;;  %v532_v7 = vld [vmem:[#allocation2 + $0xad8] sm:$0xff]  ;;  %v647_v44 = vld [vmem:[#allocation2 + $0xe70] sm:$0xff] }
 0x144   :  { %10296 = vmatprep.subr.bf16.mxu0 %v10295_v9  ;;  %10492 = vmatprep.subr.bf16.mxu1 %v10491_v14  ;;  %v536_v8 = vld [vmem:[#allocation2 + $0xaf8] sm:$0xff]  ;;  %v541_v9 = vld [vmem:[#allocation2 + $0xb20] sm:$0xff]  ;;  %v10509_v14 = vpack.c.bf16 %v532_v7, %v527_v5  ;;  %v10329_v5 = vpack.c.bf16 %v570_v59, %v565_v58  ;;  %v618_v58 = vld [vmem:[#allocation2 + $0xd88] sm:$0xff] }
 0x145   :  { %v10315_v15 = vpack.c.bf16 %v541_v9, %v536_v8  ;;  %v575_v8 = vld [vmem:[#allocation2 + $0xc30] sm:$0xff]  ;;  %v580_v9 = vld [vmem:[#allocation2 + $0xc58] sm:$0xff] }
 0x146   :  { %v623_v59 = vld [vmem:[#allocation2 + $0xdb0] sm:$0xff] }
 0x147   :  { %10298 = vmatpush1.bf16.msra.mxu0 %v10297_v20  ;;  %10494 = vmatpush1.bf16.msra.mxu1 %v10493_v21  ;;  %v542_v20 = vld [vmem:[#allocation2 + $0xb28] sm:$0xff]  ;;  %v10543_v4 = vpack.c.bf16 %v623_v59, %v618_v58  ;;  %v657_v58 = vld [vmem:[#allocation2 + $0xec0] sm:$0xff] }
 0x148   :  { %10300 = vmatprep.subr.bf16.mxu0 %v10299_v23  ;;  %10496 = vmatprep.subr.bf16.mxu1 %v10495_v28  ;;  %v546_v21 = vld [vmem:[#allocation2 + $0xb48] sm:$0xff]  ;;  %v551_v23 = vld [vmem:[#allocation2 + $0xb70] sm:$0xff]  ;;  %v10513_v28 = vpack.c.bf16 %v542_v20, %v537_v18  ;;  %v10333_v18 = vpack.c.bf16 %v580_v9, %v575_v8  ;;  %v628_v8 = vld [vmem:[#allocation2 + $0xdd8] sm:$0xff] }
 0x149   :  { %v10319_v29 = vpack.c.bf16 %v551_v23, %v546_v21  ;;  %v585_v21 = vld [vmem:[#allocation2 + $0xc80] sm:$0xff]  ;;  %v590_v23 = vld [vmem:[#allocation2 + $0xca8] sm:$0xff] }
 0x14a   :  { %v633_v9 = vld [vmem:[#allocation2 + $0xe00] sm:$0xff] }
 0x14b   :  { %10302 = vmatpush1.bf16.msra.mxu0 %v10301_v35  ;;  %10498 = vmatpush1.bf16.msra.mxu1 %v10497_v36  ;;  %v552_v35 = vld [vmem:[#allocation2 + $0xb78] sm:$0xff]  ;;  %v10547_v17 = vpack.c.bf16 %v633_v9, %v628_v8  ;;  %v667_v9 = vld [vmem:[#allocation2 + $0xf10] sm:$0xff] }
 0x14c   :  { %10304 = vmatprep.subr.bf16.mxu0 %v10303_v37  ;;  %10500 = vmatprep.subr.bf16.mxu1 %v10499_v42  ;;  %v556_v36 = vld [vmem:[#allocation2 + $0xb98] sm:$0xff]  ;;  %v561_v37 = vld [vmem:[#allocation2 + $0xbc0] sm:$0xff]  ;;  %v10517_v42 = vpack.c.bf16 %v552_v35, %v547_v33  ;;  %v10337_v33 = vpack.c.bf16 %v590_v23, %v585_v21  ;;  %v638_v21 = vld [vmem:[#allocation2 + $0xe28] sm:$0xff] }
 0x14d   :  { %v10323_v43 = vpack.c.bf16 %v561_v37, %v556_v36  ;;  %v595_v36 = vld [vmem:[#allocation2 + $0xcd0] sm:$0xff]  ;;  %v600_v37 = vld [vmem:[#allocation2 + $0xcf8] sm:$0xff] }
 0x14e   :  { %855 = vmatmul.mubr.f32.vlgmr.msra.gmra.mrb[0].mxu0 %v13883_v26  ;;  %1139 = vmatmul.mubr.f32.vlgmr.msra.gmra.mrb[0].mxu1 %v13883_v26  ;;  %v643_v23 = vld [vmem:[#allocation2 + $0xe50] sm:$0xff] }
 0x14f   :  { %10306 = vmatpush1.bf16.msra.mxu0 %v10305_v48  ;;  %10502 = vmatpush1.bf16.msra.mxu1 %v10501_v50  ;;  %v562_v48 = vld [vmem:[#allocation2 + $0xbc8] sm:$0xff]  ;;  %v10551_v31 = vpack.c.bf16 %v643_v23, %v638_v21  ;;  %v15192_v21 = vmov 0.0   ;;  %v189_v23 = vld [vmem:[#allocation2 + $0x20] sm:$0xff] }
 0x150   :  { %10308 = vmatprep.subr.bf16.mxu0 %v10307_v51  ;;  %10504 = vmatprep.subr.bf16.mxu1 %v10503_v56  ;;  %v566_v50 = vld [vmem:[#allocation2 + $0xbe8] sm:$0xff]  ;;  %v571_v51 = vld [vmem:[#allocation2 + $0xc10] sm:$0xff]  ;;  %v10521_v56 = vpack.c.bf16 %v562_v48, %v557_v46  ;;  %v10341_v46 = vpack.c.bf16 %v600_v37, %v595_v36  ;;  %v648_v36 = vld [vmem:[#allocation2 + $0xe78] sm:$0xff] }
 0x151   :  { %925 = vmatprep.mubr.f32.mxu0 %v13905_v63  ;;  %1209 = vmatprep.mubr.f32.mxu1 %v13905_v63  ;;  %v10327_v57 = vpack.c.bf16 %v571_v51, %v566_v50  ;;  %v605_v50 = vld [vmem:[#allocation2 + $0xd20] sm:$0xff]  ;;  %v610_v51 = vld [vmem:[#allocation2 + $0xd48] sm:$0xff] }
 0x152   :  { %v653_v37 = vld [vmem:[#allocation2 + $0xea0] sm:$0xff] }
 0x153   :  { %10310 = vmatpush1.bf16.msra.mxu0 %v10309_v0  ;;  %10506 = vmatpush1.bf16.msra.mxu1 %v10505_v1  ;;  %v572_v0 = vld [vmem:[#allocation2 + $0xc18] sm:$0xff]  ;;  %v10555_v45 = vpack.c.bf16 %v653_v37, %v648_v36  ;;  %v199_v36 = vld [vmem:[#allocation2 + $0x70] sm:$0xff] }
 0x154   :  { %10312 = vmatprep.subr.bf16.mxu0 %v10311_v2  ;;  %10508 = vmatprep.subr.bf16.mxu1 %v10507_v6  ;;  %v576_v1 = vld [vmem:[#allocation2 + $0xc38] sm:$0xff]  ;;  %v581_v2 = vld [vmem:[#allocation2 + $0xc60] sm:$0xff]  ;;  %v10525_v6 = vpack.c.bf16 %v572_v0, %v567_v60  ;;  %v10345_v60 = vpack.c.bf16 %v610_v51, %v605_v50  ;;  %v658_v50 = vld [vmem:[#allocation2 + $0xec8] sm:$0xff] }
 0x155   :  { %v10331_v7 = vpack.c.bf16 %v581_v2, %v576_v1  ;;  %v615_v1 = vld [vmem:[#allocation2 + $0xd70] sm:$0xff]  ;;  %v620_v2 = vld [vmem:[#allocation2 + $0xd98] sm:$0xff] }
 0x156   :  { %v663_v51 = vld [vmem:[#allocation2 + $0xef0] sm:$0xff]  ;;  %v204_v37 = vld [vmem:[#allocation2 + $0x98] sm:$0xff] }
 0x157   :  { %10314 = vmatpush1.bf16.msra.mxu0 %v10313_v13  ;;  %10510 = vmatpush1.bf16.msra.mxu1 %v10509_v14  ;;  %v582_v13 = vld [vmem:[#allocation2 + $0xc68] sm:$0xff]  ;;  %v10559_v59 = vpack.c.bf16 %v663_v51, %v658_v50  ;;  %v369_v51 = vld [vmem:[#allocation2 + $0x5c0] sm:$0xff] }
 0x158   :  { %10316 = vmatprep.subr.bf16.mxu0 %v10315_v15  ;;  %10512 = vmatprep.subr.bf16.mxu1 %v10511_v19  ;;  %v586_v14 = vld [vmem:[#allocation2 + $0xc88] sm:$0xff]  ;;  %v591_v15 = vld [vmem:[#allocation2 + $0xcb0] sm:$0xff]  ;;  %v10529_v19 = vpack.c.bf16 %v582_v13, %v577_v10  ;;  %v10349_v10 = vpack.c.bf16 %v620_v2, %v615_v1  ;;  %v668_v1 = vld [vmem:[#allocation2 + $0xf18] sm:$0xff] }
 0x159   :  { %v10335_v20 = vpack.c.bf16 %v591_v15, %v586_v14  ;;  %v625_v14 = vld [vmem:[#allocation2 + $0xdc0] sm:$0xff]  ;;  %v630_v15 = vld [vmem:[#allocation2 + $0xde8] sm:$0xff] }
 0x15a   :  { %v673_v2 = vld [vmem:[#allocation2 + $0xf40] sm:$0xff]  ;;  %v214_v50 = vld [vmem:[#allocation2 + $0xe8] sm:$0xff] }
 0x15b   :  { %10318 = vmatpush1.bf16.msra.mxu0 %v10317_v27  ;;  %10514 = vmatpush1.bf16.msra.mxu1 %v10513_v28  ;;  %v592_v27 = vld [vmem:[#allocation2 + $0xcb8] sm:$0xff]  ;;  %v10563_v8 = vpack.c.bf16 %v673_v2, %v668_v1  ;;  %v379_v2 = vld [vmem:[#allocation2 + $0x610] sm:$0xff] }
 0x15c   :  { %10320 = vmatprep.subr.bf16.mxu0 %v10319_v29  ;;  %10516 = vmatprep.subr.bf16.mxu1 %v10515_v34  ;;  %v596_v28 = vld [vmem:[#allocation2 + $0xcd8] sm:$0xff]  ;;  %v601_v29 = vld [vmem:[#allocation2 + $0xd00] sm:$0xff]  ;;  %v10533_v34 = vpack.c.bf16 %v592_v27, %v587_v24  ;;  %v10353_v24 = vpack.c.bf16 %v630_v15, %v625_v14 }
 0x15d   :  { %v10339_v35 = vpack.c.bf16 %v601_v29, %v596_v28  ;;  %v635_v28 = vld [vmem:[#allocation2 + $0xe10] sm:$0xff]  ;;  %v640_v29 = vld [vmem:[#allocation2 + $0xe38] sm:$0xff]  ;;  %v429_v15 = vld [vmem:[#allocation2 + $0x7a0] sm:$0xff] }
 0x15e   :  { %v224_v1 = vld [vmem:[#allocation2 + $0x138] sm:$0xff] }
 0x15f   :  { %10322 = vmatpush1.bf16.msra.mxu0 %v10321_v41  ;;  %10518 = vmatpush1.bf16.msra.mxu1 %v10517_v42  ;;  %v602_v41 = vld [vmem:[#allocation2 + $0xd08] sm:$0xff] }
 0x160   :  { %10324 = vmatprep.subr.bf16.mxu0 %v10323_v43  ;;  %10520 = vmatprep.subr.bf16.mxu1 %v10519_v47  ;;  %v606_v42 = vld [vmem:[#allocation2 + $0xd28] sm:$0xff]  ;;  %v611_v43 = vld [vmem:[#allocation2 + $0xd50] sm:$0xff]  ;;  %v10537_v47 = vpack.c.bf16 %v602_v41, %v597_v38  ;;  %v10357_v38 = vpack.c.bf16 %v640_v29, %v635_v28  ;;  %v284_v29 = vld [vmem:[#allocation2 + $0x318] sm:$0xff] }
 0x161   :  { %v10343_v48 = vpack.c.bf16 %v611_v43, %v606_v42  ;;  %v645_v42 = vld [vmem:[#allocation2 + $0xe60] sm:$0xff]  ;;  %v650_v43 = vld [vmem:[#allocation2 + $0xe88] sm:$0xff]  ;;  %v279_v28 = vld [vmem:[#allocation2 + $0x2f0] sm:$0xff] }
 0x163   :  { %10326 = vmatpush1.bf16.msra.mxu0 %v10325_v54  ;;  %10522 = vmatpush1.bf16.msra.mxu1 %v10521_v56  ;;  %v612_v54 = vld [vmem:[#allocation2 + $0xd58] sm:$0xff] }
 0x164   :  { %10328 = vmatprep.subr.bf16.mxu0 %v10327_v57  ;;  %10524 = vmatprep.subr.bf16.mxu1 %v10523_v61  ;;  %v616_v56 = vld [vmem:[#allocation2 + $0xd78] sm:$0xff]  ;;  %v621_v57 = vld [vmem:[#allocation2 + $0xda0] sm:$0xff]  ;;  %v10541_v61 = vpack.c.bf16 %v612_v54, %v607_v52  ;;  %v10361_v52 = vpack.c.bf16 %v650_v43, %v645_v42  ;;  %v294_v43 = vld [vmem:[#allocation2 + $0x368] sm:$0xff] }
 0x165   :  { %v10347_v0 = vpack.c.bf16 %v621_v57, %v616_v56  ;;  %v655_v56 = vld [vmem:[#allocation2 + $0xeb0] sm:$0xff]  ;;  %v660_v57 = vld [vmem:[#allocation2 + $0xed8] sm:$0xff]  ;;  %v289_v42 = vld [vmem:[#allocation2 + $0x340] sm:$0xff] }
 0x167   :  { %10330 = vmatpush1.bf16.msra.mxu0 %v10329_v5  ;;  %10526 = vmatpush1.bf16.msra.mxu1 %v10525_v6  ;;  %v622_v5 = vld [vmem:[#allocation2 + $0xda8] sm:$0xff] }
 0x168   :  { %10332 = vmatprep.subr.bf16.mxu0 %v10331_v7  ;;  %10528 = vmatprep.subr.bf16.mxu1 %v10527_v12  ;;  %v626_v6 = vld [vmem:[#allocation2 + $0xdc8] sm:$0xff]  ;;  %v631_v7 = vld [vmem:[#allocation2 + $0xdf0] sm:$0xff]  ;;  %v10545_v12 = vpack.c.bf16 %v622_v5, %v617_v3  ;;  %v10365_v3 = vpack.c.bf16 %v660_v57, %v655_v56  ;;  %v304_v56 = vld [vmem:[#allocation2 + $0x3b8] sm:$0xff] }
 0x169   :  { %v10351_v13 = vpack.c.bf16 %v631_v7, %v626_v6  ;;  %v665_v6 = vld [vmem:[#allocation2 + $0xf00] sm:$0xff]  ;;  %v670_v7 = vld [vmem:[#allocation2 + $0xf28] sm:$0xff]  ;;  %v459_v57 = vld [vmem:[#allocation2 + $0x890] sm:$0xff] }
 0x16a   :  { %v10369_v14 = vpack.c.bf16 %v670_v7, %v665_v6  ;;  %v314_v6 = vld [vmem:[#allocation2 + $0x408] sm:$0xff]  ;;  %v469_v7 = vld [vmem:[#allocation2 + $0x8e0] sm:$0xff] }
 0x16b   :  { %10334 = vmatpush1.bf16.msra.mxu0 %v10333_v18  ;;  %10530 = vmatpush1.bf16.msra.mxu1 %v10529_v19  ;;  %v632_v18 = vld [vmem:[#allocation2 + $0xdf8] sm:$0xff] }
 0x16c   :  { %10336 = vmatprep.subr.bf16.mxu0 %v10335_v20  ;;  %10532 = vmatprep.subr.bf16.mxu1 %v10531_v22  ;;  %v636_v19 = vld [vmem:[#allocation2 + $0xe18] sm:$0xff]  ;;  %v641_v20 = vld [vmem:[#allocation2 + $0xe40] sm:$0xff]  ;;  %v10549_v22 = vpack.c.bf16 %v632_v18, %v627_v16  ;;  %v434_v16 = vld [vmem:[#allocation2 + $0x7c8] sm:$0xff] }
 0x16d   :  { %v10355_v27 = vpack.c.bf16 %v641_v20, %v636_v19  ;;  %v10599_v19 = vpack.c.bf16 %v434_v16, %v429_v15  ;;  %v694_v20 = vcombine.high %v13896_v49, %v13896_v49  ;;  %v439_v49 = vld [vmem:[#allocation2 + $0x7f0] sm:$0xff]  ;;  %v389_v15 = vld [vmem:[#allocation2 + $0x660] sm:$0xff] }
 0x16f   :  { %10338 = vmatpush1.bf16.msra.mxu0 %v10337_v33  ;;  %10534 = vmatpush1.bf16.msra.mxu1 %v10533_v34  ;;  %v642_v33 = vld [vmem:[#allocation2 + $0xe48] sm:$0xff] }
 0x170   :  { %10340 = vmatprep.subr.bf16.mxu0 %v10339_v35  ;;  %10536 = vmatprep.subr.bf16.mxu1 %v10535_v40  ;;  %v646_v34 = vld [vmem:[#allocation2 + $0xe68] sm:$0xff]  ;;  %v651_v35 = vld [vmem:[#allocation2 + $0xe90] sm:$0xff]  ;;  %v10553_v40 = vpack.c.bf16 %v642_v33, %v637_v30  ;;  %v13917_v30 = vrot.slane %v694_v20, %v13863_v11  ;;  %v10573_v11 = vpack.c.bf16 %v204_v37, %v199_v36  ;;  %v489_v36 = vld [vmem:[#allocation2 + $0x980] sm:$0xff] }
 0x171   :  { %v10359_v41 = vpack.c.bf16 %v651_v35, %v646_v34  ;;  %v10571_v35 = vpack.c.bf16 %v284_v29, %v279_v28  ;;  %v479_v20 = vld [vmem:[#allocation2 + $0x930] sm:$0xff]  ;;  %v244_v29 = vld [vmem:[#allocation2 + $0x1d8] sm:$0xff]  ;;  %v494_v37 = vld [vmem:[#allocation2 + $0x9a8] sm:$0xff] }
 0x172   :  { %v239_v28 = vld [vmem:[#allocation2 + $0x1b0] sm:$0xff] }
 0x173   :  { %10342 = vmatpush1.bf16.msra.mxu0 %v10341_v46  ;;  %10538 = vmatpush1.bf16.msra.mxu1 %v10537_v47  ;;  %v652_v46 = vld [vmem:[#allocation2 + $0xe98] sm:$0xff] }
 0x174   :  { %10344 = vmatprep.subr.bf16.mxu0 %v10343_v48  ;;  %10540 = vmatprep.subr.bf16.mxu1 %v10539_v53  ;;  %v656_v47 = vld [vmem:[#allocation2 + $0xeb8] sm:$0xff]  ;;  %v661_v48 = vld [vmem:[#allocation2 + $0xee0] sm:$0xff]  ;;  %v10557_v53 = vpack.c.bf16 %v652_v46, %v647_v44 }
 0x175   :  { %v10363_v54 = vpack.c.bf16 %v661_v48, %v656_v47  ;;  %v449_v44 = vld [vmem:[#allocation2 + $0x840] sm:$0xff]  ;;  %v10575_v47 = vpack.c.bf16 %v294_v43, %v289_v42  ;;  %v254_v43 = vld [vmem:[#allocation2 + $0x228] sm:$0xff] }
 0x176   :  { %v209_v48 = vld [vmem:[#allocation2 + $0xc0] sm:$0xff] }
 0x177   :  { %10346 = vmatpush1.bf16.msra.mxu0 %v10345_v60  ;;  %10542 = vmatpush1.bf16.msra.mxu1 %v10541_v61  ;;  %v662_v60 = vld [vmem:[#allocation2 + $0xee8] sm:$0xff]  ;;  %v249_v42 = vld [vmem:[#allocation2 + $0x200] sm:$0xff] }
 0x178   :  { %10348 = vmatprep.subr.bf16.mxu0 %v10347_v0  ;;  %10544 = vmatprep.subr.bf16.mxu1 %v10543_v4  ;;  %v666_v61 = vld [vmem:[#allocation2 + $0xf08] sm:$0xff]  ;;  %v671_v0 = vld [vmem:[#allocation2 + $0xf30] sm:$0xff]  ;;  %v10561_v4 = vpack.c.bf16 %v662_v60, %v657_v58  ;;  %v464_v58 = vld [vmem:[#allocation2 + $0x8b8] sm:$0xff] }
 0x179   :  { %v10367_v5 = vpack.c.bf16 %v671_v0, %v666_v61  ;;  %v219_v0 = vld [vmem:[#allocation2 + $0x110] sm:$0xff] }
 0x17b   :  { %10350 = vmatpush1.bf16.msra.mxu0 %v10349_v10  ;;  %10546 = vmatpush1.bf16.msra.mxu1 %v10545_v12  ;;  %v672_v10 = vld [vmem:[#allocation2 + $0xf38] sm:$0xff]  ;;  %v269_v12 = vld [vmem:[#allocation2 + $0x2a0] sm:$0xff] }
 0x17c   :  { %10352 = vmatprep.subr.bf16.mxu0 %v10351_v13  ;;  %10548 = vmatprep.subr.bf16.mxu1 %v10547_v17  ;;  %v274_v13 = vld [vmem:[#allocation2 + $0x2c8] sm:$0xff]  ;;  %v10565_v17 = vpack.c.bf16 %v672_v10, %v667_v9  ;;  %v10581_v9 = vpack.c.bf16 %v224_v1, %v219_v0 }
 0x17d   :  { %v10567_v18 = vpack.c.bf16 %v274_v13, %v269_v12  ;;  %v229_v13 = vld [vmem:[#allocation2 + $0x160] sm:$0xff] }
 0x17f   :  { %10354 = vmatpush1.bf16.msra.mxu0 %v10353_v24  ;;  %10550 = vmatpush1.bf16.msra.mxu1 %v10549_v22  ;;  %v194_v24 = vld [vmem:[#allocation2 + $0x48] sm:$0xff]  ;;  %v349_v22 = vld [vmem:[#allocation2 + $0x520] sm:$0xff] }
 0x180   :  { %10356 = vmatprep.subr.bf16.mxu0 %v10355_v27  ;;  %10552 = vmatprep.subr.bf16.mxu1 %v10551_v31  ;;  %v354_v27 = vld [vmem:[#allocation2 + $0x548] sm:$0xff]  ;;  %v444_v31 = vld [vmem:[#allocation2 + $0x818] sm:$0xff]  ;;  %v10569_v33 = vpack.c.bf16 %v194_v24, %v189_v23 }
 0x181   :  { %v10601_v34 = vpack.c.bf16 %v354_v27, %v349_v22  ;;  %v484_v23 = vld [vmem:[#allocation2 + $0x958] sm:$0xff] }
 0x183   :  { %10358 = vmatpush1.bf16.msra.mxu0 %v10357_v38  ;;  %10554 = vmatpush1.bf16.msra.mxu1 %v10553_v40  ;;  %v359_v38 = vld [vmem:[#allocation2 + $0x570] sm:$0xff]  ;;  %v10603_v40 = vpack.c.bf16 %v444_v31, %v439_v49  ;;  %v10619_v31 = vpack.c.bf16 %v484_v23, %v479_v20  ;;  %v1573_v20 = vld [vmem:[#allocation2 + $0xf78] sm:$0xff]  ;;  %v609_v23 = vld [vmem:[#allocation2 + $0xd40] sm:$0xff] }
 0x184   :  { %10360 = vmatprep.subr.bf16.mxu0 %v10359_v41  ;;  %10556 = vmatprep.subr.bf16.mxu1 %v10555_v45  ;;  %v364_v41 = vld [vmem:[#allocation2 + $0x598] sm:$0xff]  ;;  %v454_v45 = vld [vmem:[#allocation2 + $0x868] sm:$0xff]  ;;  %v399_v49 = vld [vmem:[#allocation2 + $0x6b0] sm:$0xff] }
 0x185   :  { %v10605_v46 = vpack.c.bf16 %v364_v41, %v359_v38  ;;  %v10589_v38 = vpack.c.bf16 %v244_v29, %v239_v28 }
 0x187   :  { %10362 = vmatpush1.bf16.msra.mxu0 %v10361_v52  ;;  %10558 = vmatpush1.bf16.msra.mxu1 %v10557_v53  ;;  %v10607_v52 = vpack.c.bf16 %v454_v45, %v449_v44  ;;  %v374_v53 = vld [vmem:[#allocation2 + $0x5e8] sm:$0xff]  ;;  %v409_v44 = vld [vmem:[#allocation2 + $0x700] sm:$0xff]  ;;  %v10623_v45 = vpack.c.bf16 %v494_v37, %v489_v36  ;;  %v619_v37 = vld [vmem:[#allocation2 + $0xd90] sm:$0xff] }
 0x188   :  { %10364 = vmatprep.subr.bf16.mxu0 %v10363_v54  ;;  %10560 = vmatprep.subr.bf16.mxu1 %v10559_v59  ;;  %v299_v54 = vld [vmem:[#allocation2 + $0x390] sm:$0xff]  ;;  %v10577_v59 = vpack.c.bf16 %v214_v50, %v209_v48  ;;  %v10609_v60 = vpack.c.bf16 %v374_v53, %v369_v51  ;;  %v504_v50 = vld [vmem:[#allocation2 + $0x9f8] sm:$0xff]  ;;  %v10593_v51 = vpack.c.bf16 %v254_v43, %v249_v42  ;;  %v1583_v36 = vld [vmem:[#allocation2 + $0xfc8] sm:$0xff] }
 0x189   :  { %v10579_v61 = vpack.c.bf16 %v304_v56, %v299_v54  ;;  %v499_v48 = vld [vmem:[#allocation2 + $0x9d0] sm:$0xff]  ;;  %v264_v56 = vld [vmem:[#allocation2 + $0x278] sm:$0xff] }
 0x18a   :  { %v259_v54 = vld [vmem:[#allocation2 + $0x250] sm:$0xff] }
 0x18b   :  { %10366 = vmatpush1.bf16.msra.mxu0 %v10365_v3  ;;  %10562 = vmatpush1.bf16.msra.mxu1 %v10561_v4  ;;  %v10611_v3 = vpack.c.bf16 %v464_v58, %v459_v57  ;;  %v384_v4 = vld [vmem:[#allocation2 + $0x638] sm:$0xff]  ;;  %v419_v57 = vld [vmem:[#allocation2 + $0x750] sm:$0xff]  ;;  %v10627_v58 = vpack.c.bf16 %v504_v50, %v499_v48  ;;  %v10597_v0 = vpack.c.bf16 %v264_v56, %v259_v54  ;;  %v629_v50 = vld [vmem:[#allocation2 + $0xde0] sm:$0xff] }
 0x18c   :  { %10368 = vmatprep.subr.bf16.mxu0 %v10367_v5  ;;  %10564 = vmatprep.subr.bf16.mxu1 %v10563_v8  ;;  %v309_v5 = vld [vmem:[#allocation2 + $0x3e0] sm:$0xff]  ;;  %v474_v8 = vld [vmem:[#allocation2 + $0x908] sm:$0xff]  ;;  %v10613_v10 = vpack.c.bf16 %v384_v4, %v379_v2  ;;  %v1593_v48 = vld [vmem:[#allocation2 + $0x1018] sm:$0xff] }
 0x18d   :  { %v10583_v12 = vpack.c.bf16 %v314_v6, %v309_v5  ;;  %v10615_v16 = vpack.c.bf16 %v474_v8, %v469_v7  ;;  %v514_v4 = vld [vmem:[#allocation2 + $0xa48] sm:$0xff]  ;;  %v669_v5 = vld [vmem:[#allocation2 + $0xf20] sm:$0xff]  ;;  %v599_v7 = vld [vmem:[#allocation2 + $0xcf0] sm:$0xff] }
 0x18e   :  { %926 = vmatmul.mubr.f32.vlgmr.msra.gmra.mrb[0].mxu0 %v13900_v55  ;;  %1210 = vmatmul.mubr.f32.vlgmr.msra.gmra.mrb[0].mxu1 %v13900_v55  ;;  %v674_v6 = vld [vmem:[#allocation2 + $0xf48] sm:$0xff]  ;;  %v604_v8 = vld [vmem:[#allocation2 + $0xd18] sm:$0xff] }
 0x18f   :  { %10370 = vmatpush1.bf16.msra.mxu0 %v10369_v14  ;;  %10566 = vmatpush1.bf16.msra.mxu1 %v10565_v17  ;;  %v234_v14 = vld [vmem:[#allocation2 + $0x188] sm:$0xff] }
 0x190   :  { %996 = vmatprep.mubr.f32.mxu0 %v15192_v21  ;;  %1280 = vmatprep.mubr.f32.mxu1 %v15192_v21  ;;  %v394_v17 = vld [vmem:[#allocation2 + $0x688] sm:$0xff]  ;;  %v10585_v24 = vpack.c.bf16 %v234_v14, %v229_v13  ;;  %v10664_v13 = vpack.c.bf16 %v674_v6, %v669_v5  ;;  %v519_v14 = vld [vmem:[#allocation2 + $0xa70] sm:$0xff] }
 0x191   :  { %10568 = vmatprep.subr.bf16.mxu0 %v10567_v18  ;;  %10600 = vmatprep.subr.bf16.mxu1 %v10599_v19  ;;  %v319_v18 = vld [vmem:[#allocation2 + $0x430] sm:$0xff]  ;;  %v324_v19 = vld [vmem:[#allocation2 + $0x458] sm:$0xff]  ;;  %v10617_v22 = vpack.c.bf16 %v394_v17, %v389_v15  ;;  %v15194_v17 = vmov 0.0|0.0  }
 0x192   :  { %v10587_v27 = vpack.c.bf16 %v324_v19, %v319_v18  ;;  %v524_v15 = vld [vmem:[#allocation2 + $0xa98] sm:$0xff]  ;;  %v10635_v18 = vpack.c.bf16 %v604_v8, %v599_v7  ;;  %v559_v8 = vld [vmem:[#allocation2 + $0xbb0] sm:$0xff] }
 0x193   :  { %v10637_v28 = vpack.c.bf16 %v524_v15, %v519_v14  ;;  %v649_v14 = vld [vmem:[#allocation2 + $0xe80] sm:$0xff]  ;;  %v654_v15 = vld [vmem:[#allocation2 + $0xea8] sm:$0xff] }
 0x196   :  { %8945 = vmatmul.mubr.msk.f32.vlgmr.msra.gmra.mrb[0].mxu0 %vm716_vm0, %v13917_v30  ;;  %8946 = vmatmul.mubr.msk.f32.vlgmr.msra.gmra.mrb[0].mxu1 %vm716_vm0, %v13917_v30 }
 0x197   :  { %10570 = vmatpush3.bf16.msra.mxu0 %v10569_v33  ;;  %10602 = vmatpush3.bf16.msra.mxu1 %v10601_v34  ;;  %v404_v33 = vld [vmem:[#allocation2 + $0x6d8] sm:$0xff]  ;;  %v329_v34 = vld [vmem:[#allocation2 + $0x480] sm:$0xff] }
 0x198   :  { %10572 = vmatprep.subr.bf16.mxu0 %v10571_v35  ;;  %10604 = vmatprep.subr.bf16.mxu1 %v10603_v40  ;;  %v334_v35 = vld [vmem:[#allocation2 + $0x4a8] sm:$0xff]  ;;  %v10621_v40 = vpack.c.bf16 %v404_v33, %v399_v49 }
 0x199   :  { %1351 = vmatprep.mubr.f32.mxu0 %v13876_v32  ;;  %1421 = vmatprep.mubr.f32.mxu1 %v13887_v39  ;;  %v10591_v41 = vpack.c.bf16 %v334_v35, %v329_v34  ;;  %v534_v33 = vld [vmem:[#allocation2 + $0xae8] sm:$0xff]  ;;  %v1578_v34 = vld [vmem:[#allocation2 + $0xfa0] sm:$0xff] }
 0x19a   :  { %v10672_v43 = vpack.c.bf16 %v1583_v36, %v1578_v34  ;;  %v1634_v34 = vld [vmem:[#allocation2 + $0x1160] sm:$0xff] }
 0x19b   :  { %10574 = vmatpush3.bf16.msra.mxu0 %v10573_v11  ;;  %10606 = vmatpush3.bf16.msra.mxu1 %v10605_v46  ;;  %v414_v11 = vld [vmem:[#allocation2 + $0x728] sm:$0xff]  ;;  %v339_v46 = vld [vmem:[#allocation2 + $0x4d0] sm:$0xff] }
 0x19c   :  { %10576 = vmatprep.subr.bf16.mxu0 %v10575_v47  ;;  %10608 = vmatprep.subr.bf16.mxu1 %v10607_v52  ;;  %v344_v47 = vld [vmem:[#allocation2 + $0x4f8] sm:$0xff]  ;;  %v10625_v52 = vpack.c.bf16 %v414_v11, %v409_v44 }
 0x19d   :  { %v10595_v53 = vpack.c.bf16 %v344_v47, %v339_v46  ;;  %v544_v11 = vld [vmem:[#allocation2 + $0xb38] sm:$0xff]  ;;  %v1588_v46 = vld [vmem:[#allocation2 + $0xff0] sm:$0xff] }
 0x19e   :  { %v10676_v56 = vpack.c.bf16 %v1593_v48, %v1588_v46  ;;  %v1644_v46 = vld [vmem:[#allocation2 + $0x11b0] sm:$0xff] }
 0x19f   :  { %10578 = vmatpush3.bf16.msra.mxu0 %v10577_v59  ;;  %10610 = vmatpush3.bf16.msra.mxu1 %v10609_v60  ;;  %v424_v59 = vld [vmem:[#allocation2 + $0x778] sm:$0xff]  ;;  %v589_v60 = vld [vmem:[#allocation2 + $0xca0] sm:$0xff] }
 0x1a0   :  { %10580 = vmatprep.subr.bf16.mxu0 %v10579_v61  ;;  %10612 = vmatprep.subr.bf16.mxu1 %v10611_v3  ;;  %v594_v61 = vld [vmem:[#allocation2 + $0xcc8] sm:$0xff]  ;;  %v10629_v1 = vpack.c.bf16 %v424_v59, %v419_v57  ;;  %v509_v3 = vld [vmem:[#allocation2 + $0xa20] sm:$0xff] }
 0x1a1   :  { %v10631_v2 = vpack.c.bf16 %v594_v61, %v589_v60  ;;  %v554_v59 = vld [vmem:[#allocation2 + $0xb88] sm:$0xff]  ;;  %v1598_v60 = vld [vmem:[#allocation2 + $0x1040] sm:$0xff] }
 0x1a3   :  { %10582 = vmatpush3.bf16.msra.mxu0 %v10581_v9  ;;  %10614 = vmatpush3.bf16.msra.mxu1 %v10613_v10  ;;  %v1569_v9 = vld [vmem:[#allocation2 + $0xf58] sm:$0xff]  ;;  %v1574_v10 = vld [vmem:[#allocation2 + $0xf80] sm:$0xff] }
 0x1a4   :  { %10584 = vmatprep.subr.bf16.mxu0 %v10583_v12  ;;  %10616 = vmatprep.subr.bf16.mxu1 %v10615_v16  ;;  %v10633_v12 = vpack.c.bf16 %v514_v4, %v509_v3  ;;  %v1568_v16 = vld [vmem:[#allocation2 + $0xf50] sm:$0xff]  ;;  %v10666_v19 = vpack.c.bf16 %v1574_v10, %v1569_v9  ;;  %v1609_v3 = vld [vmem:[#allocation2 + $0x1098] sm:$0xff]  ;;  %v1614_v4 = vld [vmem:[#allocation2 + $0x10c0] sm:$0xff] }
 0x1a5   :  { %v10668_v29 = vpack.c.bf16 %v1573_v20, %v1568_v16  ;;  %v564_v9 = vld [vmem:[#allocation2 + $0xbd8] sm:$0xff]  ;;  %v1608_v10 = vld [vmem:[#allocation2 + $0x1090] sm:$0xff]  ;;  %v1619_v16 = vld [vmem:[#allocation2 + $0x10e8] sm:$0xff] }
 0x1a7   :  { %10586 = vmatpush3.bf16.msra.mxu0 %v10585_v24  ;;  %10618 = vmatpush3.bf16.msra.mxu1 %v10617_v22  ;;  %v614_v24 = vld [vmem:[#allocation2 + $0xd68] sm:$0xff] }
 0x1a8   :  { %10588 = vmatprep.subr.bf16.mxu0 %v10587_v27  ;;  %10620 = vmatprep.subr.bf16.mxu1 %v10619_v31  ;;  %v1579_v22 = vld [vmem:[#allocation2 + $0xfa8] sm:$0xff]  ;;  %v1584_v27 = vld [vmem:[#allocation2 + $0xfd0] sm:$0xff]  ;;  %v10639_v49 = vpack.c.bf16 %v614_v24, %v609_v23  ;;  %v529_v31 = vld [vmem:[#allocation2 + $0xac0] sm:$0xff]  ;;  %v10655_v23 = vpack.c.bf16 %v654_v15, %v649_v14 }
 0x1a9   :  { %v10670_v35 = vpack.c.bf16 %v1584_v27, %v1579_v22  ;;  %v10641_v42 = vpack.c.bf16 %v534_v33, %v529_v31  ;;  %v569_v24 = vld [vmem:[#allocation2 + $0xc00] sm:$0xff]  ;;  %v574_v22 = vld [vmem:[#allocation2 + $0xc28] sm:$0xff]  ;;  %v664_v31 = vld [vmem:[#allocation2 + $0xef8] sm:$0xff] }
 0x1aa   :  { %v1618_v27 = vld [vmem:[#allocation2 + $0x10e0] sm:$0xff]  ;;  %v1629_v33 = vld [vmem:[#allocation2 + $0x1138] sm:$0xff] }
 0x1ab   :  { %10590 = vmatpush3.bf16.msra.mxu0 %v10589_v38  ;;  %10622 = vmatpush3.bf16.msra.mxu1 %v10621_v40  ;;  %v624_v38 = vld [vmem:[#allocation2 + $0xdb8] sm:$0xff]  ;;  %v1658_v15 = vld [vmem:[#allocation2 + $0x1220] sm:$0xff] }
 0x1ac   :  { %10592 = vmatprep.subr.bf16.mxu0 %v10591_v41  ;;  %10624 = vmatprep.subr.bf16.mxu1 %v10623_v45  ;;  %v1589_v40 = vld [vmem:[#allocation2 + $0xff8] sm:$0xff]  ;;  %v1594_v41 = vld [vmem:[#allocation2 + $0x1020] sm:$0xff]  ;;  %v10643_v44 = vpack.c.bf16 %v624_v38, %v619_v37  ;;  %v539_v45 = vld [vmem:[#allocation2 + $0xb10] sm:$0xff] }
 0x1ad   :  { %v10674_v47 = vpack.c.bf16 %v1594_v41, %v1589_v40  ;;  %v10645_v54 = vpack.c.bf16 %v544_v11, %v539_v45  ;;  %v579_v38 = vld [vmem:[#allocation2 + $0xc50] sm:$0xff]  ;;  %v584_v40 = vld [vmem:[#allocation2 + $0xc78] sm:$0xff]  ;;  %v1639_v11 = vld [vmem:[#allocation2 + $0x1188] sm:$0xff] }
 0x1ae   :  { %v1628_v41 = vld [vmem:[#allocation2 + $0x1130] sm:$0xff] }
 0x1af   :  { %10594 = vmatpush3.bf16.msra.mxu0 %v10593_v51  ;;  %10626 = vmatpush3.bf16.msra.mxu1 %v10625_v52  ;;  %v634_v51 = vld [vmem:[#allocation2 + $0xe08] sm:$0xff]  ;;  %v1576_v45 = vld [vmem:[#allocation2 + $0xf90] sm:$0xff] }
 0x1b0   :  { %10596 = vmatprep.subr.bf16.mxu0 %v10595_v53  ;;  %10628 = vmatprep.subr.bf16.mxu1 %v10627_v58  ;;  %v1599_v52 = vld [vmem:[#allocation2 + $0x1048] sm:$0xff]  ;;  %v1604_v53 = vld [vmem:[#allocation2 + $0x1070] sm:$0xff]  ;;  %v10647_v57 = vpack.c.bf16 %v634_v51, %v629_v50  ;;  %v549_v58 = vld [vmem:[#allocation2 + $0xb60] sm:$0xff] }
 0x1b1   :  { %v10678_v61 = vpack.c.bf16 %v1604_v53, %v1599_v52  ;;  %v10649_v5 = vpack.c.bf16 %v554_v59, %v549_v58  ;;  %v1638_v51 = vld [vmem:[#allocation2 + $0x1180] sm:$0xff]  ;;  %v1575_v53 = vld [vmem:[#allocation2 + $0xf88] sm:$0xff]  ;;  %v1649_v59 = vld [vmem:[#allocation2 + $0x11d8] sm:$0xff] }
 0x1b2   :  { %v1570_v52 = vld [vmem:[#allocation2 + $0xf60] sm:$0xff] }
 0x1b3   :  { %10598 = vmatpush3.bf16.msra.mxu0 %v10597_v0  ;;  %10630 = vmatpush3.bf16.msra.mxu1 %v10629_v1  ;;  %v1603_v0 = vld [vmem:[#allocation2 + $0x1068] sm:$0xff]  ;;  %v639_v1 = vld [vmem:[#allocation2 + $0xe30] sm:$0xff]  ;;  %v1586_v58 = vld [vmem:[#allocation2 + $0xfe0] sm:$0xff] }
 0x1b4   :  { %10632 = vmatprep.subr.bf16.mxu0 %v10631_v2  ;;  %10663 = vmatprep.subr.bf16.mxu1 %v15194_v17  ;;  %v644_v2 = vld [vmem:[#allocation2 + $0xe58] sm:$0xff]  ;;  %v10680_v6 = vpack.c.bf16 %v1603_v0, %v1598_v60  ;;  %v1654_v60 = vld [vmem:[#allocation2 + $0x1200] sm:$0xff] }
 0x1b5   :  { %v10651_v7 = vpack.c.bf16 %v644_v2, %v639_v1  ;;  %v1648_v2 = vld [vmem:[#allocation2 + $0x11d0] sm:$0xff] }
 0x1b6   :  { %1352 = vmatmul.mubr.f32.vlgmr.msra.gmra.mrb[2].mxu0 %v13872_v25  ;;  %1422 = vmatmul.mubr.f32.vlgmr.msra.gmra.mrb[2].mxu1 %v13883_v26 }
 0x1b7   :  { %10634 = vmatpush3.bf16.msra.mxu0 %v10633_v12  ;;  %10665 = vmatpush3.bf16.msra.mxu1 %v10664_v13  ;;  %v10682_v12 = vpack.c.bf16 %v1614_v4, %v1609_v3  ;;  %v1613_v13 = vld [vmem:[#allocation2 + $0x10b8] sm:$0xff]  ;;  %v1580_v3 = vld [vmem:[#allocation2 + $0xfb0] sm:$0xff] }
 0x1b8   :  { %9932 = vmatprep.mubr.msk.f32.mxu1 %vm13637_vm1, %v15192_v21  ;;  %10636 = vmatprep.subr.bf16.mxu0 %v10635_v18  ;;  %v1624_v18 = vld [vmem:[#allocation2 + $0x1110] sm:$0xff]  ;;  %v10684_v20 = vpack.c.bf16 %v1613_v13, %v1608_v10  ;;  %v1585_v4 = vld [vmem:[#allocation2 + $0xfd8] sm:$0xff] }
 0x1b9   :  { %10667 = vmatprep.subr.bf16.mxu1 %v10666_v19  ;;  %1491 = vmatprep.mubr.f32.mxu0 %v13905_v63  ;;  %v10653_v19 = vpack.c.bf16 %v564_v9, %v559_v8  ;;  %v1596_v8 = vld [vmem:[#allocation2 + $0x1030] sm:$0xff]  ;;  %v1659_v9 = vld [vmem:[#allocation2 + $0x1228] sm:$0xff] }
 0x1ba   :  { %9933 = vmatmul.mubr.msk.f32.vlgmr.msra.gmra.mrb[4].mxu1 %vm716_vm0, %v13917_v30  ;;  %v1664_v10 = vld [vmem:[#allocation2 + $0x1250] sm:$0xff] }
 0x1bb   :  { %10638 = vmatpush3.bf16.msra.mxu0 %v10637_v28  ;;  %10669 = vmatpush1.bf16.msra.mxu1 %v10668_v29  ;;  %v10686_v28 = vpack.c.bf16 %v1624_v18, %v1619_v16  ;;  %v1623_v29 = vld [vmem:[#allocation2 + $0x1108] sm:$0xff]  ;;  %v1590_v16 = vld [vmem:[#allocation2 + $0x1000] sm:$0xff] }
 0x1bc   :  { %10640 = vmatprep.subr.bf16.mxu0 %v10639_v49  ;;  %10671 = vmatprep.subr.bf16.mxu1 %v10670_v35  ;;  %v659_v49 = vld [vmem:[#allocation2 + $0xed0] sm:$0xff]  ;;  %v10657_v35 = vpack.c.bf16 %v574_v22, %v569_v24  ;;  %v10688_v36 = vpack.c.bf16 %v1623_v29, %v1618_v27  ;;  %v1595_v18 = vld [vmem:[#allocation2 + $0x1028] sm:$0xff]  ;;  %v1606_v24 = vld [vmem:[#allocation2 + $0x1080] sm:$0xff] }
 0x1bd   :  { %2122 = vmatprep.mubr.f32.mxu1 %v13876_v32  ;;  %v10659_v37 = vpack.c.bf16 %v664_v31, %v659_v49  ;;  %v1669_v22 = vld [vmem:[#allocation2 + $0x1278] sm:$0xff]  ;;  %v1674_v27 = vld [vmem:[#allocation2 + $0x12a0] sm:$0xff]  ;;  %v1668_v31 = vld [vmem:[#allocation2 + $0x1270] sm:$0xff] }
 0x1bf   :  { %10642 = vmatpush3.bf16.msra.mxu0 %v10641_v42  ;;  %10673 = vmatpush1.bf16.msra.mxu1 %v10672_v43  ;;  %v10690_v42 = vpack.c.bf16 %v1634_v34, %v1629_v33  ;;  %v1633_v43 = vld [vmem:[#allocation2 + $0x1158] sm:$0xff]  ;;  %v1600_v33 = vld [vmem:[#allocation2 + $0x1050] sm:$0xff] }
 0x1c0   :  { %10644 = vmatprep.subr.bf16.mxu0 %v10643_v44  ;;  %10675 = vmatprep.subr.bf16.mxu1 %v10674_v47  ;;  %v1571_v44 = vld [vmem:[#allocation2 + $0xf68] sm:$0xff]  ;;  %v10661_v47 = vpack.c.bf16 %v584_v40, %v579_v38  ;;  %v10692_v48 = vpack.c.bf16 %v1633_v43, %v1628_v41  ;;  %v1605_v34 = vld [vmem:[#allocation2 + $0x1078] sm:$0xff]  ;;  %v1616_v38 = vld [vmem:[#allocation2 + $0x10d0] sm:$0xff] }
 0x1c1   :  { %v10862_v50 = vpack.c.bf16 %v1576_v45, %v1571_v44  ;;  %v1679_v40 = vld [vmem:[#allocation2 + $0x12c8] sm:$0xff]  ;;  %v1684_v41 = vld [vmem:[#allocation2 + $0x12f0] sm:$0xff]  ;;  %v1678_v45 = vld [vmem:[#allocation2 + $0x12c0] sm:$0xff] }
 0x1c3   :  { %10646 = vmatpush3.bf16.msra.mxu0 %v10645_v54  ;;  %10677 = vmatpush1.bf16.msra.mxu1 %v10676_v56  ;;  %v10694_v54 = vpack.c.bf16 %v1644_v46, %v1639_v11  ;;  %v1643_v56 = vld [vmem:[#allocation2 + $0x11a8] sm:$0xff]  ;;  %v1610_v11 = vld [vmem:[#allocation2 + $0x10a0] sm:$0xff] }
 0x1c4   :  { %10648 = vmatprep.subr.bf16.mxu0 %v10647_v57  ;;  %10679 = vmatprep.subr.bf16.mxu1 %v10678_v61  ;;  %v1581_v57 = vld [vmem:[#allocation2 + $0xfb8] sm:$0xff]  ;;  %v10864_v61 = vpack.c.bf16 %v1575_v53, %v1570_v52  ;;  %v10696_v0 = vpack.c.bf16 %v1643_v56, %v1638_v51  ;;  %v1615_v46 = vld [vmem:[#allocation2 + $0x10c8] sm:$0xff]  ;;  %v1626_v51 = vld [vmem:[#allocation2 + $0x1120] sm:$0xff] }
 0x1c5   :  { %v10866_v1 = vpack.c.bf16 %v1586_v58, %v1581_v57  ;;  %v1689_v52 = vld [vmem:[#allocation2 + $0x1318] sm:$0xff]  ;;  %v1694_v53 = vld [vmem:[#allocation2 + $0x1340] sm:$0xff]  ;;  %v1688_v58 = vld [vmem:[#allocation2 + $0x1310] sm:$0xff] }
 0x1c7   :  { %10650 = vmatpush3.bf16.msra.mxu0 %v10649_v5  ;;  %10681 = vmatpush1.bf16.msra.mxu1 %v10680_v6  ;;  %v10698_v5 = vpack.c.bf16 %v1654_v60, %v1649_v59  ;;  %v1653_v6 = vld [vmem:[#allocation2 + $0x11f8] sm:$0xff]  ;;  %v1620_v59 = vld [vmem:[#allocation2 + $0x10f0] sm:$0xff] }
 0x1c8   :  { %10652 = vmatprep.subr.bf16.mxu0 %v10651_v7  ;;  %10683 = vmatprep.subr.bf16.mxu1 %v10682_v12  ;;  %v1591_v7 = vld [vmem:[#allocation2 + $0x1008] sm:$0xff]  ;;  %v10868_v12 = vpack.c.bf16 %v1585_v4, %v1580_v3  ;;  %v10700_v13 = vpack.c.bf16 %v1653_v6, %v1648_v2  ;;  %v1625_v60 = vld [vmem:[#allocation2 + $0x1118] sm:$0xff]  ;;  %v1636_v2 = vld [vmem:[#allocation2 + $0x1170] sm:$0xff] }
 0x1c9   :  { %v10870_v14 = vpack.c.bf16 %v1596_v8, %v1591_v7  ;;  %v1699_v3 = vld [vmem:[#allocation2 + $0x1368] sm:$0xff]  ;;  %v1704_v4 = vld [vmem:[#allocation2 + $0x1390] sm:$0xff]  ;;  %v1698_v8 = vld [vmem:[#allocation2 + $0x1360] sm:$0xff] }
 0x1cb   :  { %10654 = vmatpush3.bf16.msra.mxu0 %v10653_v19  ;;  %10685 = vmatpush1.bf16.msra.mxu1 %v10684_v20  ;;  %v10702_v19 = vpack.c.bf16 %v1664_v10, %v1659_v9  ;;  %v1663_v20 = vld [vmem:[#allocation2 + $0x1248] sm:$0xff]  ;;  %v1630_v9 = vld [vmem:[#allocation2 + $0x1140] sm:$0xff] }
 0x1cc   :  { %10656 = vmatprep.subr.bf16.mxu0 %v10655_v23  ;;  %10687 = vmatprep.subr.bf16.mxu1 %v10686_v28  ;;  %v1601_v23 = vld [vmem:[#allocation2 + $0x1058] sm:$0xff]  ;;  %v10872_v28 = vpack.c.bf16 %v1595_v18, %v1590_v16  ;;  %v10704_v29 = vpack.c.bf16 %v1663_v20, %v1658_v15  ;;  %v1635_v10 = vld [vmem:[#allocation2 + $0x1168] sm:$0xff]  ;;  %v1646_v15 = vld [vmem:[#allocation2 + $0x11c0] sm:$0xff] }
 0x1cd   :  { %v10874_v49 = vpack.c.bf16 %v1606_v24, %v1601_v23  ;;  %v1709_v16 = vld [vmem:[#allocation2 + $0x13b8] sm:$0xff]  ;;  %v1714_v18 = vld [vmem:[#allocation2 + $0x13e0] sm:$0xff]  ;;  %v1708_v24 = vld [vmem:[#allocation2 + $0x13b0] sm:$0xff] }
 0x1cf   :  { %10658 = vmatpush3.bf16.msra.mxu0 %v10657_v35  ;;  %10689 = vmatpush1.bf16.msra.mxu1 %v10688_v36  ;;  %v10706_v35 = vpack.c.bf16 %v1674_v27, %v1669_v22  ;;  %v1673_v36 = vld [vmem:[#allocation2 + $0x1298] sm:$0xff]  ;;  %v1640_v22 = vld [vmem:[#allocation2 + $0x1190] sm:$0xff] }
 0x1d0   :  { %10660 = vmatprep.subr.bf16.mxu0 %v10659_v37  ;;  %10691 = vmatprep.subr.bf16.mxu1 %v10690_v42  ;;  %v1611_v37 = vld [vmem:[#allocation2 + $0x10a8] sm:$0xff]  ;;  %v10876_v42 = vpack.c.bf16 %v1605_v34, %v1600_v33  ;;  %v10708_v43 = vpack.c.bf16 %v1673_v36, %v1668_v31  ;;  %v1645_v27 = vld [vmem:[#allocation2 + $0x11b8] sm:$0xff]  ;;  %v1656_v31 = vld [vmem:[#allocation2 + $0x1210] sm:$0xff] }
 0x1d1   :  { %v10878_v44 = vpack.c.bf16 %v1616_v38, %v1611_v37  ;;  %v1719_v33 = vld [vmem:[#allocation2 + $0x1408] sm:$0xff]  ;;  %v1724_v34 = vld [vmem:[#allocation2 + $0x1430] sm:$0xff]  ;;  %v1718_v38 = vld [vmem:[#allocation2 + $0x1400] sm:$0xff] }
 0x1d3   :  { %10662 = vmatpush3.bf16.msra.mxu0 %v10661_v47  ;;  %10693 = vmatpush1.bf16.msra.mxu1 %v10692_v48  ;;  %v10710_v47 = vpack.c.bf16 %v1684_v41, %v1679_v40  ;;  %v1683_v48 = vld [vmem:[#allocation2 + $0x12e8] sm:$0xff]  ;;  %v1650_v40 = vld [vmem:[#allocation2 + $0x11e0] sm:$0xff] }
 0x1d4   :  { %10863 = vmatprep.subr.bf16.mxu0 %v10862_v50  ;;  %10695 = vmatprep.subr.bf16.mxu1 %v10694_v54  ;;  %v1621_v50 = vld [vmem:[#allocation2 + $0x10f8] sm:$0xff]  ;;  %v10880_v54 = vpack.c.bf16 %v1615_v46, %v1610_v11  ;;  %v10712_v56 = vpack.c.bf16 %v1683_v48, %v1678_v45  ;;  %v1655_v41 = vld [vmem:[#allocation2 + $0x1208] sm:$0xff]  ;;  %v1666_v45 = vld [vmem:[#allocation2 + $0x1260] sm:$0xff] }
 0x1d5   :  { %v10882_v57 = vpack.c.bf16 %v1626_v51, %v1621_v50  ;;  %v1729_v11 = vld [vmem:[#allocation2 + $0x1458] sm:$0xff]  ;;  %v1734_v46 = vld [vmem:[#allocation2 + $0x1480] sm:$0xff]  ;;  %v1728_v51 = vld [vmem:[#allocation2 + $0x1450] sm:$0xff] }
 0x1d6   :  { %1492 = vmatmul.mubr.f32.vlgmr.msra.gmra.mrb[4].mxu0 %v13900_v55 }
 0x1d7   :  { %10865 = vmatpush1.bf16.msra.mxu0 %v10864_v61  ;;  %2406 = vmatprep.mubr.f32.mxu0 %v13876_v32  ;;  %v10714_v61 = vpack.c.bf16 %v1694_v53, %v1689_v52  ;;  %v1660_v52 = vld [vmem:[#allocation2 + $0x1230] sm:$0xff]  ;;  %v1665_v53 = vld [vmem:[#allocation2 + $0x1258] sm:$0xff] }
 0x1d8   :  { %10697 = vmatpush1.bf16.msra.mxu1 %v10696_v0  ;;  %10867 = vmatprep.subr.bf16.mxu0 %v10866_v1  ;;  %v1693_v0 = vld [vmem:[#allocation2 + $0x1338] sm:$0xff]  ;;  %v1631_v1 = vld [vmem:[#allocation2 + $0x1148] sm:$0xff] }
 0x1d9   :  { %10699 = vmatprep.subr.bf16.mxu1 %v10698_v5  ;;  %v10884_v5 = vpack.c.bf16 %v1625_v60, %v1620_v59  ;;  %v10716_v6 = vpack.c.bf16 %v1693_v0, %v1688_v58  ;;  %v10886_v7 = vpack.c.bf16 %v1636_v2, %v1631_v1  ;;  %v1676_v58 = vld [vmem:[#allocation2 + $0x12b0] sm:$0xff]  ;;  %v1739_v59 = vld [vmem:[#allocation2 + $0x14a8] sm:$0xff]  ;;  %v1738_v2 = vld [vmem:[#allocation2 + $0x14a0] sm:$0xff] }
 0x1da   :  { %v1744_v60 = vld [vmem:[#allocation2 + $0x14d0] sm:$0xff] }
 0x1db   :  { %10869 = vmatpush1.bf16.msra.mxu0 %v10868_v12  ;;  %v10718_v12 = vpack.c.bf16 %v1704_v4, %v1699_v3  ;;  %v1670_v3 = vld [vmem:[#allocation2 + $0x1280] sm:$0xff]  ;;  %v1675_v4 = vld [vmem:[#allocation2 + $0x12a8] sm:$0xff] }
 0x1dc   :  { %10701 = vmatpush1.bf16.msra.mxu1 %v10700_v13  ;;  %10871 = vmatprep.subr.bf16.mxu0 %v10870_v14  ;;  %v1703_v13 = vld [vmem:[#allocation2 + $0x1388] sm:$0xff]  ;;  %v1641_v14 = vld [vmem:[#allocation2 + $0x1198] sm:$0xff] }
 0x1dd   :  { %10703 = vmatprep.subr.bf16.mxu1 %v10702_v19  ;;  %v10888_v19 = vpack.c.bf16 %v1635_v10, %v1630_v9  ;;  %v10720_v20 = vpack.c.bf16 %v1703_v13, %v1698_v8  ;;  %v10890_v23 = vpack.c.bf16 %v1646_v15, %v1641_v14  ;;  %v1686_v8 = vld [vmem:[#allocation2 + $0x1300] sm:$0xff]  ;;  %v1749_v9 = vld [vmem:[#allocation2 + $0x14f8] sm:$0xff]  ;;  %v1748_v15 = vld [vmem:[#allocation2 + $0x14f0] sm:$0xff] }
 0x1de   :  { %v1754_v10 = vld [vmem:[#allocation2 + $0x1520] sm:$0xff] }
 0x1df   :  { %10873 = vmatpush1.bf16.msra.mxu0 %v10872_v28  ;;  %v10722_v28 = vpack.c.bf16 %v1714_v18, %v1709_v16  ;;  %v1680_v16 = vld [vmem:[#allocation2 + $0x12d0] sm:$0xff]  ;;  %v1685_v18 = vld [vmem:[#allocation2 + $0x12f8] sm:$0xff] }
 0x1e0   :  { %10705 = vmatpush1.bf16.msra.mxu1 %v10704_v29  ;;  %10875 = vmatprep.subr.bf16.mxu0 %v10874_v49  ;;  %v1713_v29 = vld [vmem:[#allocation2 + $0x13d8] sm:$0xff]  ;;  %v1651_v49 = vld [vmem:[#allocation2 + $0x11e8] sm:$0xff] }
 0x1e1   :  { %10707 = vmatprep.subr.bf16.mxu1 %v10706_v35  ;;  %v10892_v35 = vpack.c.bf16 %v1645_v27, %v1640_v22  ;;  %v10724_v36 = vpack.c.bf16 %v1713_v29, %v1708_v24  ;;  %v10894_v37 = vpack.c.bf16 %v1656_v31, %v1651_v49  ;;  %v1696_v24 = vld [vmem:[#allocation2 + $0x1350] sm:$0xff]  ;;  %v1759_v22 = vld [vmem:[#allocation2 + $0x1548] sm:$0xff]  ;;  %v1758_v31 = vld [vmem:[#allocation2 + $0x1540] sm:$0xff] }
 0x1e2   :  { %v1764_v27 = vld [vmem:[#allocation2 + $0x1570] sm:$0xff] }
 0x1e3   :  { %10877 = vmatpush1.bf16.msra.mxu0 %v10876_v42  ;;  %v10726_v42 = vpack.c.bf16 %v1724_v34, %v1719_v33  ;;  %v1690_v33 = vld [vmem:[#allocation2 + $0x1320] sm:$0xff]  ;;  %v1695_v34 = vld [vmem:[#allocation2 + $0x1348] sm:$0xff] }
 0x1e4   :  { %10709 = vmatpush1.bf16.msra.mxu1 %v10708_v43  ;;  %10879 = vmatprep.subr.bf16.mxu0 %v10878_v44  ;;  %v1723_v43 = vld [vmem:[#allocation2 + $0x1428] sm:$0xff]  ;;  %v1661_v44 = vld [vmem:[#allocation2 + $0x1238] sm:$0xff] }
 0x1e5   :  { %10711 = vmatprep.subr.bf16.mxu1 %v10710_v47  ;;  %v10896_v47 = vpack.c.bf16 %v1655_v41, %v1650_v40  ;;  %v10728_v48 = vpack.c.bf16 %v1723_v43, %v1718_v38  ;;  %v10898_v50 = vpack.c.bf16 %v1666_v45, %v1661_v44  ;;  %v1706_v38 = vld [vmem:[#allocation2 + $0x13a0] sm:$0xff]  ;;  %v1769_v40 = vld [vmem:[#allocation2 + $0x1598] sm:$0xff]  ;;  %v1768_v45 = vld [vmem:[#allocation2 + $0x1590] sm:$0xff] }
 0x1e6   :  { %v1774_v41 = vld [vmem:[#allocation2 + $0x15c0] sm:$0xff] }
 0x1e7   :  { %10881 = vmatpush1.bf16.msra.mxu0 %v10880_v54  ;;  %v10730_v54 = vpack.c.bf16 %v1734_v46, %v1729_v11  ;;  %v1700_v11 = vld [vmem:[#allocation2 + $0x1370] sm:$0xff]  ;;  %v1705_v46 = vld [vmem:[#allocation2 + $0x1398] sm:$0xff] }
 0x1e8   :  { %10713 = vmatpush1.bf16.msra.mxu1 %v10712_v56  ;;  %10883 = vmatprep.subr.bf16.mxu0 %v10882_v57  ;;  %v1733_v56 = vld [vmem:[#allocation2 + $0x1478] sm:$0xff]  ;;  %v1671_v57 = vld [vmem:[#allocation2 + $0x1288] sm:$0xff] }
 0x1e9   :  { %10715 = vmatprep.subr.bf16.mxu1 %v10714_v61  ;;  %v10900_v61 = vpack.c.bf16 %v1665_v53, %v1660_v52  ;;  %v10732_v0 = vpack.c.bf16 %v1733_v56, %v1728_v51  ;;  %v10902_v1 = vpack.c.bf16 %v1676_v58, %v1671_v57  ;;  %v1716_v51 = vld [vmem:[#allocation2 + $0x13f0] sm:$0xff]  ;;  %v1779_v52 = vld [vmem:[#allocation2 + $0x15e8] sm:$0xff]  ;;  %v1778_v58 = vld [vmem:[#allocation2 + $0x15e0] sm:$0xff] }
 0x1ea   :  { %v1784_v53 = vld [vmem:[#allocation2 + $0x1610] sm:$0xff] }
 0x1eb   :  { %10885 = vmatpush1.bf16.msra.mxu0 %v10884_v5  ;;  %v10734_v5 = vpack.c.bf16 %v1744_v60, %v1739_v59  ;;  %v1710_v59 = vld [vmem:[#allocation2 + $0x13c0] sm:$0xff]  ;;  %v1715_v60 = vld [vmem:[#allocation2 + $0x13e8] sm:$0xff] }
 0x1ec   :  { %10717 = vmatpush1.bf16.msra.mxu1 %v10716_v6  ;;  %10887 = vmatprep.subr.bf16.mxu0 %v10886_v7  ;;  %v1743_v6 = vld [vmem:[#allocation2 + $0x14c8] sm:$0xff]  ;;  %v1681_v7 = vld [vmem:[#allocation2 + $0x12d8] sm:$0xff] }
 0x1ed   :  { %10719 = vmatprep.subr.bf16.mxu1 %v10718_v12  ;;  %v10904_v12 = vpack.c.bf16 %v1675_v4, %v1670_v3  ;;  %v10736_v13 = vpack.c.bf16 %v1743_v6, %v1738_v2  ;;  %v10906_v14 = vpack.c.bf16 %v1686_v8, %v1681_v7  ;;  %v1726_v2 = vld [vmem:[#allocation2 + $0x1440] sm:$0xff]  ;;  %v1789_v3 = vld [vmem:[#allocation2 + $0x1638] sm:$0xff]  ;;  %v1788_v8 = vld [vmem:[#allocation2 + $0x1630] sm:$0xff] }
 0x1ee   :  { %v1794_v4 = vld [vmem:[#allocation2 + $0x1660] sm:$0xff] }
 0x1ef   :  { %10889 = vmatpush1.bf16.msra.mxu0 %v10888_v19  ;;  %v10738_v19 = vpack.c.bf16 %v1754_v10, %v1749_v9  ;;  %v1720_v9 = vld [vmem:[#allocation2 + $0x1410] sm:$0xff]  ;;  %v1725_v10 = vld [vmem:[#allocation2 + $0x1438] sm:$0xff] }
 0x1f0   :  { %10721 = vmatpush1.bf16.msra.mxu1 %v10720_v20  ;;  %10891 = vmatprep.subr.bf16.mxu0 %v10890_v23  ;;  %v1753_v20 = vld [vmem:[#allocation2 + $0x1518] sm:$0xff]  ;;  %v1691_v23 = vld [vmem:[#allocation2 + $0x1328] sm:$0xff] }
 0x1f1   :  { %10723 = vmatprep.subr.bf16.mxu1 %v10722_v28  ;;  %v10908_v28 = vpack.c.bf16 %v1685_v18, %v1680_v16  ;;  %v10740_v29 = vpack.c.bf16 %v1753_v20, %v1748_v15  ;;  %v10910_v49 = vpack.c.bf16 %v1696_v24, %v1691_v23  ;;  %v1736_v15 = vld [vmem:[#allocation2 + $0x1490] sm:$0xff]  ;;  %v1799_v16 = vld [vmem:[#allocation2 + $0x1688] sm:$0xff]  ;;  %v1798_v24 = vld [vmem:[#allocation2 + $0x1680] sm:$0xff] }
 0x1f2   :  { %v1804_v18 = vld [vmem:[#allocation2 + $0x16b0] sm:$0xff] }
 0x1f3   :  { %10893 = vmatpush1.bf16.msra.mxu0 %v10892_v35  ;;  %v10742_v35 = vpack.c.bf16 %v1764_v27, %v1759_v22  ;;  %v1730_v22 = vld [vmem:[#allocation2 + $0x1460] sm:$0xff]  ;;  %v1735_v27 = vld [vmem:[#allocation2 + $0x1488] sm:$0xff] }
 0x1f4   :  { %10725 = vmatpush1.bf16.msra.mxu1 %v10724_v36  ;;  %10895 = vmatprep.subr.bf16.mxu0 %v10894_v37  ;;  %v1763_v36 = vld [vmem:[#allocation2 + $0x1568] sm:$0xff]  ;;  %v1701_v37 = vld [vmem:[#allocation2 + $0x1378] sm:$0xff] }
 0x1f5   :  { %10727 = vmatprep.subr.bf16.mxu1 %v10726_v42  ;;  %v10912_v42 = vpack.c.bf16 %v1695_v34, %v1690_v33  ;;  %v10744_v43 = vpack.c.bf16 %v1763_v36, %v1758_v31  ;;  %v10914_v44 = vpack.c.bf16 %v1706_v38, %v1701_v37  ;;  %v1746_v31 = vld [vmem:[#allocation2 + $0x14e0] sm:$0xff]  ;;  %v1809_v33 = vld [vmem:[#allocation2 + $0x16d8] sm:$0xff]  ;;  %v1808_v38 = vld [vmem:[#allocation2 + $0x16d0] sm:$0xff] }
 0x1f6   :  { %v1814_v34 = vld [vmem:[#allocation2 + $0x1700] sm:$0xff] }
 0x1f7   :  { %10897 = vmatpush1.bf16.msra.mxu0 %v10896_v47  ;;  %v10746_v47 = vpack.c.bf16 %v1774_v41, %v1769_v40  ;;  %v1740_v40 = vld [vmem:[#allocation2 + $0x14b0] sm:$0xff]  ;;  %v1745_v41 = vld [vmem:[#allocation2 + $0x14d8] sm:$0xff] }
 0x1f8   :  { %10729 = vmatpush1.bf16.msra.mxu1 %v10728_v48  ;;  %10899 = vmatprep.subr.bf16.mxu0 %v10898_v50  ;;  %v1773_v48 = vld [vmem:[#allocation2 + $0x15b8] sm:$0xff]  ;;  %v1711_v50 = vld [vmem:[#allocation2 + $0x13c8] sm:$0xff] }
 0x1f9   :  { %10731 = vmatprep.subr.bf16.mxu1 %v10730_v54  ;;  %v10916_v54 = vpack.c.bf16 %v1705_v46, %v1700_v11  ;;  %v10748_v56 = vpack.c.bf16 %v1773_v48, %v1768_v45  ;;  %v10918_v57 = vpack.c.bf16 %v1716_v51, %v1711_v50  ;;  %v1756_v45 = vld [vmem:[#allocation2 + $0x1530] sm:$0xff]  ;;  %v1819_v11 = vld [vmem:[#allocation2 + $0x1728] sm:$0xff]  ;;  %v1818_v51 = vld [vmem:[#allocation2 + $0x1720] sm:$0xff] }
 0x1fa   :  { %v1824_v46 = vld [vmem:[#allocation2 + $0x1750] sm:$0xff] }
 0x1fb   :  { %2123 = vmatmul.mubr.f32.vlgmr.msra.gmra.mrb[6].mxu1 %v13872_v25  ;;  %10901 = vmatpush1.bf16.msra.mxu0 %v10900_v61  ;;  %v10750_v61 = vpack.c.bf16 %v1784_v53, %v1779_v52  ;;  %v1750_v52 = vld [vmem:[#allocation2 + $0x1500] sm:$0xff]  ;;  %v1755_v53 = vld [vmem:[#allocation2 + $0x1528] sm:$0xff] }
 0x1fc   :  { %10733 = vmatpush1.bf16.msra.mxu1 %v10732_v0  ;;  %10903 = vmatprep.subr.bf16.mxu0 %v10902_v1  ;;  %v1783_v0 = vld [vmem:[#allocation2 + $0x1608] sm:$0xff]  ;;  %v1721_v1 = vld [vmem:[#allocation2 + $0x1418] sm:$0xff] }
 0x1fd   :  { %10735 = vmatprep.subr.bf16.mxu1 %v10734_v5  ;;  %2193 = vmatprep.mubr.f32.mxu1 %v13887_v39  ;;  %v10920_v5 = vpack.c.bf16 %v1715_v60, %v1710_v59  ;;  %v10752_v6 = vpack.c.bf16 %v1783_v0, %v1778_v58  ;;  %v10922_v7 = vpack.c.bf16 %v1726_v2, %v1721_v1  ;;  %v1766_v58 = vld [vmem:[#allocation2 + $0x1580] sm:$0xff]  ;;  %v1829_v59 = vld [vmem:[#allocation2 + $0x1778] sm:$0xff]  ;;  %v1828_v2 = vld [vmem:[#allocation2 + $0x1770] sm:$0xff] }
 0x1fe   :  { %v1834_v60 = vld [vmem:[#allocation2 + $0x17a0] sm:$0xff] }
 0x1ff   :  { %10905 = vmatpush1.bf16.msra.mxu0 %v10904_v12  ;;  %v10754_v12 = vpack.c.bf16 %v1794_v4, %v1789_v3  ;;  %v1760_v3 = vld [vmem:[#allocation2 + $0x1550] sm:$0xff]  ;;  %v1765_v4 = vld [vmem:[#allocation2 + $0x1578] sm:$0xff] }
 0x200   :  { %10737 = vmatpush1.bf16.msra.mxu1 %v10736_v13  ;;  %10907 = vmatprep.subr.bf16.mxu0 %v10906_v14  ;;  %v1793_v13 = vld [vmem:[#allocation2 + $0x1658] sm:$0xff]  ;;  %v1731_v14 = vld [vmem:[#allocation2 + $0x1468] sm:$0xff] }
 0x201   :  { %10739 = vmatprep.subr.bf16.mxu1 %v10738_v19  ;;  %v10924_v19 = vpack.c.bf16 %v1725_v10, %v1720_v9  ;;  %v10756_v20 = vpack.c.bf16 %v1793_v13, %v1788_v8  ;;  %v10926_v23 = vpack.c.bf16 %v1736_v15, %v1731_v14  ;;  %v1776_v8 = vld [vmem:[#allocation2 + $0x15d0] sm:$0xff]  ;;  %v1839_v9 = vld [vmem:[#allocation2 + $0x17c8] sm:$0xff]  ;;  %v1838_v15 = vld [vmem:[#allocation2 + $0x17c0] sm:$0xff] }
 0x202   :  { %v1844_v10 = vld [vmem:[#allocation2 + $0x17f0] sm:$0xff] }
 0x203   :  { %10909 = vmatpush1.bf16.msra.mxu0 %v10908_v28  ;;  %v10758_v28 = vpack.c.bf16 %v1804_v18, %v1799_v16  ;;  %v1770_v16 = vld [vmem:[#allocation2 + $0x15a0] sm:$0xff]  ;;  %v1775_v18 = vld [vmem:[#allocation2 + $0x15c8] sm:$0xff] }
 0x204   :  { %10741 = vmatpush1.bf16.msra.mxu1 %v10740_v29  ;;  %10911 = vmatprep.subr.bf16.mxu0 %v10910_v49  ;;  %v1803_v29 = vld [vmem:[#allocation2 + $0x16a8] sm:$0xff]  ;;  %v1741_v49 = vld [vmem:[#allocation2 + $0x14b8] sm:$0xff] }
 0x205   :  { %10743 = vmatprep.subr.bf16.mxu1 %v10742_v35  ;;  %v10928_v35 = vpack.c.bf16 %v1735_v27, %v1730_v22  ;;  %v10760_v36 = vpack.c.bf16 %v1803_v29, %v1798_v24  ;;  %v10930_v37 = vpack.c.bf16 %v1746_v31, %v1741_v49  ;;  %v1786_v24 = vld [vmem:[#allocation2 + $0x1620] sm:$0xff]  ;;  %v1849_v22 = vld [vmem:[#allocation2 + $0x1818] sm:$0xff]  ;;  %v1848_v31 = vld [vmem:[#allocation2 + $0x1810] sm:$0xff] }
 0x206   :  { %v1854_v27 = vld [vmem:[#allocation2 + $0x1840] sm:$0xff] }
 0x207   :  { %10913 = vmatpush1.bf16.msra.mxu0 %v10912_v42  ;;  %v10762_v42 = vpack.c.bf16 %v1814_v34, %v1809_v33  ;;  %v1780_v33 = vld [vmem:[#allocation2 + $0x15f0] sm:$0xff]  ;;  %v1785_v34 = vld [vmem:[#allocation2 + $0x1618] sm:$0xff] }
 0x208   :  { %10745 = vmatpush1.bf16.msra.mxu1 %v10744_v43  ;;  %10915 = vmatprep.subr.bf16.mxu0 %v10914_v44  ;;  %v1813_v43 = vld [vmem:[#allocation2 + $0x16f8] sm:$0xff]  ;;  %v1751_v44 = vld [vmem:[#allocation2 + $0x1508] sm:$0xff] }
 0x209   :  { %10747 = vmatprep.subr.bf16.mxu1 %v10746_v47  ;;  %v10932_v47 = vpack.c.bf16 %v1745_v41, %v1740_v40  ;;  %v10764_v48 = vpack.c.bf16 %v1813_v43, %v1808_v38  ;;  %v10934_v50 = vpack.c.bf16 %v1756_v45, %v1751_v44  ;;  %v1796_v38 = vld [vmem:[#allocation2 + $0x1670] sm:$0xff]  ;;  %v1859_v40 = vld [vmem:[#allocation2 + $0x1868] sm:$0xff]  ;;  %v1858_v45 = vld [vmem:[#allocation2 + $0x1860] sm:$0xff] }
 0x20a   :  { %v1864_v41 = vld [vmem:[#allocation2 + $0x1890] sm:$0xff] }
 0x20b   :  { %10917 = vmatpush1.bf16.msra.mxu0 %v10916_v54  ;;  %v10766_v54 = vpack.c.bf16 %v1824_v46, %v1819_v11  ;;  %v1790_v11 = vld [vmem:[#allocation2 + $0x1640] sm:$0xff]  ;;  %v1795_v46 = vld [vmem:[#allocation2 + $0x1668] sm:$0xff] }
 0x20c   :  { %10749 = vmatpush1.bf16.msra.mxu1 %v10748_v56  ;;  %10919 = vmatprep.subr.bf16.mxu0 %v10918_v57  ;;  %v1823_v56 = vld [vmem:[#allocation2 + $0x1748] sm:$0xff]  ;;  %v1761_v57 = vld [vmem:[#allocation2 + $0x1558] sm:$0xff] }
 0x20d   :  { %10751 = vmatprep.subr.bf16.mxu1 %v10750_v61  ;;  %v10936_v61 = vpack.c.bf16 %v1755_v53, %v1750_v52  ;;  %v10768_v0 = vpack.c.bf16 %v1823_v56, %v1818_v51  ;;  %v10938_v1 = vpack.c.bf16 %v1766_v58, %v1761_v57  ;;  %v1806_v51 = vld [vmem:[#allocation2 + $0x16c0] sm:$0xff]  ;;  %v1869_v52 = vld [vmem:[#allocation2 + $0x18b8] sm:$0xff]  ;;  %v1868_v58 = vld [vmem:[#allocation2 + $0x18b0] sm:$0xff] }
 0x20e   :  { %v1874_v53 = vld [vmem:[#allocation2 + $0x18e0] sm:$0xff] }
 0x20f   :  { %10921 = vmatpush1.bf16.msra.mxu0 %v10920_v5  ;;  %v10770_v5 = vpack.c.bf16 %v1834_v60, %v1829_v59  ;;  %v1800_v59 = vld [vmem:[#allocation2 + $0x1690] sm:$0xff]  ;;  %v1805_v60 = vld [vmem:[#allocation2 + $0x16b8] sm:$0xff] }
 0x210   :  { %10753 = vmatpush1.bf16.msra.mxu1 %v10752_v6  ;;  %10923 = vmatprep.subr.bf16.mxu0 %v10922_v7  ;;  %v1833_v6 = vld [vmem:[#allocation2 + $0x1798] sm:$0xff]  ;;  %v1771_v7 = vld [vmem:[#allocation2 + $0x15a8] sm:$0xff] }
 0x211   :  { %10755 = vmatprep.subr.bf16.mxu1 %v10754_v12  ;;  %v10940_v12 = vpack.c.bf16 %v1765_v4, %v1760_v3  ;;  %v10772_v13 = vpack.c.bf16 %v1833_v6, %v1828_v2  ;;  %v10942_v14 = vpack.c.bf16 %v1776_v8, %v1771_v7  ;;  %v1816_v2 = vld [vmem:[#allocation2 + $0x1710] sm:$0xff]  ;;  %v1879_v3 = vld [vmem:[#allocation2 + $0x1908] sm:$0xff]  ;;  %v1878_v8 = vld [vmem:[#allocation2 + $0x1900] sm:$0xff] }
 0x212   :  { %v1884_v4 = vld [vmem:[#allocation2 + $0x1930] sm:$0xff] }
 0x213   :  { %10925 = vmatpush1.bf16.msra.mxu0 %v10924_v19  ;;  %v10774_v19 = vpack.c.bf16 %v1844_v10, %v1839_v9  ;;  %v1810_v9 = vld [vmem:[#allocation2 + $0x16e0] sm:$0xff]  ;;  %v1815_v10 = vld [vmem:[#allocation2 + $0x1708] sm:$0xff] }
 0x214   :  { %10757 = vmatpush1.bf16.msra.mxu1 %v10756_v20  ;;  %10927 = vmatprep.subr.bf16.mxu0 %v10926_v23  ;;  %v1843_v20 = vld [vmem:[#allocation2 + $0x17e8] sm:$0xff]  ;;  %v1781_v23 = vld [vmem:[#allocation2 + $0x15f8] sm:$0xff] }
 0x215   :  { %10759 = vmatprep.subr.bf16.mxu1 %v10758_v28  ;;  %v10944_v28 = vpack.c.bf16 %v1775_v18, %v1770_v16  ;;  %v10776_v29 = vpack.c.bf16 %v1843_v20, %v1838_v15  ;;  %v10946_v49 = vpack.c.bf16 %v1786_v24, %v1781_v23  ;;  %v1826_v15 = vld [vmem:[#allocation2 + $0x1760] sm:$0xff]  ;;  %v1889_v16 = vld [vmem:[#allocation2 + $0x1958] sm:$0xff]  ;;  %v1888_v24 = vld [vmem:[#allocation2 + $0x1950] sm:$0xff] }
 0x216   :  { %2407 = vmatmul.mubr.f32.vlgmr.msra.gmra.mrb[6].mxu0 %v13872_v25  ;;  %v1894_v18 = vld [vmem:[#allocation2 + $0x1980] sm:$0xff] }
 0x217   :  { %10929 = vmatpush1.bf16.msra.mxu0 %v10928_v35  ;;  %2477 = vmatprep.mubr.f32.mxu0 %v13887_v39  ;;  %v10778_v35 = vpack.c.bf16 %v1854_v27, %v1849_v22  ;;  %v1820_v22 = vld [vmem:[#allocation2 + $0x1730] sm:$0xff]  ;;  %v1825_v27 = vld [vmem:[#allocation2 + $0x1758] sm:$0xff] }
 0x218   :  { %10761 = vmatpush1.bf16.msra.mxu1 %v10760_v36  ;;  %10931 = vmatprep.subr.bf16.mxu0 %v10930_v37  ;;  %v1853_v36 = vld [vmem:[#allocation2 + $0x1838] sm:$0xff]  ;;  %v1791_v37 = vld [vmem:[#allocation2 + $0x1648] sm:$0xff] }
 0x219   :  { %10763 = vmatprep.subr.bf16.mxu1 %v10762_v42  ;;  %v10948_v42 = vpack.c.bf16 %v1785_v34, %v1780_v33  ;;  %v10780_v43 = vpack.c.bf16 %v1853_v36, %v1848_v31  ;;  %v10950_v44 = vpack.c.bf16 %v1796_v38, %v1791_v37  ;;  %v1836_v31 = vld [vmem:[#allocation2 + $0x17b0] sm:$0xff]  ;;  %v1899_v33 = vld [vmem:[#allocation2 + $0x19a8] sm:$0xff]  ;;  %v1898_v38 = vld [vmem:[#allocation2 + $0x19a0] sm:$0xff] }
 0x21a   :  { %v1904_v34 = vld [vmem:[#allocation2 + $0x19d0] sm:$0xff] }
 0x21b   :  { %10933 = vmatpush1.bf16.msra.mxu0 %v10932_v47  ;;  %v10782_v47 = vpack.c.bf16 %v1864_v41, %v1859_v40  ;;  %v1830_v40 = vld [vmem:[#allocation2 + $0x1780] sm:$0xff]  ;;  %v1835_v41 = vld [vmem:[#allocation2 + $0x17a8] sm:$0xff] }
 0x21c   :  { %10765 = vmatpush1.bf16.msra.mxu1 %v10764_v48  ;;  %10935 = vmatprep.subr.bf16.mxu0 %v10934_v50  ;;  %v1863_v48 = vld [vmem:[#allocation2 + $0x1888] sm:$0xff]  ;;  %v1801_v50 = vld [vmem:[#allocation2 + $0x1698] sm:$0xff] }
 0x21d   :  { %10767 = vmatprep.subr.bf16.mxu1 %v10766_v54  ;;  %v10952_v54 = vpack.c.bf16 %v1795_v46, %v1790_v11  ;;  %v10784_v56 = vpack.c.bf16 %v1863_v48, %v1858_v45  ;;  %v10954_v57 = vpack.c.bf16 %v1806_v51, %v1801_v50  ;;  %v1846_v45 = vld [vmem:[#allocation2 + $0x1800] sm:$0xff]  ;;  %v1909_v11 = vld [vmem:[#allocation2 + $0x19f8] sm:$0xff]  ;;  %v1908_v51 = vld [vmem:[#allocation2 + $0x19f0] sm:$0xff] }
 0x21e   :  { %v1914_v46 = vld [vmem:[#allocation2 + $0x1a20] sm:$0xff] }
 0x21f   :  { %10937 = vmatpush1.bf16.msra.mxu0 %v10936_v61  ;;  %v10786_v61 = vpack.c.bf16 %v1874_v53, %v1869_v52  ;;  %v1840_v52 = vld [vmem:[#allocation2 + $0x17d0] sm:$0xff]  ;;  %v1845_v53 = vld [vmem:[#allocation2 + $0x17f8] sm:$0xff] }
 0x220   :  { %10769 = vmatpush1.bf16.msra.mxu1 %v10768_v0  ;;  %10939 = vmatprep.subr.bf16.mxu0 %v10938_v1  ;;  %v1873_v0 = vld [vmem:[#allocation2 + $0x18d8] sm:$0xff]  ;;  %v1811_v1 = vld [vmem:[#allocation2 + $0x16e8] sm:$0xff] }
 0x221   :  { %10771 = vmatprep.subr.bf16.mxu1 %v10770_v5  ;;  %v10956_v5 = vpack.c.bf16 %v1805_v60, %v1800_v59  ;;  %v10788_v6 = vpack.c.bf16 %v1873_v0, %v1868_v58  ;;  %v10958_v7 = vpack.c.bf16 %v1816_v2, %v1811_v1  ;;  %v1856_v58 = vld [vmem:[#allocation2 + $0x1850] sm:$0xff]  ;;  %v1919_v59 = vld [vmem:[#allocation2 + $0x1a48] sm:$0xff]  ;;  %v1918_v2 = vld [vmem:[#allocation2 + $0x1a40] sm:$0xff] }
 0x222   :  { %v1924_v60 = vld [vmem:[#allocation2 + $0x1a70] sm:$0xff] }
 0x223   :  { %10941 = vmatpush1.bf16.msra.mxu0 %v10940_v12  ;;  %v10790_v12 = vpack.c.bf16 %v1884_v4, %v1879_v3  ;;  %v1850_v3 = vld [vmem:[#allocation2 + $0x1820] sm:$0xff]  ;;  %v1855_v4 = vld [vmem:[#allocation2 + $0x1848] sm:$0xff] }
 0x224   :  { %10773 = vmatpush1.bf16.msra.mxu1 %v10772_v13  ;;  %10943 = vmatprep.subr.bf16.mxu0 %v10942_v14  ;;  %v1883_v13 = vld [vmem:[#allocation2 + $0x1928] sm:$0xff]  ;;  %v1821_v14 = vld [vmem:[#allocation2 + $0x1738] sm:$0xff] }
 0x225   :  { %10775 = vmatprep.subr.bf16.mxu1 %v10774_v19  ;;  %v10960_v19 = vpack.c.bf16 %v1815_v10, %v1810_v9  ;;  %v10792_v20 = vpack.c.bf16 %v1883_v13, %v1878_v8  ;;  %v10962_v23 = vpack.c.bf16 %v1826_v15, %v1821_v14  ;;  %v1866_v8 = vld [vmem:[#allocation2 + $0x18a0] sm:$0xff]  ;;  %v1929_v9 = vld [vmem:[#allocation2 + $0x1a98] sm:$0xff]  ;;  %v1928_v15 = vld [vmem:[#allocation2 + $0x1a90] sm:$0xff] }
 0x226   :  { %v1934_v10 = vld [vmem:[#allocation2 + $0x1ac0] sm:$0xff] }
 0x227   :  { %10945 = vmatpush1.bf16.msra.mxu0 %v10944_v28  ;;  %v10794_v28 = vpack.c.bf16 %v1894_v18, %v1889_v16  ;;  %v1860_v16 = vld [vmem:[#allocation2 + $0x1870] sm:$0xff]  ;;  %v1865_v18 = vld [vmem:[#allocation2 + $0x1898] sm:$0xff] }
 0x228   :  { %10777 = vmatpush1.bf16.msra.mxu1 %v10776_v29  ;;  %10947 = vmatprep.subr.bf16.mxu0 %v10946_v49  ;;  %v1893_v29 = vld [vmem:[#allocation2 + $0x1978] sm:$0xff]  ;;  %v1831_v49 = vld [vmem:[#allocation2 + $0x1788] sm:$0xff] }
 0x229   :  { %10779 = vmatprep.subr.bf16.mxu1 %v10778_v35  ;;  %v10964_v35 = vpack.c.bf16 %v1825_v27, %v1820_v22  ;;  %v10796_v36 = vpack.c.bf16 %v1893_v29, %v1888_v24  ;;  %v10966_v37 = vpack.c.bf16 %v1836_v31, %v1831_v49  ;;  %v1876_v24 = vld [vmem:[#allocation2 + $0x18f0] sm:$0xff]  ;;  %v1939_v22 = vld [vmem:[#allocation2 + $0x1ae8] sm:$0xff]  ;;  %v1938_v31 = vld [vmem:[#allocation2 + $0x1ae0] sm:$0xff] }
 0x22a   :  { %v1944_v27 = vld [vmem:[#allocation2 + $0x1b10] sm:$0xff] }
 0x22b   :  { %10949 = vmatpush1.bf16.msra.mxu0 %v10948_v42  ;;  %v10798_v42 = vpack.c.bf16 %v1904_v34, %v1899_v33  ;;  %v1870_v33 = vld [vmem:[#allocation2 + $0x18c0] sm:$0xff]  ;;  %v1875_v34 = vld [vmem:[#allocation2 + $0x18e8] sm:$0xff] }
 0x22c   :  { %10781 = vmatpush1.bf16.msra.mxu1 %v10780_v43  ;;  %10951 = vmatprep.subr.bf16.mxu0 %v10950_v44  ;;  %v1903_v43 = vld [vmem:[#allocation2 + $0x19c8] sm:$0xff]  ;;  %v1841_v44 = vld [vmem:[#allocation2 + $0x17d8] sm:$0xff] }
 0x22d   :  { %10783 = vmatprep.subr.bf16.mxu1 %v10782_v47  ;;  %v10968_v47 = vpack.c.bf16 %v1835_v41, %v1830_v40  ;;  %v10800_v48 = vpack.c.bf16 %v1903_v43, %v1898_v38  ;;  %v10970_v50 = vpack.c.bf16 %v1846_v45, %v1841_v44  ;;  %v1886_v38 = vld [vmem:[#allocation2 + $0x1940] sm:$0xff]  ;;  %v1949_v40 = vld [vmem:[#allocation2 + $0x1b38] sm:$0xff]  ;;  %v1948_v45 = vld [vmem:[#allocation2 + $0x1b30] sm:$0xff] }
 0x22e   :  { %v1954_v41 = vld [vmem:[#allocation2 + $0x1b60] sm:$0xff] }
 0x22f   :  { %10953 = vmatpush1.bf16.msra.mxu0 %v10952_v54  ;;  %v10802_v54 = vpack.c.bf16 %v1914_v46, %v1909_v11  ;;  %v1880_v11 = vld [vmem:[#allocation2 + $0x1910] sm:$0xff]  ;;  %v1885_v46 = vld [vmem:[#allocation2 + $0x1938] sm:$0xff] }
 0x230   :  { %10785 = vmatpush1.bf16.msra.mxu1 %v10784_v56  ;;  %10955 = vmatprep.subr.bf16.mxu0 %v10954_v57  ;;  %v1913_v56 = vld [vmem:[#allocation2 + $0x1a18] sm:$0xff]  ;;  %v1851_v57 = vld [vmem:[#allocation2 + $0x1828] sm:$0xff] }
 0x231   :  { %10787 = vmatprep.subr.bf16.mxu1 %v10786_v61  ;;  %v10972_v61 = vpack.c.bf16 %v1845_v53, %v1840_v52  ;;  %v10804_v0 = vpack.c.bf16 %v1913_v56, %v1908_v51  ;;  %v10974_v1 = vpack.c.bf16 %v1856_v58, %v1851_v57  ;;  %v1896_v51 = vld [vmem:[#allocation2 + $0x1990] sm:$0xff]  ;;  %v1959_v52 = vld [vmem:[#allocation2 + $0x1b88] sm:$0xff]  ;;  %v1958_v58 = vld [vmem:[#allocation2 + $0x1b80] sm:$0xff] }
 0x232   :  { %v1964_v53 = vld [vmem:[#allocation2 + $0x1bb0] sm:$0xff] }
 0x233   :  { %10957 = vmatpush1.bf16.msra.mxu0 %v10956_v5  ;;  %v10806_v5 = vpack.c.bf16 %v1924_v60, %v1919_v59  ;;  %v1890_v59 = vld [vmem:[#allocation2 + $0x1960] sm:$0xff]  ;;  %v1895_v60 = vld [vmem:[#allocation2 + $0x1988] sm:$0xff] }
 0x234   :  { %10789 = vmatpush1.bf16.msra.mxu1 %v10788_v6  ;;  %10959 = vmatprep.subr.bf16.mxu0 %v10958_v7  ;;  %v1923_v6 = vld [vmem:[#allocation2 + $0x1a68] sm:$0xff]  ;;  %v1861_v7 = vld [vmem:[#allocation2 + $0x1878] sm:$0xff] }
 0x235   :  { %10791 = vmatprep.subr.bf16.mxu1 %v10790_v12  ;;  %v10976_v12 = vpack.c.bf16 %v1855_v4, %v1850_v3  ;;  %v10808_v13 = vpack.c.bf16 %v1923_v6, %v1918_v2  ;;  %v10978_v14 = vpack.c.bf16 %v1866_v8, %v1861_v7  ;;  %v1906_v2 = vld [vmem:[#allocation2 + $0x19e0] sm:$0xff]  ;;  %v1969_v3 = vld [vmem:[#allocation2 + $0x1bd8] sm:$0xff]  ;;  %v1968_v8 = vld [vmem:[#allocation2 + $0x1bd0] sm:$0xff] }
 0x236   :  { %v1974_v4 = vld [vmem:[#allocation2 + $0x1c00] sm:$0xff] }
 0x237   :  { %10961 = vmatpush1.bf16.msra.mxu0 %v10960_v19  ;;  %v10810_v19 = vpack.c.bf16 %v1934_v10, %v1929_v9  ;;  %v1900_v9 = vld [vmem:[#allocation2 + $0x19b0] sm:$0xff]  ;;  %v1905_v10 = vld [vmem:[#allocation2 + $0x19d8] sm:$0xff] }
 0x238   :  { %10793 = vmatpush1.bf16.msra.mxu1 %v10792_v20  ;;  %10963 = vmatprep.subr.bf16.mxu0 %v10962_v23  ;;  %v1933_v20 = vld [vmem:[#allocation2 + $0x1ab8] sm:$0xff]  ;;  %v1871_v23 = vld [vmem:[#allocation2 + $0x18c8] sm:$0xff] }
 0x239   :  { %10795 = vmatprep.subr.bf16.mxu1 %v10794_v28  ;;  %v10980_v28 = vpack.c.bf16 %v1865_v18, %v1860_v16  ;;  %v10812_v29 = vpack.c.bf16 %v1933_v20, %v1928_v15  ;;  %v10982_v49 = vpack.c.bf16 %v1876_v24, %v1871_v23  ;;  %v1916_v15 = vld [vmem:[#allocation2 + $0x1a30] sm:$0xff]  ;;  %v1979_v16 = vld [vmem:[#allocation2 + $0x1c28] sm:$0xff]  ;;  %v1978_v24 = vld [vmem:[#allocation2 + $0x1c20] sm:$0xff] }
 0x23a   :  { %v1984_v18 = vld [vmem:[#allocation2 + $0x1c50] sm:$0xff] }
 0x23b   :  { %2194 = vmatmul.mubr.f32.vlgmr.msra.gmra.mrb[6].mxu1 %v13883_v26  ;;  %10965 = vmatpush1.bf16.msra.mxu0 %v10964_v35  ;;  %v10814_v35 = vpack.c.bf16 %v1944_v27, %v1939_v22  ;;  %v1910_v22 = vld [vmem:[#allocation2 + $0x1a00] sm:$0xff]  ;;  %v1915_v27 = vld [vmem:[#allocation2 + $0x1a28] sm:$0xff] }
 0x23c   :  { %10797 = vmatpush1.bf16.msra.mxu1 %v10796_v36  ;;  %10967 = vmatprep.subr.bf16.mxu0 %v10966_v37  ;;  %v1943_v36 = vld [vmem:[#allocation2 + $0x1b08] sm:$0xff]  ;;  %v1881_v37 = vld [vmem:[#allocation2 + $0x1918] sm:$0xff] }
 0x23d   :  { %10799 = vmatprep.subr.bf16.mxu1 %v10798_v42  ;;  %2264 = vmatprep.mubr.f32.mxu1 %v13905_v63  ;;  %v10984_v42 = vpack.c.bf16 %v1875_v34, %v1870_v33  ;;  %v10816_v43 = vpack.c.bf16 %v1943_v36, %v1938_v31  ;;  %v10986_v44 = vpack.c.bf16 %v1886_v38, %v1881_v37  ;;  %v1926_v31 = vld [vmem:[#allocation2 + $0x1a80] sm:$0xff]  ;;  %v1989_v33 = vld [vmem:[#allocation2 + $0x1c78] sm:$0xff]  ;;  %v1988_v38 = vld [vmem:[#allocation2 + $0x1c70] sm:$0xff] }
 0x23e   :  { %v1994_v34 = vld [vmem:[#allocation2 + $0x1ca0] sm:$0xff] }
 0x23f   :  { %10969 = vmatpush1.bf16.msra.mxu0 %v10968_v47  ;;  %v10818_v47 = vpack.c.bf16 %v1954_v41, %v1949_v40  ;;  %v1920_v40 = vld [vmem:[#allocation2 + $0x1a50] sm:$0xff]  ;;  %v1925_v41 = vld [vmem:[#allocation2 + $0x1a78] sm:$0xff] }
 0x240   :  { %10801 = vmatpush1.bf16.msra.mxu1 %v10800_v48  ;;  %10971 = vmatprep.subr.bf16.mxu0 %v10970_v50  ;;  %v1953_v48 = vld [vmem:[#allocation2 + $0x1b58] sm:$0xff]  ;;  %v1891_v50 = vld [vmem:[#allocation2 + $0x1968] sm:$0xff] }
 0x241   :  { %10803 = vmatprep.subr.bf16.mxu1 %v10802_v54  ;;  %v10988_v54 = vpack.c.bf16 %v1885_v46, %v1880_v11  ;;  %v10820_v56 = vpack.c.bf16 %v1953_v48, %v1948_v45  ;;  %v10990_v57 = vpack.c.bf16 %v1896_v51, %v1891_v50  ;;  %v1936_v45 = vld [vmem:[#allocation2 + $0x1ad0] sm:$0xff]  ;;  %v1999_v11 = vld [vmem:[#allocation2 + $0x1cc8] sm:$0xff]  ;;  %v1998_v51 = vld [vmem:[#allocation2 + $0x1cc0] sm:$0xff] }
 0x242   :  { %v2004_v46 = vld [vmem:[#allocation2 + $0x1cf0] sm:$0xff] }
 0x243   :  { %10973 = vmatpush1.bf16.msra.mxu0 %v10972_v61  ;;  %v10822_v61 = vpack.c.bf16 %v1964_v53, %v1959_v52  ;;  %v1930_v52 = vld [vmem:[#allocation2 + $0x1aa0] sm:$0xff]  ;;  %v1935_v53 = vld [vmem:[#allocation2 + $0x1ac8] sm:$0xff] }
 0x244   :  { %10805 = vmatpush1.bf16.msra.mxu1 %v10804_v0  ;;  %10975 = vmatprep.subr.bf16.mxu0 %v10974_v1  ;;  %v1963_v0 = vld [vmem:[#allocation2 + $0x1ba8] sm:$0xff]  ;;  %v1901_v1 = vld [vmem:[#allocation2 + $0x19b8] sm:$0xff] }
 0x245   :  { %10807 = vmatprep.subr.bf16.mxu1 %v10806_v5  ;;  %v10992_v5 = vpack.c.bf16 %v1895_v60, %v1890_v59  ;;  %v10824_v6 = vpack.c.bf16 %v1963_v0, %v1958_v58  ;;  %v10994_v7 = vpack.c.bf16 %v1906_v2, %v1901_v1  ;;  %v1946_v58 = vld [vmem:[#allocation2 + $0x1b20] sm:$0xff]  ;;  %v2009_v59 = vld [vmem:[#allocation2 + $0x1d18] sm:$0xff]  ;;  %v2008_v2 = vld [vmem:[#allocation2 + $0x1d10] sm:$0xff] }
 0x246   :  { %v2014_v60 = vld [vmem:[#allocation2 + $0x1d40] sm:$0xff] }
 0x247   :  { %10977 = vmatpush1.bf16.msra.mxu0 %v10976_v12  ;;  %v10826_v12 = vpack.c.bf16 %v1974_v4, %v1969_v3  ;;  %v1940_v3 = vld [vmem:[#allocation2 + $0x1af0] sm:$0xff]  ;;  %v1945_v4 = vld [vmem:[#allocation2 + $0x1b18] sm:$0xff] }
 0x248   :  { %10809 = vmatpush1.bf16.msra.mxu1 %v10808_v13  ;;  %10979 = vmatprep.subr.bf16.mxu0 %v10978_v14  ;;  %v1973_v13 = vld [vmem:[#allocation2 + $0x1bf8] sm:$0xff]  ;;  %v1911_v14 = vld [vmem:[#allocation2 + $0x1a08] sm:$0xff] }
 0x249   :  { %10811 = vmatprep.subr.bf16.mxu1 %v10810_v19  ;;  %v10996_v19 = vpack.c.bf16 %v1905_v10, %v1900_v9  ;;  %v10828_v20 = vpack.c.bf16 %v1973_v13, %v1968_v8  ;;  %v10998_v23 = vpack.c.bf16 %v1916_v15, %v1911_v14  ;;  %v1956_v8 = vld [vmem:[#allocation2 + $0x1b70] sm:$0xff]  ;;  %v2019_v9 = vld [vmem:[#allocation2 + $0x1d68] sm:$0xff]  ;;  %v2018_v15 = vld [vmem:[#allocation2 + $0x1d60] sm:$0xff] }
 0x24a   :  { %v2024_v10 = vld [vmem:[#allocation2 + $0x1d90] sm:$0xff] }
 0x24b   :  { %10981 = vmatpush1.bf16.msra.mxu0 %v10980_v28  ;;  %v10830_v28 = vpack.c.bf16 %v1984_v18, %v1979_v16  ;;  %v1950_v16 = vld [vmem:[#allocation2 + $0x1b40] sm:$0xff]  ;;  %v1955_v18 = vld [vmem:[#allocation2 + $0x1b68] sm:$0xff] }
 0x24c   :  { %10813 = vmatpush1.bf16.msra.mxu1 %v10812_v29  ;;  %10983 = vmatprep.subr.bf16.mxu0 %v10982_v49  ;;  %v1983_v29 = vld [vmem:[#allocation2 + $0x1c48] sm:$0xff]  ;;  %v1921_v49 = vld [vmem:[#allocation2 + $0x1a58] sm:$0xff] }
 0x24d   :  { %10815 = vmatprep.subr.bf16.mxu1 %v10814_v35  ;;  %v11000_v35 = vpack.c.bf16 %v1915_v27, %v1910_v22  ;;  %v10832_v36 = vpack.c.bf16 %v1983_v29, %v1978_v24  ;;  %v11002_v37 = vpack.c.bf16 %v1926_v31, %v1921_v49  ;;  %v1961_v24 = vld [vmem:[#allocation2 + $0x1b98] sm:$0xff]  ;;  %v1966_v22 = vld [vmem:[#allocation2 + $0x1bc0] sm:$0xff] }
 0x24e   :  { %v2029_v29 = vld [vmem:[#allocation2 + $0x1db8] sm:$0xff]  ;;  %v2034_v49 = vld [vmem:[#allocation2 + $0x1de0] sm:$0xff] }
 0x24f   :  { %10985 = vmatpush1.bf16.msra.mxu0 %v10984_v42  ;;  %v10834_v42 = vpack.c.bf16 %v1994_v34, %v1989_v33  ;;  %v11016_v33 = vpack.c.bf16 %v1955_v18, %v1950_v16  ;;  %v2001_v16 = vld [vmem:[#allocation2 + $0x1cd8] sm:$0xff]  ;;  %v2006_v18 = vld [vmem:[#allocation2 + $0x1d00] sm:$0xff] }
 0x250   :  { %10817 = vmatpush1.bf16.msra.mxu1 %v10816_v43  ;;  %10987 = vmatprep.subr.bf16.mxu0 %v10986_v44  ;;  %v1993_v43 = vld [vmem:[#allocation2 + $0x1c98] sm:$0xff]  ;;  %v1931_v44 = vld [vmem:[#allocation2 + $0x1aa8] sm:$0xff] }
 0x251   :  { %10819 = vmatprep.subr.bf16.mxu1 %v10818_v47  ;;  %v11004_v47 = vpack.c.bf16 %v1925_v41, %v1920_v40  ;;  %v10836_v48 = vpack.c.bf16 %v1993_v43, %v1988_v38  ;;  %v11006_v50 = vpack.c.bf16 %v1936_v45, %v1931_v44  ;;  %v1965_v38 = vld [vmem:[#allocation2 + $0x1bb8] sm:$0xff]  ;;  %v10850_v40 = vpack.c.bf16 %v2034_v49, %v2029_v29  ;;  %v1976_v43 = vld [vmem:[#allocation2 + $0x1c10] sm:$0xff]  ;;  %v2039_v44 = vld [vmem:[#allocation2 + $0x1e08] sm:$0xff] }
 0x252   :  { %v2033_v41 = vld [vmem:[#allocation2 + $0x1dd8] sm:$0xff]  ;;  %v2044_v45 = vld [vmem:[#allocation2 + $0x1e30] sm:$0xff] }
 0x253   :  { %10989 = vmatpush1.bf16.msra.mxu0 %v10988_v54  ;;  %v10838_v54 = vpack.c.bf16 %v2004_v46, %v1999_v11  ;;  %v2005_v29 = vld [vmem:[#allocation2 + $0x1cf8] sm:$0xff] }
 0x254   :  { %10821 = vmatpush1.bf16.msra.mxu1 %v10820_v56  ;;  %10991 = vmatprep.subr.bf16.mxu0 %v10990_v57  ;;  %v2003_v56 = vld [vmem:[#allocation2 + $0x1ce8] sm:$0xff]  ;;  %v1941_v57 = vld [vmem:[#allocation2 + $0x1af8] sm:$0xff] }
 0x255   :  { %10823 = vmatprep.subr.bf16.mxu1 %v10822_v61  ;;  %v11008_v61 = vpack.c.bf16 %v1935_v53, %v1930_v52  ;;  %v10840_v0 = vpack.c.bf16 %v2003_v56, %v1998_v51  ;;  %v11010_v1 = vpack.c.bf16 %v1946_v58, %v1941_v57  ;;  %v1975_v51 = vld [vmem:[#allocation2 + $0x1c08] sm:$0xff]  ;;  %v10854_v52 = vpack.c.bf16 %v2044_v45, %v2039_v44  ;;  %v1986_v56 = vld [vmem:[#allocation2 + $0x1c60] sm:$0xff]  ;;  %v2049_v57 = vld [vmem:[#allocation2 + $0x1e58] sm:$0xff] }
 0x256   :  { %2478 = vmatmul.mubr.f32.vlgmr.msra.gmra.mrb[6].mxu0 %v13883_v26  ;;  %v2043_v53 = vld [vmem:[#allocation2 + $0x1e28] sm:$0xff]  ;;  %v2054_v58 = vld [vmem:[#allocation2 + $0x1e80] sm:$0xff]  ;;  %v1577_v49 = vld [vmem:[#allocation2 + $0xf98] sm:$0xff] }
 0x257   :  { %10993 = vmatpush1.bf16.msra.mxu0 %v10992_v5  ;;  %2548 = vmatprep.mubr.f32.mxu0 %v13905_v63  ;;  %v10842_v5 = vpack.c.bf16 %v2014_v60, %v2009_v59  ;;  %v1587_v45 = vld [vmem:[#allocation2 + $0xfe8] sm:$0xff] }
 0x258   :  { %10825 = vmatpush1.bf16.msra.mxu1 %v10824_v6  ;;  %10995 = vmatprep.subr.bf16.mxu0 %v10994_v7  ;;  %v2013_v6 = vld [vmem:[#allocation2 + $0x1d38] sm:$0xff]  ;;  %v1951_v7 = vld [vmem:[#allocation2 + $0x1b48] sm:$0xff] }
 0x259   :  { %10827 = vmatprep.subr.bf16.mxu1 %v10826_v12  ;;  %v11012_v12 = vpack.c.bf16 %v1945_v4, %v1940_v3  ;;  %v10844_v13 = vpack.c.bf16 %v2013_v6, %v2008_v2  ;;  %v11014_v14 = vpack.c.bf16 %v1956_v8, %v1951_v7  ;;  %v1985_v2 = vld [vmem:[#allocation2 + $0x1c58] sm:$0xff]  ;;  %v10858_v3 = vpack.c.bf16 %v2054_v58, %v2049_v57  ;;  %v1996_v6 = vld [vmem:[#allocation2 + $0x1cb0] sm:$0xff] }
 0x25a   :  { %v2053_v4 = vld [vmem:[#allocation2 + $0x1e78] sm:$0xff]  ;;  %v1652_v7 = vld [vmem:[#allocation2 + $0x11f0] sm:$0xff] }
 0x25b   :  { %10997 = vmatpush1.bf16.msra.mxu0 %v10996_v19  ;;  %v1657_v8 = vld [vmem:[#allocation2 + $0x1218] sm:$0xff] }
 0x25c   :  { %10829 = vmatpush1.bf16.msra.mxu1 %v10828_v20  ;;  %10999 = vmatprep.subr.bf16.mxu0 %v10998_v23  ;;  %v10846_v20 = vpack.c.bf16 %v2024_v10, %v2019_v9  ;;  %v2023_v23 = vld [vmem:[#allocation2 + $0x1d88] sm:$0xff]  ;;  %v1597_v58 = vld [vmem:[#allocation2 + $0x1038] sm:$0xff] }
 0x25d   :  { %10831 = vmatprep.subr.bf16.mxu1 %v10830_v28  ;;  %v10848_v34 = vpack.c.bf16 %v2023_v23, %v2018_v15  ;;  %v11058_v15 = vpack.c.bf16 %v1657_v8, %v1652_v7  ;;  %v11034_v23 = vpack.c.bf16 %v2006_v18, %v2001_v16  ;;  %v1697_v16 = vld [vmem:[#allocation2 + $0x1358] sm:$0xff] }
 0x25f   :  { %11001 = vmatpush1.bf16.msra.mxu0 %v11000_v35  ;;  %v11018_v35 = vpack.c.bf16 %v1966_v22, %v1961_v24  ;;  %v1572_v24 = vld [vmem:[#allocation2 + $0xf70] sm:$0xff] }
 0x260   :  { %10833 = vmatpush1.bf16.msra.mxu1 %v10832_v36  ;;  %11003 = vmatprep.subr.bf16.mxu0 %v11002_v37  ;;  %v2028_v36 = vld [vmem:[#allocation2 + $0x1db0] sm:$0xff] }
 0x261   :  { %10835 = vmatprep.subr.bf16.mxu1 %v10834_v42  ;;  %v1960_v37 = vld [vmem:[#allocation2 + $0x1b90] sm:$0xff]  ;;  %v1971_v42 = vld [vmem:[#allocation2 + $0x1be8] sm:$0xff]  ;;  %v10852_v46 = vpack.c.bf16 %v2033_v41, %v2028_v36  ;;  %v1582_v41 = vld [vmem:[#allocation2 + $0xfc0] sm:$0xff] }
 0x262   :  { %v11020_v11 = vpack.c.bf16 %v1965_v38, %v1960_v37  ;;  %v2000_v22 = vld [vmem:[#allocation2 + $0x1cd0] sm:$0xff]  ;;  %v1667_v36 = vld [vmem:[#allocation2 + $0x1268] sm:$0xff]  ;;  %v11060_v38 = vpack.c.bf16 %v1577_v49, %v1572_v24 }
 0x263   :  { %11005 = vmatpush1.bf16.msra.mxu0 %v11004_v47  ;;  %v11022_v47 = vpack.c.bf16 %v1976_v43, %v1971_v42  ;;  %v11036_v37 = vpack.c.bf16 %v2005_v29, %v2000_v22  ;;  %v2010_v42 = vld [vmem:[#allocation2 + $0x1d20] sm:$0xff]  ;;  %v2015_v43 = vld [vmem:[#allocation2 + $0x1d48] sm:$0xff]  ;;  %v1612_v49 = vld [vmem:[#allocation2 + $0x10b0] sm:$0xff] }
 0x264   :  { %10837 = vmatpush1.bf16.msra.mxu1 %v10836_v48  ;;  %11007 = vmatprep.subr.bf16.mxu0 %v11006_v50  ;;  %v2038_v48 = vld [vmem:[#allocation2 + $0x1e00] sm:$0xff] }
 0x265   :  { %10839 = vmatprep.subr.bf16.mxu1 %v10838_v54  ;;  %v1970_v50 = vld [vmem:[#allocation2 + $0x1be0] sm:$0xff]  ;;  %v1981_v54 = vld [vmem:[#allocation2 + $0x1c38] sm:$0xff]  ;;  %v10856_v60 = vpack.c.bf16 %v2043_v53, %v2038_v48  ;;  %v1592_v53 = vld [vmem:[#allocation2 + $0x1010] sm:$0xff] }
 0x266   :  { %v11024_v59 = vpack.c.bf16 %v1975_v51, %v1970_v50  ;;  %v1677_v48 = vld [vmem:[#allocation2 + $0x12b8] sm:$0xff]  ;;  %v11040_v50 = vpack.c.bf16 %v2015_v43, %v2010_v42  ;;  %v11064_v51 = vpack.c.bf16 %v1587_v45, %v1582_v41  ;;  %v1702_v42 = vld [vmem:[#allocation2 + $0x1380] sm:$0xff]  ;;  %v1707_v43 = vld [vmem:[#allocation2 + $0x13a8] sm:$0xff] }
 0x267   :  { %11009 = vmatpush1.bf16.msra.mxu0 %v11008_v61  ;;  %v11026_v61 = vpack.c.bf16 %v1986_v56, %v1981_v54  ;;  %v2020_v54 = vld [vmem:[#allocation2 + $0x1d70] sm:$0xff]  ;;  %v2025_v56 = vld [vmem:[#allocation2 + $0x1d98] sm:$0xff] }
 0x268   :  { %10841 = vmatpush1.bf16.msra.mxu1 %v10840_v0  ;;  %11011 = vmatprep.subr.bf16.mxu0 %v11010_v1  ;;  %v2048_v0 = vld [vmem:[#allocation2 + $0x1e50] sm:$0xff] }
 0x269   :  { %v13944_v19 = vpop.f32.mrb[0].mxu0  ;;  %10843 = vmatprep.subr.bf16.mxu1 %v10842_v5  ;;  %v13946_v27 = vpop.f32.mrb[0].mxu1  ;;  %v1980_v1 = vld [vmem:[#allocation2 + $0x1c30] sm:$0xff]  ;;  %v1991_v5 = vld [vmem:[#allocation2 + $0x1c88] sm:$0xff]  ;;  %v10860_v10 = vpack.c.bf16 %v2053_v4, %v2048_v0  ;;  %v1602_v4 = vld [vmem:[#allocation2 + $0x1060] sm:$0xff] }
 0x26a   :  { %v13948_v28 = vpop.f32.mrb[1].mxu0  ;;  %v13950_v31 = vpop.f32.mrb[1].mxu1  ;;  %v11028_v9 = vpack.c.bf16 %v1985_v2, %v1980_v1  ;;  %v1687_v0 = vld [vmem:[#allocation2 + $0x1308] sm:$0xff]  ;;  %v11044_v1 = vpack.c.bf16 %v2025_v56, %v2020_v54  ;;  %v11068_v2 = vpack.c.bf16 %v1597_v58, %v1592_v53  ;;  %v1812_v53 = vld [vmem:[#allocation2 + $0x16f0] sm:$0xff]  ;;  %v1817_v54 = vld [vmem:[#allocation2 + $0x1718] sm:$0xff] }
 0x26b   :  { %11013 = vmatpush1.bf16.msra.mxu0 %v11012_v12  ;;  %v11030_v12 = vpack.c.bf16 %v1996_v6, %v1991_v5  ;;  %v2030_v5 = vld [vmem:[#allocation2 + $0x1dc0] sm:$0xff]  ;;  %v2035_v6 = vld [vmem:[#allocation2 + $0x1de8] sm:$0xff]  ;;  %v1712_v56 = vld [vmem:[#allocation2 + $0x13d0] sm:$0xff] }
 0x26c   :  { %10845 = vmatpush1.bf16.msra.mxu1 %v10844_v13  ;;  %11015 = vmatprep.subr.bf16.mxu0 %v11014_v14  ;;  %v1990_v13 = vld [vmem:[#allocation2 + $0x1c80] sm:$0xff]  ;;  %v1995_v14 = vld [vmem:[#allocation2 + $0x1ca8] sm:$0xff] }
 0x26d   :  { %10847 = vmatprep.subr.bf16.mxu1 %v10846_v20  ;;  %v11032_v20 = vpack.c.bf16 %v1995_v14, %v1990_v13 }
 0x26f   :  { %11017 = vmatpush1.bf16.msra.mxu0 %v11016_v33  ;;  %v2011_v33 = vld [vmem:[#allocation2 + $0x1d28] sm:$0xff] }
 0x270   :  { %10849 = vmatpush1.bf16.msra.mxu1 %v10848_v34  ;;  %11019 = vmatprep.subr.bf16.mxu0 %v11018_v35  ;;  %v2016_v34 = vld [vmem:[#allocation2 + $0x1d50] sm:$0xff]  ;;  %v1662_v35 = vld [vmem:[#allocation2 + $0x1240] sm:$0xff] }
 0x271   :  { %10851 = vmatprep.subr.bf16.mxu1 %v10850_v40  ;;  %v11038_v40 = vpack.c.bf16 %v2016_v34, %v2011_v33  ;;  %v11062_v44 = vpack.c.bf16 %v1667_v36, %v1662_v35  ;;  %v2040_v33 = vld [vmem:[#allocation2 + $0x1e10] sm:$0xff]  ;;  %v2045_v34 = vld [vmem:[#allocation2 + $0x1e38] sm:$0xff] }
 0x272   :  { %v1617_v36 = vld [vmem:[#allocation2 + $0x10d8] sm:$0xff]  ;;  %v11052_v45 = vpack.c.bf16 %v2045_v34, %v2040_v33  ;;  %v1982_v34 = vld [vmem:[#allocation2 + $0x1c40] sm:$0xff] }
 0x273   :  { %11021 = vmatpush1.bf16.msra.mxu0 %v11020_v11  ;;  %v2021_v11 = vld [vmem:[#allocation2 + $0x1d78] sm:$0xff] }
 0x274   :  { %10853 = vmatpush1.bf16.msra.mxu1 %v10852_v46  ;;  %11023 = vmatprep.subr.bf16.mxu0 %v11022_v47  ;;  %v2026_v46 = vld [vmem:[#allocation2 + $0x1da0] sm:$0xff]  ;;  %v1672_v47 = vld [vmem:[#allocation2 + $0x1290] sm:$0xff]  ;;  %v1837_v33 = vld [vmem:[#allocation2 + $0x17b8] sm:$0xff] }
 0x275   :  { %10855 = vmatprep.subr.bf16.mxu1 %v10854_v52  ;;  %v11042_v52 = vpack.c.bf16 %v2026_v46, %v2021_v11  ;;  %v11066_v57 = vpack.c.bf16 %v1677_v48, %v1672_v47  ;;  %v11076_v11 = vpack.c.bf16 %v1617_v36, %v1612_v49  ;;  %v1622_v46 = vld [vmem:[#allocation2 + $0x1100] sm:$0xff]  ;;  %v1832_v49 = vld [vmem:[#allocation2 + $0x1790] sm:$0xff] }
 0x276   :  { %v2050_v48 = vld [vmem:[#allocation2 + $0x1e60] sm:$0xff] }
 0x277   :  { %11025 = vmatpush1.bf16.msra.mxu0 %v11024_v59  ;;  %v2031_v59 = vld [vmem:[#allocation2 + $0x1dc8] sm:$0xff] }
 0x278   :  { %10857 = vmatpush1.bf16.msra.mxu1 %v10856_v60  ;;  %11027 = vmatprep.subr.bf16.mxu0 %v11026_v61  ;;  %v2036_v60 = vld [vmem:[#allocation2 + $0x1df0] sm:$0xff]  ;;  %v1682_v61 = vld [vmem:[#allocation2 + $0x12e0] sm:$0xff] }
 0x279   :  { %10859 = vmatprep.subr.bf16.mxu1 %v10858_v3  ;;  %v11046_v3 = vpack.c.bf16 %v2036_v60, %v2031_v59  ;;  %v11070_v8 = vpack.c.bf16 %v1687_v0, %v1682_v61  ;;  %v11090_v60 = vpack.c.bf16 %v1817_v54, %v1812_v53  ;;  %v1632_v0 = vld [vmem:[#allocation2 + $0x1150] sm:$0xff]  ;;  %v1762_v54 = vld [vmem:[#allocation2 + $0x1560] sm:$0xff] }
 0x27b   :  { %2265 = vmatmul.mubr.f32.vlgmr.msra.gmra.mrb[6].mxu1 %v13900_v55  ;;  %11029 = vmatpush1.bf16.msra.mxu0 %v11028_v9  ;;  %v1607_v9 = vld [vmem:[#allocation2 + $0x1088] sm:$0xff] }
 0x27c   :  { %10861 = vmatpush1.bf16.msra.mxu1 %v10860_v10  ;;  %11031 = vmatprep.subr.bf16.mxu0 %v11030_v12  ;;  %v2041_v10 = vld [vmem:[#allocation2 + $0x1e18] sm:$0xff]  ;;  %v2046_v12 = vld [vmem:[#allocation2 + $0x1e40] sm:$0xff]  ;;  %v11072_v22 = vpack.c.bf16 %v1607_v9, %v1602_v4  ;;  %v1647_v9 = vld [vmem:[#allocation2 + $0x11c8] sm:$0xff] }
 0x27d   :  { %2335 = vmatprep.mubr.f32.mxu1 %v15192_v21  ;;  %11059 = vmatprep.subr.bf16.mxu1 %v11058_v15  ;;  %v1692_v15 = vld [vmem:[#allocation2 + $0x1330] sm:$0xff]  ;;  %v11050_v29 = vpack.c.bf16 %v2046_v12, %v2041_v10  ;;  %v1822_v10 = vld [vmem:[#allocation2 + $0x1740] sm:$0xff]  ;;  %v1827_v12 = vld [vmem:[#allocation2 + $0x1768] sm:$0xff] }
 0x27e   :  { %v11074_v35 = vpack.c.bf16 %v1697_v16, %v1692_v15 }
 0x27f   :  { %11033 = vmatpush1.bf16.msra.mxu0 %v11032_v20 }
 0x280   :  { %11035 = vmatprep.subr.bf16.mxu0 %v11034_v23  ;;  %v11048_v23 = vpack.c.bf16 %v2035_v6, %v2030_v5  ;;  %v1642_v5 = vld [vmem:[#allocation2 + $0x11a0] sm:$0xff]  ;;  %v1732_v6 = vld [vmem:[#allocation2 + $0x1470] sm:$0xff] }
 0x281   :  { %v11088_v16 = vpack.c.bf16 %v1647_v9, %v1642_v5  ;;  %v1772_v5 = vld [vmem:[#allocation2 + $0x15b0] sm:$0xff] }
 0x283   :  { %8948 = vmatmul.mubr.msk.f32.vlgmr.msra.gmra.mrb[6].mxu1 %vm716_vm0, %v13917_v30  ;;  %11037 = vmatpush1.bf16.msra.mxu0 %v11036_v37  ;;  %v2051_v37 = vld [vmem:[#allocation2 + $0x1e68] sm:$0xff] }
 0x284   :  { %11061 = vmatpush3.bf16.msra.mxu1 %v11060_v38  ;;  %11039 = vmatprep.subr.bf16.mxu0 %v11038_v40  ;;  %v2056_v38 = vld [vmem:[#allocation2 + $0x1e90] sm:$0xff] }
 0x285   :  { %11063 = vmatprep.subr.bf16.mxu1 %v11062_v44  ;;  %2690 = vmatprep.mubr.f32.mxu1 %v13876_v32  ;;  %v11054_v47 = vpack.c.bf16 %v2056_v38, %v2051_v37  ;;  %v11098_v38 = vpack.c.bf16 %v1837_v33, %v1832_v49  ;;  %v1932_v49 = vld [vmem:[#allocation2 + $0x1ab0] sm:$0xff] }
 0x287   :  { %11041 = vmatpush1.bf16.msra.mxu0 %v11040_v50  ;;  %v2055_v50 = vld [vmem:[#allocation2 + $0x1e88] sm:$0xff] }
 0x288   :  { %11065 = vmatpush3.bf16.msra.mxu1 %v11064_v51  ;;  %11043 = vmatprep.subr.bf16.mxu0 %v11042_v52  ;;  %v11078_v51 = vpack.c.bf16 %v1707_v43, %v1702_v42  ;;  %v1627_v52 = vld [vmem:[#allocation2 + $0x1128] sm:$0xff]  ;;  %v11056_v58 = vpack.c.bf16 %v2055_v50, %v2050_v48  ;;  %v1752_v42 = vld [vmem:[#allocation2 + $0x1510] sm:$0xff]  ;;  %v1757_v43 = vld [vmem:[#allocation2 + $0x1538] sm:$0xff] }
 0x289   :  { %v9003_v7 = vpop.f32.mrb[2].mxu0  ;;  %11067 = vmatprep.subr.bf16.mxu1 %v11066_v57  ;;  %v9038_v13 = vpop.f32.mrb[2].mxu1  ;;  %v1717_v57 = vld [vmem:[#allocation2 + $0x13f8] sm:$0xff]  ;;  %v11080_v59 = vpack.c.bf16 %v1627_v52, %v1622_v46  ;;  %v1842_v46 = vld [vmem:[#allocation2 + $0x17e0] sm:$0xff]  ;;  %v1992_v48 = vld [vmem:[#allocation2 + $0x1c90] sm:$0xff] }
 0x28a   :  { %v9004_v14 = vpop.f32.mrb[3].mxu0  ;;  %v9039_v20 = vpop.f32.mrb[3].mxu1  ;;  %v11082_v61 = vpack.c.bf16 %v1717_v57, %v1712_v56  ;;  %v1997_v50 = vld [vmem:[#allocation2 + $0x1cb8] sm:$0xff]  ;;  %v1767_v56 = vld [vmem:[#allocation2 + $0x1588] sm:$0xff]  ;;  %v1912_v57 = vld [vmem:[#allocation2 + $0x1a10] sm:$0xff] }
 0x28b   :  { %v9005_v18 = vadd.f32 %v9004_v14, %v9003_v7  ;;  %11045 = vmatpush1.bf16.msra.mxu0 %v11044_v1  ;;  %v9040_v24 = vadd.f32 %v9039_v20, %v9038_v13  ;;  %v1637_v1 = vld [vmem:[#allocation2 + $0x1178] sm:$0xff]  ;;  %v1972_v13 = vld [vmem:[#allocation2 + $0x1bf0] sm:$0xff]  ;;  %v1742_v20 = vld [vmem:[#allocation2 + $0x14c0] sm:$0xff] }
 0x28c   :  { %11069 = vmatpush3.bf16.msra.mxu1 %v11068_v2  ;;  %11047 = vmatprep.subr.bf16.mxu0 %v11046_v3  ;;  %v1722_v2 = vld [vmem:[#allocation2 + $0x1420] sm:$0xff]  ;;  %v1727_v3 = vld [vmem:[#allocation2 + $0x1448] sm:$0xff]  ;;  %v11084_v4 = vpack.c.bf16 %v1637_v1, %v1632_v0  ;;  %v1737_v7 = vld [vmem:[#allocation2 + $0x1498] sm:$0xff] }
 0x28d   :  { %11071 = vmatprep.subr.bf16.mxu1 %v11070_v8  ;;  %v13957_v40 = vadd.f32 %v9040_v24, %v9005_v18  ;;  %v13959_v41 = vpop.f32.mrb[4].mxu1  ;;  %v11086_v8 = vpack.c.bf16 %v1727_v3, %v1722_v2  ;;  %v1977_v14 = vld [vmem:[#allocation2 + $0x1c18] sm:$0xff]  ;;  %v11092_v15 = vpack.c.bf16 %v1737_v7, %v1732_v6  ;;  %v11094_v18 = vpack.c.bf16 %v1827_v12, %v1822_v10  ;;  %v1892_v24 = vld [vmem:[#allocation2 + $0x1970] sm:$0xff]  ;;  %v2002_v0 = vld [vmem:[#allocation2 + $0x1ce0] sm:$0xff] }
 0x28e   :  { %v9934_v44 = vpop.f32.mrb[5].mxu1  ;;  %v2007_v1 = vld [vmem:[#allocation2 + $0x1d08] sm:$0xff]  ;;  %v11104_v2 = vpack.c.bf16 %v1767_v56, %v1762_v54  ;;  %v1777_v6 = vld [vmem:[#allocation2 + $0x15d8] sm:$0xff]  ;;  %v1922_v7 = vld [vmem:[#allocation2 + $0x1a60] sm:$0xff] }
 0x28f   :  { %11049 = vmatpush1.bf16.msra.mxu0 %v11048_v23  ;;  %v1747_v23 = vld [vmem:[#allocation2 + $0x14e8] sm:$0xff]  ;;  %v1902_v44 = vld [vmem:[#allocation2 + $0x19c0] sm:$0xff]  ;;  %v11134_v9 = vpack.c.bf16 %v2007_v1, %v2002_v0  ;;  %v2037_v54 = vld [vmem:[#allocation2 + $0x1df8] sm:$0xff] }
 0x290   :  { %11073 = vmatpush3.bf16.msra.mxu1 %v11072_v22  ;;  %11051 = vmatprep.subr.bf16.mxu0 %v11050_v29  ;;  %v11122_v22 = vpack.c.bf16 %v1977_v14, %v1972_v13  ;;  %v1897_v29 = vld [vmem:[#allocation2 + $0x1998] sm:$0xff]  ;;  %v11096_v36 = vpack.c.bf16 %v1747_v23, %v1742_v20  ;;  %v1927_v10 = vld [vmem:[#allocation2 + $0x1a88] sm:$0xff]  ;;  %v1862_v12 = vld [vmem:[#allocation2 + $0x1880] sm:$0xff]  ;;  %v11108_v20 = vpack.c.bf16 %v1777_v6, %v1772_v5 }
 0x291   :  { %11075 = vmatprep.subr.bf16.mxu1 %v11074_v35  ;;  %v1987_v35 = vld [vmem:[#allocation2 + $0x1c68] sm:$0xff]  ;;  %v11124_v37 = vpack.c.bf16 %v1897_v29, %v1892_v24  ;;  %v11136_v23 = vpack.c.bf16 %v1927_v10, %v1922_v7  ;;  %v1957_v0 = vld [vmem:[#allocation2 + $0x1b78] sm:$0xff]  ;;  %v2042_v1 = vld [vmem:[#allocation2 + $0x1e20] sm:$0xff] }
 0x292   :  { %v1867_v13 = vld [vmem:[#allocation2 + $0x18a8] sm:$0xff]  ;;  %v1962_v5 = vld [vmem:[#allocation2 + $0x1ba0] sm:$0xff]  ;;  %v2052_v6 = vld [vmem:[#allocation2 + $0x1e70] sm:$0xff] }
 0x293   :  { %11053 = vmatpush1.bf16.msra.mxu0 %v11052_v45  ;;  %v11126_v45 = vpack.c.bf16 %v1987_v35, %v1982_v34  ;;  %v11110_v24 = vpack.c.bf16 %v1867_v13, %v1862_v12  ;;  %v1787_v29 = vld [vmem:[#allocation2 + $0x1628] sm:$0xff]  ;;  %v1937_v35 = vld [vmem:[#allocation2 + $0x1ad8] sm:$0xff]  ;;  %v2918_v12 = vld [vmem:[#allocation2 + $0x1ed0] sm:$0xff] }
 0x294   :  { %11077 = vmatpush3.bf16.msra.mxu1 %v11076_v11  ;;  %11055 = vmatprep.subr.bf16.mxu0 %v11054_v47  ;;  %v1907_v11 = vld [vmem:[#allocation2 + $0x19e8] sm:$0xff]  ;;  %v2057_v7 = vld [vmem:[#allocation2 + $0x1e98] sm:$0xff] }
 0x295   :  { %11079 = vmatprep.subr.bf16.mxu1 %v11078_v51  ;;  %v1847_v47 = vld [vmem:[#allocation2 + $0x1808] sm:$0xff]  ;;  %v11100_v51 = vpack.c.bf16 %v1757_v43, %v1752_v42  ;;  %v11128_v52 = vpack.c.bf16 %v1907_v11, %v1902_v44  ;;  %v2915_v13 = vld [vmem:[#allocation2 + $0x1eb8] sm:$0xff] }
 0x296   :  { %2549 = vmatmul.mubr.f32.vlgmr.msra.gmra.mrb[6].mxu0 %v13900_v55  ;;  %v11102_v53 = vpack.c.bf16 %v1847_v47, %v1842_v46  ;;  %v2027_v42 = vld [vmem:[#allocation2 + $0x1da8] sm:$0xff]  ;;  %v1792_v46 = vld [vmem:[#allocation2 + $0x1650] sm:$0xff]  ;;  %v1797_v47 = vld [vmem:[#allocation2 + $0x1678] sm:$0xff] }
 0x297   :  { %11057 = vmatpush1.bf16.msra.mxu0 %v11056_v58  ;;  %2619 = vmatprep.mubr.f32.mxu0 %v15192_v21  ;;  %v11130_v58 = vpack.c.bf16 %v1997_v50, %v1992_v48  ;;  %v1942_v48 = vld [vmem:[#allocation2 + $0x1b00] sm:$0xff]  ;;  %v1947_v50 = vld [vmem:[#allocation2 + $0x1b28] sm:$0xff]  ;;  %v11116_v56 = vpack.c.bf16 %v1797_v47, %v1792_v46 }
 0x298   :  { %11081 = vmatpush3.bf16.msra.mxu1 %v11080_v59  ;;  %11091 = vmatprep.subr.bf16.mxu0 %v11090_v60  ;;  %v1917_v59 = vld [vmem:[#allocation2 + $0x1a38] sm:$0xff]  ;;  %v1852_v60 = vld [vmem:[#allocation2 + $0x1830] sm:$0xff]  ;;  %v2913_v10 = vld [vmem:[#allocation2 + $0x1ea8] sm:$0xff] }
 0x299   :  { %11083 = vmatprep.subr.bf16.mxu1 %v11082_v61  ;;  %v1857_v61 = vld [vmem:[#allocation2 + $0x1858] sm:$0xff]  ;;  %v11132_v3 = vpack.c.bf16 %v1917_v59, %v1912_v57  ;;  %v1807_v59 = vld [vmem:[#allocation2 + $0x16c8] sm:$0xff] }
 0x29a   :  { %v2929_v46 = vld [vmem:[#allocation2 + $0x1f28] sm:$0xff] }
 0x29b   :  { %v2933_v47 = vld [vmem:[#allocation2 + $0x1f48] sm:$0xff] }
 0x29c   :  { %11085 = vmatpush3.bf16.msra.mxu1 %v11084_v4  ;;  %v11106_v4 = vpack.c.bf16 %v1857_v61, %v1852_v60  ;;  %v1952_v61 = vld [vmem:[#allocation2 + $0x1b50] sm:$0xff] }
 0x29d   :  { %11087 = vmatprep.subr.bf16.mxu1 %v11086_v8 }
 0x29e   :  { %8949 = vmatmul.mubr.msk.f32.vlgmr.msra.gmra.mrb[6].mxu0 %vm716_vm0, %v13917_v30 }
 0x29f   :  { %11093 = vmatpush3.bf16.msra.mxu0 %v11092_v15  ;;  %2760 = vmatprep.mubr.f32.mxu0 %v13887_v39  ;;  %v2012_v15 = vld [vmem:[#allocation2 + $0x1d30] sm:$0xff] }
 0x2a0   :  { %11089 = vmatpush3.bf16.msra.mxu1 %v11088_v16  ;;  %11095 = vmatprep.subr.bf16.mxu0 %v11094_v18  ;;  %v2017_v16 = vld [vmem:[#allocation2 + $0x1d58] sm:$0xff] }
 0x2a1   :  { %11123 = vmatprep.subr.bf16.mxu1 %v11122_v22  ;;  %v1782_v22 = vld [vmem:[#allocation2 + $0x1600] sm:$0xff]  ;;  %v11138_v34 = vpack.c.bf16 %v2017_v16, %v2012_v15  ;;  %v11155_v15 = vpack.c.bf16 %v2057_v7, %v2052_v6 }
 0x2a2   :  { %v11112_v43 = vpack.c.bf16 %v1787_v29, %v1782_v22  ;;  %v2919_v29 = vld [vmem:[#allocation2 + $0x1ed8] sm:$0xff]  ;;  %v2944_v6 = vld [vmem:[#allocation2 + $0x1fa0] sm:$0xff] }
 0x2a3   :  { %2691 = vmatmul.mubr.f32.vlgmr.msra.gmra.mrb[8].mxu1 %v13872_v25  ;;  %11097 = vmatpush3.bf16.msra.mxu0 %v11096_v36  ;;  %v1872_v36 = vld [vmem:[#allocation2 + $0x18d0] sm:$0xff] }
 0x2a4   :  { %11125 = vmatpush3.bf16.msra.mxu1 %v11124_v37  ;;  %11099 = vmatprep.subr.bf16.mxu0 %v11098_v38  ;;  %v1877_v37 = vld [vmem:[#allocation2 + $0x18f8] sm:$0xff]  ;;  %v2022_v38 = vld [vmem:[#allocation2 + $0x1d80] sm:$0xff] }
 0x2a5   :  { %11127 = vmatprep.subr.bf16.mxu1 %v11126_v45  ;;  %2830 = vmatprep.mubr.f32.mxu1 %v13905_v63  ;;  %v11140_v45 = vpack.c.bf16 %v1937_v35, %v1932_v49  ;;  %v11114_v11 = vpack.c.bf16 %v1877_v37, %v1872_v36  ;;  %v2923_v49 = vld [vmem:[#allocation2 + $0x1ef8] sm:$0xff]  ;;  %v2930_v35 = vld [vmem:[#allocation2 + $0x1f30] sm:$0xff] }
 0x2a7   :  { %11101 = vmatpush3.bf16.msra.mxu0 %v11100_v51  ;;  %v1882_v51 = vld [vmem:[#allocation2 + $0x1920] sm:$0xff] }
 0x2a8   :  { %11129 = vmatpush3.bf16.msra.mxu1 %v11128_v52  ;;  %11103 = vmatprep.subr.bf16.mxu0 %v11102_v53  ;;  %v1887_v52 = vld [vmem:[#allocation2 + $0x1948] sm:$0xff]  ;;  %v2032_v53 = vld [vmem:[#allocation2 + $0x1dd0] sm:$0xff] }
 0x2a9   :  { %v9073_v8 = vpop.f32.mrb[4].mxu0  ;;  %11131 = vmatprep.subr.bf16.mxu1 %v11130_v58  ;;  %v11118_v57 = vpack.c.bf16 %v1887_v52, %v1882_v51  ;;  %v1802_v58 = vld [vmem:[#allocation2 + $0x16a0] sm:$0xff]  ;;  %v11146_v60 = vpack.c.bf16 %v2037_v54, %v2032_v53 }
 0x2aa   :  { %v9074_v14 = vpop.f32.mrb[5].mxu0  ;;  %v2932_v54 = vld [vmem:[#allocation2 + $0x1f40] sm:$0xff] }
 0x2ab   :  { %v9075_v18 = vadd.f32 %v9074_v14, %v9073_v8  ;;  %11105 = vmatpush3.bf16.msra.mxu0 %v11104_v2  ;;  %v2047_v2 = vld [vmem:[#allocation2 + $0x1e48] sm:$0xff]  ;;  %v2920_v14 = vld [vmem:[#allocation2 + $0x1ee0] sm:$0xff] }
 0x2ac   :  { %11133 = vmatpush3.bf16.msra.mxu1 %v11132_v3  ;;  %11107 = vmatprep.subr.bf16.mxu0 %v11106_v4  ;;  %v11120_v3 = vpack.c.bf16 %v1807_v59, %v1802_v58  ;;  %v11148_v4 = vpack.c.bf16 %v1957_v0, %v1952_v61  ;;  %v11150_v8 = vpack.c.bf16 %v2047_v2, %v2042_v1  ;;  %v2939_v58 = vld [vmem:[#allocation2 + $0x1f78] sm:$0xff]  ;;  %v2945_v61 = vld [vmem:[#allocation2 + $0x1fa8] sm:$0xff]  ;;  %v2950_v0 = vld [vmem:[#allocation2 + $0x1fd0] sm:$0xff] }
 0x2ad   :  { %v1494_v33 = vadd.f32 %v9075_v18, %v13957_v40  ;;  %11135 = vmatprep.subr.bf16.mxu1 %v11134_v9  ;;  %v11142_v40 = vpack.c.bf16 %v2027_v42, %v2022_v38  ;;  %v1967_v9 = vld [vmem:[#allocation2 + $0x1bc8] sm:$0xff]  ;;  %v11157_v18 = vpack.c.bf16 %v2918_v12, %v2913_v10  ;;  %v11353_v22 = vpack.c.bf16 %v2920_v14, %v2915_v13  ;;  %v2922_v42 = vld [vmem:[#allocation2 + $0x1ef0] sm:$0xff]  ;;  %v2943_v59 = vld [vmem:[#allocation2 + $0x1f98] sm:$0xff] }
 0x2ae   :  { %v11152_v16 = vpack.c.bf16 %v1967_v9, %v1962_v5  ;;  %v2947_v5 = vld [vmem:[#allocation2 + $0x1fb8] sm:$0xff]  ;;  %v11365_v7 = vpack.c.bf16 %v2950_v0, %v2945_v61  ;;  %v2953_v9 = vld [vmem:[#allocation2 + $0x1fe8] sm:$0xff]  ;;  %v2958_v10 = vld [vmem:[#allocation2 + $0x2010] sm:$0xff] }
 0x2af   :  { %11109 = vmatpush3.bf16.msra.mxu0 %v11108_v20  ;;  %v13970_v44 = vadd.f32 %v13959_v41, %v1494_v33  ;;  %v11144_v41 = vpack.c.bf16 %v1947_v50, %v1942_v48  ;;  %v2912_v20 = vld [vmem:[#allocation2 + $0x1ea0] sm:$0xff]  ;;  %v2938_v48 = vld [vmem:[#allocation2 + $0x1f70] sm:$0xff]  ;;  %v2955_v12 = vld [vmem:[#allocation2 + $0x1ff8] sm:$0xff] }
 0x2b0   :  { %11137 = vmatpush3.bf16.msra.mxu1 %v11136_v23  ;;  %11111 = vmatprep.subr.bf16.mxu0 %v11110_v24  ;;  %v2917_v23 = vld [vmem:[#allocation2 + $0x1ec8] sm:$0xff]  ;;  %v2914_v24 = vld [vmem:[#allocation2 + $0x1eb0] sm:$0xff]  ;;  %v2928_v33 = vld [vmem:[#allocation2 + $0x1f20] sm:$0xff]  ;;  %v11165_v53 = vpack.c.bf16 %v2938_v48, %v2933_v47 }
 0x2b1   :  { %11139 = vmatprep.subr.bf16.mxu1 %v11138_v34  ;;  %v2925_v34 = vld [vmem:[#allocation2 + $0x1f08] sm:$0xff]  ;;  %v11159_v36 = vpack.c.bf16 %v2917_v23, %v2912_v20  ;;  %v11355_v37 = vpack.c.bf16 %v2919_v29, %v2914_v24  ;;  %v11161_v38 = vpack.c.bf16 %v2928_v33, %v2923_v49  ;;  %v2940_v50 = vld [vmem:[#allocation2 + $0x1f80] sm:$0xff]  ;;  %v2954_v23 = vld [vmem:[#allocation2 + $0x1ff0] sm:$0xff] }
 0x2b2   :  { %v2960_v13 = vld [vmem:[#allocation2 + $0x2020] sm:$0xff]  ;;  %v2957_v20 = vld [vmem:[#allocation2 + $0x2008] sm:$0xff]  ;;  %v2963_v29 = vld [vmem:[#allocation2 + $0x2038] sm:$0xff] }
 0x2b3   :  { %11113 = vmatpush3.bf16.msra.mxu0 %v11112_v43  ;;  %v2927_v43 = vld [vmem:[#allocation2 + $0x1f18] sm:$0xff]  ;;  %v11369_v24 = vpack.c.bf16 %v2960_v13, %v2955_v12  ;;  %v2968_v49 = vld [vmem:[#allocation2 + $0x2060] sm:$0xff]  ;;  %v2965_v33 = vld [vmem:[#allocation2 + $0x2048] sm:$0xff] }
 0x2b4   :  { %11141 = vmatpush3.bf16.msra.mxu1 %v11140_v45  ;;  %11115 = vmatprep.subr.bf16.mxu0 %v11114_v11  ;;  %v2924_v45 = vld [vmem:[#allocation2 + $0x1f00] sm:$0xff]  ;;  %v11357_v11 = vpack.c.bf16 %v2930_v35, %v2925_v34  ;;  %v11163_v51 = vpack.c.bf16 %v2927_v43, %v2922_v42  ;;  %v2970_v34 = vld [vmem:[#allocation2 + $0x2070] sm:$0xff]  ;;  %v2967_v42 = vld [vmem:[#allocation2 + $0x2058] sm:$0xff] }
 0x2b5   :  { %11143 = vmatprep.subr.bf16.mxu1 %v11142_v40  ;;  %v2935_v40 = vld [vmem:[#allocation2 + $0x1f58] sm:$0xff]  ;;  %v11359_v52 = vpack.c.bf16 %v2929_v46, %v2924_v45  ;;  %v2964_v43 = vld [vmem:[#allocation2 + $0x2040] sm:$0xff]  ;;  %v11373_v45 = vpack.c.bf16 %v2970_v34, %v2965_v33  ;;  %v2973_v46 = vld [vmem:[#allocation2 + $0x2088] sm:$0xff] }
 0x2b6   :  { %v2978_v47 = vld [vmem:[#allocation2 + $0x20b0] sm:$0xff]  ;;  %v2975_v48 = vld [vmem:[#allocation2 + $0x2098] sm:$0xff]  ;;  %v3000_v12 = vld [vmem:[#allocation2 + $0x2160] sm:$0xff] }
 0x2b7   :  { %11117 = vmatpush3.bf16.msra.mxu0 %v11116_v56  ;;  %v2937_v56 = vld [vmem:[#allocation2 + $0x1f68] sm:$0xff]  ;;  %v2990_v61 = vld [vmem:[#allocation2 + $0x2110] sm:$0xff] }
 0x2b8   :  { %11145 = vmatpush3.bf16.msra.mxu1 %v11144_v41  ;;  %11119 = vmatprep.subr.bf16.mxu0 %v11118_v57  ;;  %v2934_v41 = vld [vmem:[#allocation2 + $0x1f50] sm:$0xff]  ;;  %v11361_v57 = vpack.c.bf16 %v2940_v50, %v2935_v40  ;;  %v11167_v1 = vpack.c.bf16 %v2937_v56, %v2932_v54  ;;  %v2980_v40 = vld [vmem:[#allocation2 + $0x20c0] sm:$0xff]  ;;  %v2977_v54 = vld [vmem:[#allocation2 + $0x20a8] sm:$0xff] }
 0x2b9   :  { %11147 = vmatprep.subr.bf16.mxu1 %v11146_v60  ;;  %v2948_v60 = vld [vmem:[#allocation2 + $0x1fc0] sm:$0xff]  ;;  %v11363_v2 = vpack.c.bf16 %v2939_v58, %v2934_v41  ;;  %v2974_v56 = vld [vmem:[#allocation2 + $0x2090] sm:$0xff]  ;;  %v11377_v41 = vpack.c.bf16 %v2980_v40, %v2975_v48  ;;  %v2983_v58 = vld [vmem:[#allocation2 + $0x20d8] sm:$0xff] }
 0x2ba   :  { %v3010_v33 = vld [vmem:[#allocation2 + $0x21b0] sm:$0xff]  ;;  %v3020_v48 = vld [vmem:[#allocation2 + $0x2200] sm:$0xff] }
 0x2bb   :  { %11121 = vmatpush3.bf16.msra.mxu0 %v11120_v3  ;;  %v11169_v3 = vpack.c.bf16 %v2948_v60, %v2943_v59  ;;  %v2988_v59 = vld [vmem:[#allocation2 + $0x2100] sm:$0xff]  ;;  %v2985_v60 = vld [vmem:[#allocation2 + $0x20e8] sm:$0xff] }
 0x2bc   :  { %11149 = vmatpush3.bf16.msra.mxu1 %v11148_v4  ;;  %11154 = vmatprep.subr.bf16.mxu0 %v15194_v17  ;;  %v2942_v4 = vld [vmem:[#allocation2 + $0x1f90] sm:$0xff] }
 0x2bd   :  { %11151 = vmatprep.subr.bf16.mxu1 %v11150_v8  ;;  %v2949_v8 = vld [vmem:[#allocation2 + $0x1fc8] sm:$0xff]  ;;  %v11171_v14 = vpack.c.bf16 %v2947_v5, %v2942_v4  ;;  %v2987_v4 = vld [vmem:[#allocation2 + $0x20f8] sm:$0xff]  ;;  %v2984_v5 = vld [vmem:[#allocation2 + $0x20e0] sm:$0xff] }
 0x2be   :  { %2761 = vmatmul.mubr.f32.vlgmr.msra.gmra.mrb[8].mxu0 %v13883_v26 }
 0x2bf   :  { %11156 = vmatpush3.bf16.msra.mxu0 %v11155_v15  ;;  %9939 = vmatprep.mubr.msk.f32.mxu0 %vm13637_vm1, %v15192_v21  ;;  %v11367_v15 = vpack.c.bf16 %v2949_v8, %v2944_v6  ;;  %v11381_v6 = vpack.c.bf16 %v2990_v61, %v2985_v60  ;;  %v2993_v8 = vld [vmem:[#allocation2 + $0x2128] sm:$0xff]  ;;  %v3030_v60 = vld [vmem:[#allocation2 + $0x2250] sm:$0xff] }
 0x2c0   :  { %11153 = vmatpush3.bf16.msra.mxu1 %v11152_v16  ;;  %11158 = vmatprep.subr.bf16.mxu0 %v11157_v18  ;;  %v11173_v16 = vpack.c.bf16 %v2958_v10, %v2953_v9  ;;  %v2952_v18 = vld [vmem:[#allocation2 + $0x1fe0] sm:$0xff]  ;;  %v2998_v9 = vld [vmem:[#allocation2 + $0x2150] sm:$0xff]  ;;  %v2995_v10 = vld [vmem:[#allocation2 + $0x2138] sm:$0xff] }
 0x2c1   :  { %11354 = vmatprep.subr.bf16.mxu1 %v11353_v22  ;;  %v2959_v22 = vld [vmem:[#allocation2 + $0x2018] sm:$0xff]  ;;  %v11175_v35 = vpack.c.bf16 %v2957_v20, %v2952_v18  ;;  %v2997_v18 = vld [vmem:[#allocation2 + $0x2148] sm:$0xff]  ;;  %v2994_v20 = vld [vmem:[#allocation2 + $0x2130] sm:$0xff] }
 0x2c2   :  { %9940 = vmatmul.mubr.msk.f32.vlgmr.msra.gmra.mrb[10].mxu0 %vm716_vm0, %v13917_v30 }
 0x2c3   :  { %2831 = vmatmul.mubr.f32.vlgmr.msra.gmra.mrb[10].mxu1 %v13900_v55  ;;  %11160 = vmatpush1.bf16.msra.mxu0 %v11159_v36  ;;  %v11371_v36 = vpack.c.bf16 %v2959_v22, %v2954_v23  ;;  %v11385_v23 = vpack.c.bf16 %v3000_v12, %v2995_v10  ;;  %v3003_v22 = vld [vmem:[#allocation2 + $0x2178] sm:$0xff]  ;;  %v3040_v10 = vld [vmem:[#allocation2 + $0x22a0] sm:$0xff] }
 0x2c4   :  { %11356 = vmatpush1.bf16.msra.mxu1 %v11355_v37  ;;  %11162 = vmatprep.subr.bf16.mxu0 %v11161_v38  ;;  %v11177_v37 = vpack.c.bf16 %v2968_v49, %v2963_v29  ;;  %v2962_v38 = vld [vmem:[#allocation2 + $0x2030] sm:$0xff]  ;;  %v3008_v29 = vld [vmem:[#allocation2 + $0x21a0] sm:$0xff]  ;;  %v3005_v49 = vld [vmem:[#allocation2 + $0x2188] sm:$0xff] }
 0x2c5   :  { %11358 = vmatprep.subr.bf16.mxu1 %v11357_v11  ;;  %3466 = vmatprep.mubr.f32.mxu0 %v13876_v32  ;;  %v2969_v11 = vld [vmem:[#allocation2 + $0x2068] sm:$0xff]  ;;  %v11179_v50 = vpack.c.bf16 %v2967_v42, %v2962_v38  ;;  %v3007_v38 = vld [vmem:[#allocation2 + $0x2198] sm:$0xff]  ;;  %v3004_v42 = vld [vmem:[#allocation2 + $0x2180] sm:$0xff] }
 0x2c6   :  { %3750 = vmatprep.mubr.f32.mxu1 %v13876_v32 }
 0x2c7   :  { %11164 = vmatpush1.bf16.msra.mxu0 %v11163_v51  ;;  %v11375_v51 = vpack.c.bf16 %v2969_v11, %v2964_v43  ;;  %v11389_v43 = vpack.c.bf16 %v3010_v33, %v3005_v49  ;;  %v3013_v11 = vld [vmem:[#allocation2 + $0x21c8] sm:$0xff]  ;;  %v3050_v49 = vld [vmem:[#allocation2 + $0x22f0] sm:$0xff] }
 0x2c8   :  { %11360 = vmatpush1.bf16.msra.mxu1 %v11359_v52  ;;  %11166 = vmatprep.subr.bf16.mxu0 %v11165_v53  ;;  %v11181_v52 = vpack.c.bf16 %v2978_v47, %v2973_v46  ;;  %v2972_v53 = vld [vmem:[#allocation2 + $0x2080] sm:$0xff]  ;;  %v3018_v46 = vld [vmem:[#allocation2 + $0x21f0] sm:$0xff]  ;;  %v3015_v47 = vld [vmem:[#allocation2 + $0x21d8] sm:$0xff] }
 0x2c9   :  { %11362 = vmatprep.subr.bf16.mxu1 %v11361_v57  ;;  %v2979_v57 = vld [vmem:[#allocation2 + $0x20b8] sm:$0xff]  ;;  %v11183_v0 = vpack.c.bf16 %v2977_v54, %v2972_v53  ;;  %v3017_v53 = vld [vmem:[#allocation2 + $0x21e8] sm:$0xff]  ;;  %v3014_v54 = vld [vmem:[#allocation2 + $0x21d0] sm:$0xff] }
 0x2cb   :  { %11168 = vmatpush1.bf16.msra.mxu0 %v11167_v1  ;;  %v11379_v1 = vpack.c.bf16 %v2979_v57, %v2974_v56  ;;  %v11393_v56 = vpack.c.bf16 %v3020_v48, %v3015_v47  ;;  %v3023_v57 = vld [vmem:[#allocation2 + $0x2218] sm:$0xff]  ;;  %v3060_v47 = vld [vmem:[#allocation2 + $0x2340] sm:$0xff] }
 0x2cc   :  { %11364 = vmatpush1.bf16.msra.mxu1 %v11363_v2  ;;  %11170 = vmatprep.subr.bf16.mxu0 %v11169_v3  ;;  %v11185_v2 = vpack.c.bf16 %v2988_v59, %v2983_v58  ;;  %v2982_v3 = vld [vmem:[#allocation2 + $0x20d0] sm:$0xff]  ;;  %v3028_v58 = vld [vmem:[#allocation2 + $0x2240] sm:$0xff]  ;;  %v3025_v59 = vld [vmem:[#allocation2 + $0x2228] sm:$0xff] }
 0x2cd   :  { %11366 = vmatprep.subr.bf16.mxu1 %v11365_v7  ;;  %v2989_v7 = vld [vmem:[#allocation2 + $0x2108] sm:$0xff]  ;;  %v11187_v13 = vpack.c.bf16 %v2987_v4, %v2982_v3  ;;  %v3027_v3 = vld [vmem:[#allocation2 + $0x2238] sm:$0xff]  ;;  %v3024_v4 = vld [vmem:[#allocation2 + $0x2220] sm:$0xff] }
 0x2cf   :  { %11172 = vmatpush1.bf16.msra.mxu0 %v11171_v14  ;;  %v11383_v14 = vpack.c.bf16 %v2989_v7, %v2984_v5  ;;  %v11397_v5 = vpack.c.bf16 %v3030_v60, %v3025_v59  ;;  %v3033_v7 = vld [vmem:[#allocation2 + $0x2268] sm:$0xff]  ;;  %v3070_v59 = vld [vmem:[#allocation2 + $0x2390] sm:$0xff] }
 0x2d0   :  { %11368 = vmatpush1.bf16.msra.mxu1 %v11367_v15  ;;  %11174 = vmatprep.subr.bf16.mxu0 %v11173_v16  ;;  %v11189_v15 = vpack.c.bf16 %v2998_v9, %v2993_v8  ;;  %v2992_v16 = vld [vmem:[#allocation2 + $0x2120] sm:$0xff]  ;;  %v3038_v8 = vld [vmem:[#allocation2 + $0x2290] sm:$0xff]  ;;  %v3035_v9 = vld [vmem:[#allocation2 + $0x2278] sm:$0xff] }
 0x2d1   :  { %11370 = vmatprep.subr.bf16.mxu1 %v11369_v24  ;;  %v2999_v24 = vld [vmem:[#allocation2 + $0x2158] sm:$0xff]  ;;  %v11191_v34 = vpack.c.bf16 %v2997_v18, %v2992_v16  ;;  %v3037_v16 = vld [vmem:[#allocation2 + $0x2288] sm:$0xff]  ;;  %v3034_v18 = vld [vmem:[#allocation2 + $0x2270] sm:$0xff] }
 0x2d3   :  { %11176 = vmatpush1.bf16.msra.mxu0 %v11175_v35  ;;  %v11387_v35 = vpack.c.bf16 %v2999_v24, %v2994_v20  ;;  %v11401_v20 = vpack.c.bf16 %v3040_v10, %v3035_v9  ;;  %v3043_v24 = vld [vmem:[#allocation2 + $0x22b8] sm:$0xff]  ;;  %v3080_v9 = vld [vmem:[#allocation2 + $0x23e0] sm:$0xff] }
 0x2d4   :  { %11372 = vmatpush1.bf16.msra.mxu1 %v11371_v36  ;;  %11178 = vmatprep.subr.bf16.mxu0 %v11177_v37  ;;  %v11193_v36 = vpack.c.bf16 %v3008_v29, %v3003_v22  ;;  %v3002_v37 = vld [vmem:[#allocation2 + $0x2170] sm:$0xff]  ;;  %v3048_v22 = vld [vmem:[#allocation2 + $0x22e0] sm:$0xff]  ;;  %v3045_v29 = vld [vmem:[#allocation2 + $0x22c8] sm:$0xff] }
 0x2d5   :  { %11374 = vmatprep.subr.bf16.mxu1 %v11373_v45  ;;  %v3009_v45 = vld [vmem:[#allocation2 + $0x21a8] sm:$0xff]  ;;  %v11195_v40 = vpack.c.bf16 %v3007_v38, %v3002_v37  ;;  %v3047_v37 = vld [vmem:[#allocation2 + $0x22d8] sm:$0xff]  ;;  %v3044_v38 = vld [vmem:[#allocation2 + $0x22c0] sm:$0xff] }
 0x2d7   :  { %11180 = vmatpush1.bf16.msra.mxu0 %v11179_v50  ;;  %v11391_v50 = vpack.c.bf16 %v3009_v45, %v3004_v42  ;;  %v11405_v42 = vpack.c.bf16 %v3050_v49, %v3045_v29  ;;  %v3053_v45 = vld [vmem:[#allocation2 + $0x2308] sm:$0xff]  ;;  %v3090_v29 = vld [vmem:[#allocation2 + $0x2430] sm:$0xff] }
 0x2d8   :  { %11376 = vmatpush1.bf16.msra.mxu1 %v11375_v51  ;;  %11182 = vmatprep.subr.bf16.mxu0 %v11181_v52  ;;  %v11197_v51 = vpack.c.bf16 %v3018_v46, %v3013_v11  ;;  %v3012_v52 = vld [vmem:[#allocation2 + $0x21c0] sm:$0xff]  ;;  %v3058_v11 = vld [vmem:[#allocation2 + $0x2330] sm:$0xff]  ;;  %v3055_v46 = vld [vmem:[#allocation2 + $0x2318] sm:$0xff] }
 0x2d9   :  { %11378 = vmatprep.subr.bf16.mxu1 %v11377_v41  ;;  %v3019_v41 = vld [vmem:[#allocation2 + $0x21f8] sm:$0xff]  ;;  %v11199_v61 = vpack.c.bf16 %v3017_v53, %v3012_v52  ;;  %v3057_v52 = vld [vmem:[#allocation2 + $0x2328] sm:$0xff]  ;;  %v3054_v53 = vld [vmem:[#allocation2 + $0x2310] sm:$0xff] }
 0x2db   :  { %11184 = vmatpush1.bf16.msra.mxu0 %v11183_v0  ;;  %v11395_v0 = vpack.c.bf16 %v3019_v41, %v3014_v54  ;;  %v11409_v54 = vpack.c.bf16 %v3060_v47, %v3055_v46  ;;  %v3063_v41 = vld [vmem:[#allocation2 + $0x2358] sm:$0xff]  ;;  %v3100_v46 = vld [vmem:[#allocation2 + $0x2480] sm:$0xff] }
 0x2dc   :  { %11380 = vmatpush1.bf16.msra.mxu1 %v11379_v1  ;;  %11186 = vmatprep.subr.bf16.mxu0 %v11185_v2  ;;  %v11201_v1 = vpack.c.bf16 %v3028_v58, %v3023_v57  ;;  %v3022_v2 = vld [vmem:[#allocation2 + $0x2210] sm:$0xff]  ;;  %v3068_v57 = vld [vmem:[#allocation2 + $0x2380] sm:$0xff]  ;;  %v3065_v58 = vld [vmem:[#allocation2 + $0x2368] sm:$0xff] }
 0x2dd   :  { %11382 = vmatprep.subr.bf16.mxu1 %v11381_v6  ;;  %v3029_v6 = vld [vmem:[#allocation2 + $0x2248] sm:$0xff]  ;;  %v11203_v12 = vpack.c.bf16 %v3027_v3, %v3022_v2  ;;  %v3067_v2 = vld [vmem:[#allocation2 + $0x2378] sm:$0xff]  ;;  %v3064_v3 = vld [vmem:[#allocation2 + $0x2360] sm:$0xff] }
 0x2df   :  { %11188 = vmatpush1.bf16.msra.mxu0 %v11187_v13  ;;  %v11399_v13 = vpack.c.bf16 %v3029_v6, %v3024_v4  ;;  %v11413_v4 = vpack.c.bf16 %v3070_v59, %v3065_v58  ;;  %v3073_v6 = vld [vmem:[#allocation2 + $0x23a8] sm:$0xff]  ;;  %v3110_v58 = vld [vmem:[#allocation2 + $0x24d0] sm:$0xff] }
 0x2e0   :  { %11384 = vmatpush1.bf16.msra.mxu1 %v11383_v14  ;;  %11190 = vmatprep.subr.bf16.mxu0 %v11189_v15  ;;  %v11205_v14 = vpack.c.bf16 %v3038_v8, %v3033_v7  ;;  %v3032_v15 = vld [vmem:[#allocation2 + $0x2260] sm:$0xff]  ;;  %v3078_v7 = vld [vmem:[#allocation2 + $0x23d0] sm:$0xff]  ;;  %v3075_v8 = vld [vmem:[#allocation2 + $0x23b8] sm:$0xff] }
 0x2e1   :  { %11386 = vmatprep.subr.bf16.mxu1 %v11385_v23  ;;  %v3039_v23 = vld [vmem:[#allocation2 + $0x2298] sm:$0xff]  ;;  %v11207_v33 = vpack.c.bf16 %v3037_v16, %v3032_v15  ;;  %v3077_v15 = vld [vmem:[#allocation2 + $0x23c8] sm:$0xff]  ;;  %v3074_v16 = vld [vmem:[#allocation2 + $0x23b0] sm:$0xff] }
 0x2e3   :  { %11192 = vmatpush1.bf16.msra.mxu0 %v11191_v34  ;;  %v11403_v34 = vpack.c.bf16 %v3039_v23, %v3034_v18  ;;  %v11417_v18 = vpack.c.bf16 %v3080_v9, %v3075_v8  ;;  %v3083_v23 = vld [vmem:[#allocation2 + $0x23f8] sm:$0xff]  ;;  %v3120_v8 = vld [vmem:[#allocation2 + $0x2520] sm:$0xff] }
 0x2e4   :  { %11388 = vmatpush1.bf16.msra.mxu1 %v11387_v35  ;;  %11194 = vmatprep.subr.bf16.mxu0 %v11193_v36  ;;  %v11209_v35 = vpack.c.bf16 %v3048_v22, %v3043_v24  ;;  %v3042_v36 = vld [vmem:[#allocation2 + $0x22b0] sm:$0xff]  ;;  %v3088_v24 = vld [vmem:[#allocation2 + $0x2420] sm:$0xff]  ;;  %v3085_v22 = vld [vmem:[#allocation2 + $0x2408] sm:$0xff] }
 0x2e5   :  { %11390 = vmatprep.subr.bf16.mxu1 %v11389_v43  ;;  %v3049_v43 = vld [vmem:[#allocation2 + $0x22e8] sm:$0xff]  ;;  %v11211_v48 = vpack.c.bf16 %v3047_v37, %v3042_v36  ;;  %v3087_v36 = vld [vmem:[#allocation2 + $0x2418] sm:$0xff]  ;;  %v3084_v37 = vld [vmem:[#allocation2 + $0x2400] sm:$0xff] }
 0x2e7   :  { %11196 = vmatpush1.bf16.msra.mxu0 %v11195_v40  ;;  %v11407_v40 = vpack.c.bf16 %v3049_v43, %v3044_v38  ;;  %v11421_v38 = vpack.c.bf16 %v3090_v29, %v3085_v22  ;;  %v3093_v43 = vld [vmem:[#allocation2 + $0x2448] sm:$0xff]  ;;  %v3130_v22 = vld [vmem:[#allocation2 + $0x2570] sm:$0xff] }
 0x2e8   :  { %11392 = vmatpush1.bf16.msra.mxu1 %v11391_v50  ;;  %11198 = vmatprep.subr.bf16.mxu0 %v11197_v51  ;;  %v11213_v50 = vpack.c.bf16 %v3058_v11, %v3053_v45  ;;  %v3052_v51 = vld [vmem:[#allocation2 + $0x2300] sm:$0xff]  ;;  %v3098_v45 = vld [vmem:[#allocation2 + $0x2470] sm:$0xff]  ;;  %v3095_v11 = vld [vmem:[#allocation2 + $0x2458] sm:$0xff] }
 0x2e9   :  { %11394 = vmatprep.subr.bf16.mxu1 %v11393_v56  ;;  %v3059_v56 = vld [vmem:[#allocation2 + $0x2338] sm:$0xff]  ;;  %v11215_v60 = vpack.c.bf16 %v3057_v52, %v3052_v51  ;;  %v3097_v51 = vld [vmem:[#allocation2 + $0x2468] sm:$0xff]  ;;  %v3094_v52 = vld [vmem:[#allocation2 + $0x2450] sm:$0xff] }
 0x2eb   :  { %11200 = vmatpush1.bf16.msra.mxu0 %v11199_v61  ;;  %v11411_v61 = vpack.c.bf16 %v3059_v56, %v3054_v53  ;;  %v11425_v53 = vpack.c.bf16 %v3100_v46, %v3095_v11  ;;  %v3103_v56 = vld [vmem:[#allocation2 + $0x2498] sm:$0xff]  ;;  %v3140_v11 = vld [vmem:[#allocation2 + $0x25c0] sm:$0xff] }
 0x2ec   :  { %11396 = vmatpush1.bf16.msra.mxu1 %v11395_v0  ;;  %11202 = vmatprep.subr.bf16.mxu0 %v11201_v1  ;;  %v11217_v0 = vpack.c.bf16 %v3068_v57, %v3063_v41  ;;  %v3062_v1 = vld [vmem:[#allocation2 + $0x2350] sm:$0xff]  ;;  %v3108_v41 = vld [vmem:[#allocation2 + $0x24c0] sm:$0xff]  ;;  %v3105_v57 = vld [vmem:[#allocation2 + $0x24a8] sm:$0xff] }
 0x2ed   :  { %11398 = vmatprep.subr.bf16.mxu1 %v11397_v5  ;;  %v3069_v5 = vld [vmem:[#allocation2 + $0x2388] sm:$0xff]  ;;  %v11219_v10 = vpack.c.bf16 %v3067_v2, %v3062_v1  ;;  %v3107_v1 = vld [vmem:[#allocation2 + $0x24b8] sm:$0xff]  ;;  %v3104_v2 = vld [vmem:[#allocation2 + $0x24a0] sm:$0xff] }
 0x2ef   :  { %11204 = vmatpush1.bf16.msra.mxu0 %v11203_v12  ;;  %v11415_v12 = vpack.c.bf16 %v3069_v5, %v3064_v3  ;;  %v11429_v3 = vpack.c.bf16 %v3110_v58, %v3105_v57  ;;  %v3113_v5 = vld [vmem:[#allocation2 + $0x24e8] sm:$0xff]  ;;  %v3150_v57 = vld [vmem:[#allocation2 + $0x2610] sm:$0xff] }
 0x2f0   :  { %11400 = vmatpush1.bf16.msra.mxu1 %v11399_v13  ;;  %11206 = vmatprep.subr.bf16.mxu0 %v11205_v14  ;;  %v11221_v13 = vpack.c.bf16 %v3078_v7, %v3073_v6  ;;  %v3072_v14 = vld [vmem:[#allocation2 + $0x23a0] sm:$0xff]  ;;  %v3118_v6 = vld [vmem:[#allocation2 + $0x2510] sm:$0xff]  ;;  %v3115_v7 = vld [vmem:[#allocation2 + $0x24f8] sm:$0xff] }
 0x2f1   :  { %11402 = vmatprep.subr.bf16.mxu1 %v11401_v20  ;;  %v3079_v20 = vld [vmem:[#allocation2 + $0x23d8] sm:$0xff]  ;;  %v11223_v49 = vpack.c.bf16 %v3077_v15, %v3072_v14  ;;  %v3117_v14 = vld [vmem:[#allocation2 + $0x2508] sm:$0xff]  ;;  %v3114_v15 = vld [vmem:[#allocation2 + $0x24f0] sm:$0xff] }
 0x2f3   :  { %11208 = vmatpush1.bf16.msra.mxu0 %v11207_v33  ;;  %v11419_v33 = vpack.c.bf16 %v3079_v20, %v3074_v16  ;;  %v11433_v16 = vpack.c.bf16 %v3120_v8, %v3115_v7  ;;  %v3123_v20 = vld [vmem:[#allocation2 + $0x2538] sm:$0xff]  ;;  %v3160_v7 = vld [vmem:[#allocation2 + $0x2660] sm:$0xff] }
 0x2f4   :  { %11404 = vmatpush1.bf16.msra.mxu1 %v11403_v34  ;;  %11210 = vmatprep.subr.bf16.mxu0 %v11209_v35  ;;  %v11225_v34 = vpack.c.bf16 %v3088_v24, %v3083_v23  ;;  %v3082_v35 = vld [vmem:[#allocation2 + $0x23f0] sm:$0xff]  ;;  %v3128_v23 = vld [vmem:[#allocation2 + $0x2560] sm:$0xff]  ;;  %v3125_v24 = vld [vmem:[#allocation2 + $0x2548] sm:$0xff] }
 0x2f5   :  { %11406 = vmatprep.subr.bf16.mxu1 %v11405_v42  ;;  %v3089_v42 = vld [vmem:[#allocation2 + $0x2428] sm:$0xff]  ;;  %v11227_v47 = vpack.c.bf16 %v3087_v36, %v3082_v35  ;;  %v3127_v35 = vld [vmem:[#allocation2 + $0x2558] sm:$0xff]  ;;  %v3124_v36 = vld [vmem:[#allocation2 + $0x2540] sm:$0xff] }
 0x2f7   :  { %11212 = vmatpush1.bf16.msra.mxu0 %v11211_v48  ;;  %v11423_v48 = vpack.c.bf16 %v3089_v42, %v3084_v37  ;;  %v11437_v37 = vpack.c.bf16 %v3130_v22, %v3125_v24  ;;  %v3133_v42 = vld [vmem:[#allocation2 + $0x2588] sm:$0xff]  ;;  %v3170_v24 = vld [vmem:[#allocation2 + $0x26b0] sm:$0xff] }
 0x2f8   :  { %11408 = vmatpush1.bf16.msra.mxu1 %v11407_v40  ;;  %11214 = vmatprep.subr.bf16.mxu0 %v11213_v50  ;;  %v11229_v40 = vpack.c.bf16 %v3098_v45, %v3093_v43  ;;  %v3092_v50 = vld [vmem:[#allocation2 + $0x2440] sm:$0xff]  ;;  %v3138_v43 = vld [vmem:[#allocation2 + $0x25b0] sm:$0xff]  ;;  %v3135_v45 = vld [vmem:[#allocation2 + $0x2598] sm:$0xff] }
 0x2f9   :  { %11410 = vmatprep.subr.bf16.mxu1 %v11409_v54  ;;  %v3099_v54 = vld [vmem:[#allocation2 + $0x2478] sm:$0xff]  ;;  %v11231_v59 = vpack.c.bf16 %v3097_v51, %v3092_v50  ;;  %v3137_v50 = vld [vmem:[#allocation2 + $0x25a8] sm:$0xff]  ;;  %v3134_v51 = vld [vmem:[#allocation2 + $0x2590] sm:$0xff] }
 0x2fb   :  { %11216 = vmatpush1.bf16.msra.mxu0 %v11215_v60  ;;  %v11427_v60 = vpack.c.bf16 %v3099_v54, %v3094_v52  ;;  %v11441_v52 = vpack.c.bf16 %v3140_v11, %v3135_v45  ;;  %v3143_v54 = vld [vmem:[#allocation2 + $0x25d8] sm:$0xff]  ;;  %v3180_v45 = vld [vmem:[#allocation2 + $0x2700] sm:$0xff] }
 0x2fc   :  { %11412 = vmatpush1.bf16.msra.mxu1 %v11411_v61  ;;  %11218 = vmatprep.subr.bf16.mxu0 %v11217_v0  ;;  %v11233_v61 = vpack.c.bf16 %v3108_v41, %v3103_v56  ;;  %v3102_v0 = vld [vmem:[#allocation2 + $0x2490] sm:$0xff]  ;;  %v3148_v56 = vld [vmem:[#allocation2 + $0x2600] sm:$0xff]  ;;  %v3145_v41 = vld [vmem:[#allocation2 + $0x25e8] sm:$0xff] }
 0x2fd   :  { %11414 = vmatprep.subr.bf16.mxu1 %v11413_v4  ;;  %v3109_v4 = vld [vmem:[#allocation2 + $0x24c8] sm:$0xff]  ;;  %v11235_v9 = vpack.c.bf16 %v3107_v1, %v3102_v0  ;;  %v3147_v0 = vld [vmem:[#allocation2 + $0x25f8] sm:$0xff]  ;;  %v3144_v1 = vld [vmem:[#allocation2 + $0x25e0] sm:$0xff] }
 0x2ff   :  { %11220 = vmatpush1.bf16.msra.mxu0 %v11219_v10  ;;  %v11431_v10 = vpack.c.bf16 %v3109_v4, %v3104_v2  ;;  %v11445_v2 = vpack.c.bf16 %v3150_v57, %v3145_v41  ;;  %v3153_v4 = vld [vmem:[#allocation2 + $0x2628] sm:$0xff]  ;;  %v3190_v41 = vld [vmem:[#allocation2 + $0x2750] sm:$0xff] }
 0x300   :  { %11416 = vmatpush1.bf16.msra.mxu1 %v11415_v12  ;;  %11222 = vmatprep.subr.bf16.mxu0 %v11221_v13  ;;  %v11237_v12 = vpack.c.bf16 %v3118_v6, %v3113_v5  ;;  %v3112_v13 = vld [vmem:[#allocation2 + $0x24e0] sm:$0xff]  ;;  %v3158_v5 = vld [vmem:[#allocation2 + $0x2650] sm:$0xff]  ;;  %v3155_v6 = vld [vmem:[#allocation2 + $0x2638] sm:$0xff] }
 0x301   :  { %11418 = vmatprep.subr.bf16.mxu1 %v11417_v18  ;;  %v3119_v18 = vld [vmem:[#allocation2 + $0x2518] sm:$0xff]  ;;  %v11239_v29 = vpack.c.bf16 %v3117_v14, %v3112_v13  ;;  %v3157_v13 = vld [vmem:[#allocation2 + $0x2648] sm:$0xff]  ;;  %v3154_v14 = vld [vmem:[#allocation2 + $0x2630] sm:$0xff] }
 0x302   :  { %3467 = vmatmul.mubr.f32.vlgmr.msra.gmra.mrb[12].mxu0 %v13872_v25 }
 0x303   :  { %11224 = vmatpush1.bf16.msra.mxu0 %v11223_v49  ;;  %3751 = vmatmul.mubr.f32.vlgmr.msra.gmra.mrb[12].mxu1 %v13872_v25  ;;  %v11435_v49 = vpack.c.bf16 %v3119_v18, %v3114_v15  ;;  %v11449_v15 = vpack.c.bf16 %v3160_v7, %v3155_v6  ;;  %v3163_v18 = vld [vmem:[#allocation2 + $0x2678] sm:$0xff]  ;;  %v3200_v6 = vld [vmem:[#allocation2 + $0x27a0] sm:$0xff] }
 0x304   :  { %11420 = vmatpush1.bf16.msra.mxu1 %v11419_v33  ;;  %11226 = vmatprep.subr.bf16.mxu0 %v11225_v34  ;;  %v11241_v33 = vpack.c.bf16 %v3128_v23, %v3123_v20  ;;  %v3122_v34 = vld [vmem:[#allocation2 + $0x2530] sm:$0xff]  ;;  %v3168_v20 = vld [vmem:[#allocation2 + $0x26a0] sm:$0xff]  ;;  %v3165_v23 = vld [vmem:[#allocation2 + $0x2688] sm:$0xff] }
 0x305   :  { %11422 = vmatprep.subr.bf16.mxu1 %v11421_v38  ;;  %3537 = vmatprep.mubr.f32.mxu0 %v13887_v39  ;;  %v3129_v38 = vld [vmem:[#allocation2 + $0x2568] sm:$0xff]  ;;  %v11243_v46 = vpack.c.bf16 %v3127_v35, %v3122_v34  ;;  %v3167_v34 = vld [vmem:[#allocation2 + $0x2698] sm:$0xff]  ;;  %v3164_v35 = vld [vmem:[#allocation2 + $0x2680] sm:$0xff] }
 0x306   :  { %3821 = vmatprep.mubr.f32.mxu1 %v13887_v39 }
 0x307   :  { %11228 = vmatpush1.bf16.msra.mxu0 %v11227_v47  ;;  %v11439_v47 = vpack.c.bf16 %v3129_v38, %v3124_v36  ;;  %v11453_v36 = vpack.c.bf16 %v3170_v24, %v3165_v23  ;;  %v3173_v38 = vld [vmem:[#allocation2 + $0x26c8] sm:$0xff]  ;;  %v3210_v23 = vld [vmem:[#allocation2 + $0x27f0] sm:$0xff] }
 0x308   :  { %11424 = vmatpush1.bf16.msra.mxu1 %v11423_v48  ;;  %11230 = vmatprep.subr.bf16.mxu0 %v11229_v40  ;;  %v11245_v48 = vpack.c.bf16 %v3138_v43, %v3133_v42  ;;  %v3132_v40 = vld [vmem:[#allocation2 + $0x2580] sm:$0xff]  ;;  %v3178_v42 = vld [vmem:[#allocation2 + $0x26f0] sm:$0xff]  ;;  %v3175_v43 = vld [vmem:[#allocation2 + $0x26d8] sm:$0xff] }
 0x309   :  { %11426 = vmatprep.subr.bf16.mxu1 %v11425_v53  ;;  %v3139_v53 = vld [vmem:[#allocation2 + $0x25b8] sm:$0xff]  ;;  %v11247_v58 = vpack.c.bf16 %v3137_v50, %v3132_v40  ;;  %v3177_v40 = vld [vmem:[#allocation2 + $0x26e8] sm:$0xff]  ;;  %v3174_v50 = vld [vmem:[#allocation2 + $0x26d0] sm:$0xff] }
 0x30b   :  { %11232 = vmatpush1.bf16.msra.mxu0 %v11231_v59  ;;  %v11443_v59 = vpack.c.bf16 %v3139_v53, %v3134_v51  ;;  %v11457_v51 = vpack.c.bf16 %v3180_v45, %v3175_v43  ;;  %v3183_v53 = vld [vmem:[#allocation2 + $0x2718] sm:$0xff]  ;;  %v3220_v43 = vld [vmem:[#allocation2 + $0x2840] sm:$0xff] }
 0x30c   :  { %11428 = vmatpush1.bf16.msra.mxu1 %v11427_v60  ;;  %11234 = vmatprep.subr.bf16.mxu0 %v11233_v61  ;;  %v11249_v60 = vpack.c.bf16 %v3148_v56, %v3143_v54  ;;  %v3142_v61 = vld [vmem:[#allocation2 + $0x25d0] sm:$0xff]  ;;  %v3188_v54 = vld [vmem:[#allocation2 + $0x2740] sm:$0xff]  ;;  %v3185_v56 = vld [vmem:[#allocation2 + $0x2728] sm:$0xff] }
 0x30d   :  { %11430 = vmatprep.subr.bf16.mxu1 %v11429_v3  ;;  %v3149_v3 = vld [vmem:[#allocation2 + $0x2608] sm:$0xff]  ;;  %v11251_v8 = vpack.c.bf16 %v3147_v0, %v3142_v61  ;;  %v3187_v61 = vld [vmem:[#allocation2 + $0x2738] sm:$0xff]  ;;  %v3184_v0 = vld [vmem:[#allocation2 + $0x2720] sm:$0xff] }
 0x30f   :  { %11236 = vmatpush1.bf16.msra.mxu0 %v11235_v9  ;;  %v11447_v9 = vpack.c.bf16 %v3149_v3, %v3144_v1  ;;  %v11461_v1 = vpack.c.bf16 %v3190_v41, %v3185_v56  ;;  %v3193_v3 = vld [vmem:[#allocation2 + $0x2768] sm:$0xff]  ;;  %v3230_v56 = vld [vmem:[#allocation2 + $0x2890] sm:$0xff] }
 0x310   :  { %11432 = vmatpush1.bf16.msra.mxu1 %v11431_v10  ;;  %11238 = vmatprep.subr.bf16.mxu0 %v11237_v12  ;;  %v11253_v10 = vpack.c.bf16 %v3158_v5, %v3153_v4  ;;  %v3152_v12 = vld [vmem:[#allocation2 + $0x2620] sm:$0xff]  ;;  %v3198_v4 = vld [vmem:[#allocation2 + $0x2790] sm:$0xff]  ;;  %v3195_v5 = vld [vmem:[#allocation2 + $0x2778] sm:$0xff] }
 0x311   :  { %11434 = vmatprep.subr.bf16.mxu1 %v11433_v16  ;;  %v3159_v16 = vld [vmem:[#allocation2 + $0x2658] sm:$0xff]  ;;  %v11255_v22 = vpack.c.bf16 %v3157_v13, %v3152_v12  ;;  %v3197_v12 = vld [vmem:[#allocation2 + $0x2788] sm:$0xff]  ;;  %v3194_v13 = vld [vmem:[#allocation2 + $0x2770] sm:$0xff] }
 0x313   :  { %11240 = vmatpush1.bf16.msra.mxu0 %v11239_v29  ;;  %v11451_v29 = vpack.c.bf16 %v3159_v16, %v3154_v14  ;;  %v11465_v14 = vpack.c.bf16 %v3200_v6, %v3195_v5  ;;  %v3203_v16 = vld [vmem:[#allocation2 + $0x27b8] sm:$0xff]  ;;  %v3240_v5 = vld [vmem:[#allocation2 + $0x28e0] sm:$0xff] }
 0x314   :  { %11436 = vmatpush1.bf16.msra.mxu1 %v11435_v49  ;;  %11242 = vmatprep.subr.bf16.mxu0 %v11241_v33  ;;  %v11257_v49 = vpack.c.bf16 %v3168_v20, %v3163_v18  ;;  %v3162_v33 = vld [vmem:[#allocation2 + $0x2670] sm:$0xff]  ;;  %v3208_v18 = vld [vmem:[#allocation2 + $0x27e0] sm:$0xff]  ;;  %v3205_v20 = vld [vmem:[#allocation2 + $0x27c8] sm:$0xff] }
 0x315   :  { %11438 = vmatprep.subr.bf16.mxu1 %v11437_v37  ;;  %v3169_v37 = vld [vmem:[#allocation2 + $0x26a8] sm:$0xff]  ;;  %v11259_v11 = vpack.c.bf16 %v3167_v34, %v3162_v33  ;;  %v3207_v33 = vld [vmem:[#allocation2 + $0x27d8] sm:$0xff]  ;;  %v3204_v34 = vld [vmem:[#allocation2 + $0x27c0] sm:$0xff] }
 0x317   :  { %11244 = vmatpush1.bf16.msra.mxu0 %v11243_v46  ;;  %v11455_v46 = vpack.c.bf16 %v3169_v37, %v3164_v35  ;;  %v11469_v35 = vpack.c.bf16 %v3210_v23, %v3205_v20  ;;  %v3213_v37 = vld [vmem:[#allocation2 + $0x2808] sm:$0xff]  ;;  %v3250_v20 = vld [vmem:[#allocation2 + $0x2930] sm:$0xff] }
 0x318   :  { %11440 = vmatpush1.bf16.msra.mxu1 %v11439_v47  ;;  %11246 = vmatprep.subr.bf16.mxu0 %v11245_v48  ;;  %v11261_v47 = vpack.c.bf16 %v3178_v42, %v3173_v38  ;;  %v3172_v48 = vld [vmem:[#allocation2 + $0x26c0] sm:$0xff]  ;;  %v3218_v38 = vld [vmem:[#allocation2 + $0x2830] sm:$0xff]  ;;  %v3215_v42 = vld [vmem:[#allocation2 + $0x2818] sm:$0xff] }
 0x319   :  { %11442 = vmatprep.subr.bf16.mxu1 %v11441_v52  ;;  %v3179_v52 = vld [vmem:[#allocation2 + $0x26f8] sm:$0xff]  ;;  %v11263_v57 = vpack.c.bf16 %v3177_v40, %v3172_v48  ;;  %v3217_v48 = vld [vmem:[#allocation2 + $0x2828] sm:$0xff]  ;;  %v3214_v40 = vld [vmem:[#allocation2 + $0x2810] sm:$0xff] }
 0x31b   :  { %11248 = vmatpush1.bf16.msra.mxu0 %v11247_v58  ;;  %v11459_v58 = vpack.c.bf16 %v3179_v52, %v3174_v50  ;;  %v11473_v50 = vpack.c.bf16 %v3220_v43, %v3215_v42  ;;  %v3223_v52 = vld [vmem:[#allocation2 + $0x2858] sm:$0xff]  ;;  %v3260_v42 = vld [vmem:[#allocation2 + $0x2980] sm:$0xff] }
 0x31c   :  { %11444 = vmatpush1.bf16.msra.mxu1 %v11443_v59  ;;  %11250 = vmatprep.subr.bf16.mxu0 %v11249_v60  ;;  %v11265_v59 = vpack.c.bf16 %v3188_v54, %v3183_v53  ;;  %v3182_v60 = vld [vmem:[#allocation2 + $0x2710] sm:$0xff]  ;;  %v3228_v53 = vld [vmem:[#allocation2 + $0x2880] sm:$0xff]  ;;  %v3225_v54 = vld [vmem:[#allocation2 + $0x2868] sm:$0xff] }
 0x31d   :  { %11446 = vmatprep.subr.bf16.mxu1 %v11445_v2  ;;  %v3189_v2 = vld [vmem:[#allocation2 + $0x2748] sm:$0xff]  ;;  %v11267_v7 = vpack.c.bf16 %v3187_v61, %v3182_v60  ;;  %v3227_v60 = vld [vmem:[#allocation2 + $0x2878] sm:$0xff]  ;;  %v3224_v61 = vld [vmem:[#allocation2 + $0x2860] sm:$0xff] }
 0x31f   :  { %11252 = vmatpush1.bf16.msra.mxu0 %v11251_v8  ;;  %v11463_v8 = vpack.c.bf16 %v3189_v2, %v3184_v0  ;;  %v11477_v0 = vpack.c.bf16 %v3230_v56, %v3225_v54  ;;  %v3233_v2 = vld [vmem:[#allocation2 + $0x28a8] sm:$0xff]  ;;  %v3270_v54 = vld [vmem:[#allocation2 + $0x29d0] sm:$0xff] }
 0x320   :  { %11448 = vmatpush1.bf16.msra.mxu1 %v11447_v9  ;;  %11254 = vmatprep.subr.bf16.mxu0 %v11253_v10  ;;  %v11269_v9 = vpack.c.bf16 %v3198_v4, %v3193_v3  ;;  %v3192_v10 = vld [vmem:[#allocation2 + $0x2760] sm:$0xff]  ;;  %v3238_v3 = vld [vmem:[#allocation2 + $0x28d0] sm:$0xff]  ;;  %v3235_v4 = vld [vmem:[#allocation2 + $0x28b8] sm:$0xff] }
 0x321   :  { %11450 = vmatprep.subr.bf16.mxu1 %v11449_v15  ;;  %v3199_v15 = vld [vmem:[#allocation2 + $0x2798] sm:$0xff]  ;;  %v11271_v24 = vpack.c.bf16 %v3197_v12, %v3192_v10  ;;  %v3237_v10 = vld [vmem:[#allocation2 + $0x28c8] sm:$0xff]  ;;  %v3234_v12 = vld [vmem:[#allocation2 + $0x28b0] sm:$0xff] }
 0x323   :  { %11256 = vmatpush1.bf16.msra.mxu0 %v11255_v22  ;;  %v11467_v22 = vpack.c.bf16 %v3199_v15, %v3194_v13  ;;  %v11481_v13 = vpack.c.bf16 %v3240_v5, %v3235_v4  ;;  %v3243_v15 = vld [vmem:[#allocation2 + $0x28f8] sm:$0xff]  ;;  %v3280_v4 = vld [vmem:[#allocation2 + $0x2a20] sm:$0xff] }
 0x324   :  { %11452 = vmatpush1.bf16.msra.mxu1 %v11451_v29  ;;  %11258 = vmatprep.subr.bf16.mxu0 %v11257_v49  ;;  %v11273_v29 = vpack.c.bf16 %v3208_v18, %v3203_v16  ;;  %v3202_v49 = vld [vmem:[#allocation2 + $0x27b0] sm:$0xff]  ;;  %v3248_v16 = vld [vmem:[#allocation2 + $0x2920] sm:$0xff]  ;;  %v3245_v18 = vld [vmem:[#allocation2 + $0x2908] sm:$0xff] }
 0x325   :  { %11454 = vmatprep.subr.bf16.mxu1 %v11453_v36  ;;  %v3209_v36 = vld [vmem:[#allocation2 + $0x27e8] sm:$0xff]  ;;  %v11275_v45 = vpack.c.bf16 %v3207_v33, %v3202_v49  ;;  %v3247_v49 = vld [vmem:[#allocation2 + $0x2918] sm:$0xff]  ;;  %v3244_v33 = vld [vmem:[#allocation2 + $0x2900] sm:$0xff] }
 0x327   :  { %11260 = vmatpush1.bf16.msra.mxu0 %v11259_v11  ;;  %v11471_v11 = vpack.c.bf16 %v3209_v36, %v3204_v34  ;;  %v11485_v34 = vpack.c.bf16 %v3250_v20, %v3245_v18  ;;  %v3253_v36 = vld [vmem:[#allocation2 + $0x2948] sm:$0xff]  ;;  %v3290_v18 = vld [vmem:[#allocation2 + $0x2a70] sm:$0xff] }
 0x328   :  { %11456 = vmatpush1.bf16.msra.mxu1 %v11455_v46  ;;  %11262 = vmatprep.subr.bf16.mxu0 %v11261_v47  ;;  %v11277_v46 = vpack.c.bf16 %v3218_v38, %v3213_v37  ;;  %v3212_v47 = vld [vmem:[#allocation2 + $0x2800] sm:$0xff]  ;;  %v3258_v37 = vld [vmem:[#allocation2 + $0x2970] sm:$0xff]  ;;  %v3255_v38 = vld [vmem:[#allocation2 + $0x2958] sm:$0xff] }
 0x329   :  { %11458 = vmatprep.subr.bf16.mxu1 %v11457_v51  ;;  %v3219_v51 = vld [vmem:[#allocation2 + $0x2838] sm:$0xff]  ;;  %v11279_v41 = vpack.c.bf16 %v3217_v48, %v3212_v47  ;;  %v3257_v47 = vld [vmem:[#allocation2 + $0x2968] sm:$0xff]  ;;  %v3254_v48 = vld [vmem:[#allocation2 + $0x2950] sm:$0xff] }
 0x32b   :  { %11264 = vmatpush1.bf16.msra.mxu0 %v11263_v57  ;;  %v11475_v57 = vpack.c.bf16 %v3219_v51, %v3214_v40  ;;  %v11489_v40 = vpack.c.bf16 %v3260_v42, %v3255_v38  ;;  %v3263_v51 = vld [vmem:[#allocation2 + $0x2998] sm:$0xff]  ;;  %v3300_v38 = vld [vmem:[#allocation2 + $0x2ac0] sm:$0xff] }
 0x32c   :  { %11460 = vmatpush1.bf16.msra.mxu1 %v11459_v58  ;;  %11266 = vmatprep.subr.bf16.mxu0 %v11265_v59  ;;  %v11281_v58 = vpack.c.bf16 %v3228_v53, %v3223_v52  ;;  %v3222_v59 = vld [vmem:[#allocation2 + $0x2850] sm:$0xff]  ;;  %v3268_v52 = vld [vmem:[#allocation2 + $0x29c0] sm:$0xff]  ;;  %v3265_v53 = vld [vmem:[#allocation2 + $0x29a8] sm:$0xff] }
 0x32d   :  { %11462 = vmatprep.subr.bf16.mxu1 %v11461_v1  ;;  %v3229_v1 = vld [vmem:[#allocation2 + $0x2888] sm:$0xff]  ;;  %v11283_v6 = vpack.c.bf16 %v3227_v60, %v3222_v59  ;;  %v3267_v59 = vld [vmem:[#allocation2 + $0x29b8] sm:$0xff]  ;;  %v3264_v60 = vld [vmem:[#allocation2 + $0x29a0] sm:$0xff] }
 0x32f   :  { %11268 = vmatpush1.bf16.msra.mxu0 %v11267_v7  ;;  %v11479_v7 = vpack.c.bf16 %v3229_v1, %v3224_v61  ;;  %v11493_v61 = vpack.c.bf16 %v3270_v54, %v3265_v53  ;;  %v3273_v1 = vld [vmem:[#allocation2 + $0x29e8] sm:$0xff]  ;;  %v3310_v54 = vld [vmem:[#allocation2 + $0x2b10] sm:$0xff] }
 0x330   :  { %11464 = vmatpush1.bf16.msra.mxu1 %v11463_v8  ;;  %11270 = vmatprep.subr.bf16.mxu0 %v11269_v9  ;;  %v11285_v8 = vpack.c.bf16 %v3238_v3, %v3233_v2  ;;  %v3232_v9 = vld [vmem:[#allocation2 + $0x28a0] sm:$0xff]  ;;  %v3278_v2 = vld [vmem:[#allocation2 + $0x2a10] sm:$0xff]  ;;  %v3275_v3 = vld [vmem:[#allocation2 + $0x29f8] sm:$0xff] }
 0x331   :  { %11466 = vmatprep.subr.bf16.mxu1 %v11465_v14  ;;  %v3239_v14 = vld [vmem:[#allocation2 + $0x28d8] sm:$0xff]  ;;  %v11287_v23 = vpack.c.bf16 %v3237_v10, %v3232_v9  ;;  %v3277_v9 = vld [vmem:[#allocation2 + $0x2a08] sm:$0xff]  ;;  %v3274_v10 = vld [vmem:[#allocation2 + $0x29f0] sm:$0xff] }
 0x332   :  { %v3305_v53 = vld [vmem:[#allocation2 + $0x2ae8] sm:$0xff] }
 0x333   :  { %11272 = vmatpush1.bf16.msra.mxu0 %v11271_v24  ;;  %v11483_v24 = vpack.c.bf16 %v3239_v14, %v3234_v12  ;;  %v11497_v12 = vpack.c.bf16 %v3280_v4, %v3275_v3  ;;  %v3283_v14 = vld [vmem:[#allocation2 + $0x2a38] sm:$0xff]  ;;  %v3309_v3 = vld [vmem:[#allocation2 + $0x2b08] sm:$0xff] }
 0x334   :  { %11468 = vmatpush1.bf16.msra.mxu1 %v11467_v22  ;;  %11274 = vmatprep.subr.bf16.mxu0 %v11273_v29  ;;  %v11289_v22 = vpack.c.bf16 %v3248_v16, %v3243_v15  ;;  %v3242_v29 = vld [vmem:[#allocation2 + $0x28f0] sm:$0xff]  ;;  %v3288_v15 = vld [vmem:[#allocation2 + $0x2a60] sm:$0xff]  ;;  %v3285_v16 = vld [vmem:[#allocation2 + $0x2a48] sm:$0xff] }
 0x335   :  { %11470 = vmatprep.subr.bf16.mxu1 %v11469_v35  ;;  %v3249_v35 = vld [vmem:[#allocation2 + $0x2928] sm:$0xff]  ;;  %v11291_v43 = vpack.c.bf16 %v3247_v49, %v3242_v29  ;;  %v3287_v29 = vld [vmem:[#allocation2 + $0x2a58] sm:$0xff]  ;;  %v3284_v49 = vld [vmem:[#allocation2 + $0x2a40] sm:$0xff] }
 0x336   :  { %v3313_v4 = vld [vmem:[#allocation2 + $0x2b28] sm:$0xff] }
 0x337   :  { %11276 = vmatpush1.bf16.msra.mxu0 %v11275_v45  ;;  %v11487_v45 = vpack.c.bf16 %v3249_v35, %v3244_v33  ;;  %v11501_v33 = vpack.c.bf16 %v3290_v18, %v3285_v16  ;;  %v3293_v35 = vld [vmem:[#allocation2 + $0x2a88] sm:$0xff]  ;;  %v3319_v16 = vld [vmem:[#allocation2 + $0x2b58] sm:$0xff] }
 0x338   :  { %11472 = vmatpush1.bf16.msra.mxu1 %v11471_v11  ;;  %11278 = vmatprep.subr.bf16.mxu0 %v11277_v46  ;;  %v11293_v11 = vpack.c.bf16 %v3258_v37, %v3253_v36  ;;  %v3252_v46 = vld [vmem:[#allocation2 + $0x2940] sm:$0xff]  ;;  %v3298_v36 = vld [vmem:[#allocation2 + $0x2ab0] sm:$0xff]  ;;  %v3295_v37 = vld [vmem:[#allocation2 + $0x2a98] sm:$0xff] }
 0x339   :  { %11474 = vmatprep.subr.bf16.mxu1 %v11473_v50  ;;  %v3259_v50 = vld [vmem:[#allocation2 + $0x2978] sm:$0xff]  ;;  %v11295_v56 = vpack.c.bf16 %v3257_v47, %v3252_v46  ;;  %v3297_v46 = vld [vmem:[#allocation2 + $0x2aa8] sm:$0xff]  ;;  %v3294_v47 = vld [vmem:[#allocation2 + $0x2a90] sm:$0xff] }
 0x33a   :  { %v3323_v18 = vld [vmem:[#allocation2 + $0x2b78] sm:$0xff] }
 0x33b   :  { %11280 = vmatpush1.bf16.msra.mxu0 %v11279_v41  ;;  %v11491_v41 = vpack.c.bf16 %v3259_v50, %v3254_v48  ;;  %v11505_v48 = vpack.c.bf16 %v3300_v38, %v3295_v37  ;;  %v3303_v50 = vld [vmem:[#allocation2 + $0x2ad8] sm:$0xff]  ;;  %v3329_v37 = vld [vmem:[#allocation2 + $0x2ba8] sm:$0xff] }
 0x33c   :  { %11476 = vmatpush1.bf16.msra.mxu1 %v11475_v57  ;;  %11282 = vmatprep.subr.bf16.mxu0 %v11281_v58  ;;  %v11297_v57 = vpack.c.bf16 %v3268_v52, %v3263_v51  ;;  %v3262_v58 = vld [vmem:[#allocation2 + $0x2990] sm:$0xff]  ;;  %v3308_v51 = vld [vmem:[#allocation2 + $0x2b00] sm:$0xff]  ;;  %v3333_v38 = vld [vmem:[#allocation2 + $0x2bc8] sm:$0xff] }
 0x33d   :  { %11478 = vmatprep.subr.bf16.mxu1 %v11477_v0  ;;  %v3269_v0 = vld [vmem:[#allocation2 + $0x29c8] sm:$0xff]  ;;  %v11299_v5 = vpack.c.bf16 %v3267_v59, %v3262_v58 }
 0x33f   :  { %11284 = vmatpush1.bf16.msra.mxu0 %v11283_v6  ;;  %v11495_v6 = vpack.c.bf16 %v3269_v0, %v3264_v60  ;;  %v11313_v60 = vpack.c.bf16 %v3308_v51, %v3303_v50  ;;  %v3307_v0 = vld [vmem:[#allocation2 + $0x2af8] sm:$0xff]  ;;  %v3334_v50 = vld [vmem:[#allocation2 + $0x2bd0] sm:$0xff] }
 0x340   :  { %11480 = vmatpush1.bf16.msra.mxu1 %v11479_v7  ;;  %11286 = vmatprep.subr.bf16.mxu0 %v11285_v8  ;;  %v11301_v7 = vpack.c.bf16 %v3278_v2, %v3273_v1  ;;  %v3272_v8 = vld [vmem:[#allocation2 + $0x29e0] sm:$0xff]  ;;  %v11509_v2 = vpack.c.bf16 %v3310_v54, %v3305_v53  ;;  %v3339_v53 = vld [vmem:[#allocation2 + $0x2bf8] sm:$0xff] }
 0x341   :  { %11482 = vmatprep.subr.bf16.mxu1 %v11481_v13  ;;  %v3279_v13 = vld [vmem:[#allocation2 + $0x2a18] sm:$0xff]  ;;  %v11303_v20 = vpack.c.bf16 %v3277_v9, %v3272_v8  ;;  %v3304_v1 = vld [vmem:[#allocation2 + $0x2ae0] sm:$0xff] }
 0x342   :  { %3538 = vmatmul.mubr.f32.vlgmr.msra.gmra.mrb[12].mxu0 %v13883_v26  ;;  %v11511_v9 = vpack.c.bf16 %v3309_v3, %v3304_v1  ;;  %v3343_v54 = vld [vmem:[#allocation2 + $0x2c18] sm:$0xff] }
 0x343   :  { %11288 = vmatpush1.bf16.msra.mxu0 %v11287_v23  ;;  %3822 = vmatmul.mubr.f32.vlgmr.msra.gmra.mrb[12].mxu1 %v13883_v26  ;;  %v11499_v23 = vpack.c.bf16 %v3279_v13, %v3274_v10  ;;  %v3317_v13 = vld [vmem:[#allocation2 + $0x2b48] sm:$0xff]  ;;  %v3347_v3 = vld [vmem:[#allocation2 + $0x2c38] sm:$0xff] }
 0x344   :  { %11484 = vmatpush1.bf16.msra.mxu1 %v11483_v24  ;;  %11290 = vmatprep.subr.bf16.mxu0 %v11289_v22  ;;  %v11305_v24 = vpack.c.bf16 %v3288_v15, %v3283_v14  ;;  %v3282_v22 = vld [vmem:[#allocation2 + $0x2a30] sm:$0xff] }
 0x345   :  { %11486 = vmatprep.subr.bf16.mxu1 %v11485_v34  ;;  %3608 = vmatprep.mubr.f32.mxu0 %v13905_v63  ;;  %v3289_v34 = vld [vmem:[#allocation2 + $0x2a68] sm:$0xff]  ;;  %v11307_v42 = vpack.c.bf16 %v3287_v29, %v3282_v22  ;;  %v3314_v14 = vld [vmem:[#allocation2 + $0x2b30] sm:$0xff] }
 0x346   :  { %3892 = vmatprep.mubr.f32.mxu1 %v13905_v63  ;;  %v11515_v29 = vpack.c.bf16 %v3319_v16, %v3314_v14  ;;  %v3357_v16 = vld [vmem:[#allocation2 + $0x2c88] sm:$0xff] }
 0x347   :  { %11292 = vmatpush1.bf16.msra.mxu0 %v11291_v43  ;;  %v11503_v43 = vpack.c.bf16 %v3289_v34, %v3284_v49  ;;  %v3327_v34 = vld [vmem:[#allocation2 + $0x2b98] sm:$0xff] }
 0x348   :  { %11488 = vmatpush1.bf16.msra.mxu1 %v11487_v45  ;;  %11294 = vmatprep.subr.bf16.mxu0 %v11293_v11  ;;  %v11309_v45 = vpack.c.bf16 %v3298_v36, %v3293_v35  ;;  %v3292_v11 = vld [vmem:[#allocation2 + $0x2a80] sm:$0xff] }
 0x349   :  { %11490 = vmatprep.subr.bf16.mxu1 %v11489_v40  ;;  %v3299_v40 = vld [vmem:[#allocation2 + $0x2ab8] sm:$0xff]  ;;  %v3324_v35 = vld [vmem:[#allocation2 + $0x2b80] sm:$0xff] }
 0x34a   :  { %v11507_v59 = vpack.c.bf16 %v3299_v40, %v3294_v47  ;;  %v3337_v40 = vld [vmem:[#allocation2 + $0x2be8] sm:$0xff] }
 0x34b   :  { %11296 = vmatpush1.bf16.msra.mxu0 %v11295_v56  ;;  %v6027_v56 = vld [vmem:[#allocation10 + $0xb18] sm:$0xff] }
 0x34c   :  { %11492 = vmatpush1.bf16.msra.mxu1 %v11491_v41  ;;  %11298 = vmatprep.subr.bf16.mxu0 %v11297_v57  ;;  %v11311_v57 = vpack.c.bf16 %v3297_v46, %v3292_v11  ;;  %v11519_v46 = vpack.c.bf16 %v3329_v37, %v3324_v35  ;;  %v3367_v37 = vld [vmem:[#allocation2 + $0x2cd8] sm:$0xff] }
 0x34d   :  { %11494 = vmatprep.subr.bf16.mxu1 %v11493_v61  ;;  %v3302_v61 = vld [vmem:[#allocation2 + $0x2ad0] sm:$0xff] }
 0x34e   :  { %v11315_v8 = vpack.c.bf16 %v3307_v0, %v3302_v61  ;;  %v11523_v0 = vpack.c.bf16 %v3339_v53, %v3334_v50  ;;  %v3380_v50 = vld [vmem:[#allocation2 + $0x2d40] sm:$0xff] }
 0x34f   :  { %11300 = vmatpush1.bf16.msra.mxu0 %v11299_v5  ;;  %v3318_v5 = vld [vmem:[#allocation2 + $0x2b50] sm:$0xff] }
 0x350   :  { %11496 = vmatpush1.bf16.msra.mxu1 %v11495_v6  ;;  %11302 = vmatprep.subr.bf16.mxu0 %v11301_v7  ;;  %v3315_v6 = vld [vmem:[#allocation2 + $0x2b38] sm:$0xff]  ;;  %v3320_v7 = vld [vmem:[#allocation2 + $0x2b60] sm:$0xff]  ;;  %v11317_v10 = vpack.c.bf16 %v3318_v5, %v3313_v4 }
 0x351   :  { %11498 = vmatprep.subr.bf16.mxu1 %v11497_v12  ;;  %v3312_v12 = vld [vmem:[#allocation2 + $0x2b20] sm:$0xff]  ;;  %v11513_v15 = vpack.c.bf16 %v3320_v7, %v3315_v6  ;;  %v3349_v6 = vld [vmem:[#allocation2 + $0x2c48] sm:$0xff] }
 0x352   :  { %v11319_v22 = vpack.c.bf16 %v3317_v13, %v3312_v12  ;;  %v3344_v4 = vld [vmem:[#allocation2 + $0x2c20] sm:$0xff]  ;;  %v3353_v7 = vld [vmem:[#allocation2 + $0x2c68] sm:$0xff] }
 0x353   :  { %11304 = vmatpush1.bf16.msra.mxu0 %v11303_v20  ;;  %v3328_v20 = vld [vmem:[#allocation2 + $0x2ba0] sm:$0xff]  ;;  %v11527_v13 = vpack.c.bf16 %v3349_v6, %v3344_v4  ;;  %v3390_v6 = vld [vmem:[#allocation2 + $0x2d90] sm:$0xff] }
 0x354   :  { %11500 = vmatpush1.bf16.msra.mxu1 %v11499_v23  ;;  %11306 = vmatprep.subr.bf16.mxu0 %v11305_v24  ;;  %v3325_v23 = vld [vmem:[#allocation2 + $0x2b88] sm:$0xff]  ;;  %v3330_v24 = vld [vmem:[#allocation2 + $0x2bb0] sm:$0xff]  ;;  %v11321_v49 = vpack.c.bf16 %v3328_v20, %v3323_v18 }
 0x355   :  { %11502 = vmatprep.subr.bf16.mxu1 %v11501_v33  ;;  %v3322_v33 = vld [vmem:[#allocation2 + $0x2b70] sm:$0xff]  ;;  %v11517_v36 = vpack.c.bf16 %v3330_v24, %v3325_v23  ;;  %v3359_v23 = vld [vmem:[#allocation2 + $0x2c98] sm:$0xff] }
 0x356   :  { %v13989_v52 = vpop.f32.mrb[6].mxu1  ;;  %v11323_v11 = vpack.c.bf16 %v3327_v34, %v3322_v33  ;;  %v3354_v18 = vld [vmem:[#allocation2 + $0x2c70] sm:$0xff]  ;;  %v3363_v24 = vld [vmem:[#allocation2 + $0x2cb8] sm:$0xff] }
 0x357   :  { %v13993_v41 = vpop.f32.mrb[7].mxu1  ;;  %11308 = vmatpush1.bf16.msra.mxu0 %v11307_v42  ;;  %v3338_v42 = vld [vmem:[#allocation2 + $0x2bf0] sm:$0xff]  ;;  %v11531_v34 = vpack.c.bf16 %v3359_v23, %v3354_v18  ;;  %v3389_v18 = vld [vmem:[#allocation2 + $0x2d88] sm:$0xff] }
 0x358   :  { %11504 = vmatpush1.bf16.msra.mxu1 %v11503_v43  ;;  %11310 = vmatprep.subr.bf16.mxu0 %v11309_v45  ;;  %v3335_v43 = vld [vmem:[#allocation2 + $0x2bd8] sm:$0xff]  ;;  %v3340_v45 = vld [vmem:[#allocation2 + $0x2c00] sm:$0xff]  ;;  %v11325_v47 = vpack.c.bf16 %v3338_v42, %v3333_v38  ;;  %v3398_v23 = vld [vmem:[#allocation2 + $0x2dd0] sm:$0xff] }
 0x359   :  { %11506 = vmatprep.subr.bf16.mxu1 %v11505_v48  ;;  %v3332_v48 = vld [vmem:[#allocation2 + $0x2bc0] sm:$0xff]  ;;  %v11521_v51 = vpack.c.bf16 %v3340_v45, %v3335_v43  ;;  %v3369_v45 = vld [vmem:[#allocation2 + $0x2ce8] sm:$0xff] }
 0x35a   :  { %v11327_v61 = vpack.c.bf16 %v3337_v40, %v3332_v48  ;;  %v3364_v38 = vld [vmem:[#allocation2 + $0x2cc0] sm:$0xff]  ;;  %v3375_v40 = vld [vmem:[#allocation2 + $0x2d18] sm:$0xff] }
 0x35b   :  { %11312 = vmatpush1.bf16.msra.mxu0 %v11311_v57  ;;  %v3348_v57 = vld [vmem:[#allocation2 + $0x2c40] sm:$0xff] }
 0x35c   :  { %11508 = vmatpush1.bf16.msra.mxu1 %v11507_v59  ;;  %11314 = vmatprep.subr.bf16.mxu0 %v11313_v60  ;;  %v3345_v59 = vld [vmem:[#allocation2 + $0x2c28] sm:$0xff]  ;;  %v3350_v60 = vld [vmem:[#allocation2 + $0x2c50] sm:$0xff]  ;;  %v11329_v1 = vpack.c.bf16 %v3348_v57, %v3343_v54  ;;  %v11535_v54 = vpack.c.bf16 %v3369_v45, %v3364_v38  ;;  %v3399_v38 = vld [vmem:[#allocation2 + $0x2dd8] sm:$0xff] }
 0x35d   :  { %11510 = vmatprep.subr.bf16.mxu1 %v11509_v2  ;;  %v3342_v2 = vld [vmem:[#allocation2 + $0x2c10] sm:$0xff]  ;;  %v11525_v5 = vpack.c.bf16 %v3350_v60, %v3345_v59  ;;  %v3372_v59 = vld [vmem:[#allocation2 + $0x2d00] sm:$0xff]  ;;  %v3377_v60 = vld [vmem:[#allocation2 + $0x2d28] sm:$0xff] }
 0x35e   :  { %v11331_v12 = vpack.c.bf16 %v3347_v3, %v3342_v2  ;;  %v3383_v2 = vld [vmem:[#allocation2 + $0x2d58] sm:$0xff]  ;;  %v3388_v3 = vld [vmem:[#allocation2 + $0x2d80] sm:$0xff]  ;;  %v3001_v45 = vld [vmem:[#allocation2 + $0x2168] sm:$0xff] }
 0x35f   :  { %11316 = vmatpush1.bf16.msra.mxu0 %v11315_v8  ;;  %v3358_v8 = vld [vmem:[#allocation2 + $0x2c90] sm:$0xff] }
 0x360   :  { %11512 = vmatpush1.bf16.msra.mxu1 %v11511_v9  ;;  %11318 = vmatprep.subr.bf16.mxu0 %v11317_v10  ;;  %v3355_v9 = vld [vmem:[#allocation2 + $0x2c78] sm:$0xff]  ;;  %v3360_v10 = vld [vmem:[#allocation2 + $0x2ca0] sm:$0xff]  ;;  %v11333_v14 = vpack.c.bf16 %v3358_v8, %v3353_v7  ;;  %v11343_v8 = vpack.c.bf16 %v3377_v60, %v3372_v59  ;;  %v2921_v59 = vld [vmem:[#allocation2 + $0x1ee8] sm:$0xff] }
 0x361   :  { %11514 = vmatprep.subr.bf16.mxu1 %v11513_v15  ;;  %v3352_v15 = vld [vmem:[#allocation2 + $0x2c60] sm:$0xff]  ;;  %v11529_v20 = vpack.c.bf16 %v3360_v10, %v3355_v9 }
 0x362   :  { %v11335_v33 = vpack.c.bf16 %v3357_v16, %v3352_v15  ;;  %v3384_v15 = vld [vmem:[#allocation2 + $0x2d60] sm:$0xff] }
 0x363   :  { %11320 = vmatpush1.bf16.msra.mxu0 %v11319_v22  ;;  %v3368_v22 = vld [vmem:[#allocation2 + $0x2ce0] sm:$0xff] }
 0x364   :  { %11516 = vmatpush1.bf16.msra.mxu1 %v11515_v29  ;;  %11322 = vmatprep.subr.bf16.mxu0 %v11321_v49  ;;  %v3365_v29 = vld [vmem:[#allocation2 + $0x2cc8] sm:$0xff]  ;;  %v3370_v49 = vld [vmem:[#allocation2 + $0x2cf0] sm:$0xff]  ;;  %v11337_v35 = vpack.c.bf16 %v3368_v22, %v3363_v24  ;;  %v3395_v24 = vld [vmem:[#allocation2 + $0x2db8] sm:$0xff] }
 0x365   :  { %11518 = vmatprep.subr.bf16.mxu1 %v11517_v36  ;;  %v3362_v36 = vld [vmem:[#allocation2 + $0x2cb0] sm:$0xff]  ;;  %v11533_v43 = vpack.c.bf16 %v3370_v49, %v3365_v29  ;;  %v3400_v22 = vld [vmem:[#allocation2 + $0x2de0] sm:$0xff]  ;;  %v11543_v49 = vpack.c.bf16 %v3389_v18, %v3384_v15  ;;  %v3021_v15 = vld [vmem:[#allocation2 + $0x2208] sm:$0xff] }
 0x366   :  { %v11339_v53 = vpack.c.bf16 %v3367_v37, %v3362_v36  ;;  %v11545_v36 = vpack.c.bf16 %v3400_v22, %v3395_v24  ;;  %v3394_v37 = vld [vmem:[#allocation2 + $0x2db0] sm:$0xff]  ;;  %v3076_v60 = vld [vmem:[#allocation2 + $0x23c0] sm:$0xff]  ;;  %v3181_v18 = vld [vmem:[#allocation2 + $0x2708] sm:$0xff] }
 0x367   :  { %11324 = vmatpush1.bf16.msra.mxu0 %v11323_v11  ;;  %v3373_v11 = vld [vmem:[#allocation2 + $0x2d08] sm:$0xff]  ;;  %v2936_v22 = vld [vmem:[#allocation2 + $0x1f60] sm:$0xff] }
 0x368   :  { %11520 = vmatpush1.bf16.msra.mxu1 %v11519_v46  ;;  %11326 = vmatprep.subr.bf16.mxu0 %v11325_v47  ;;  %v3378_v46 = vld [vmem:[#allocation2 + $0x2d30] sm:$0xff]  ;;  %v6017_v47 = vld [vmem:[#allocation10 + $0xac8] sm:$0xff] }
 0x369   :  { %11522 = vmatprep.subr.bf16.mxu1 %v11521_v51  ;;  %v11341_v57 = vpack.c.bf16 %v3378_v46, %v3373_v11  ;;  %v3156_v46 = vld [vmem:[#allocation2 + $0x2640] sm:$0xff] }
 0x36b   :  { %11328 = vmatpush1.bf16.msra.mxu0 %v11327_v61  ;;  %v3374_v61 = vld [vmem:[#allocation2 + $0x2d10] sm:$0xff] }
 0x36c   :  { %11524 = vmatpush1.bf16.msra.mxu1 %v11523_v0  ;;  %11330 = vmatprep.subr.bf16.mxu0 %v11329_v1  ;;  %v11537_v0 = vpack.c.bf16 %v3380_v50, %v3375_v40  ;;  %v3379_v1 = vld [vmem:[#allocation2 + $0x2d38] sm:$0xff]  ;;  %v3161_v40 = vld [vmem:[#allocation2 + $0x2668] sm:$0xff]  ;;  %v11547_v50 = vpack.c.bf16 %v3399_v38, %v3394_v37  ;;  %v3186_v37 = vld [vmem:[#allocation2 + $0x2730] sm:$0xff] }
 0x36d   :  { %11526 = vmatprep.subr.bf16.mxu1 %v11525_v5  ;;  %v3385_v5 = vld [vmem:[#allocation2 + $0x2d68] sm:$0xff]  ;;  %v11539_v10 = vpack.c.bf16 %v3379_v1, %v3374_v61  ;;  %v3011_v1 = vld [vmem:[#allocation2 + $0x21b8] sm:$0xff] }
 0x36e   :  { %v11541_v16 = vpack.c.bf16 %v3390_v6, %v3385_v5  ;;  %v3081_v61 = vld [vmem:[#allocation2 + $0x23e8] sm:$0xff]  ;;  %v3191_v38 = vld [vmem:[#allocation2 + $0x2758] sm:$0xff] }
 0x36f   :  { %11332 = vmatpush1.bf16.msra.mxu0 %v11331_v12  ;;  %v11345_v12 = vpack.c.bf16 %v3388_v3, %v3383_v2  ;;  %v3166_v2 = vld [vmem:[#allocation2 + $0x2690] sm:$0xff]  ;;  %v3171_v3 = vld [vmem:[#allocation2 + $0x26b8] sm:$0xff]  ;;  %v11583_v5 = vpack.c.bf16 %v3081_v61, %v3076_v60  ;;  %v3041_v60 = vld [vmem:[#allocation2 + $0x22a8] sm:$0xff] }
 0x370   :  { %11528 = vmatpush1.bf16.msra.mxu1 %v11527_v13  ;;  %11334 = vmatprep.subr.bf16.mxu0 %v11333_v14  ;;  %v3382_v13 = vld [vmem:[#allocation2 + $0x2d50] sm:$0xff]  ;;  %v3387_v14 = vld [vmem:[#allocation2 + $0x2d78] sm:$0xff] }
 0x371   :  { %v13997_v42 = vpop.f32.mrb[6].mxu0  ;;  %11530 = vmatprep.subr.bf16.mxu1 %v11529_v20  ;;  %v3393_v20 = vld [vmem:[#allocation2 + $0x2da8] sm:$0xff]  ;;  %v11347_v29 = vpack.c.bf16 %v3387_v14, %v3382_v13  ;;  %v3091_v13 = vld [vmem:[#allocation2 + $0x2438] sm:$0xff]  ;;  %v3016_v14 = vld [vmem:[#allocation2 + $0x21e0] sm:$0xff] }
 0x372   :  { %v14001_v48 = vpop.f32.mrb[7].mxu0  ;;  %v11557_v24 = vpack.c.bf16 %v3021_v15, %v3016_v14  ;;  %v3121_v14 = vld [vmem:[#allocation2 + $0x2528] sm:$0xff]  ;;  %v3046_v15 = vld [vmem:[#allocation2 + $0x22d0] sm:$0xff] }
 0x373   :  { %11336 = vmatpush1.bf16.msra.mxu0 %v11335_v33  ;;  %v11349_v33 = vpack.c.bf16 %v3398_v23, %v3393_v20 }
 0x374   :  { %11532 = vmatpush1.bf16.msra.mxu1 %v11531_v34  ;;  %11338 = vmatprep.subr.bf16.mxu0 %v11337_v35  ;;  %v3392_v34 = vld [vmem:[#allocation2 + $0x2da0] sm:$0xff]  ;;  %v3397_v35 = vld [vmem:[#allocation2 + $0x2dc8] sm:$0xff] }
 0x375   :  { %11534 = vmatprep.subr.bf16.mxu1 %v11533_v43  ;;  %v2996_v43 = vld [vmem:[#allocation2 + $0x2140] sm:$0xff]  ;;  %v11351_v11 = vpack.c.bf16 %v3397_v35, %v3392_v34  ;;  %v3101_v34 = vld [vmem:[#allocation2 + $0x2488] sm:$0xff]  ;;  %v3026_v35 = vld [vmem:[#allocation2 + $0x2230] sm:$0xff] }
 0x376   :  { %v9111_v4 = vpop.f32.mrb[8].mxu1 }
 0x377   :  { %v9112_v7 = vpop.f32.mrb[9].mxu1  ;;  %11340 = vmatpush1.bf16.msra.mxu0 %v11339_v53  ;;  %v11549_v53 = vpack.c.bf16 %v3001_v45, %v2996_v43 }
 0x378   :  { %v14005_v9 = vadd.f32 %v9112_v7, %v9111_v4  ;;  %11536 = vmatpush1.bf16.msra.mxu1 %v11535_v54  ;;  %11342 = vmatprep.subr.bf16.mxu0 %v11341_v57  ;;  %v11581_v54 = vpack.c.bf16 %v3161_v40, %v3156_v46  ;;  %v2916_v57 = vld [vmem:[#allocation2 + $0x1ec0] sm:$0xff]  ;;  %v2926_v7 = vld [vmem:[#allocation2 + $0x1f10] sm:$0xff]  ;;  %v2951_v40 = vld [vmem:[#allocation2 + $0x1fd8] sm:$0xff] }
 0x379   :  { %11538 = vmatprep.subr.bf16.mxu1 %v11537_v0  ;;  %v3006_v0 = vld [vmem:[#allocation2 + $0x2190] sm:$0xff]  ;;  %v11551_v4 = vpack.c.bf16 %v2921_v59, %v2916_v57  ;;  %v3111_v57 = vld [vmem:[#allocation2 + $0x24d8] sm:$0xff]  ;;  %v3036_v59 = vld [vmem:[#allocation2 + $0x2280] sm:$0xff] }
 0x37a   :  { %v11553_v6 = vpack.c.bf16 %v3011_v1, %v3006_v0  ;;  %v2946_v46 = vld [vmem:[#allocation2 + $0x1fb0] sm:$0xff]  ;;  %v3196_v0 = vld [vmem:[#allocation2 + $0x2780] sm:$0xff]  ;;  %v3201_v1 = vld [vmem:[#allocation2 + $0x27a8] sm:$0xff] }
 0x37b   :  { %11344 = vmatpush1.bf16.msra.mxu0 %v11343_v8  ;;  %v2931_v8 = vld [vmem:[#allocation2 + $0x1f38] sm:$0xff] }
 0x37c   :  { %11540 = vmatpush1.bf16.msra.mxu1 %v11539_v10  ;;  %11346 = vmatprep.subr.bf16.mxu0 %v11345_v12  ;;  %v3086_v10 = vld [vmem:[#allocation2 + $0x2410] sm:$0xff]  ;;  %v11585_v12 = vpack.c.bf16 %v3171_v3, %v3166_v2  ;;  %v11555_v20 = vpack.c.bf16 %v2931_v8, %v2926_v7  ;;  %v11563_v3 = vpack.c.bf16 %v2951_v40, %v2946_v46  ;;  %v2961_v7 = vld [vmem:[#allocation2 + $0x2028] sm:$0xff]  ;;  %v3116_v8 = vld [vmem:[#allocation2 + $0x2500] sm:$0xff] }
 0x37d   :  { %11542 = vmatprep.subr.bf16.mxu1 %v11541_v16  ;;  %v3176_v16 = vld [vmem:[#allocation2 + $0x26e0] sm:$0xff]  ;;  %v11587_v23 = vpack.c.bf16 %v3091_v13, %v3086_v10  ;;  %v11597_v13 = vpack.c.bf16 %v3201_v1, %v3196_v0  ;;  %v3221_v40 = vld [vmem:[#allocation2 + $0x2848] sm:$0xff] }
 0x37e   :  { %v3216_v46 = vld [vmem:[#allocation2 + $0x2820] sm:$0xff]  ;;  %v3141_v1 = vld [vmem:[#allocation2 + $0x25c8] sm:$0xff] }
 0x37f   :  { %11348 = vmatpush1.bf16.msra.mxu0 %v11347_v29  ;;  %v2941_v29 = vld [vmem:[#allocation2 + $0x1f88] sm:$0xff]  ;;  %v11605_v0 = vpack.c.bf16 %v3221_v40, %v3216_v46  ;;  %v4251_v46 = vld [vmem:[#allocation2 + $0x2df0] sm:$0xff] }
 0x380   :  { %11544 = vmatpush1.bf16.msra.mxu1 %v11543_v49  ;;  %11350 = vmatprep.subr.bf16.mxu0 %v11349_v33  ;;  %v3096_v49 = vld [vmem:[#allocation2 + $0x2460] sm:$0xff]  ;;  %v11589_v33 = vpack.c.bf16 %v3181_v18, %v3176_v16  ;;  %v11559_v43 = vpack.c.bf16 %v2941_v29, %v2936_v22  ;;  %v3051_v16 = vld [vmem:[#allocation2 + $0x22f8] sm:$0xff] }
 0x381   :  { %11546 = vmatprep.subr.bf16.mxu1 %v11545_v36  ;;  %v3031_v36 = vld [vmem:[#allocation2 + $0x2258] sm:$0xff]  ;;  %v11591_v45 = vpack.c.bf16 %v3101_v34, %v3096_v49  ;;  %v11569_v34 = vpack.c.bf16 %v3051_v16, %v3046_v15 }
 0x382   :  { %3609 = vmatmul.mubr.f32.vlgmr.msra.gmra.mrb[12].mxu0 %v13900_v55  ;;  %v3151_v16 = vld [vmem:[#allocation2 + $0x2618] sm:$0xff] }
 0x383   :  { %3893 = vmatmul.mubr.f32.vlgmr.msra.gmra.mrb[12].mxu1 %v13900_v55  ;;  %11352 = vmatpush1.bf16.msra.mxu0 %v11351_v11  ;;  %v11561_v11 = vpack.c.bf16 %v3031_v36, %v3026_v35  ;;  %v2966_v35 = vld [vmem:[#allocation2 + $0x2050] sm:$0xff] }
 0x384   :  { %11548 = vmatpush1.bf16.msra.mxu1 %v11547_v50  ;;  %3679 = vmatprep.mubr.f32.mxu0 %v15192_v21  ;;  %v3106_v50 = vld [vmem:[#allocation2 + $0x24b0] sm:$0xff] }
 0x385   :  { %3963 = vmatprep.mubr.f32.mxu1 %v15192_v21  ;;  %11550 = vmatprep.subr.bf16.mxu0 %v11549_v53  ;;  %v3126_v36 = vld [vmem:[#allocation2 + $0x2550] sm:$0xff] }
 0x386   :  { %11582 = vmatprep.subr.bf16.mxu1 %v11581_v54  ;;  %v11593_v54 = vpack.c.bf16 %v3191_v38, %v3186_v37  ;;  %v3131_v38 = vld [vmem:[#allocation2 + $0x2578] sm:$0xff] }
 0x38a   :  { %8951 = vmatmul.mubr.msk.f32.vlgmr.msra.gmra.mrb[12].mxu0 %vm716_vm0, %v13917_v30 }
 0x38b   :  { %8952 = vmatmul.mubr.msk.f32.vlgmr.msra.gmra.mrb[12].mxu1 %vm716_vm0, %v13917_v30  ;;  %11552 = vmatpush3.bf16.msra.mxu0 %v11551_v4  ;;  %v11595_v4 = vpack.c.bf16 %v3111_v57, %v3106_v50 }
 0x38c   :  { %11584 = vmatpush3.bf16.msra.mxu1 %v11583_v5  ;;  %11554 = vmatprep.subr.bf16.mxu0 %v11553_v6  ;;  %v11565_v5 = vpack.c.bf16 %v3041_v60, %v3036_v59  ;;  %v2956_v6 = vld [vmem:[#allocation2 + $0x2000] sm:$0xff]  ;;  %v2981_v60 = vld [vmem:[#allocation2 + $0x20c8] sm:$0xff] }
 0x38d   :  { %11586 = vmatprep.subr.bf16.mxu1 %v11585_v12  ;;  %4034 = vmatprep.mubr.f32.mxu0 %v13876_v32  ;;  %v11567_v29 = vpack.c.bf16 %v2961_v7, %v2956_v6  ;;  %v2976_v59 = vld [vmem:[#allocation2 + $0x20a0] sm:$0xff]  ;;  %v3231_v6 = vld [vmem:[#allocation2 + $0x2898] sm:$0xff] }
 0x38e   :  { %4104 = vmatprep.mubr.f32.mxu1 %v13887_v39  ;;  %v11575_v7 = vpack.c.bf16 %v2981_v60, %v2976_v59  ;;  %v3341_v59 = vld [vmem:[#allocation2 + $0x2c08] sm:$0xff] }
 0x38f   :  { %11556 = vmatpush3.bf16.msra.mxu0 %v11555_v20  ;;  %v4262_v60 = vld [vmem:[#allocation2 + $0x2e48] sm:$0xff] }
 0x390   :  { %11588 = vmatpush3.bf16.msra.mxu1 %v11587_v23  ;;  %11558 = vmatprep.subr.bf16.mxu0 %v11557_v24  ;;  %v3206_v23 = vld [vmem:[#allocation2 + $0x27d0] sm:$0xff]  ;;  %v3211_v24 = vld [vmem:[#allocation2 + $0x27f8] sm:$0xff] }
 0x391   :  { %v9146_v53 = vpop.f32.mrb[8].mxu0  ;;  %11590 = vmatprep.subr.bf16.mxu1 %v11589_v33  ;;  %v11599_v33 = vpack.c.bf16 %v3121_v14, %v3116_v8  ;;  %v11601_v37 = vpack.c.bf16 %v3211_v24, %v3206_v23  ;;  %v3146_v14 = vld [vmem:[#allocation2 + $0x25f0] sm:$0xff] }
 0x392   :  { %v9147_v61 = vpop.f32.mrb[9].mxu0  ;;  %v11611_v24 = vpack.c.bf16 %v3151_v16, %v3146_v14  ;;  %v4277_v14 = vld [vmem:[#allocation2 + $0x2ec0] sm:$0xff] }
 0x393   :  { %v9148_v2 = vadd.f32 %v9147_v61, %v9146_v53  ;;  %11560 = vmatpush3.bf16.msra.mxu0 %v11559_v43  ;;  %v3056_v43 = vld [vmem:[#allocation2 + $0x2320] sm:$0xff] }
 0x394   :  { %11592 = vmatpush3.bf16.msra.mxu1 %v11591_v45  ;;  %11562 = vmatprep.subr.bf16.mxu0 %v11561_v11  ;;  %v3061_v45 = vld [vmem:[#allocation2 + $0x2348] sm:$0xff]  ;;  %v3136_v61 = vld [vmem:[#allocation2 + $0x25a0] sm:$0xff] }
 0x395   :  { %v2763_v10 = vadd.f32 %v9148_v2, %v14005_v9  ;;  %11594 = vmatprep.subr.bf16.mxu1 %v11593_v54  ;;  %v2902_v12 = vpop.f32.mrb[10].mxu0  ;;  %v2971_v9 = vld [vmem:[#allocation2 + $0x2078] sm:$0xff]  ;;  %v11603_v54 = vpack.c.bf16 %v3131_v38, %v3126_v36  ;;  %v11573_v57 = vpack.c.bf16 %v3061_v45, %v3056_v43  ;;  %v3066_v2 = vld [vmem:[#allocation2 + $0x2370] sm:$0xff]  ;;  %v11607_v8 = vpack.c.bf16 %v3141_v1, %v3136_v61 }
 0x396   :  { %v9181_v18 = vpop.f32.mrb[10].mxu1  ;;  %v9941_v20 = vpop.f32.mrb[11].mxu0  ;;  %v11571_v50 = vpack.c.bf16 %v2971_v9, %v2966_v35  ;;  %v3326_v35 = vld [vmem:[#allocation2 + $0x2b90] sm:$0xff]  ;;  %v3331_v9 = vld [vmem:[#allocation2 + $0x2bb8] sm:$0xff] }
 0x397   :  { %v9182_v22 = vpop.f32.mrb[11].mxu1  ;;  %11564 = vmatpush3.bf16.msra.mxu0 %v11563_v3  ;;  %v3071_v3 = vld [vmem:[#allocation2 + $0x2398] sm:$0xff]  ;;  %v3321_v20 = vld [vmem:[#allocation2 + $0x2b68] sm:$0xff]  ;;  %v3246_v45 = vld [vmem:[#allocation2 + $0x2910] sm:$0xff]  ;;  %v11617_v40 = vpack.c.bf16 %v3331_v9, %v3326_v35 }
 0x398   :  { %v9183_v49 = vadd.f32 %v9182_v22, %v9181_v18  ;;  %11596 = vmatpush3.bf16.msra.mxu1 %v11595_v4  ;;  %11566 = vmatprep.subr.bf16.mxu0 %v11565_v5  ;;  %v3226_v5 = vld [vmem:[#allocation2 + $0x2870] sm:$0xff]  ;;  %v3316_v18 = vld [vmem:[#allocation2 + $0x2b40] sm:$0xff]  ;;  %v4252_v36 = vld [vmem:[#allocation2 + $0x2df8] sm:$0xff] }
 0x399   :  { %11598 = vmatprep.subr.bf16.mxu1 %v11597_v13  ;;  %v2991_v13 = vld [vmem:[#allocation2 + $0x2118] sm:$0xff]  ;;  %v11609_v15 = vpack.c.bf16 %v3231_v6, %v3226_v5  ;;  %v11613_v22 = vpack.c.bf16 %v3321_v20, %v3316_v18  ;;  %v4267_v61 = vld [vmem:[#allocation2 + $0x2e70] sm:$0xff]  ;;  %v3261_v5 = vld [vmem:[#allocation2 + $0x2988] sm:$0xff] }
 0x39a   :  { %v2833_v11 = vadd.f32 %v9183_v49, %v2763_v10  ;;  %v11577_v10 = vpack.c.bf16 %v3071_v3, %v3066_v2  ;;  %v3241_v49 = vld [vmem:[#allocation2 + $0x28e8] sm:$0xff]  ;;  %v3256_v3 = vld [vmem:[#allocation2 + $0x2960] sm:$0xff]  ;;  %v3266_v20 = vld [vmem:[#allocation2 + $0x29b0] sm:$0xff] }
 0x39b   :  { %11568 = vmatpush3.bf16.msra.mxu0 %v11567_v29  ;;  %v3236_v29 = vld [vmem:[#allocation2 + $0x28c0] sm:$0xff]  ;;  %v4287_v35 = vld [vmem:[#allocation2 + $0x2f10] sm:$0xff] }
 0x39c   :  { %v14018_v53 = vadd.f32 %v2902_v12, %v2833_v11  ;;  %11600 = vmatpush3.bf16.msra.mxu1 %v11599_v33  ;;  %11570 = vmatprep.subr.bf16.mxu0 %v11569_v34  ;;  %v2986_v12 = vld [vmem:[#allocation2 + $0x20f0] sm:$0xff]  ;;  %v3396_v33 = vld [vmem:[#allocation2 + $0x2dc0] sm:$0xff]  ;;  %v3401_v34 = vld [vmem:[#allocation2 + $0x2de8] sm:$0xff]  ;;  %v11615_v38 = vpack.c.bf16 %v3241_v49, %v3236_v29 }
 0x39d   :  { %11602 = vmatprep.subr.bf16.mxu1 %v11601_v37  ;;  %v11579_v23 = vpack.c.bf16 %v2991_v13, %v2986_v12  ;;  %v4257_v37 = vld [vmem:[#allocation2 + $0x2e20] sm:$0xff]  ;;  %v11646_v43 = vpack.c.bf16 %v3401_v34, %v3396_v33  ;;  %v3251_v11 = vld [vmem:[#allocation2 + $0x2938] sm:$0xff]  ;;  %v3361_v33 = vld [vmem:[#allocation2 + $0x2ca8] sm:$0xff] }
 0x39e   :  { %v4261_v6 = vld [vmem:[#allocation2 + $0x2e40] sm:$0xff]  ;;  %v3351_v12 = vld [vmem:[#allocation2 + $0x2c58] sm:$0xff]  ;;  %v4282_v34 = vld [vmem:[#allocation2 + $0x2ee8] sm:$0xff] }
 0x39f   :  { %11572 = vmatpush3.bf16.msra.mxu0 %v11571_v50  ;;  %v11648_v50 = vpack.c.bf16 %v4257_v37, %v4252_v36  ;;  %v4272_v13 = vld [vmem:[#allocation2 + $0x2e98] sm:$0xff]  ;;  %v3356_v49 = vld [vmem:[#allocation2 + $0x2c80] sm:$0xff]  ;;  %v6007_v4 = vld [vmem:[#allocation10 + $0xa78] sm:$0xff] }
 0x3a0   :  { %11604 = vmatpush3.bf16.msra.mxu1 %v11603_v54  ;;  %11574 = vmatprep.subr.bf16.mxu0 %v11573_v57  ;;  %v4256_v54 = vld [vmem:[#allocation2 + $0x2e18] sm:$0xff]  ;;  %v3336_v57 = vld [vmem:[#allocation2 + $0x2be0] sm:$0xff]  ;;  %v11629_v37 = vpack.c.bf16 %v3361_v33, %v3356_v49 }
 0x3a1   :  { %11606 = vmatprep.subr.bf16.mxu1 %v11605_v0  ;;  %v11619_v0 = vpack.c.bf16 %v3251_v11, %v3246_v45  ;;  %v11650_v1 = vpack.c.bf16 %v4256_v54, %v4251_v46  ;;  %v11621_v2 = vpack.c.bf16 %v3341_v59, %v3336_v57  ;;  %v4276_v29 = vld [vmem:[#allocation2 + $0x2eb8] sm:$0xff]  ;;  %v4281_v45 = vld [vmem:[#allocation2 + $0x2ee0] sm:$0xff]  ;;  %v11660_v11 = vpack.c.bf16 %v4287_v35, %v4282_v34  ;;  %v4286_v46 = vld [vmem:[#allocation2 + $0x2f08] sm:$0xff] }
 0x3a2   :  { %v4292_v54 = vld [vmem:[#allocation2 + $0x2f38] sm:$0xff]  ;;  %v4297_v57 = vld [vmem:[#allocation2 + $0x2f60] sm:$0xff] }
 0x3a3   :  { %11576 = vmatpush3.bf16.msra.mxu0 %v11575_v7  ;;  %v11652_v7 = vpack.c.bf16 %v4267_v61, %v4262_v60  ;;  %v11662_v60 = vpack.c.bf16 %v4286_v46, %v4281_v45  ;;  %v4317_v49 = vld [vmem:[#allocation2 + $0x3000] sm:$0xff]  ;;  %v4254_v45 = vld [vmem:[#allocation2 + $0x2e08] sm:$0xff] }
 0x3a4   :  { %11608 = vmatpush3.bf16.msra.mxu1 %v11607_v8  ;;  %11578 = vmatprep.subr.bf16.mxu0 %v11577_v10  ;;  %v4266_v8 = vld [vmem:[#allocation2 + $0x2e68] sm:$0xff]  ;;  %v3346_v10 = vld [vmem:[#allocation2 + $0x2c30] sm:$0xff] }
 0x3a5   :  { %11610 = vmatprep.subr.bf16.mxu1 %v11609_v15  ;;  %v11623_v15 = vpack.c.bf16 %v3261_v5, %v3256_v3  ;;  %v11654_v16 = vpack.c.bf16 %v4266_v8, %v4261_v6  ;;  %v11625_v18 = vpack.c.bf16 %v3351_v12, %v3346_v10  ;;  %v11664_v3 = vpack.c.bf16 %v4297_v57, %v4292_v54  ;;  %v4296_v5 = vld [vmem:[#allocation2 + $0x2f58] sm:$0xff]  ;;  %v3376_v6 = vld [vmem:[#allocation2 + $0x2d20] sm:$0xff]  ;;  %v4302_v8 = vld [vmem:[#allocation2 + $0x2f88] sm:$0xff] }
 0x3a6   :  { %v4307_v10 = vld [vmem:[#allocation2 + $0x2fb0] sm:$0xff]  ;;  %v4322_v46 = vld [vmem:[#allocation2 + $0x3028] sm:$0xff] }
 0x3a7   :  { %11580 = vmatpush3.bf16.msra.mxu0 %v11579_v23  ;;  %v3271_v23 = vld [vmem:[#allocation2 + $0x29d8] sm:$0xff] }
 0x3a8   :  { %11612 = vmatpush3.bf16.msra.mxu1 %v11611_v24  ;;  %11614 = vmatprep.subr.bf16.mxu0 %v11613_v22  ;;  %v4271_v24 = vld [vmem:[#allocation2 + $0x2e90] sm:$0xff]  ;;  %v11656_v22 = vpack.c.bf16 %v4277_v14, %v4272_v13  ;;  %v11627_v9 = vpack.c.bf16 %v3271_v23, %v3266_v20  ;;  %v11668_v20 = vpack.c.bf16 %v4307_v10, %v4302_v8  ;;  %v4306_v23 = vld [vmem:[#allocation2 + $0x2fa8] sm:$0xff] }
 0x3a9   :  { %11645 = vmatprep.subr.bf16.mxu1 %v15194_v17  ;;  %v11658_v36 = vpack.c.bf16 %v4276_v29, %v4271_v24  ;;  %v3386_v24 = vld [vmem:[#allocation2 + $0x2d70] sm:$0xff]  ;;  %v4312_v29 = vld [vmem:[#allocation2 + $0x2fd8] sm:$0xff] }
 0x3aa   :  { %4035 = vmatmul.mubr.f32.vlgmr.msra.gmra.mrb[14].mxu0 %v13872_v25 }
 0x3ab   :  { %4105 = vmatmul.mubr.f32.vlgmr.msra.gmra.mrb[14].mxu1 %v13883_v26  ;;  %11616 = vmatpush3.bf16.msra.mxu0 %v11615_v38  ;;  %v3276_v38 = vld [vmem:[#allocation2 + $0x2a00] sm:$0xff] }
 0x3ac   :  { %11647 = vmatpush3.bf16.msra.mxu1 %v11646_v43  ;;  %9946 = vmatprep.mubr.msk.f32.mxu1 %vm13637_vm1, %v15192_v21  ;;  %v3281_v43 = vld [vmem:[#allocation2 + $0x2a28] sm:$0xff] }
 0x3ad   :  { %11618 = vmatprep.subr.bf16.mxu0 %v11617_v40  ;;  %11649 = vmatprep.subr.bf16.mxu1 %v11648_v50  ;;  %v3366_v40 = vld [vmem:[#allocation2 + $0x2cd0] sm:$0xff]  ;;  %v3371_v50 = vld [vmem:[#allocation2 + $0x2cf8] sm:$0xff]  ;;  %v11631_v59 = vpack.c.bf16 %v3281_v43, %v3276_v38  ;;  %v11672_v38 = vpack.c.bf16 %v4317_v49, %v4312_v29 }
 0x3ae   :  { %4174 = vmatprep.mubr.f32.mxu0 %v13905_v63  ;;  %v11633_v61 = vpack.c.bf16 %v3371_v50, %v3366_v40  ;;  %v4316_v43 = vld [vmem:[#allocation2 + $0x2ff8] sm:$0xff]  ;;  %v4327_v40 = vld [vmem:[#allocation2 + $0x3050] sm:$0xff] }
 0x3af   :  { %9947 = vmatmul.mubr.msk.f32.vlgmr.msra.gmra.mrb[16].mxu1 %vm716_vm0, %v13917_v30  ;;  %11620 = vmatpush3.bf16.msra.mxu0 %v11619_v0  ;;  %v3286_v0 = vld [vmem:[#allocation2 + $0x2a50] sm:$0xff] }
 0x3b0   :  { %11651 = vmatpush1.bf16.msra.mxu1 %v11650_v1  ;;  %11622 = vmatprep.subr.bf16.mxu0 %v11621_v2  ;;  %v3291_v1 = vld [vmem:[#allocation2 + $0x2a78] sm:$0xff]  ;;  %v4291_v2 = vld [vmem:[#allocation2 + $0x2f30] sm:$0xff] }
 0x3b1   :  { %11653 = vmatprep.subr.bf16.mxu1 %v11652_v7  ;;  %4805 = vmatprep.mubr.f32.mxu1 %v13876_v32  ;;  %v3381_v7 = vld [vmem:[#allocation2 + $0x2d48] sm:$0xff]  ;;  %v11635_v12 = vpack.c.bf16 %v3291_v1, %v3286_v0  ;;  %v11666_v13 = vpack.c.bf16 %v4296_v5, %v4291_v2  ;;  %v11676_v0 = vpack.c.bf16 %v4327_v40, %v4322_v46  ;;  %v4264_v2 = vld [vmem:[#allocation2 + $0x2e58] sm:$0xff] }
 0x3b2   :  { %v11637_v14 = vpack.c.bf16 %v3381_v7, %v3376_v6  ;;  %v4326_v1 = vld [vmem:[#allocation2 + $0x3048] sm:$0xff]  ;;  %v4332_v5 = vld [vmem:[#allocation2 + $0x3078] sm:$0xff]  ;;  %v4337_v6 = vld [vmem:[#allocation2 + $0x30a0] sm:$0xff] }
 0x3b3   :  { %11624 = vmatpush3.bf16.msra.mxu0 %v11623_v15  ;;  %v3296_v15 = vld [vmem:[#allocation2 + $0x2aa0] sm:$0xff] }
 0x3b4   :  { %11655 = vmatpush1.bf16.msra.mxu1 %v11654_v16  ;;  %11626 = vmatprep.subr.bf16.mxu0 %v11625_v18  ;;  %v3301_v16 = vld [vmem:[#allocation2 + $0x2ac8] sm:$0xff]  ;;  %v4301_v18 = vld [vmem:[#allocation2 + $0x2f80] sm:$0xff] }
 0x3b5   :  { %11657 = vmatprep.subr.bf16.mxu1 %v11656_v22  ;;  %v3391_v22 = vld [vmem:[#allocation2 + $0x2d98] sm:$0xff]  ;;  %v11639_v33 = vpack.c.bf16 %v3301_v16, %v3296_v15  ;;  %v11670_v34 = vpack.c.bf16 %v4306_v23, %v4301_v18  ;;  %v11680_v15 = vpack.c.bf16 %v4337_v6, %v4332_v5  ;;  %v4274_v18 = vld [vmem:[#allocation2 + $0x2ea8] sm:$0xff] }
 0x3b6   :  { %v11641_v35 = vpack.c.bf16 %v3391_v22, %v3386_v24  ;;  %v4336_v16 = vld [vmem:[#allocation2 + $0x3098] sm:$0xff]  ;;  %v4342_v23 = vld [vmem:[#allocation2 + $0x30c8] sm:$0xff]  ;;  %v4347_v24 = vld [vmem:[#allocation2 + $0x30f0] sm:$0xff] }
 0x3b7   :  { %11628 = vmatpush3.bf16.msra.mxu0 %v11627_v9  ;;  %v3306_v9 = vld [vmem:[#allocation2 + $0x2af0] sm:$0xff] }
 0x3b8   :  { %11659 = vmatpush1.bf16.msra.mxu1 %v11658_v36  ;;  %11630 = vmatprep.subr.bf16.mxu0 %v11629_v37  ;;  %v3311_v36 = vld [vmem:[#allocation2 + $0x2b18] sm:$0xff]  ;;  %v4311_v37 = vld [vmem:[#allocation2 + $0x2fd0] sm:$0xff] }
 0x3b9   :  { %11661 = vmatprep.subr.bf16.mxu1 %v11660_v11  ;;  %v4259_v11 = vld [vmem:[#allocation2 + $0x2e30] sm:$0xff]  ;;  %v11643_v50 = vpack.c.bf16 %v3311_v36, %v3306_v9  ;;  %v11674_v54 = vpack.c.bf16 %v4316_v43, %v4311_v37  ;;  %v11684_v9 = vpack.c.bf16 %v4347_v24, %v4342_v23  ;;  %v4346_v36 = vld [vmem:[#allocation2 + $0x30e8] sm:$0xff]  ;;  %v4284_v37 = vld [vmem:[#allocation2 + $0x2ef8] sm:$0xff] }
 0x3ba   :  { %v11844_v57 = vpack.c.bf16 %v4259_v11, %v4254_v45  ;;  %v4352_v43 = vld [vmem:[#allocation2 + $0x3118] sm:$0xff]  ;;  %v4357_v45 = vld [vmem:[#allocation2 + $0x3140] sm:$0xff] }
 0x3bb   :  { %11632 = vmatpush3.bf16.msra.mxu0 %v11631_v59  ;;  %v4321_v59 = vld [vmem:[#allocation2 + $0x3020] sm:$0xff] }
 0x3bc   :  { %11663 = vmatpush1.bf16.msra.mxu1 %v11662_v60  ;;  %11634 = vmatprep.subr.bf16.mxu0 %v11633_v61  ;;  %v4253_v60 = vld [vmem:[#allocation2 + $0x2e00] sm:$0xff]  ;;  %v4258_v61 = vld [vmem:[#allocation2 + $0x2e28] sm:$0xff]  ;;  %v11678_v8 = vpack.c.bf16 %v4326_v1, %v4321_v59  ;;  %v11688_v59 = vpack.c.bf16 %v4357_v45, %v4352_v43 }
 0x3bd   :  { %11665 = vmatprep.subr.bf16.mxu1 %v11664_v3  ;;  %v4269_v3 = vld [vmem:[#allocation2 + $0x2e80] sm:$0xff]  ;;  %v11846_v7 = vpack.c.bf16 %v4258_v61, %v4253_v60  ;;  %v4356_v60 = vld [vmem:[#allocation2 + $0x3138] sm:$0xff]  ;;  %v4294_v61 = vld [vmem:[#allocation2 + $0x2f48] sm:$0xff] }
 0x3be   :  { %v11848_v10 = vpack.c.bf16 %v4269_v3, %v4264_v2  ;;  %v4362_v1 = vld [vmem:[#allocation2 + $0x3168] sm:$0xff]  ;;  %v4367_v2 = vld [vmem:[#allocation2 + $0x3190] sm:$0xff] }
 0x3bf   :  { %11636 = vmatpush3.bf16.msra.mxu0 %v11635_v12  ;;  %v4331_v12 = vld [vmem:[#allocation2 + $0x3070] sm:$0xff] }
 0x3c0   :  { %11667 = vmatpush1.bf16.msra.mxu1 %v11666_v13  ;;  %11638 = vmatprep.subr.bf16.mxu0 %v11637_v14  ;;  %v4263_v13 = vld [vmem:[#allocation2 + $0x2e50] sm:$0xff]  ;;  %v4268_v14 = vld [vmem:[#allocation2 + $0x2e78] sm:$0xff]  ;;  %v11682_v29 = vpack.c.bf16 %v4336_v16, %v4331_v12  ;;  %v11692_v12 = vpack.c.bf16 %v4367_v2, %v4362_v1 }
 0x3c1   :  { %11669 = vmatprep.subr.bf16.mxu1 %v11668_v20  ;;  %v4279_v20 = vld [vmem:[#allocation2 + $0x2ed0] sm:$0xff]  ;;  %v11850_v22 = vpack.c.bf16 %v4268_v14, %v4263_v13  ;;  %v4366_v13 = vld [vmem:[#allocation2 + $0x3188] sm:$0xff]  ;;  %v4304_v14 = vld [vmem:[#allocation2 + $0x2f98] sm:$0xff] }
 0x3c2   :  { %v11852_v49 = vpack.c.bf16 %v4279_v20, %v4274_v18  ;;  %v4372_v16 = vld [vmem:[#allocation2 + $0x31b8] sm:$0xff]  ;;  %v4377_v18 = vld [vmem:[#allocation2 + $0x31e0] sm:$0xff] }
 0x3c3   :  { %11640 = vmatpush3.bf16.msra.mxu0 %v11639_v33  ;;  %v4341_v33 = vld [vmem:[#allocation2 + $0x30c0] sm:$0xff] }
 0x3c4   :  { %11671 = vmatpush1.bf16.msra.mxu1 %v11670_v34  ;;  %11642 = vmatprep.subr.bf16.mxu0 %v11641_v35  ;;  %v4273_v34 = vld [vmem:[#allocation2 + $0x2ea0] sm:$0xff]  ;;  %v4278_v35 = vld [vmem:[#allocation2 + $0x2ec8] sm:$0xff]  ;;  %v11686_v46 = vpack.c.bf16 %v4346_v36, %v4341_v33  ;;  %v11696_v33 = vpack.c.bf16 %v4377_v18, %v4372_v16 }
 0x3c5   :  { %11673 = vmatprep.subr.bf16.mxu1 %v11672_v38  ;;  %v4289_v38 = vld [vmem:[#allocation2 + $0x2f20] sm:$0xff]  ;;  %v11854_v11 = vpack.c.bf16 %v4278_v35, %v4273_v34  ;;  %v4376_v34 = vld [vmem:[#allocation2 + $0x31d8] sm:$0xff]  ;;  %v4314_v35 = vld [vmem:[#allocation2 + $0x2fe8] sm:$0xff] }
 0x3c6   :  { %v11856_v40 = vpack.c.bf16 %v4289_v38, %v4284_v37  ;;  %v4382_v36 = vld [vmem:[#allocation2 + $0x3208] sm:$0xff]  ;;  %v4387_v37 = vld [vmem:[#allocation2 + $0x3230] sm:$0xff] }
 0x3c7   :  { %11644 = vmatpush3.bf16.msra.mxu0 %v11643_v50  ;;  %v4351_v50 = vld [vmem:[#allocation2 + $0x3110] sm:$0xff] }
 0x3c8   :  { %11675 = vmatpush1.bf16.msra.mxu1 %v11674_v54  ;;  %11845 = vmatprep.subr.bf16.mxu0 %v11844_v57  ;;  %v4283_v54 = vld [vmem:[#allocation2 + $0x2ef0] sm:$0xff]  ;;  %v4288_v57 = vld [vmem:[#allocation2 + $0x2f18] sm:$0xff]  ;;  %v11690_v5 = vpack.c.bf16 %v4356_v60, %v4351_v50  ;;  %v11700_v50 = vpack.c.bf16 %v4387_v37, %v4382_v36 }
 0x3c9   :  { %11677 = vmatprep.subr.bf16.mxu1 %v11676_v0  ;;  %v4299_v0 = vld [vmem:[#allocation2 + $0x2f70] sm:$0xff]  ;;  %v11858_v3 = vpack.c.bf16 %v4288_v57, %v4283_v54  ;;  %v4386_v54 = vld [vmem:[#allocation2 + $0x3228] sm:$0xff]  ;;  %v4324_v57 = vld [vmem:[#allocation2 + $0x3038] sm:$0xff] }
 0x3ca   :  { %4175 = vmatmul.mubr.f32.vlgmr.msra.gmra.mrb[16].mxu0 %v13900_v55  ;;  %v11860_v6 = vpack.c.bf16 %v4299_v0, %v4294_v61  ;;  %v4392_v60 = vld [vmem:[#allocation2 + $0x3258] sm:$0xff]  ;;  %v4397_v61 = vld [vmem:[#allocation2 + $0x3280] sm:$0xff] }
 0x3cb   :  { %11847 = vmatpush1.bf16.msra.mxu0 %v11846_v7  ;;  %5089 = vmatprep.mubr.f32.mxu0 %v13876_v32  ;;  %v4361_v7 = vld [vmem:[#allocation2 + $0x3160] sm:$0xff] }
 0x3cc   :  { %11679 = vmatpush1.bf16.msra.mxu1 %v11678_v8  ;;  %11849 = vmatprep.subr.bf16.mxu0 %v11848_v10  ;;  %v4293_v8 = vld [vmem:[#allocation2 + $0x2f40] sm:$0xff]  ;;  %v4298_v10 = vld [vmem:[#allocation2 + $0x2f68] sm:$0xff]  ;;  %v11694_v23 = vpack.c.bf16 %v4366_v13, %v4361_v7  ;;  %v11704_v7 = vpack.c.bf16 %v4397_v61, %v4392_v60 }
 0x3cd   :  { %11681 = vmatprep.subr.bf16.mxu1 %v11680_v15  ;;  %v4309_v15 = vld [vmem:[#allocation2 + $0x2fc0] sm:$0xff]  ;;  %v11862_v20 = vpack.c.bf16 %v4298_v10, %v4293_v8  ;;  %v4396_v8 = vld [vmem:[#allocation2 + $0x3278] sm:$0xff]  ;;  %v4334_v10 = vld [vmem:[#allocation2 + $0x3088] sm:$0xff] }
 0x3ce   :  { %v11864_v24 = vpack.c.bf16 %v4309_v15, %v4304_v14  ;;  %v4402_v13 = vld [vmem:[#allocation2 + $0x32a8] sm:$0xff]  ;;  %v4407_v14 = vld [vmem:[#allocation2 + $0x32d0] sm:$0xff] }
 0x3cf   :  { %11851 = vmatpush1.bf16.msra.mxu0 %v11850_v22  ;;  %v4371_v22 = vld [vmem:[#allocation2 + $0x31b0] sm:$0xff] }
 0x3d0   :  { %11683 = vmatpush1.bf16.msra.mxu1 %v11682_v29  ;;  %11853 = vmatprep.subr.bf16.mxu0 %v11852_v49  ;;  %v4303_v29 = vld [vmem:[#allocation2 + $0x2f90] sm:$0xff]  ;;  %v4308_v49 = vld [vmem:[#allocation2 + $0x2fb8] sm:$0xff]  ;;  %v11698_v43 = vpack.c.bf16 %v4376_v34, %v4371_v22  ;;  %v11708_v22 = vpack.c.bf16 %v4407_v14, %v4402_v13 }
 0x3d1   :  { %11685 = vmatprep.subr.bf16.mxu1 %v11684_v9  ;;  %v4319_v9 = vld [vmem:[#allocation2 + $0x3010] sm:$0xff]  ;;  %v11866_v38 = vpack.c.bf16 %v4308_v49, %v4303_v29  ;;  %v4406_v29 = vld [vmem:[#allocation2 + $0x32c8] sm:$0xff]  ;;  %v4344_v49 = vld [vmem:[#allocation2 + $0x30d8] sm:$0xff] }
 0x3d2   :  { %v11868_v45 = vpack.c.bf16 %v4319_v9, %v4314_v35  ;;  %v4412_v34 = vld [vmem:[#allocation2 + $0x32f8] sm:$0xff]  ;;  %v4417_v35 = vld [vmem:[#allocation2 + $0x3320] sm:$0xff] }
 0x3d3   :  { %11855 = vmatpush1.bf16.msra.mxu0 %v11854_v11  ;;  %v4381_v11 = vld [vmem:[#allocation2 + $0x3200] sm:$0xff] }
 0x3d4   :  { %11687 = vmatpush1.bf16.msra.mxu1 %v11686_v46  ;;  %11857 = vmatprep.subr.bf16.mxu0 %v11856_v40  ;;  %v4313_v46 = vld [vmem:[#allocation2 + $0x2fe0] sm:$0xff]  ;;  %v4318_v40 = vld [vmem:[#allocation2 + $0x3008] sm:$0xff]  ;;  %v11702_v1 = vpack.c.bf16 %v4386_v54, %v4381_v11  ;;  %v11712_v11 = vpack.c.bf16 %v4417_v35, %v4412_v34 }
 0x3d5   :  { %11689 = vmatprep.subr.bf16.mxu1 %v11688_v59  ;;  %v4329_v59 = vld [vmem:[#allocation2 + $0x3060] sm:$0xff]  ;;  %v11870_v0 = vpack.c.bf16 %v4318_v40, %v4313_v46  ;;  %v4416_v46 = vld [vmem:[#allocation2 + $0x3318] sm:$0xff]  ;;  %v4354_v40 = vld [vmem:[#allocation2 + $0x3128] sm:$0xff] }
 0x3d6   :  { %v11872_v2 = vpack.c.bf16 %v4329_v59, %v4324_v57  ;;  %v4422_v54 = vld [vmem:[#allocation2 + $0x3348] sm:$0xff]  ;;  %v4427_v57 = vld [vmem:[#allocation2 + $0x3370] sm:$0xff] }
 0x3d7   :  { %11859 = vmatpush1.bf16.msra.mxu0 %v11858_v3  ;;  %v4391_v3 = vld [vmem:[#allocation2 + $0x3250] sm:$0xff] }
 0x3d8   :  { %11691 = vmatpush1.bf16.msra.mxu1 %v11690_v5  ;;  %11861 = vmatprep.subr.bf16.mxu0 %v11860_v6  ;;  %v4323_v5 = vld [vmem:[#allocation2 + $0x3030] sm:$0xff]  ;;  %v4328_v6 = vld [vmem:[#allocation2 + $0x3058] sm:$0xff]  ;;  %v11706_v16 = vpack.c.bf16 %v4396_v8, %v4391_v3  ;;  %v11716_v3 = vpack.c.bf16 %v4427_v57, %v4422_v54 }
 0x3d9   :  { %11693 = vmatprep.subr.bf16.mxu1 %v11692_v12  ;;  %v4339_v12 = vld [vmem:[#allocation2 + $0x30b0] sm:$0xff]  ;;  %v11874_v15 = vpack.c.bf16 %v4328_v6, %v4323_v5  ;;  %v4426_v5 = vld [vmem:[#allocation2 + $0x3368] sm:$0xff]  ;;  %v4364_v6 = vld [vmem:[#allocation2 + $0x3178] sm:$0xff] }
 0x3da   :  { %v11876_v18 = vpack.c.bf16 %v4339_v12, %v4334_v10  ;;  %v4432_v8 = vld [vmem:[#allocation2 + $0x3398] sm:$0xff]  ;;  %v4437_v10 = vld [vmem:[#allocation2 + $0x33c0] sm:$0xff] }
 0x3db   :  { %11863 = vmatpush1.bf16.msra.mxu0 %v11862_v20  ;;  %v4401_v20 = vld [vmem:[#allocation2 + $0x32a0] sm:$0xff] }
 0x3dc   :  { %11695 = vmatpush1.bf16.msra.mxu1 %v11694_v23  ;;  %11865 = vmatprep.subr.bf16.mxu0 %v11864_v24  ;;  %v4333_v23 = vld [vmem:[#allocation2 + $0x3080] sm:$0xff]  ;;  %v4338_v24 = vld [vmem:[#allocation2 + $0x30a8] sm:$0xff]  ;;  %v11710_v36 = vpack.c.bf16 %v4406_v29, %v4401_v20  ;;  %v11720_v20 = vpack.c.bf16 %v4437_v10, %v4432_v8 }
 0x3dd   :  { %11697 = vmatprep.subr.bf16.mxu1 %v11696_v33  ;;  %v4349_v33 = vld [vmem:[#allocation2 + $0x3100] sm:$0xff]  ;;  %v11878_v9 = vpack.c.bf16 %v4338_v24, %v4333_v23  ;;  %v4436_v23 = vld [vmem:[#allocation2 + $0x33b8] sm:$0xff]  ;;  %v4374_v24 = vld [vmem:[#allocation2 + $0x31c8] sm:$0xff] }
 0x3de   :  { %v11880_v37 = vpack.c.bf16 %v4349_v33, %v4344_v49  ;;  %v4442_v29 = vld [vmem:[#allocation2 + $0x33e8] sm:$0xff]  ;;  %v4447_v49 = vld [vmem:[#allocation2 + $0x3410] sm:$0xff] }
 0x3df   :  { %11867 = vmatpush1.bf16.msra.mxu0 %v11866_v38  ;;  %v4411_v38 = vld [vmem:[#allocation2 + $0x32f0] sm:$0xff] }
 0x3e0   :  { %11699 = vmatpush1.bf16.msra.mxu1 %v11698_v43  ;;  %11869 = vmatprep.subr.bf16.mxu0 %v11868_v45  ;;  %v4343_v43 = vld [vmem:[#allocation2 + $0x30d0] sm:$0xff]  ;;  %v4348_v45 = vld [vmem:[#allocation2 + $0x30f8] sm:$0xff]  ;;  %v11714_v60 = vpack.c.bf16 %v4416_v46, %v4411_v38  ;;  %v11724_v38 = vpack.c.bf16 %v4447_v49, %v4442_v29 }
 0x3e1   :  { %11701 = vmatprep.subr.bf16.mxu1 %v11700_v50  ;;  %v4359_v50 = vld [vmem:[#allocation2 + $0x3150] sm:$0xff]  ;;  %v11882_v59 = vpack.c.bf16 %v4348_v45, %v4343_v43  ;;  %v4446_v43 = vld [vmem:[#allocation2 + $0x3408] sm:$0xff]  ;;  %v4384_v45 = vld [vmem:[#allocation2 + $0x3218] sm:$0xff] }
 0x3e2   :  { %v11884_v61 = vpack.c.bf16 %v4359_v50, %v4354_v40  ;;  %v4452_v46 = vld [vmem:[#allocation2 + $0x3438] sm:$0xff]  ;;  %v4457_v40 = vld [vmem:[#allocation2 + $0x3460] sm:$0xff] }
 0x3e3   :  { %11871 = vmatpush1.bf16.msra.mxu0 %v11870_v0  ;;  %v4421_v0 = vld [vmem:[#allocation2 + $0x3340] sm:$0xff] }
 0x3e4   :  { %11703 = vmatpush1.bf16.msra.mxu1 %v11702_v1  ;;  %11873 = vmatprep.subr.bf16.mxu0 %v11872_v2  ;;  %v4353_v1 = vld [vmem:[#allocation2 + $0x3120] sm:$0xff]  ;;  %v4358_v2 = vld [vmem:[#allocation2 + $0x3148] sm:$0xff]  ;;  %v11718_v13 = vpack.c.bf16 %v4426_v5, %v4421_v0  ;;  %v11728_v0 = vpack.c.bf16 %v4457_v40, %v4452_v46 }
 0x3e5   :  { %11705 = vmatprep.subr.bf16.mxu1 %v11704_v7  ;;  %v4369_v7 = vld [vmem:[#allocation2 + $0x31a0] sm:$0xff]  ;;  %v11886_v12 = vpack.c.bf16 %v4358_v2, %v4353_v1  ;;  %v4456_v1 = vld [vmem:[#allocation2 + $0x3458] sm:$0xff]  ;;  %v4394_v2 = vld [vmem:[#allocation2 + $0x3268] sm:$0xff] }
 0x3e6   :  { %v11888_v14 = vpack.c.bf16 %v4369_v7, %v4364_v6  ;;  %v4462_v5 = vld [vmem:[#allocation2 + $0x3488] sm:$0xff]  ;;  %v4467_v6 = vld [vmem:[#allocation2 + $0x34b0] sm:$0xff] }
 0x3e7   :  { %11875 = vmatpush1.bf16.msra.mxu0 %v11874_v15  ;;  %v4431_v15 = vld [vmem:[#allocation2 + $0x3390] sm:$0xff] }
 0x3e8   :  { %11707 = vmatpush1.bf16.msra.mxu1 %v11706_v16  ;;  %11877 = vmatprep.subr.bf16.mxu0 %v11876_v18  ;;  %v4363_v16 = vld [vmem:[#allocation2 + $0x3170] sm:$0xff]  ;;  %v4368_v18 = vld [vmem:[#allocation2 + $0x3198] sm:$0xff]  ;;  %v11722_v34 = vpack.c.bf16 %v4436_v23, %v4431_v15  ;;  %v11732_v15 = vpack.c.bf16 %v4467_v6, %v4462_v5 }
 0x3e9   :  { %11709 = vmatprep.subr.bf16.mxu1 %v11708_v22  ;;  %v4379_v22 = vld [vmem:[#allocation2 + $0x31f0] sm:$0xff]  ;;  %v11890_v33 = vpack.c.bf16 %v4368_v18, %v4363_v16  ;;  %v4466_v16 = vld [vmem:[#allocation2 + $0x34a8] sm:$0xff]  ;;  %v4404_v18 = vld [vmem:[#allocation2 + $0x32b8] sm:$0xff] }
 0x3ea   :  { %v11892_v35 = vpack.c.bf16 %v4379_v22, %v4374_v24  ;;  %v4472_v23 = vld [vmem:[#allocation2 + $0x34d8] sm:$0xff]  ;;  %v4477_v24 = vld [vmem:[#allocation2 + $0x3500] sm:$0xff] }
 0x3eb   :  { %11879 = vmatpush1.bf16.msra.mxu0 %v11878_v9  ;;  %v4441_v9 = vld [vmem:[#allocation2 + $0x33e0] sm:$0xff] }
 0x3ec   :  { %11711 = vmatpush1.bf16.msra.mxu1 %v11710_v36  ;;  %11881 = vmatprep.subr.bf16.mxu0 %v11880_v37  ;;  %v4373_v36 = vld [vmem:[#allocation2 + $0x31c0] sm:$0xff]  ;;  %v4378_v37 = vld [vmem:[#allocation2 + $0x31e8] sm:$0xff]  ;;  %v11726_v54 = vpack.c.bf16 %v4446_v43, %v4441_v9  ;;  %v11736_v9 = vpack.c.bf16 %v4477_v24, %v4472_v23 }
 0x3ed   :  { %11713 = vmatprep.subr.bf16.mxu1 %v11712_v11  ;;  %v4389_v11 = vld [vmem:[#allocation2 + $0x3240] sm:$0xff]  ;;  %v11894_v50 = vpack.c.bf16 %v4378_v37, %v4373_v36  ;;  %v4476_v36 = vld [vmem:[#allocation2 + $0x34f8] sm:$0xff]  ;;  %v4414_v37 = vld [vmem:[#allocation2 + $0x3308] sm:$0xff] }
 0x3ee   :  { %v11896_v57 = vpack.c.bf16 %v4389_v11, %v4384_v45  ;;  %v4482_v43 = vld [vmem:[#allocation2 + $0x3528] sm:$0xff]  ;;  %v4487_v45 = vld [vmem:[#allocation2 + $0x3550] sm:$0xff] }
 0x3ef   :  { %4806 = vmatmul.mubr.f32.vlgmr.msra.gmra.mrb[18].mxu1 %v13872_v25  ;;  %11883 = vmatpush1.bf16.msra.mxu0 %v11882_v59  ;;  %v4451_v59 = vld [vmem:[#allocation2 + $0x3430] sm:$0xff] }
 0x3f0   :  { %11715 = vmatpush1.bf16.msra.mxu1 %v11714_v60  ;;  %11885 = vmatprep.subr.bf16.mxu0 %v11884_v61  ;;  %v4383_v60 = vld [vmem:[#allocation2 + $0x3210] sm:$0xff]  ;;  %v4388_v61 = vld [vmem:[#allocation2 + $0x3238] sm:$0xff]  ;;  %v11730_v8 = vpack.c.bf16 %v4456_v1, %v4451_v59  ;;  %v11740_v59 = vpack.c.bf16 %v4487_v45, %v4482_v43 }
 0x3f1   :  { %11717 = vmatprep.subr.bf16.mxu1 %v11716_v3  ;;  %4876 = vmatprep.mubr.f32.mxu1 %v13887_v39  ;;  %v4399_v3 = vld [vmem:[#allocation2 + $0x3290] sm:$0xff]  ;;  %v11898_v7 = vpack.c.bf16 %v4388_v61, %v4383_v60  ;;  %v4486_v60 = vld [vmem:[#allocation2 + $0x3548] sm:$0xff]  ;;  %v4424_v61 = vld [vmem:[#allocation2 + $0x3358] sm:$0xff] }
 0x3f2   :  { %v11900_v10 = vpack.c.bf16 %v4399_v3, %v4394_v2  ;;  %v4492_v1 = vld [vmem:[#allocation2 + $0x3578] sm:$0xff]  ;;  %v4497_v2 = vld [vmem:[#allocation2 + $0x35a0] sm:$0xff] }
 0x3f3   :  { %11887 = vmatpush1.bf16.msra.mxu0 %v11886_v12  ;;  %v4461_v12 = vld [vmem:[#allocation2 + $0x3480] sm:$0xff] }
 0x3f4   :  { %11719 = vmatpush1.bf16.msra.mxu1 %v11718_v13  ;;  %11889 = vmatprep.subr.bf16.mxu0 %v11888_v14  ;;  %v4393_v13 = vld [vmem:[#allocation2 + $0x3260] sm:$0xff]  ;;  %v4398_v14 = vld [vmem:[#allocation2 + $0x3288] sm:$0xff]  ;;  %v11734_v29 = vpack.c.bf16 %v4466_v16, %v4461_v12  ;;  %v11744_v12 = vpack.c.bf16 %v4497_v2, %v4492_v1 }
 0x3f5   :  { %11721 = vmatprep.subr.bf16.mxu1 %v11720_v20  ;;  %v4409_v20 = vld [vmem:[#allocation2 + $0x32e0] sm:$0xff]  ;;  %v11902_v22 = vpack.c.bf16 %v4398_v14, %v4393_v13  ;;  %v4496_v13 = vld [vmem:[#allocation2 + $0x3598] sm:$0xff]  ;;  %v4434_v14 = vld [vmem:[#allocation2 + $0x33a8] sm:$0xff] }
 0x3f6   :  { %v11904_v49 = vpack.c.bf16 %v4409_v20, %v4404_v18  ;;  %v4502_v16 = vld [vmem:[#allocation2 + $0x35c8] sm:$0xff]  ;;  %v4507_v18 = vld [vmem:[#allocation2 + $0x35f0] sm:$0xff] }
 0x3f7   :  { %11891 = vmatpush1.bf16.msra.mxu0 %v11890_v33  ;;  %v4471_v33 = vld [vmem:[#allocation2 + $0x34d0] sm:$0xff] }
 0x3f8   :  { %11723 = vmatpush1.bf16.msra.mxu1 %v11722_v34  ;;  %11893 = vmatprep.subr.bf16.mxu0 %v11892_v35  ;;  %v4403_v34 = vld [vmem:[#allocation2 + $0x32b0] sm:$0xff]  ;;  %v4408_v35 = vld [vmem:[#allocation2 + $0x32d8] sm:$0xff]  ;;  %v11738_v46 = vpack.c.bf16 %v4476_v36, %v4471_v33  ;;  %v11748_v33 = vpack.c.bf16 %v4507_v18, %v4502_v16 }
 0x3f9   :  { %11725 = vmatprep.subr.bf16.mxu1 %v11724_v38  ;;  %v4419_v38 = vld [vmem:[#allocation2 + $0x3330] sm:$0xff]  ;;  %v11906_v11 = vpack.c.bf16 %v4408_v35, %v4403_v34  ;;  %v4506_v34 = vld [vmem:[#allocation2 + $0x35e8] sm:$0xff]  ;;  %v4444_v35 = vld [vmem:[#allocation2 + $0x33f8] sm:$0xff] }
 0x3fa   :  { %v11908_v40 = vpack.c.bf16 %v4419_v38, %v4414_v37  ;;  %v4512_v36 = vld [vmem:[#allocation2 + $0x3618] sm:$0xff]  ;;  %v4517_v37 = vld [vmem:[#allocation2 + $0x3640] sm:$0xff] }
 0x3fb   :  { %11895 = vmatpush1.bf16.msra.mxu0 %v11894_v50  ;;  %v4481_v50 = vld [vmem:[#allocation2 + $0x3520] sm:$0xff] }
 0x3fc   :  { %11727 = vmatpush1.bf16.msra.mxu1 %v11726_v54  ;;  %11897 = vmatprep.subr.bf16.mxu0 %v11896_v57  ;;  %v4413_v54 = vld [vmem:[#allocation2 + $0x3300] sm:$0xff]  ;;  %v4418_v57 = vld [vmem:[#allocation2 + $0x3328] sm:$0xff]  ;;  %v11742_v5 = vpack.c.bf16 %v4486_v60, %v4481_v50  ;;  %v11752_v50 = vpack.c.bf16 %v4517_v37, %v4512_v36 }
 0x3fd   :  { %11729 = vmatprep.subr.bf16.mxu1 %v11728_v0  ;;  %v4429_v0 = vld [vmem:[#allocation2 + $0x3380] sm:$0xff]  ;;  %v11910_v3 = vpack.c.bf16 %v4418_v57, %v4413_v54  ;;  %v4516_v54 = vld [vmem:[#allocation2 + $0x3638] sm:$0xff]  ;;  %v4454_v57 = vld [vmem:[#allocation2 + $0x3448] sm:$0xff] }
 0x3fe   :  { %v11912_v6 = vpack.c.bf16 %v4429_v0, %v4424_v61  ;;  %v4522_v60 = vld [vmem:[#allocation2 + $0x3668] sm:$0xff]  ;;  %v4527_v61 = vld [vmem:[#allocation2 + $0x3690] sm:$0xff] }
 0x3ff   :  { %11899 = vmatpush1.bf16.msra.mxu0 %v11898_v7  ;;  %v4491_v7 = vld [vmem:[#allocation2 + $0x3570] sm:$0xff] }
 0x400   :  { %11731 = vmatpush1.bf16.msra.mxu1 %v11730_v8  ;;  %11901 = vmatprep.subr.bf16.mxu0 %v11900_v10  ;;  %v4423_v8 = vld [vmem:[#allocation2 + $0x3350] sm:$0xff]  ;;  %v4428_v10 = vld [vmem:[#allocation2 + $0x3378] sm:$0xff]  ;;  %v11746_v23 = vpack.c.bf16 %v4496_v13, %v4491_v7  ;;  %v11756_v7 = vpack.c.bf16 %v4527_v61, %v4522_v60 }
 0x401   :  { %11733 = vmatprep.subr.bf16.mxu1 %v11732_v15  ;;  %v4439_v15 = vld [vmem:[#allocation2 + $0x33d0] sm:$0xff]  ;;  %v11914_v20 = vpack.c.bf16 %v4428_v10, %v4423_v8  ;;  %v4526_v8 = vld [vmem:[#allocation2 + $0x3688] sm:$0xff]  ;;  %v4464_v10 = vld [vmem:[#allocation2 + $0x3498] sm:$0xff] }
 0x402   :  { %v11916_v24 = vpack.c.bf16 %v4439_v15, %v4434_v14  ;;  %v4532_v13 = vld [vmem:[#allocation2 + $0x36b8] sm:$0xff]  ;;  %v4537_v14 = vld [vmem:[#allocation2 + $0x36e0] sm:$0xff] }
 0x403   :  { %11903 = vmatpush1.bf16.msra.mxu0 %v11902_v22  ;;  %v4501_v22 = vld [vmem:[#allocation2 + $0x35c0] sm:$0xff] }
 0x404   :  { %11735 = vmatpush1.bf16.msra.mxu1 %v11734_v29  ;;  %11905 = vmatprep.subr.bf16.mxu0 %v11904_v49  ;;  %v4433_v29 = vld [vmem:[#allocation2 + $0x33a0] sm:$0xff]  ;;  %v4438_v49 = vld [vmem:[#allocation2 + $0x33c8] sm:$0xff]  ;;  %v11750_v43 = vpack.c.bf16 %v4506_v34, %v4501_v22  ;;  %v11760_v22 = vpack.c.bf16 %v4537_v14, %v4532_v13 }
 0x405   :  { %11737 = vmatprep.subr.bf16.mxu1 %v11736_v9  ;;  %v4449_v9 = vld [vmem:[#allocation2 + $0x3420] sm:$0xff]  ;;  %v11918_v38 = vpack.c.bf16 %v4438_v49, %v4433_v29  ;;  %v4536_v29 = vld [vmem:[#allocation2 + $0x36d8] sm:$0xff]  ;;  %v4474_v49 = vld [vmem:[#allocation2 + $0x34e8] sm:$0xff] }
 0x406   :  { %v11920_v45 = vpack.c.bf16 %v4449_v9, %v4444_v35  ;;  %v4542_v34 = vld [vmem:[#allocation2 + $0x3708] sm:$0xff]  ;;  %v4547_v35 = vld [vmem:[#allocation2 + $0x3730] sm:$0xff] }
 0x407   :  { %11907 = vmatpush1.bf16.msra.mxu0 %v11906_v11  ;;  %v4511_v11 = vld [vmem:[#allocation2 + $0x3610] sm:$0xff] }
 0x408   :  { %11739 = vmatpush1.bf16.msra.mxu1 %v11738_v46  ;;  %11909 = vmatprep.subr.bf16.mxu0 %v11908_v40  ;;  %v4443_v46 = vld [vmem:[#allocation2 + $0x33f0] sm:$0xff]  ;;  %v4448_v40 = vld [vmem:[#allocation2 + $0x3418] sm:$0xff]  ;;  %v11754_v1 = vpack.c.bf16 %v4516_v54, %v4511_v11  ;;  %v11764_v11 = vpack.c.bf16 %v4547_v35, %v4542_v34 }
 0x409   :  { %11741 = vmatprep.subr.bf16.mxu1 %v11740_v59  ;;  %v4459_v59 = vld [vmem:[#allocation2 + $0x3470] sm:$0xff]  ;;  %v11922_v0 = vpack.c.bf16 %v4448_v40, %v4443_v46  ;;  %v4546_v46 = vld [vmem:[#allocation2 + $0x3728] sm:$0xff]  ;;  %v4484_v40 = vld [vmem:[#allocation2 + $0x3538] sm:$0xff] }
 0x40a   :  { %5090 = vmatmul.mubr.f32.vlgmr.msra.gmra.mrb[18].mxu0 %v13872_v25  ;;  %v11924_v2 = vpack.c.bf16 %v4459_v59, %v4454_v57  ;;  %v4552_v54 = vld [vmem:[#allocation2 + $0x3758] sm:$0xff]  ;;  %v4557_v57 = vld [vmem:[#allocation2 + $0x3780] sm:$0xff] }
 0x40b   :  { %11911 = vmatpush1.bf16.msra.mxu0 %v11910_v3  ;;  %5160 = vmatprep.mubr.f32.mxu0 %v13887_v39  ;;  %v4521_v3 = vld [vmem:[#allocation2 + $0x3660] sm:$0xff] }
 0x40c   :  { %11743 = vmatpush1.bf16.msra.mxu1 %v11742_v5  ;;  %11913 = vmatprep.subr.bf16.mxu0 %v11912_v6  ;;  %v4453_v5 = vld [vmem:[#allocation2 + $0x3440] sm:$0xff]  ;;  %v4458_v6 = vld [vmem:[#allocation2 + $0x3468] sm:$0xff]  ;;  %v11758_v16 = vpack.c.bf16 %v4526_v8, %v4521_v3  ;;  %v11768_v3 = vpack.c.bf16 %v4557_v57, %v4552_v54 }
 0x40d   :  { %11745 = vmatprep.subr.bf16.mxu1 %v11744_v12  ;;  %v4469_v12 = vld [vmem:[#allocation2 + $0x34c0] sm:$0xff]  ;;  %v11926_v15 = vpack.c.bf16 %v4458_v6, %v4453_v5  ;;  %v4556_v5 = vld [vmem:[#allocation2 + $0x3778] sm:$0xff]  ;;  %v4494_v6 = vld [vmem:[#allocation2 + $0x3588] sm:$0xff] }
 0x40e   :  { %v11928_v18 = vpack.c.bf16 %v4469_v12, %v4464_v10  ;;  %v4562_v8 = vld [vmem:[#allocation2 + $0x37a8] sm:$0xff]  ;;  %v4567_v10 = vld [vmem:[#allocation2 + $0x37d0] sm:$0xff] }
 0x40f   :  { %11915 = vmatpush1.bf16.msra.mxu0 %v11914_v20  ;;  %v4531_v20 = vld [vmem:[#allocation2 + $0x36b0] sm:$0xff] }
 0x410   :  { %11747 = vmatpush1.bf16.msra.mxu1 %v11746_v23  ;;  %11917 = vmatprep.subr.bf16.mxu0 %v11916_v24  ;;  %v4463_v23 = vld [vmem:[#allocation2 + $0x3490] sm:$0xff]  ;;  %v4468_v24 = vld [vmem:[#allocation2 + $0x34b8] sm:$0xff]  ;;  %v11762_v36 = vpack.c.bf16 %v4536_v29, %v4531_v20  ;;  %v11772_v20 = vpack.c.bf16 %v4567_v10, %v4562_v8 }
 0x411   :  { %11749 = vmatprep.subr.bf16.mxu1 %v11748_v33  ;;  %v4479_v33 = vld [vmem:[#allocation2 + $0x3510] sm:$0xff]  ;;  %v11930_v9 = vpack.c.bf16 %v4468_v24, %v4463_v23  ;;  %v4566_v23 = vld [vmem:[#allocation2 + $0x37c8] sm:$0xff]  ;;  %v4504_v24 = vld [vmem:[#allocation2 + $0x35d8] sm:$0xff] }
 0x412   :  { %v11932_v37 = vpack.c.bf16 %v4479_v33, %v4474_v49  ;;  %v4572_v29 = vld [vmem:[#allocation2 + $0x37f8] sm:$0xff]  ;;  %v4577_v49 = vld [vmem:[#allocation2 + $0x3820] sm:$0xff] }
 0x413   :  { %11919 = vmatpush1.bf16.msra.mxu0 %v11918_v38  ;;  %v4541_v38 = vld [vmem:[#allocation2 + $0x3700] sm:$0xff] }
 0x414   :  { %11751 = vmatpush1.bf16.msra.mxu1 %v11750_v43  ;;  %11921 = vmatprep.subr.bf16.mxu0 %v11920_v45  ;;  %v4473_v43 = vld [vmem:[#allocation2 + $0x34e0] sm:$0xff]  ;;  %v4478_v45 = vld [vmem:[#allocation2 + $0x3508] sm:$0xff]  ;;  %v11766_v60 = vpack.c.bf16 %v4546_v46, %v4541_v38  ;;  %v11776_v38 = vpack.c.bf16 %v4577_v49, %v4572_v29 }
 0x415   :  { %11753 = vmatprep.subr.bf16.mxu1 %v11752_v50  ;;  %v4489_v50 = vld [vmem:[#allocation2 + $0x3560] sm:$0xff]  ;;  %v11934_v59 = vpack.c.bf16 %v4478_v45, %v4473_v43  ;;  %v4576_v43 = vld [vmem:[#allocation2 + $0x3818] sm:$0xff]  ;;  %v4514_v45 = vld [vmem:[#allocation2 + $0x3628] sm:$0xff] }
 0x416   :  { %v11936_v61 = vpack.c.bf16 %v4489_v50, %v4484_v40  ;;  %v4582_v46 = vld [vmem:[#allocation2 + $0x3848] sm:$0xff]  ;;  %v4587_v40 = vld [vmem:[#allocation2 + $0x3870] sm:$0xff] }
 0x417   :  { %11923 = vmatpush1.bf16.msra.mxu0 %v11922_v0  ;;  %v4551_v0 = vld [vmem:[#allocation2 + $0x3750] sm:$0xff] }
 0x418   :  { %11755 = vmatpush1.bf16.msra.mxu1 %v11754_v1  ;;  %11925 = vmatprep.subr.bf16.mxu0 %v11924_v2  ;;  %v4483_v1 = vld [vmem:[#allocation2 + $0x3530] sm:$0xff]  ;;  %v4488_v2 = vld [vmem:[#allocation2 + $0x3558] sm:$0xff]  ;;  %v11770_v13 = vpack.c.bf16 %v4556_v5, %v4551_v0  ;;  %v11780_v0 = vpack.c.bf16 %v4587_v40, %v4582_v46 }
 0x419   :  { %11757 = vmatprep.subr.bf16.mxu1 %v11756_v7  ;;  %v4499_v7 = vld [vmem:[#allocation2 + $0x35b0] sm:$0xff]  ;;  %v11938_v12 = vpack.c.bf16 %v4488_v2, %v4483_v1  ;;  %v4586_v1 = vld [vmem:[#allocation2 + $0x3868] sm:$0xff]  ;;  %v4524_v2 = vld [vmem:[#allocation2 + $0x3678] sm:$0xff] }
 0x41a   :  { %v11940_v14 = vpack.c.bf16 %v4499_v7, %v4494_v6  ;;  %v4592_v5 = vld [vmem:[#allocation2 + $0x3898] sm:$0xff]  ;;  %v4597_v6 = vld [vmem:[#allocation2 + $0x38c0] sm:$0xff] }
 0x41b   :  { %11927 = vmatpush1.bf16.msra.mxu0 %v11926_v15  ;;  %v4561_v15 = vld [vmem:[#allocation2 + $0x37a0] sm:$0xff] }
 0x41c   :  { %11759 = vmatpush1.bf16.msra.mxu1 %v11758_v16  ;;  %11929 = vmatprep.subr.bf16.mxu0 %v11928_v18  ;;  %v4493_v16 = vld [vmem:[#allocation2 + $0x3580] sm:$0xff]  ;;  %v4498_v18 = vld [vmem:[#allocation2 + $0x35a8] sm:$0xff]  ;;  %v11774_v34 = vpack.c.bf16 %v4566_v23, %v4561_v15  ;;  %v11784_v15 = vpack.c.bf16 %v4597_v6, %v4592_v5 }
 0x41d   :  { %11761 = vmatprep.subr.bf16.mxu1 %v11760_v22  ;;  %v4509_v22 = vld [vmem:[#allocation2 + $0x3600] sm:$0xff]  ;;  %v11942_v33 = vpack.c.bf16 %v4498_v18, %v4493_v16  ;;  %v4596_v16 = vld [vmem:[#allocation2 + $0x38b8] sm:$0xff]  ;;  %v4534_v18 = vld [vmem:[#allocation2 + $0x36c8] sm:$0xff] }
 0x41e   :  { %v11944_v35 = vpack.c.bf16 %v4509_v22, %v4504_v24  ;;  %v4602_v23 = vld [vmem:[#allocation2 + $0x38e8] sm:$0xff]  ;;  %v4607_v24 = vld [vmem:[#allocation2 + $0x3910] sm:$0xff] }
 0x41f   :  { %11931 = vmatpush1.bf16.msra.mxu0 %v11930_v9  ;;  %v4571_v9 = vld [vmem:[#allocation2 + $0x37f0] sm:$0xff] }
 0x420   :  { %11763 = vmatpush1.bf16.msra.mxu1 %v11762_v36  ;;  %11933 = vmatprep.subr.bf16.mxu0 %v11932_v37  ;;  %v4503_v36 = vld [vmem:[#allocation2 + $0x35d0] sm:$0xff]  ;;  %v4508_v37 = vld [vmem:[#allocation2 + $0x35f8] sm:$0xff]  ;;  %v11778_v54 = vpack.c.bf16 %v4576_v43, %v4571_v9  ;;  %v11788_v9 = vpack.c.bf16 %v4607_v24, %v4602_v23 }
 0x421   :  { %11765 = vmatprep.subr.bf16.mxu1 %v11764_v11  ;;  %v4519_v11 = vld [vmem:[#allocation2 + $0x3650] sm:$0xff]  ;;  %v11946_v50 = vpack.c.bf16 %v4508_v37, %v4503_v36  ;;  %v4606_v36 = vld [vmem:[#allocation2 + $0x3908] sm:$0xff]  ;;  %v4544_v37 = vld [vmem:[#allocation2 + $0x3718] sm:$0xff] }
 0x422   :  { %v11948_v57 = vpack.c.bf16 %v4519_v11, %v4514_v45  ;;  %v4612_v43 = vld [vmem:[#allocation2 + $0x3938] sm:$0xff]  ;;  %v4617_v45 = vld [vmem:[#allocation2 + $0x3960] sm:$0xff] }
 0x423   :  { %11935 = vmatpush1.bf16.msra.mxu0 %v11934_v59  ;;  %v4581_v59 = vld [vmem:[#allocation2 + $0x3840] sm:$0xff] }
 0x424   :  { %11767 = vmatpush1.bf16.msra.mxu1 %v11766_v60  ;;  %11937 = vmatprep.subr.bf16.mxu0 %v11936_v61  ;;  %v4513_v60 = vld [vmem:[#allocation2 + $0x3620] sm:$0xff]  ;;  %v4518_v61 = vld [vmem:[#allocation2 + $0x3648] sm:$0xff]  ;;  %v11782_v8 = vpack.c.bf16 %v4586_v1, %v4581_v59  ;;  %v11792_v59 = vpack.c.bf16 %v4617_v45, %v4612_v43 }
 0x425   :  { %11769 = vmatprep.subr.bf16.mxu1 %v11768_v3  ;;  %v4529_v3 = vld [vmem:[#allocation2 + $0x36a0] sm:$0xff]  ;;  %v11950_v7 = vpack.c.bf16 %v4518_v61, %v4513_v60  ;;  %v4616_v60 = vld [vmem:[#allocation2 + $0x3958] sm:$0xff]  ;;  %v4554_v61 = vld [vmem:[#allocation2 + $0x3768] sm:$0xff] }
 0x426   :  { %v11952_v10 = vpack.c.bf16 %v4529_v3, %v4524_v2  ;;  %v4622_v1 = vld [vmem:[#allocation2 + $0x3988] sm:$0xff]  ;;  %v4627_v2 = vld [vmem:[#allocation2 + $0x39b0] sm:$0xff] }
 0x427   :  { %11939 = vmatpush1.bf16.msra.mxu0 %v11938_v12  ;;  %v4591_v12 = vld [vmem:[#allocation2 + $0x3890] sm:$0xff] }
 0x428   :  { %11771 = vmatpush1.bf16.msra.mxu1 %v11770_v13  ;;  %11941 = vmatprep.subr.bf16.mxu0 %v11940_v14  ;;  %v4523_v13 = vld [vmem:[#allocation2 + $0x3670] sm:$0xff]  ;;  %v4528_v14 = vld [vmem:[#allocation2 + $0x3698] sm:$0xff]  ;;  %v11786_v29 = vpack.c.bf16 %v4596_v16, %v4591_v12  ;;  %v11796_v12 = vpack.c.bf16 %v4627_v2, %v4622_v1 }
 0x429   :  { %11773 = vmatprep.subr.bf16.mxu1 %v11772_v20  ;;  %v4539_v20 = vld [vmem:[#allocation2 + $0x36f0] sm:$0xff]  ;;  %v11954_v22 = vpack.c.bf16 %v4528_v14, %v4523_v13  ;;  %v4626_v13 = vld [vmem:[#allocation2 + $0x39a8] sm:$0xff]  ;;  %v4564_v14 = vld [vmem:[#allocation2 + $0x37b8] sm:$0xff] }
 0x42a   :  { %v11956_v49 = vpack.c.bf16 %v4539_v20, %v4534_v18  ;;  %v4632_v16 = vld [vmem:[#allocation2 + $0x39d8] sm:$0xff]  ;;  %v4637_v18 = vld [vmem:[#allocation2 + $0x3a00] sm:$0xff] }
 0x42b   :  { %11943 = vmatpush1.bf16.msra.mxu0 %v11942_v33  ;;  %v4601_v33 = vld [vmem:[#allocation2 + $0x38e0] sm:$0xff] }
 0x42c   :  { %11775 = vmatpush1.bf16.msra.mxu1 %v11774_v34  ;;  %11945 = vmatprep.subr.bf16.mxu0 %v11944_v35  ;;  %v4533_v34 = vld [vmem:[#allocation2 + $0x36c0] sm:$0xff]  ;;  %v4538_v35 = vld [vmem:[#allocation2 + $0x36e8] sm:$0xff]  ;;  %v11790_v46 = vpack.c.bf16 %v4606_v36, %v4601_v33  ;;  %v11800_v33 = vpack.c.bf16 %v4637_v18, %v4632_v16 }
 0x42d   :  { %11777 = vmatprep.subr.bf16.mxu1 %v11776_v38  ;;  %v4549_v38 = vld [vmem:[#allocation2 + $0x3740] sm:$0xff]  ;;  %v11958_v11 = vpack.c.bf16 %v4538_v35, %v4533_v34  ;;  %v4636_v34 = vld [vmem:[#allocation2 + $0x39f8] sm:$0xff]  ;;  %v4574_v35 = vld [vmem:[#allocation2 + $0x3808] sm:$0xff] }
 0x42e   :  { %v11960_v40 = vpack.c.bf16 %v4549_v38, %v4544_v37  ;;  %v4642_v36 = vld [vmem:[#allocation2 + $0x3a28] sm:$0xff]  ;;  %v4647_v37 = vld [vmem:[#allocation2 + $0x3a50] sm:$0xff] }
 0x42f   :  { %4877 = vmatmul.mubr.f32.vlgmr.msra.gmra.mrb[18].mxu1 %v13883_v26  ;;  %11947 = vmatpush1.bf16.msra.mxu0 %v11946_v50  ;;  %v4611_v50 = vld [vmem:[#allocation2 + $0x3930] sm:$0xff] }
 0x430   :  { %11779 = vmatpush1.bf16.msra.mxu1 %v11778_v54  ;;  %11949 = vmatprep.subr.bf16.mxu0 %v11948_v57  ;;  %v4543_v54 = vld [vmem:[#allocation2 + $0x3710] sm:$0xff]  ;;  %v4548_v57 = vld [vmem:[#allocation2 + $0x3738] sm:$0xff]  ;;  %v11794_v5 = vpack.c.bf16 %v4616_v60, %v4611_v50  ;;  %v11804_v50 = vpack.c.bf16 %v4647_v37, %v4642_v36 }
 0x431   :  { %11781 = vmatprep.subr.bf16.mxu1 %v11780_v0  ;;  %4947 = vmatprep.mubr.f32.mxu1 %v13905_v63  ;;  %v4559_v0 = vld [vmem:[#allocation2 + $0x3790] sm:$0xff]  ;;  %v11962_v3 = vpack.c.bf16 %v4548_v57, %v4543_v54  ;;  %v4646_v54 = vld [vmem:[#allocation2 + $0x3a48] sm:$0xff]  ;;  %v4584_v57 = vld [vmem:[#allocation2 + $0x3858] sm:$0xff] }
 0x432   :  { %v11964_v6 = vpack.c.bf16 %v4559_v0, %v4554_v61  ;;  %v4652_v60 = vld [vmem:[#allocation2 + $0x3a78] sm:$0xff]  ;;  %v4657_v61 = vld [vmem:[#allocation2 + $0x3aa0] sm:$0xff] }
 0x433   :  { %11951 = vmatpush1.bf16.msra.mxu0 %v11950_v7  ;;  %v4621_v7 = vld [vmem:[#allocation2 + $0x3980] sm:$0xff] }
 0x434   :  { %11783 = vmatpush1.bf16.msra.mxu1 %v11782_v8  ;;  %11953 = vmatprep.subr.bf16.mxu0 %v11952_v10  ;;  %v4553_v8 = vld [vmem:[#allocation2 + $0x3760] sm:$0xff]  ;;  %v4558_v10 = vld [vmem:[#allocation2 + $0x3788] sm:$0xff]  ;;  %v11798_v23 = vpack.c.bf16 %v4626_v13, %v4621_v7  ;;  %v11808_v7 = vpack.c.bf16 %v4657_v61, %v4652_v60 }
 0x435   :  { %11785 = vmatprep.subr.bf16.mxu1 %v11784_v15  ;;  %v4569_v15 = vld [vmem:[#allocation2 + $0x37e0] sm:$0xff]  ;;  %v11966_v20 = vpack.c.bf16 %v4558_v10, %v4553_v8  ;;  %v4656_v8 = vld [vmem:[#allocation2 + $0x3a98] sm:$0xff]  ;;  %v4594_v10 = vld [vmem:[#allocation2 + $0x38a8] sm:$0xff] }
 0x436   :  { %v11968_v24 = vpack.c.bf16 %v4569_v15, %v4564_v14  ;;  %v4662_v13 = vld [vmem:[#allocation2 + $0x3ac8] sm:$0xff]  ;;  %v4667_v14 = vld [vmem:[#allocation2 + $0x3af0] sm:$0xff] }
 0x437   :  { %11955 = vmatpush1.bf16.msra.mxu0 %v11954_v22  ;;  %v4631_v22 = vld [vmem:[#allocation2 + $0x39d0] sm:$0xff] }
 0x438   :  { %11787 = vmatpush1.bf16.msra.mxu1 %v11786_v29  ;;  %11957 = vmatprep.subr.bf16.mxu0 %v11956_v49  ;;  %v4563_v29 = vld [vmem:[#allocation2 + $0x37b0] sm:$0xff]  ;;  %v4568_v49 = vld [vmem:[#allocation2 + $0x37d8] sm:$0xff]  ;;  %v11802_v43 = vpack.c.bf16 %v4636_v34, %v4631_v22  ;;  %v11812_v22 = vpack.c.bf16 %v4667_v14, %v4662_v13 }
 0x439   :  { %11789 = vmatprep.subr.bf16.mxu1 %v11788_v9  ;;  %v4579_v9 = vld [vmem:[#allocation2 + $0x3830] sm:$0xff]  ;;  %v11970_v38 = vpack.c.bf16 %v4568_v49, %v4563_v29  ;;  %v4666_v29 = vld [vmem:[#allocation2 + $0x3ae8] sm:$0xff]  ;;  %v4604_v49 = vld [vmem:[#allocation2 + $0x38f8] sm:$0xff] }
 0x43a   :  { %v11972_v45 = vpack.c.bf16 %v4579_v9, %v4574_v35  ;;  %v4672_v34 = vld [vmem:[#allocation2 + $0x3b18] sm:$0xff]  ;;  %v4677_v35 = vld [vmem:[#allocation2 + $0x3b40] sm:$0xff] }
 0x43b   :  { %11959 = vmatpush1.bf16.msra.mxu0 %v11958_v11  ;;  %v4641_v11 = vld [vmem:[#allocation2 + $0x3a20] sm:$0xff] }
 0x43c   :  { %11791 = vmatpush1.bf16.msra.mxu1 %v11790_v46  ;;  %11961 = vmatprep.subr.bf16.mxu0 %v11960_v40  ;;  %v4573_v46 = vld [vmem:[#allocation2 + $0x3800] sm:$0xff]  ;;  %v4578_v40 = vld [vmem:[#allocation2 + $0x3828] sm:$0xff]  ;;  %v11806_v1 = vpack.c.bf16 %v4646_v54, %v4641_v11  ;;  %v11816_v11 = vpack.c.bf16 %v4677_v35, %v4672_v34 }
 0x43d   :  { %11793 = vmatprep.subr.bf16.mxu1 %v11792_v59  ;;  %v4589_v59 = vld [vmem:[#allocation2 + $0x3880] sm:$0xff]  ;;  %v11974_v0 = vpack.c.bf16 %v4578_v40, %v4573_v46  ;;  %v4676_v46 = vld [vmem:[#allocation2 + $0x3b38] sm:$0xff]  ;;  %v4614_v40 = vld [vmem:[#allocation2 + $0x3948] sm:$0xff] }
 0x43e   :  { %v11976_v2 = vpack.c.bf16 %v4589_v59, %v4584_v57  ;;  %v4682_v54 = vld [vmem:[#allocation2 + $0x3b68] sm:$0xff]  ;;  %v4687_v57 = vld [vmem:[#allocation2 + $0x3b90] sm:$0xff] }
 0x43f   :  { %11963 = vmatpush1.bf16.msra.mxu0 %v11962_v3  ;;  %v4651_v3 = vld [vmem:[#allocation2 + $0x3a70] sm:$0xff] }
 0x440   :  { %11795 = vmatpush1.bf16.msra.mxu1 %v11794_v5  ;;  %11965 = vmatprep.subr.bf16.mxu0 %v11964_v6  ;;  %v4583_v5 = vld [vmem:[#allocation2 + $0x3850] sm:$0xff]  ;;  %v4588_v6 = vld [vmem:[#allocation2 + $0x3878] sm:$0xff]  ;;  %v11810_v16 = vpack.c.bf16 %v4656_v8, %v4651_v3  ;;  %v11820_v3 = vpack.c.bf16 %v4687_v57, %v4682_v54  ;;  %v4717_v57 = vld [vmem:[#allocation2 + $0x3c80] sm:$0xff] }
 0x441   :  { %11797 = vmatprep.subr.bf16.mxu1 %v11796_v12  ;;  %v4599_v12 = vld [vmem:[#allocation2 + $0x38d0] sm:$0xff]  ;;  %v11978_v15 = vpack.c.bf16 %v4588_v6, %v4583_v5  ;;  %v4686_v5 = vld [vmem:[#allocation2 + $0x3b88] sm:$0xff]  ;;  %v4624_v6 = vld [vmem:[#allocation2 + $0x3998] sm:$0xff] }
 0x442   :  { %v11980_v18 = vpack.c.bf16 %v4599_v12, %v4594_v10  ;;  %v4692_v8 = vld [vmem:[#allocation2 + $0x3bb8] sm:$0xff]  ;;  %v4697_v10 = vld [vmem:[#allocation2 + $0x3be0] sm:$0xff] }
 0x443   :  { %11967 = vmatpush1.bf16.msra.mxu0 %v11966_v20  ;;  %v4661_v20 = vld [vmem:[#allocation2 + $0x3ac0] sm:$0xff]  ;;  %v4712_v54 = vld [vmem:[#allocation2 + $0x3c58] sm:$0xff] }
 0x444   :  { %11799 = vmatpush1.bf16.msra.mxu1 %v11798_v23  ;;  %11969 = vmatprep.subr.bf16.mxu0 %v11968_v24  ;;  %v4593_v23 = vld [vmem:[#allocation2 + $0x38a0] sm:$0xff]  ;;  %v4598_v24 = vld [vmem:[#allocation2 + $0x38c8] sm:$0xff]  ;;  %v11814_v36 = vpack.c.bf16 %v4666_v29, %v4661_v20  ;;  %v11824_v20 = vpack.c.bf16 %v4697_v10, %v4692_v8  ;;  %v4659_v8 = vld [vmem:[#allocation2 + $0x3ab0] sm:$0xff] }
 0x445   :  { %11801 = vmatprep.subr.bf16.mxu1 %v11800_v33  ;;  %v4609_v33 = vld [vmem:[#allocation2 + $0x3920] sm:$0xff]  ;;  %v11982_v9 = vpack.c.bf16 %v4598_v24, %v4593_v23  ;;  %v4696_v23 = vld [vmem:[#allocation2 + $0x3bd8] sm:$0xff]  ;;  %v4634_v24 = vld [vmem:[#allocation2 + $0x39e8] sm:$0xff] }
 0x446   :  { %v11984_v37 = vpack.c.bf16 %v4609_v33, %v4604_v49  ;;  %v4702_v29 = vld [vmem:[#allocation2 + $0x3c08] sm:$0xff]  ;;  %v4707_v49 = vld [vmem:[#allocation2 + $0x3c30] sm:$0xff] }
 0x447   :  { %11971 = vmatpush1.bf16.msra.mxu0 %v11970_v38  ;;  %v4671_v38 = vld [vmem:[#allocation2 + $0x3b10] sm:$0xff]  ;;  %v4722_v10 = vld [vmem:[#allocation2 + $0x3ca8] sm:$0xff] }
 0x448   :  { %11803 = vmatpush1.bf16.msra.mxu1 %v11802_v43  ;;  %11973 = vmatprep.subr.bf16.mxu0 %v11972_v45  ;;  %v4603_v43 = vld [vmem:[#allocation2 + $0x38f0] sm:$0xff]  ;;  %v4608_v45 = vld [vmem:[#allocation2 + $0x3918] sm:$0xff]  ;;  %v11818_v60 = vpack.c.bf16 %v4676_v46, %v4671_v38  ;;  %v4649_v46 = vld [vmem:[#allocation2 + $0x3a60] sm:$0xff] }
 0x449   :  { %11805 = vmatprep.subr.bf16.mxu1 %v11804_v50  ;;  %v4619_v50 = vld [vmem:[#allocation2 + $0x3970] sm:$0xff]  ;;  %v11986_v59 = vpack.c.bf16 %v4608_v45, %v4603_v43  ;;  %v11828_v43 = vpack.c.bf16 %v4707_v49, %v4702_v29  ;;  %v4706_v45 = vld [vmem:[#allocation2 + $0x3c28] sm:$0xff]  ;;  %v4669_v29 = vld [vmem:[#allocation2 + $0x3b00] sm:$0xff] }
 0x44a   :  { %5161 = vmatmul.mubr.f32.vlgmr.msra.gmra.mrb[18].mxu0 %v13883_v26  ;;  %v11988_v61 = vpack.c.bf16 %v4619_v50, %v4614_v40  ;;  %v4732_v49 = vld [vmem:[#allocation2 + $0x3cf8] sm:$0xff] }
 0x44b   :  { %11975 = vmatpush1.bf16.msra.mxu0 %v11974_v0  ;;  %5231 = vmatprep.mubr.f32.mxu0 %v13905_v63  ;;  %v4681_v0 = vld [vmem:[#allocation2 + $0x3b60] sm:$0xff] }
 0x44c   :  { %11807 = vmatpush1.bf16.msra.mxu1 %v11806_v1  ;;  %11977 = vmatprep.subr.bf16.mxu0 %v11976_v2  ;;  %v4613_v1 = vld [vmem:[#allocation2 + $0x3940] sm:$0xff]  ;;  %v4618_v2 = vld [vmem:[#allocation2 + $0x3968] sm:$0xff]  ;;  %v11822_v13 = vpack.c.bf16 %v4686_v5, %v4681_v0  ;;  %v11832_v5 = vpack.c.bf16 %v4717_v57, %v4712_v54  ;;  %v4679_v54 = vld [vmem:[#allocation2 + $0x3b50] sm:$0xff] }
 0x44d   :  { %11809 = vmatprep.subr.bf16.mxu1 %v11808_v7  ;;  %v4629_v7 = vld [vmem:[#allocation2 + $0x39c0] sm:$0xff]  ;;  %v11990_v12 = vpack.c.bf16 %v4618_v2, %v4613_v1  ;;  %v4711_v1 = vld [vmem:[#allocation2 + $0x3c50] sm:$0xff] }
 0x44e   :  { %v11992_v14 = vpack.c.bf16 %v4629_v7, %v4624_v6  ;;  %v4643_v2 = vld [vmem:[#allocation2 + $0x3a30] sm:$0xff]  ;;  %v4716_v6 = vld [vmem:[#allocation2 + $0x3c78] sm:$0xff]  ;;  %v4654_v7 = vld [vmem:[#allocation2 + $0x3a88] sm:$0xff] }
 0x44f   :  { %11979 = vmatpush1.bf16.msra.mxu0 %v11978_v15  ;;  %v4691_v15 = vld [vmem:[#allocation2 + $0x3bb0] sm:$0xff] }
 0x450   :  { %11811 = vmatpush1.bf16.msra.mxu1 %v11810_v16  ;;  %11981 = vmatprep.subr.bf16.mxu0 %v11980_v18  ;;  %v4623_v16 = vld [vmem:[#allocation2 + $0x3990] sm:$0xff]  ;;  %v4628_v18 = vld [vmem:[#allocation2 + $0x39b8] sm:$0xff]  ;;  %v11826_v34 = vpack.c.bf16 %v4696_v23, %v4691_v15  ;;  %v12004_v15 = vpack.c.bf16 %v4659_v8, %v4654_v7  ;;  %v4689_v7 = vld [vmem:[#allocation2 + $0x3ba0] sm:$0xff] }
 0x451   :  { %11813 = vmatprep.subr.bf16.mxu1 %v11812_v22  ;;  %v4639_v22 = vld [vmem:[#allocation2 + $0x3a10] sm:$0xff]  ;;  %v11994_v33 = vpack.c.bf16 %v4628_v18, %v4623_v16  ;;  %v4721_v16 = vld [vmem:[#allocation2 + $0x3ca0] sm:$0xff] }
 0x452   :  { %v11996_v35 = vpack.c.bf16 %v4639_v22, %v4634_v24  ;;  %v4653_v18 = vld [vmem:[#allocation2 + $0x3a80] sm:$0xff]  ;;  %v4726_v24 = vld [vmem:[#allocation2 + $0x3cc8] sm:$0xff]  ;;  %v4664_v22 = vld [vmem:[#allocation2 + $0x3ad8] sm:$0xff] }
 0x453   :  { %11983 = vmatpush1.bf16.msra.mxu0 %v11982_v9  ;;  %v4701_v9 = vld [vmem:[#allocation2 + $0x3c00] sm:$0xff]  ;;  %v4335_v57 = vld [vmem:[#allocation2 + $0x3090] sm:$0xff] }
 0x454   :  { %11815 = vmatpush1.bf16.msra.mxu1 %v11814_v36  ;;  %11985 = vmatprep.subr.bf16.mxu0 %v11984_v37  ;;  %v4633_v36 = vld [vmem:[#allocation2 + $0x39e0] sm:$0xff]  ;;  %v4638_v37 = vld [vmem:[#allocation2 + $0x3a08] sm:$0xff] }
 0x455   :  { %11817 = vmatprep.subr.bf16.mxu1 %v11816_v11  ;;  %v4644_v11 = vld [vmem:[#allocation2 + $0x3a38] sm:$0xff] }
 0x456   :  { %v12000_v0 = vpack.c.bf16 %v4649_v46, %v4644_v11  ;;  %v4736_v11 = vld [vmem:[#allocation2 + $0x3d18] sm:$0xff]  ;;  %v4674_v46 = vld [vmem:[#allocation2 + $0x3b28] sm:$0xff] }
 0x457   :  { %11987 = vmatpush1.bf16.msra.mxu0 %v11986_v59 }
 0x458   :  { %11819 = vmatpush1.bf16.msra.mxu1 %v11818_v60  ;;  %11989 = vmatprep.subr.bf16.mxu0 %v11988_v61  ;;  %v11998_v60 = vpack.c.bf16 %v4638_v37, %v4633_v36  ;;  %v11830_v61 = vpack.c.bf16 %v4706_v45, %v4701_v9  ;;  %v12008_v9 = vpack.c.bf16 %v4669_v29, %v4664_v22  ;;  %v4731_v36 = vld [vmem:[#allocation2 + $0x3cf0] sm:$0xff] }
 0x459   :  { %11821 = vmatprep.subr.bf16.mxu1 %v11820_v3  ;;  %v4648_v3 = vld [vmem:[#allocation2 + $0x3a58] sm:$0xff]  ;;  %v4663_v37 = vld [vmem:[#allocation2 + $0x3ad0] sm:$0xff] }
 0x45b   :  { %11991 = vmatpush1.bf16.msra.mxu0 %v11990_v12  ;;  %v4727_v12 = vld [vmem:[#allocation2 + $0x3cd0] sm:$0xff] }
 0x45c   :  { %11823 = vmatpush1.bf16.msra.mxu1 %v11822_v13  ;;  %11993 = vmatprep.subr.bf16.mxu0 %v11992_v14  ;;  %v12002_v13 = vpack.c.bf16 %v4648_v3, %v4643_v2  ;;  %v11834_v14 = vpack.c.bf16 %v4716_v6, %v4711_v1  ;;  %v11836_v23 = vpack.c.bf16 %v4727_v12, %v4722_v10  ;;  %v4673_v2 = vld [vmem:[#allocation2 + $0x3b20] sm:$0xff]  ;;  %v4678_v3 = vld [vmem:[#allocation2 + $0x3b48] sm:$0xff]  ;;  %v4684_v6 = vld [vmem:[#allocation2 + $0x3b78] sm:$0xff] }
 0x45d   :  { %v14041_v38 = vpop.f32.mrb[12].mxu0  ;;  %11825 = vmatprep.subr.bf16.mxu1 %v11824_v20  ;;  %v4658_v20 = vld [vmem:[#allocation2 + $0x3aa8] sm:$0xff]  ;;  %v12012_v1 = vpack.c.bf16 %v4679_v54, %v4674_v46  ;;  %v12014_v8 = vpack.c.bf16 %v4678_v3, %v4673_v2  ;;  %v12016_v10 = vpack.c.bf16 %v4689_v7, %v4684_v6  ;;  %v4255_v12 = vld [vmem:[#allocation2 + $0x2e10] sm:$0xff] }
 0x45e   :  { %v14043_v40 = vpop.f32.mrb[12].mxu1  ;;  %v14045_v50 = vpop.f32.mrb[13].mxu0  ;;  %v4714_v2 = vld [vmem:[#allocation2 + $0x3c68] sm:$0xff]  ;;  %v4719_v3 = vld [vmem:[#allocation2 + $0x3c90] sm:$0xff] }
 0x45f   :  { %v14047_v59 = vpop.f32.mrb[13].mxu1  ;;  %11995 = vmatpush1.bf16.msra.mxu0 %v11994_v33  ;;  %v4737_v33 = vld [vmem:[#allocation2 + $0x3d20] sm:$0xff]  ;;  %v4370_v6 = vld [vmem:[#allocation2 + $0x31a8] sm:$0xff] }
 0x460   :  { %11827 = vmatpush1.bf16.msra.mxu1 %v11826_v34  ;;  %11997 = vmatprep.subr.bf16.mxu0 %v11996_v35  ;;  %v12006_v34 = vpack.c.bf16 %v4658_v20, %v4653_v18  ;;  %v11838_v35 = vpack.c.bf16 %v4726_v24, %v4721_v16  ;;  %v11840_v45 = vpack.c.bf16 %v4737_v33, %v4732_v49  ;;  %v4694_v16 = vld [vmem:[#allocation2 + $0x3bc8] sm:$0xff]  ;;  %v4699_v18 = vld [vmem:[#allocation2 + $0x3bf0] sm:$0xff]  ;;  %v4345_v20 = vld [vmem:[#allocation2 + $0x30e0] sm:$0xff] }
 0x461   :  { %11829 = vmatprep.subr.bf16.mxu1 %v11828_v43  ;;  %v4668_v43 = vld [vmem:[#allocation2 + $0x3af8] sm:$0xff]  ;;  %v12020_v29 = vpack.c.bf16 %v4699_v18, %v4694_v16  ;;  %v4265_v49 = vld [vmem:[#allocation2 + $0x2e60] sm:$0xff]  ;;  %v4290_v18 = vld [vmem:[#allocation2 + $0x2f28] sm:$0xff] }
 0x462   :  { %v4693_v33 = vld [vmem:[#allocation2 + $0x3bc0] sm:$0xff] }
 0x463   :  { %11999 = vmatpush1.bf16.msra.mxu0 %v11998_v60  ;;  %v4340_v60 = vld [vmem:[#allocation2 + $0x30b8] sm:$0xff] }
 0x464   :  { %11831 = vmatpush1.bf16.msra.mxu1 %v11830_v61  ;;  %12001 = vmatprep.subr.bf16.mxu0 %v12000_v0  ;;  %v12010_v61 = vpack.c.bf16 %v4668_v43, %v4663_v37  ;;  %v11842_v0 = vpack.c.bf16 %v4736_v11, %v4731_v36  ;;  %v4704_v36 = vld [vmem:[#allocation2 + $0x3c18] sm:$0xff]  ;;  %v4709_v37 = vld [vmem:[#allocation2 + $0x3c40] sm:$0xff]  ;;  %v4355_v43 = vld [vmem:[#allocation2 + $0x3130] sm:$0xff] }
 0x465   :  { %11833 = vmatprep.subr.bf16.mxu1 %v11832_v5  ;;  %v12040_v5 = vpack.c.bf16 %v4340_v60, %v4335_v57  ;;  %v12024_v54 = vpack.c.bf16 %v4709_v37, %v4704_v36  ;;  %v4275_v57 = vld [vmem:[#allocation2 + $0x2eb0] sm:$0xff] }
 0x466   :  { %v4703_v60 = vld [vmem:[#allocation2 + $0x3c10] sm:$0xff] }
 0x467   :  { %12003 = vmatpush1.bf16.msra.mxu0 %v12002_v13  ;;  %v4683_v13 = vld [vmem:[#allocation2 + $0x3b70] sm:$0xff] }
 0x468   :  { %11835 = vmatpush1.bf16.msra.mxu1 %v11834_v14  ;;  %12005 = vmatprep.subr.bf16.mxu0 %v12004_v15  ;;  %v4688_v14 = vld [vmem:[#allocation2 + $0x3b98] sm:$0xff]  ;;  %v4295_v37 = vld [vmem:[#allocation2 + $0x2f50] sm:$0xff] }
 0x469   :  { %11837 = vmatprep.subr.bf16.mxu1 %v11836_v23  ;;  %v4260_v15 = vld [vmem:[#allocation2 + $0x2e38] sm:$0xff]  ;;  %v4350_v23 = vld [vmem:[#allocation2 + $0x3108] sm:$0xff]  ;;  %v12018_v24 = vpack.c.bf16 %v4688_v14, %v4683_v13  ;;  %v4713_v13 = vld [vmem:[#allocation2 + $0x3c60] sm:$0xff] }
 0x46a   :  { %v12042_v22 = vpack.c.bf16 %v4260_v15, %v4255_v12  ;;  %v4285_v12 = vld [vmem:[#allocation2 + $0x2f00] sm:$0xff]  ;;  %v4718_v14 = vld [vmem:[#allocation2 + $0x3c88] sm:$0xff] }
 0x46b   :  { %12007 = vmatpush1.bf16.msra.mxu0 %v12006_v34  ;;  %v4698_v34 = vld [vmem:[#allocation2 + $0x3be8] sm:$0xff] }
 0x46c   :  { %11839 = vmatpush1.bf16.msra.mxu1 %v11838_v35  ;;  %12009 = vmatprep.subr.bf16.mxu0 %v12008_v9  ;;  %v12044_v35 = vpack.c.bf16 %v4350_v23, %v4345_v20  ;;  %v4270_v9 = vld [vmem:[#allocation2 + $0x2e88] sm:$0xff]  ;;  %v12022_v11 = vpack.c.bf16 %v4698_v34, %v4693_v33  ;;  %v4724_v20 = vld [vmem:[#allocation2 + $0x3cb8] sm:$0xff]  ;;  %v4729_v23 = vld [vmem:[#allocation2 + $0x3ce0] sm:$0xff]  ;;  %v12030_v34 = vpack.c.bf16 %v4718_v14, %v4713_v13 }
 0x46d   :  { %11841 = vmatprep.subr.bf16.mxu1 %v11840_v45  ;;  %v4360_v45 = vld [vmem:[#allocation2 + $0x3158] sm:$0xff]  ;;  %v12046_v46 = vpack.c.bf16 %v4270_v9, %v4265_v49  ;;  %v12054_v9 = vpack.c.bf16 %v4290_v18, %v4285_v12  ;;  %v12032_v36 = vpack.c.bf16 %v4729_v23, %v4724_v20  ;;  %v4310_v13 = vld [vmem:[#allocation2 + $0x2fc8] sm:$0xff]  ;;  %v4495_v14 = vld [vmem:[#allocation2 + $0x3590] sm:$0xff] }
 0x46e   :  { %v4400_v18 = vld [vmem:[#allocation2 + $0x3298] sm:$0xff] }
 0x46f   :  { %4948 = vmatmul.mubr.f32.vlgmr.msra.gmra.mrb[18].mxu1 %v13900_v55  ;;  %12011 = vmatpush1.bf16.msra.mxu0 %v12010_v61  ;;  %v4708_v61 = vld [vmem:[#allocation2 + $0x3c38] sm:$0xff] }
 0x470   :  { %11843 = vmatpush1.bf16.msra.mxu1 %v11842_v0  ;;  %12013 = vmatprep.subr.bf16.mxu0 %v12012_v1  ;;  %v12048_v0 = vpack.c.bf16 %v4360_v45, %v4355_v43  ;;  %v4280_v1 = vld [vmem:[#allocation2 + $0x2ed8] sm:$0xff]  ;;  %v12026_v7 = vpack.c.bf16 %v4708_v61, %v4703_v60  ;;  %v4723_v43 = vld [vmem:[#allocation2 + $0x3cb0] sm:$0xff] }
 0x471   :  { %5018 = vmatprep.mubr.f32.mxu1 %v15192_v21  ;;  %12041 = vmatprep.subr.bf16.mxu1 %v12040_v5  ;;  %v4365_v5 = vld [vmem:[#allocation2 + $0x3180] sm:$0xff]  ;;  %v4728_v45 = vld [vmem:[#allocation2 + $0x3cd8] sm:$0xff] }
 0x472   :  { %v12052_v16 = vpack.c.bf16 %v4370_v6, %v4365_v5  ;;  %v4305_v6 = vld [vmem:[#allocation2 + $0x2fa0] sm:$0xff] }
 0x473   :  { %12015 = vmatpush1.bf16.msra.mxu0 %v12014_v8  ;;  %v12050_v8 = vpack.c.bf16 %v4280_v1, %v4275_v57  ;;  %v4739_v57 = vld [vmem:[#allocation2 + $0x3d30] sm:$0xff]  ;;  %v4390_v1 = vld [vmem:[#allocation2 + $0x3248] sm:$0xff]  ;;  %v12062_v23 = vpack.c.bf16 %v4310_v13, %v4305_v6 }
 0x474   :  { %12017 = vmatprep.subr.bf16.mxu0 %v12016_v10  ;;  %v12028_v10 = vpack.c.bf16 %v4719_v3, %v4714_v2  ;;  %v12034_v3 = vpack.c.bf16 %v4728_v45, %v4723_v43  ;;  %v4330_v43 = vld [vmem:[#allocation2 + $0x3068] sm:$0xff]  ;;  %v4505_v45 = vld [vmem:[#allocation2 + $0x35e0] sm:$0xff] }
 0x475   :  { %v4670_v13 = vld [vmem:[#allocation2 + $0x3b08] sm:$0xff] }
 0x477   :  { %8954 = vmatmul.mubr.msk.f32.vlgmr.msra.gmra.mrb[18].mxu1 %vm716_vm0, %v13917_v30  ;;  %12019 = vmatpush1.bf16.msra.mxu0 %v12018_v24 }
 0x478   :  { %12043 = vmatpush3.bf16.msra.mxu1 %v12042_v22  ;;  %12021 = vmatprep.subr.bf16.mxu0 %v12020_v29  ;;  %v4380_v29 = vld [vmem:[#allocation2 + $0x31f8] sm:$0xff] }
 0x479   :  { %12045 = vmatprep.subr.bf16.mxu1 %v12044_v35  ;;  %5373 = vmatprep.mubr.f32.mxu1 %v13876_v32  ;;  %v4375_v32 = vld [vmem:[#allocation2 + $0x31d0] sm:$0xff] }
 0x47b   :  { %12023 = vmatpush1.bf16.msra.mxu0 %v12022_v11  ;;  %v12056_v11 = vpack.c.bf16 %v4380_v29, %v4375_v32  ;;  %v4315_v32 = vld [vmem:[#allocation2 + $0x2ff0] sm:$0xff]  ;;  %v4320_v29 = vld [vmem:[#allocation2 + $0x3018] sm:$0xff] }
 0x47c   :  { %12047 = vmatpush3.bf16.msra.mxu1 %v12046_v46  ;;  %12025 = vmatprep.subr.bf16.mxu0 %v12024_v54  ;;  %v4300_v46 = vld [vmem:[#allocation2 + $0x2f78] sm:$0xff]  ;;  %v4734_v54 = vld [vmem:[#allocation2 + $0x3d08] sm:$0xff] }
 0x47d   :  { %v9219_v15 = vpop.f32.mrb[14].mxu0  ;;  %12049 = vmatprep.subr.bf16.mxu1 %v12048_v0  ;;  %v4385_v0 = vld [vmem:[#allocation2 + $0x3220] sm:$0xff]  ;;  %v12058_v5 = vpack.c.bf16 %v4300_v46, %v4295_v37  ;;  %v4655_v46 = vld [vmem:[#allocation2 + $0x3a90] sm:$0xff] }
 0x47e   :  { %v9254_v24 = vpop.f32.mrb[14].mxu1  ;;  %v9220_v22 = vpop.f32.mrb[15].mxu0  ;;  %v12060_v12 = vpack.c.bf16 %v4390_v1, %v4385_v0 }
 0x47f   :  { %v9221_v49 = vadd.f32 %v9220_v22, %v9219_v15  ;;  %v9255_v33 = vpop.f32.mrb[15].mxu1  ;;  %12027 = vmatpush1.bf16.msra.mxu0 %v12026_v7  ;;  %v12036_v7 = vpack.c.bf16 %v4739_v57, %v4734_v54  ;;  %v4500_v15 = vld [vmem:[#allocation2 + $0x35b8] sm:$0xff] }
 0x480   :  { %v9256_v35 = vadd.f32 %v9255_v33, %v9254_v24  ;;  %12051 = vmatpush3.bf16.msra.mxu1 %v12050_v8  ;;  %12029 = vmatprep.subr.bf16.mxu0 %v12028_v10  ;;  %v4733_v8 = vld [vmem:[#allocation2 + $0x3d00] sm:$0xff]  ;;  %v4738_v10 = vld [vmem:[#allocation2 + $0x3d28] sm:$0xff]  ;;  %v12072_v24 = vpack.c.bf16 %v4500_v15, %v4495_v14  ;;  %v4660_v54 = vld [vmem:[#allocation2 + $0x3ab8] sm:$0xff] }
 0x481   :  { %12053 = vmatprep.subr.bf16.mxu1 %v12052_v16  ;;  %v4395_v16 = vld [vmem:[#allocation2 + $0x3270] sm:$0xff]  ;;  %v12038_v20 = vpack.c.bf16 %v4738_v10, %v4733_v8  ;;  %v4410_v33 = vld [vmem:[#allocation2 + $0x32e8] sm:$0xff]  ;;  %v12104_v6 = vpack.c.bf16 %v4660_v54, %v4655_v46  ;;  %v4520_v10 = vld [vmem:[#allocation2 + $0x3658] sm:$0xff] }
 0x482   :  { %v14054_v60 = vadd.f32 %v9256_v35, %v9221_v49  ;;  %v14056_v61 = vpop.f32.mrb[16].mxu1  ;;  %v12064_v22 = vpack.c.bf16 %v4400_v18, %v4395_v16  ;;  %v4405_v49 = vld [vmem:[#allocation2 + $0x32c0] sm:$0xff]  ;;  %v4515_v8 = vld [vmem:[#allocation2 + $0x3630] sm:$0xff]  ;;  %v4540_v46 = vld [vmem:[#allocation2 + $0x36f8] sm:$0xff] }
 0x483   :  { %v9948_v2 = vpop.f32.mrb[17].mxu1  ;;  %12031 = vmatpush1.bf16.msra.mxu0 %v12030_v34  ;;  %v12066_v34 = vpack.c.bf16 %v4320_v29, %v4315_v32  ;;  %v4325_v35 = vld [vmem:[#allocation2 + $0x3040] sm:$0xff]  ;;  %v12068_v37 = vpack.c.bf16 %v4410_v33, %v4405_v49  ;;  %v12080_v16 = vpack.c.bf16 %v4520_v10, %v4515_v8  ;;  %v4435_v18 = vld [vmem:[#allocation2 + $0x33b0] sm:$0xff]  ;;  %v4530_v29 = vld [vmem:[#allocation2 + $0x36a8] sm:$0xff] }
 0x484   :  { %12055 = vmatpush3.bf16.msra.mxu1 %v12054_v9  ;;  %12033 = vmatprep.subr.bf16.mxu0 %v12032_v36  ;;  %v4415_v9 = vld [vmem:[#allocation2 + $0x3310] sm:$0xff]  ;;  %v4420_v36 = vld [vmem:[#allocation2 + $0x3338] sm:$0xff]  ;;  %v12070_v0 = vpack.c.bf16 %v4330_v43, %v4325_v35  ;;  %v4425_v2 = vld [vmem:[#allocation2 + $0x3360] sm:$0xff] }
 0x485   :  { %12057 = vmatprep.subr.bf16.mxu1 %v12056_v11  ;;  %v4510_v11 = vld [vmem:[#allocation2 + $0x3608] sm:$0xff]  ;;  %v12074_v57 = vpack.c.bf16 %v4420_v36, %v4415_v9  ;;  %v4525_v32 = vld [vmem:[#allocation2 + $0x3680] sm:$0xff]  ;;  %v4675_v49 = vld [vmem:[#allocation2 + $0x3b30] sm:$0xff] }
 0x486   :  { %v12076_v1 = vpack.c.bf16 %v4510_v11, %v4505_v45  ;;  %v4680_v33 = vld [vmem:[#allocation2 + $0x3b58] sm:$0xff]  ;;  %v12084_v35 = vpack.c.bf16 %v4530_v29, %v4525_v32  ;;  %v4445_v9 = vld [vmem:[#allocation2 + $0x3400] sm:$0xff]  ;;  %v4450_v36 = vld [vmem:[#allocation2 + $0x3428] sm:$0xff] }
 0x487   :  { %12035 = vmatpush1.bf16.msra.mxu0 %v12034_v3  ;;  %v4430_v3 = vld [vmem:[#allocation2 + $0x3388] sm:$0xff]  ;;  %v12112_v43 = vpack.c.bf16 %v4680_v33, %v4675_v49  ;;  %v4600_v45 = vld [vmem:[#allocation2 + $0x38d8] sm:$0xff]  ;;  %v4535_v11 = vld [vmem:[#allocation2 + $0x36d0] sm:$0xff] }
 0x488   :  { %12059 = vmatpush3.bf16.msra.mxu1 %v12058_v5  ;;  %12037 = vmatprep.subr.bf16.mxu0 %v12036_v7  ;;  %v4575_v5 = vld [vmem:[#allocation2 + $0x3810] sm:$0xff]  ;;  %v4580_v7 = vld [vmem:[#allocation2 + $0x3838] sm:$0xff]  ;;  %v12078_v14 = vpack.c.bf16 %v4430_v3, %v4425_v2  ;;  %v4685_v54 = vld [vmem:[#allocation2 + $0x3b80] sm:$0xff] }
 0x489   :  { %12061 = vmatprep.subr.bf16.mxu1 %v12060_v12  ;;  %v4665_v12 = vld [vmem:[#allocation2 + $0x3ae0] sm:$0xff]  ;;  %v12106_v15 = vpack.c.bf16 %v4580_v7, %v4575_v5  ;;  %v4455_v2 = vld [vmem:[#allocation2 + $0x3450] sm:$0xff]  ;;  %v4460_v3 = vld [vmem:[#allocation2 + $0x3478] sm:$0xff] }
 0x48a   :  { %5232 = vmatmul.mubr.f32.vlgmr.msra.gmra.mrb[18].mxu0 %v13900_v55  ;;  %v4605_v5 = vld [vmem:[#allocation2 + $0x3900] sm:$0xff]  ;;  %v4610_v8 = vld [vmem:[#allocation2 + $0x3928] sm:$0xff]  ;;  %v4620_v49 = vld [vmem:[#allocation2 + $0x3978] sm:$0xff] }
 0x48b   :  { %12039 = vmatpush1.bf16.msra.mxu0 %v12038_v20  ;;  %5302 = vmatprep.mubr.f32.mxu0 %v15192_v21  ;;  %v4440_v20 = vld [vmem:[#allocation2 + $0x33d8] sm:$0xff]  ;;  %v4545_v10 = vld [vmem:[#allocation2 + $0x3720] sm:$0xff]  ;;  %v4555_v33 = vld [vmem:[#allocation2 + $0x3770] sm:$0xff] }
 0x48c   :  { %12063 = vmatpush3.bf16.msra.mxu1 %v12062_v23  ;;  %12073 = vmatprep.subr.bf16.mxu0 %v12072_v24  ;;  %v4585_v23 = vld [vmem:[#allocation2 + $0x3860] sm:$0xff]  ;;  %v12108_v24 = vpack.c.bf16 %v4670_v13, %v4665_v12  ;;  %v4550_v12 = vld [vmem:[#allocation2 + $0x3748] sm:$0xff] }
 0x48d   :  { %12065 = vmatprep.subr.bf16.mxu1 %v12064_v22  ;;  %v4590_v22 = vld [vmem:[#allocation2 + $0x3888] sm:$0xff] }
 0x490   :  { %12067 = vmatpush3.bf16.msra.mxu1 %v12066_v34  ;;  %v12082_v34 = vpack.c.bf16 %v4440_v20, %v4435_v18  ;;  %v12118_v18 = vpack.c.bf16 %v4610_v8, %v4605_v5  ;;  %v12092_v20 = vpack.c.bf16 %v4550_v12, %v4545_v10  ;;  %v4485_v5 = vld [vmem:[#allocation2 + $0x3540] sm:$0xff]  ;;  %v4635_v8 = vld [vmem:[#allocation2 + $0x39f0] sm:$0xff]  ;;  %v4640_v10 = vld [vmem:[#allocation2 + $0x3a18] sm:$0xff] }
 0x491   :  { %12069 = vmatprep.subr.bf16.mxu1 %v12068_v37  ;;  %v4595_v37 = vld [vmem:[#allocation2 + $0x38b0] sm:$0xff]  ;;  %v4725_v12 = vld [vmem:[#allocation2 + $0x3cc0] sm:$0xff] }
 0x492   :  { %8955 = vmatmul.mubr.msk.f32.vlgmr.msra.gmra.mrb[18].mxu0 %vm716_vm0, %v13917_v30 }
 0x493   :  { %12075 = vmatpush3.bf16.msra.mxu0 %v12074_v57  ;;  %5443 = vmatprep.mubr.f32.mxu0 %v13887_v39  ;;  %v12110_v39 = vpack.c.bf16 %v4590_v22, %v4585_v23  ;;  %v4690_v57 = vld [vmem:[#allocation2 + $0x3ba8] sm:$0xff]  ;;  %v4465_v23 = vld [vmem:[#allocation2 + $0x34a0] sm:$0xff]  ;;  %v4615_v22 = vld [vmem:[#allocation2 + $0x3950] sm:$0xff] }
 0x494   :  { %12071 = vmatpush3.bf16.msra.mxu1 %v12070_v0  ;;  %12077 = vmatprep.subr.bf16.mxu0 %v12076_v1  ;;  %v12114_v0 = vpack.c.bf16 %v4600_v45, %v4595_v37  ;;  %v12088_v1 = vpack.c.bf16 %v4540_v46, %v4535_v11  ;;  %v12116_v7 = vpack.c.bf16 %v4690_v57, %v4685_v54  ;;  %v4475_v45 = vld [vmem:[#allocation2 + $0x34f0] sm:$0xff]  ;;  %v4480_v11 = vld [vmem:[#allocation2 + $0x3518] sm:$0xff]  ;;  %v4625_v46 = vld [vmem:[#allocation2 + $0x39a0] sm:$0xff] }
 0x495   :  { %12105 = vmatprep.subr.bf16.mxu1 %v12104_v6  ;;  %v12122_v37 = vpack.c.bf16 %v4620_v49, %v4615_v22  ;;  %v4630_v54 = vld [vmem:[#allocation2 + $0x39c8] sm:$0xff]  ;;  %v4565_v57 = vld [vmem:[#allocation2 + $0x37c0] sm:$0xff] }
 0x496   :  { %v5678_v22 = vld [vmem:[#allocation10 + $0x30] sm:$0xff] }
 0x497   :  { %5374 = vmatmul.mubr.f32.vlgmr.msra.gmra.mrb[20].mxu1 %v13872_v25  ;;  %12079 = vmatpush3.bf16.msra.mxu0 %v12078_v14  ;;  %v12086_v25 = vpack.c.bf16 %v4450_v36, %v4445_v9  ;;  %v4695_v14 = vld [vmem:[#allocation2 + $0x3bd0] sm:$0xff] }
 0x498   :  { %12107 = vmatpush3.bf16.msra.mxu1 %v12106_v15  ;;  %12081 = vmatprep.subr.bf16.mxu0 %v12080_v16  ;;  %v12090_v16 = vpack.c.bf16 %v4460_v3, %v4455_v2  ;;  %v12098_v2 = vpack.c.bf16 %v4480_v11, %v4475_v45  ;;  %v5687_v45 = vld [vmem:[#allocation10 + $0x78] sm:$0xff]  ;;  %v5693_v11 = vld [vmem:[#allocation10 + $0xa8] sm:$0xff] }
 0x499   :  { %12109 = vmatprep.subr.bf16.mxu1 %v12108_v24  ;;  %5513 = vmatprep.mubr.f32.mxu1 %v13905_v63  ;;  %v4700_v63 = vld [vmem:[#allocation2 + $0x3bf8] sm:$0xff]  ;;  %v4470_v24 = vld [vmem:[#allocation2 + $0x34c8] sm:$0xff] }
 0x49a   :  { %v12120_v29 = vpack.c.bf16 %v4700_v63, %v4695_v14  ;;  %v12094_v9 = vpack.c.bf16 %v4470_v24, %v4465_v23  ;;  %v12130_v63 = vpack.c.bf16 %v4640_v10, %v4635_v8  ;;  %v4650_v23 = vld [vmem:[#allocation2 + $0x3a68] sm:$0xff]  ;;  %v5673_v24 = vld [vmem:[#allocation10 + $0x8] sm:$0xff] }
 0x49b   :  { %12083 = vmatpush3.bf16.msra.mxu0 %v12082_v34  ;;  %v4560_v34 = vld [vmem:[#allocation2 + $0x3798] sm:$0xff]  ;;  %v14070_v49 = vpack.c.bf16 %v5678_v22, %v5673_v24  ;;  %v5723_v10 = vld [vmem:[#allocation10 + $0x198] sm:$0xff] }
 0x49c   :  { %12111 = vmatpush3.bf16.msra.mxu1 %v12110_v39  ;;  %12085 = vmatprep.subr.bf16.mxu0 %v12084_v35  ;;  %v4705_v39 = vld [vmem:[#allocation2 + $0x3c20] sm:$0xff]  ;;  %v4710_v35 = vld [vmem:[#allocation2 + $0x3c48] sm:$0xff]  ;;  %v5732_v24 = vld [vmem:[#allocation10 + $0x1e0] sm:$0xff] }
 0x49d   :  { %v9289_v6 = vpop.f32.mrb[16].mxu0  ;;  %12113 = vmatprep.subr.bf16.mxu1 %v12112_v43  ;;  %v12096_v43 = vpack.c.bf16 %v4560_v34, %v4555_v33  ;;  %v5672_v33 = vld [vmem:[#allocation10] sm:$0xff]  ;;  %v5677_v34 = vld [vmem:[#allocation10 + $0x28] sm:$0xff] }
 0x49e   :  { %v9290_v13 = vpop.f32.mrb[17].mxu0  ;;  %v5717_v8 = vld [vmem:[#allocation10 + $0x168] sm:$0xff] }
 0x49f   :  { %v9291_v15 = vadd.f32 %v9290_v13, %v9289_v6  ;;  %12087 = vmatpush3.bf16.msra.mxu0 %v12086_v25  ;;  %v4570_v25 = vld [vmem:[#allocation2 + $0x37e8] sm:$0xff]  ;;  %v5737_v22 = vld [vmem:[#allocation10 + $0x208] sm:$0xff] }
 0x4a0   :  { %12115 = vmatpush3.bf16.msra.mxu1 %v12114_v0  ;;  %12089 = vmatprep.subr.bf16.mxu0 %v12088_v1  ;;  %v4715_v0 = vld [vmem:[#allocation2 + $0x3c70] sm:$0xff]  ;;  %v4720_v1 = vld [vmem:[#allocation2 + $0x3c98] sm:$0xff]  ;;  %v12100_v3 = vpack.c.bf16 %v4570_v25, %v4565_v57  ;;  %v4490_v6 = vld [vmem:[#allocation2 + $0x3568] sm:$0xff] }
 0x4a1   :  { %v4177_v32 = vadd.f32 %v9291_v15, %v14054_v60  ;;  %12117 = vmatprep.subr.bf16.mxu1 %v12116_v7  ;;  %v12124_v60 = vpack.c.bf16 %v4710_v35, %v4705_v39  ;;  %v12128_v7 = vpack.c.bf16 %v4720_v1, %v4715_v0  ;;  %v4730_v13 = vld [vmem:[#allocation2 + $0x3ce8] sm:$0xff]  ;;  %v12102_v14 = vpack.c.bf16 %v4490_v6, %v4485_v5  ;;  %v4645_v15 = vld [vmem:[#allocation2 + $0x3a40] sm:$0xff]  ;;  %v5688_v35 = vld [vmem:[#allocation10 + $0x80] sm:$0xff] }
 0x4a2   :  { %v5683_v39 = vld [vmem:[#allocation10 + $0x58] sm:$0xff]  ;;  %v5697_v57 = vld [vmem:[#allocation10 + $0xc8] sm:$0xff]  ;;  %v5708_v0 = vld [vmem:[#allocation10 + $0x120] sm:$0xff] }
 0x4a3   :  { %12091 = vmatpush3.bf16.msra.mxu0 %v12090_v16  ;;  %v14067_v36 = vadd.f32 %v14056_v61, %v4177_v32  ;;  %v12126_v61 = vpack.c.bf16 %v4630_v54, %v4625_v46  ;;  %v4735_v16 = vld [vmem:[#allocation2 + $0x3d10] sm:$0xff]  ;;  %v5698_v46 = vld [vmem:[#allocation10 + $0xd0] sm:$0xff] }
 0x4a4   :  { %12119 = vmatpush3.bf16.msra.mxu1 %v12118_v18  ;;  %12093 = vmatprep.subr.bf16.mxu0 %v12092_v20  ;;  %v4740_v18 = vld [vmem:[#allocation2 + $0x3d38] sm:$0xff]  ;;  %v12132_v20 = vpack.c.bf16 %v4730_v13, %v4725_v12  ;;  %v5703_v25 = vld [vmem:[#allocation10 + $0xf8] sm:$0xff] }
 0x4a5   :  { %12121 = vmatprep.subr.bf16.mxu1 %v12120_v29  ;;  %v12137_v32 = vpack.c.bf16 %v4740_v18, %v4735_v16  ;;  %v12134_v29 = vpack.c.bf16 %v4650_v23, %v4645_v15  ;;  %v5692_v54 = vld [vmem:[#allocation10 + $0xa0] sm:$0xff]  ;;  %v5727_v15 = vld [vmem:[#allocation10 + $0x1b8] sm:$0xff]  ;;  %v5733_v16 = vld [vmem:[#allocation10 + $0x1e8] sm:$0xff] }
 0x4a6   :  { %v14091_v1 = vpack.c.bf16 %v5697_v57, %v5692_v54  ;;  %v5728_v12 = vld [vmem:[#allocation10 + $0x1c0] sm:$0xff]  ;;  %v5738_v18 = vld [vmem:[#allocation10 + $0x210] sm:$0xff]  ;;  %v5757_v57 = vld [vmem:[#allocation10 + $0x2a8] sm:$0xff] }
 0x4a7   :  { %12095 = vmatpush3.bf16.msra.mxu0 %v12094_v9  ;;  %v14075_v9 = vpack.c.bf16 %v5677_v34, %v5672_v33  ;;  %v14112_v23 = vpack.c.bf16 %v5738_v18, %v5733_v16  ;;  %v14115_v33 = vpack.c.bf16 %v5737_v22, %v5732_v24  ;;  %v5752_v54 = vld [vmem:[#allocation10 + $0x280] sm:$0xff]  ;;  %v5783_v16 = vld [vmem:[#allocation10 + $0x378] sm:$0xff] }
 0x4a8   :  { %12123 = vmatpush3.bf16.msra.mxu1 %v12122_v37  ;;  %12097 = vmatprep.subr.bf16.mxu0 %v12096_v43  ;;  %v14078_v37 = vpack.c.bf16 %v5688_v35, %v5683_v39  ;;  %v5682_v43 = vld [vmem:[#allocation10 + $0x50] sm:$0xff]  ;;  %v5747_v35 = vld [vmem:[#allocation10 + $0x258] sm:$0xff]  ;;  %v5788_v18 = vld [vmem:[#allocation10 + $0x3a0] sm:$0xff] }
 0x4a9   :  { %12125 = vmatprep.subr.bf16.mxu1 %v12124_v60  ;;  %v14087_v60 = vpack.c.bf16 %v5698_v46, %v5693_v11  ;;  %v5742_v39 = vld [vmem:[#allocation10 + $0x230] sm:$0xff]  ;;  %v14142_v22 = vpack.c.bf16 %v5788_v18, %v5783_v16 }
 0x4aa   :  { %v14121_v11 = vpack.c.bf16 %v5747_v35, %v5742_v39  ;;  %v5793_v39 = vld [vmem:[#allocation10 + $0x3c8] sm:$0xff]  ;;  %v5798_v35 = vld [vmem:[#allocation10 + $0x3f0] sm:$0xff] }
 0x4ab   :  { %12099 = vmatpush3.bf16.msra.mxu0 %v12098_v2  ;;  %v5707_v2 = vld [vmem:[#allocation10 + $0x118] sm:$0xff]  ;;  %15310 = vst [vmem:[#allocation28_spill] sm:$0xff] %v14142_v22 }
 0x4ac   :  { %12127 = vmatpush3.bf16.msra.mxu1 %v12126_v61  ;;  %12101 = vmatprep.subr.bf16.mxu0 %v12100_v3  ;;  %v5713_v61 = vld [vmem:[#allocation10 + $0x148] sm:$0xff]  ;;  %v5718_v3 = vld [vmem:[#allocation10 + $0x170] sm:$0xff] }
 0x4ad   :  { %12129 = vmatprep.subr.bf16.mxu1 %v12128_v7  ;;  %v14100_v6 = vpack.c.bf16 %v5718_v3, %v5713_v61  ;;  %v5712_v7 = vld [vmem:[#allocation10 + $0x140] sm:$0xff]  ;;  %v5762_v61 = vld [vmem:[#allocation10 + $0x2d0] sm:$0xff]  ;;  %v5767_v3 = vld [vmem:[#allocation10 + $0x2f8] sm:$0xff] }
 0x4ae   :  { %v14103_v13 = vpack.c.bf16 %v5717_v8, %v5712_v7  ;;  %v5773_v7 = vld [vmem:[#allocation10 + $0x328] sm:$0xff]  ;;  %v5778_v8 = vld [vmem:[#allocation10 + $0x350] sm:$0xff] }
 0x4af   :  { %12103 = vmatpush3.bf16.msra.mxu0 %v12102_v14  ;;  %v14106_v14 = vpack.c.bf16 %v5728_v12, %v5723_v10  ;;  %v14133_v10 = vpack.c.bf16 %v5767_v3, %v5762_v61  ;;  %v14136_v12 = vpack.c.bf16 %v5778_v8, %v5773_v7  ;;  %v5802_v7 = vld [vmem:[#allocation10 + $0x410] sm:$0xff]  ;;  %v5807_v8 = vld [vmem:[#allocation10 + $0x438] sm:$0xff] }
 0x4b0   :  { %12131 = vmatpush3.bf16.msra.mxu1 %v12130_v63  ;;  %12136 = vmatprep.subr.bf16.mxu0 %v15194_v17  ;;  %v5722_v63 = vld [vmem:[#allocation10 + $0x190] sm:$0xff]  ;;  %v14157_v16 = vpack.c.bf16 %v5807_v8, %v5802_v7  ;;  %v5833_v7 = vld [vmem:[#allocation10 + $0x508] sm:$0xff] }
 0x4b1   :  { %12133 = vmatprep.subr.bf16.mxu1 %v12132_v20  ;;  %v14109_v20 = vpack.c.bf16 %v5727_v15, %v5722_v63  ;;  %v5772_v63 = vld [vmem:[#allocation10 + $0x320] sm:$0xff]  ;;  %v5777_v15 = vld [vmem:[#allocation10 + $0x348] sm:$0xff]  ;;  %v5838_v8 = vld [vmem:[#allocation10 + $0x530] sm:$0xff] }
 0x4b2   :  { %5444 = vmatmul.mubr.f32.vlgmr.msra.gmra.mrb[20].mxu0 %v13883_v26  ;;  %v14084_v26 = vpack.c.bf16 %v5687_v45, %v5682_v43  ;;  %v5753_v43 = vld [vmem:[#allocation10 + $0x288] sm:$0xff]  ;;  %v5758_v45 = vld [vmem:[#allocation10 + $0x2b0] sm:$0xff]  ;;  %v14139_v24 = vpack.c.bf16 %v5777_v15, %v5772_v63  ;;  %15315 = vst [vmem:[#allocation33_spill] sm:$0xff] %v14157_v16 }
 0x4b3   :  { %12138 = vmatpush3.bf16.msra.mxu0 %v12137_v32  ;;  %9953 = vmatprep.mubr.msk.f32.mxu0 %vm13637_vm1, %v15192_v21  ;;  %v5743_v32 = vld [vmem:[#allocation10 + $0x238] sm:$0xff]  ;;  %v14124_v46 = vpack.c.bf16 %v5758_v45, %v5753_v43  ;;  %v14148_v45 = vpack.c.bf16 %v5798_v35, %v5793_v39  ;;  %v5813_v63 = vld [vmem:[#allocation10 + $0x468] sm:$0xff]  ;;  %v5818_v15 = vld [vmem:[#allocation10 + $0x490] sm:$0xff] }
 0x4b4   :  { %12135 = vmatpush3.bf16.msra.mxu1 %v12134_v29  ;;  %12140 = vmatprep.subr.bf16.mxu0 %v14070_v49  ;;  %v5748_v29 = vld [vmem:[#allocation10 + $0x260] sm:$0xff]  ;;  %v14160_v18 = vpack.c.bf16 %v5818_v15, %v5813_v63  ;;  %v5823_v39 = vld [vmem:[#allocation10 + $0x4b8] sm:$0xff]  ;;  %v14172_v15 = vpack.c.bf16 %v5838_v8, %v5833_v7  ;;  %v6002_v8 = vld [vmem:[#allocation10 + $0xa50] sm:$0xff] }
 0x4b5   :  { %v14118_v34 = vpack.c.bf16 %v5748_v29, %v5743_v32  ;;  %v5782_v32 = vld [vmem:[#allocation10 + $0x370] sm:$0xff]  ;;  %v5787_v29 = vld [vmem:[#allocation10 + $0x398] sm:$0xff]  ;;  %15312 = vst [vmem:[#allocation30_spill] sm:$0xff] %v14148_v45  ;;  %v5828_v35 = vld [vmem:[#allocation10 + $0x4e0] sm:$0xff]  ;;  %v14184_v51 = vpack.c.bf16 %v6007_v4, %v6002_v8 }
 0x4b6   :  { %9954 = vmatmul.mubr.msk.f32.vlgmr.msra.gmra.mrb[22].mxu0 %vm716_vm0, %v13917_v30  ;;  %v5702_v30 = vld [vmem:[#allocation10 + $0xf0] sm:$0xff]  ;;  %v14145_v43 = vpack.c.bf16 %v5787_v29, %v5782_v32  ;;  %15316 = vst [vmem:[#allocation34_spill] sm:$0xff] %v14160_v18  ;;  %v5812_v32 = vld [vmem:[#allocation10 + $0x460] sm:$0xff]  ;;  %v5817_v29 = vld [vmem:[#allocation10 + $0x488] sm:$0xff] }
 0x4b7   :  { %5514 = vmatmul.mubr.f32.vlgmr.msra.gmra.mrb[22].mxu1 %v13900_v55  ;;  %12142 = vmatpush1.bf16.msra.mxu0 %v14075_v9  ;;  %v14094_v55 = vpack.c.bf16 %v5708_v0, %v5703_v25  ;;  %v14097_v5 = vpack.c.bf16 %v5707_v2, %v5702_v30  ;;  %v5763_v25 = vld [vmem:[#allocation10 + $0x2d8] sm:$0xff]  ;;  %v5768_v0 = vld [vmem:[#allocation10 + $0x300] sm:$0xff]  ;;  %v14127_v30 = vpack.c.bf16 %v5757_v57, %v5752_v54  ;;  %v5797_v57 = vld [vmem:[#allocation10 + $0x3e8] sm:$0xff] }
 0x4b8   :  { %12144 = vmatprep.subr.bf16.mxu0 %v14078_v37  ;;  %6242 = vmatprep.mubr.f32.mxu1 %v15192_v21  ;;  %v14130_v2 = vpack.c.bf16 %v5768_v0, %v5763_v25  ;;  %15311 = vst [vmem:[#allocation29_spill] sm:$0xff] %v14145_v43  ;;  %v5792_v54 = vld [vmem:[#allocation10 + $0x3c0] sm:$0xff]  ;;  %v5803_v25 = vld [vmem:[#allocation10 + $0x418] sm:$0xff]  ;;  %15320 = vst [vmem:[#allocation38_spill] sm:$0xff] %v14172_v15 }
 0x4b9   :  { %v5808_v0 = vld [vmem:[#allocation10 + $0x440] sm:$0xff]  ;;  %v14151_v61 = vpack.c.bf16 %v5797_v57, %v5792_v54  ;;  %v14163_v54 = vpack.c.bf16 %v5817_v29, %v5812_v32  ;;  %v14166_v57 = vpack.c.bf16 %v5828_v35, %v5823_v39  ;;  %v5993_v32 = vld [vmem:[#allocation10 + $0xa08] sm:$0xff]  ;;  %v5998_v29 = vld [vmem:[#allocation10 + $0xa30] sm:$0xff]  ;;  %15324 = vst [vmem:[#allocation42_spill] sm:$0xff] %v14184_v51 }
 0x4ba   :  { %v14154_v3 = vpack.c.bf16 %v5808_v0, %v5803_v25  ;;  %v5822_v25 = vld [vmem:[#allocation10 + $0x4b0] sm:$0xff]  ;;  %v5827_v0 = vld [vmem:[#allocation10 + $0x4d8] sm:$0xff]  ;;  %v14176_v39 = vpack.c.bf16 %v5998_v29, %v5993_v32  ;;  %v5992_v35 = vld [vmem:[#allocation10 + $0xa00] sm:$0xff] }
 0x4bb   :  { %12146 = vmatpush1.bf16.msra.mxu0 %v14084_v26  ;;  %15313 = vst [vmem:[#allocation31_spill] sm:$0xff] %v14151_v61  ;;  %15317 = vst [vmem:[#allocation35_spill] sm:$0xff] %v14163_v54  ;;  %v14169_v63 = vpack.c.bf16 %v5827_v0, %v5822_v25  ;;  %v5997_v21 = vld [vmem:[#allocation10 + $0xa28] sm:$0xff]  ;;  %v6003_v25 = vld [vmem:[#allocation10 + $0xa58] sm:$0xff] }
 0x4bc   :  { %12148 = vmatprep.subr.bf16.mxu0 %v14087_v60  ;;  %15314 = vst [vmem:[#allocation32_spill] sm:$0xff] %v14154_v3  ;;  %15318 = vst [vmem:[#allocation36_spill] sm:$0xff] %v14166_v57  ;;  %v14178_v17 = vpack.c.bf16 %v5997_v21, %v5992_v35  ;;  %12268 = vmatprep.subr.bf16.mxu1 %v14176_v39  ;;  %v6008_v0 = vld [vmem:[#allocation10 + $0xa80] sm:$0xff]  ;;  %v6013_v32 = vld [vmem:[#allocation10 + $0xaa8] sm:$0xff] }
 0x4bd   :  { %15319 = vst [vmem:[#allocation37_spill] sm:$0xff] %v14169_v63  ;;  %15321 = vst [vmem:[#allocation39_spill] sm:$0xff] %v14176_v39  ;;  %v14182_v7 = vpack.c.bf16 %v6008_v0, %v6003_v25  ;;  %v6018_v29 = vld [vmem:[#allocation10 + $0xad0] sm:$0xff]  ;;  %v6012_v35 = vld [vmem:[#allocation10 + $0xaa0] sm:$0xff] }
 0x4be   :  { %15322 = vst [vmem:[#allocation40_spill] sm:$0xff] %v14178_v17  ;;  %12270 = vmatpush1.bf16.msra.mxu1 %v14178_v17  ;;  %v14188_v21 = vpack.c.bf16 %v6018_v29, %v6013_v32  ;;  %v14190_v58 = vpack.c.bf16 %v6017_v47, %v6012_v35  ;;  %v6023_v25 = vld [vmem:[#allocation10 + $0xaf8] sm:$0xff]  ;;  %v6028_v0 = vld [vmem:[#allocation10 + $0xb20] sm:$0xff]  ;;  %v6022_v8 = vld [vmem:[#allocation10 + $0xaf0] sm:$0xff]  ;;  %v14204_v35 = vsub.s32 0, %v13860_v62 }
 0x4bf   :  { %12150 = vmatpush1.bf16.msra.mxu0 %v14091_v1  ;;  %15323 = vst [vmem:[#allocation41_spill] sm:$0xff] %v14182_v7  ;;  %12272 = vmatprep.subr.bf16.mxu1 %v14182_v7  ;;  %v14194_v4 = vpack.c.bf16 %v6028_v0, %v6023_v25  ;;  %v14196_v7 = vpack.c.bf16 %v6027_v56, %v6022_v8  ;;  %v5675_v32 = vld [vmem:[#allocation10 + $0x18] sm:$0xff]  ;;  %v5680_v29 = vld [vmem:[#allocation10 + $0x40] sm:$0xff]  ;;  %v14209_v25 = vsub.s32 1, %v13860_v62 }
 0x4c0   :  { %12152 = vmatprep.subr.bf16.mxu0 %v14094_v55  ;;  %15325 = vst [vmem:[#allocation43_spill] sm:$0xff] %v14188_v21  ;;  %15326 = vst [vmem:[#allocation44_spill] sm:$0xff] %v14190_v58  ;;  %v14200_v47 = vpack.c.bf16 %v5680_v29, %v5675_v32 }
 0x4c1   :  { %15327 = vst [vmem:[#allocation45_spill] sm:$0xff] %v14194_v4  ;;  %15328 = vst [vmem:[#allocation46_spill] sm:$0xff] %v14196_v7 }
 0x4c2   :  { %12274 = vmatpush1.bf16.msra.mxu1 %v14184_v51  ;;  %15329 = vst [vmem:[#allocation47_spill] sm:$0xff] %v14209_v25  ;;  %v15331_v51 = vmax.f32 %v13948_v28, %v13993_v41 }
 0x4c3   :  { %12154 = vmatpush1.bf16.msra.mxu0 %v14097_v5  ;;  %12276 = vmatprep.subr.bf16.mxu1 %v14188_v21 }
 0x4c4   :  { %12156 = vmatprep.subr.bf16.mxu0 %v14100_v6 }
 0x4c6   :  { %12278 = vmatpush1.bf16.msra.mxu1 %v14190_v58  ;;  %v14206_v58 = vld [vmem:[#allocation5] sm:$0x1f] }
 0x4c7   :  { %12158 = vmatpush1.bf16.msra.mxu0 %v14103_v13  ;;  %12280 = vmatprep.subr.bf16.mxu1 %v14194_v4  ;;  %v5603_v8 = vrot.slane %v14206_v58, %v14204_v35  ;;  %v5607_v29 = vrot.slane %v14206_v58, %v14209_v25 }
 0x4c8   :  { %12160 = vmatprep.subr.bf16.mxu0 %v14106_v14 }
 0x4ca   :  { %12282 = vmatpush1.bf16.msra.mxu1 %v14196_v7  ;;  %v15330_v7 = vmax.f32 %v13944_v19, %v13989_v52 }
 0x4cb   :  { %12162 = vmatpush1.bf16.msra.mxu0 %v14109_v20  ;;  %12284 = vmatprep.subr.bf16.mxu1 %v14200_v47 }
 0x4cc   :  { %12164 = vmatprep.subr.bf16.mxu0 %v14112_v23 }
 0x4cf   :  { %12166 = vmatpush1.bf16.msra.mxu0 %v14115_v33 }
 0x4d0   :  { %12168 = vmatprep.subr.bf16.mxu0 %v14118_v34 }
 0x4d3   :  { %12170 = vmatpush1.bf16.msra.mxu0 %v14121_v11 }
 0x4d4   :  { %12172 = vmatprep.subr.bf16.mxu0 %v14124_v46 }
 0x4d7   :  { %12174 = vmatpush1.bf16.msra.mxu0 %v14127_v30 }
 0x4d8   :  { %12176 = vmatprep.subr.bf16.mxu0 %v14130_v2 }
 0x4db   :  { %12178 = vmatpush1.bf16.msra.mxu0 %v14133_v10 }
 0x4dc   :  { %12180 = vmatprep.subr.bf16.mxu0 %v14136_v12 }
 0x4df   :  { %12182 = vmatpush1.bf16.msra.mxu0 %v14139_v24 }
 0x4e0   :  { %12184 = vmatprep.subr.bf16.mxu0 %v14142_v22  ;;  %v5785_v22 = vld [vmem:[#allocation10 + $0x388] sm:$0xff] }
 0x4e3   :  { %12186 = vmatpush1.bf16.msra.mxu0 %v14145_v43  ;;  %v6031_v43 = vld [vmem:[#allocation10 + $0xb38] sm:$0xff] }
 0x4e4   :  { %12188 = vmatprep.subr.bf16.mxu0 %v14148_v45  ;;  %v5769_v45 = vld [vmem:[#allocation10 + $0x308] sm:$0xff] }
 0x4e7   :  { %12190 = vmatpush1.bf16.msra.mxu0 %v14151_v61  ;;  %v5764_v61 = vld [vmem:[#allocation10 + $0x2e0] sm:$0xff] }
 0x4e8   :  { %12192 = vmatprep.subr.bf16.mxu0 %v14154_v3  ;;  %v5765_v3 = vld [vmem:[#allocation10 + $0x2e8] sm:$0xff] }
 0x4eb   :  { %12194 = vmatpush1.bf16.msra.mxu0 %v14157_v16  ;;  %v5745_v16 = vld [vmem:[#allocation10 + $0x248] sm:$0xff] }
 0x4ec   :  { %12196 = vmatprep.subr.bf16.mxu0 %v14160_v18 }
 0x4ef   :  { %12198 = vmatpush1.bf16.msra.mxu0 %v14163_v54 }
 0x4f0   :  { %12200 = vmatprep.subr.bf16.mxu0 %v14166_v57 }
 0x4f3   :  { %12202 = vmatpush1.bf16.msra.mxu0 %v14169_v63  ;;  %v5848_v63 = vld [vmem:[#allocation10 + $0x580] sm:$0xff] }
 0x4f4   :  { %12204 = vmatprep.subr.bf16.mxu0 %v14172_v15  ;;  %v5843_v15 = vld [vmem:[#allocation10 + $0x558] sm:$0xff] }
 0x54a   :  { %v5020_v56 = vpop.f32.mrb[18].mxu1 }
 0x54b   :  { %v5589_v0 = vmax.f32 %v14041_v38, %v5020_v56  ;;  %v5022_v4 = vpop.f32.mrb[19].mxu1 }
 0x54c   :  { %v5590_v32 = vmax.f32 %v14045_v50, %v5022_v4 }
 0x54d   :  { %v5594_v21 = vmax.f32 %v15330_v7, %v5589_v0 }
 0x54e   :  { %v5595_v17 = vmax.f32 %v15331_v51, %v5590_v32  ;;  %v5837_v32 = vld [vmem:[#allocation10 + $0x528] sm:$0xff] }
 0x54f   :  { %v14223_v39 = vadd.f32 %v5603_v8, %v5594_v21  ;;  %v5832_v8 = vld [vmem:[#allocation10 + $0x500] sm:$0xff] }
 0x550   :  { %v14225_v38 = vadd.f32 %v5607_v29, %v5595_v17 }
 0x551   :  { %15332 = vst [vmem:[#allocation48_spill] sm:$0xff] %v14223_v39  ;;  %v15209_v56 = vmax.f32 %v14223_v39, 0.0  ;;  %v5790_v39 = vld [vmem:[#allocation10 + $0x3b0] sm:$0xff] }
 0x552   :  { %15333 = vst [vmem:[#allocation49_spill] sm:$0xff] %v14225_v38  ;;  %v15211_v50 = vmax.f32 %v14225_v38, 0.0  ;;  %v5779_v38 = vld [vmem:[#allocation10 + $0x358] sm:$0xff] }
 0x553   :  { %v5636_v4 = vsel %vm5635_vm2, %v15209_v56, 0.0  ;;  %v14237_v56 = vpack.c.bf16 %v5837_v32, %v5832_v8 }
 0x554   :  { %v5637_v25 = vrot.slane %v5636_v4, 4  ;;  %v5643_v19 = vsel %vm5635_vm2, %v15211_v50, 0.0  ;;  %v14241_v50 = vpack.c.bf16 %v5848_v63, %v5843_v15  ;;  %v5852_v63 = vld [vmem:[#allocation10 + $0x5a0] sm:$0xff]  ;;  %v5857_v15 = vld [vmem:[#allocation10 + $0x5c8] sm:$0xff] }
 0x555   :  { %v5644_v28 = vrot.slane %v5643_v19, 4  ;;  %15334 = vst [vmem:[#allocation50_spill] sm:$0xff] %v14237_v56 }
 0x556   :  { %v5638_v52 = vadd.f32 %v5637_v25, %v5636_v4  ;;  %15335 = vst [vmem:[#allocation51_spill] sm:$0xff] %v14241_v50  ;;  %v5842_v25 = vld [vmem:[#allocation10 + $0x550] sm:$0xff]  ;;  %v5847_v4 = vld [vmem:[#allocation10 + $0x578] sm:$0xff] }
 0x557   :  { %v5645_v41 = vadd.f32 %v5644_v28, %v5643_v19  ;;  %v5853_v19 = vld [vmem:[#allocation10 + $0x5a8] sm:$0xff]  ;;  %v5858_v28 = vld [vmem:[#allocation10 + $0x5d0] sm:$0xff] }
 0x558   :  { %v5639_v51 = vrot.slane %v5638_v52, 2 }
 0x559   :  { %v5646_v7 = vrot.slane %v5645_v41, 2 }
 0x55a   :  { %v5640_v17 = vadd.f32 %v5639_v51, %v5638_v52  ;;  %v14246_v52 = vpack.c.bf16 %v5847_v4, %v5842_v25  ;;  %v14252_v51 = vpack.c.bf16 %v5858_v28, %v5853_v19  ;;  %v14259_v25 = vpack.c.bf16 %v5857_v15, %v5852_v63 }
 0x55b   :  { %v5647_v21 = vadd.f32 %v5646_v7, %v5645_v41  ;;  %v14249_v41 = vsub.s32 3, %v13860_v62  ;;  %v15340_v4 = vmax.f32 %v13946_v27, %v13997_v42 }
 0x55c   :  { %v5641_v0 = vrot.slane %v5640_v17, 1  ;;  %15336 = vst [vmem:[#allocation52_spill] sm:$0xff] %v14246_v52  ;;  %15338 = vst [vmem:[#allocation54_spill] sm:$0xff] %v14252_v51 }
 0x55d   :  { %v5648_v29 = vrot.slane %v5647_v21, 1  ;;  %15337 = vst [vmem:[#allocation53_spill] sm:$0xff] %v14249_v41  ;;  %15339 = vst [vmem:[#allocation55_spill] sm:$0xff] %v14259_v25 }
 0x55e   :  { %v14239_v54 = vadd.f32 %v5641_v0, %v5640_v17  ;;  %v5863_v17 = vld [vmem:[#allocation10 + $0x5f8] sm:$0xff] }
 0x55f   :  { %v14235_v57 = vadd.f32 %v5648_v29, %v5647_v21  ;;  %v5868_v21 = vld [vmem:[#allocation10 + $0x620] sm:$0xff]  ;;  %v5615_v29 = vrot.slane %v14206_v58, %v14249_v41 }
 0x560   :  { %v14267_v28 = vpack.c.bf16 %v5868_v21, %v5863_v17  ;;  %v5872_v21 = vld [vmem:[#allocation10 + $0x640] sm:$0xff] }
 0x561   :  { %6100 = vmatprep.mubr.f32.mxu0 %v14235_v57 }
 0x562   :  { %6101 = vmatmul.mubr.f32.vlgmr.msra.gmra.mrb[24].mxu0 %v14239_v54  ;;  %15341 = vst [vmem:[#allocation56_spill] sm:$0xff] %v14267_v28 }
 0x563   :  { %12206 = vmatpush1.bf16.msra.mxu0 %v14237_v56  ;;  %v5826_v56 = vld [vmem:[#allocation10 + $0x4d0] sm:$0xff] }
 0x564   :  { %12208 = vmatprep.subr.bf16.mxu0 %v14241_v50  ;;  %v5878_v50 = vld [vmem:[#allocation10 + $0x670] sm:$0xff] }
 0x565   :  { %v5304_v7 = vpop.f32.mrb[18].mxu0 }
 0x566   :  { %v5591_v0 = vmax.f32 %v14043_v40, %v5304_v7  ;;  %v5306_v8 = vpop.f32.mrb[19].mxu0  ;;  %v5862_v40 = vld [vmem:[#allocation10 + $0x5f0] sm:$0xff]  ;;  %v5867_v7 = vld [vmem:[#allocation10 + $0x618] sm:$0xff] }
 0x567   :  { %12210 = vmatpush1.bf16.msra.mxu0 %v14246_v52  ;;  %v5592_v32 = vmax.f32 %v14047_v59, %v5306_v8  ;;  %v15342_v52 = vmax.f32 %v13950_v31, %v14001_v48  ;;  %v5873_v8 = vld [vmem:[#allocation10 + $0x648] sm:$0xff]  ;;  %v14275_v42 = vpack.c.bf16 %v5867_v7, %v5862_v40  ;;  %v5883_v48 = vld [vmem:[#allocation10 + $0x698] sm:$0xff] }
 0x568   :  { %v14264_v19 = vmax.f32 %v15340_v4, %v5591_v0  ;;  %12212 = vmatprep.subr.bf16.mxu0 %v14252_v51  ;;  %v14280_v17 = vpack.c.bf16 %v5878_v50, %v5873_v8  ;;  %v5877_v0 = vld [vmem:[#allocation10 + $0x668] sm:$0xff]  ;;  %v5882_v50 = vld [vmem:[#allocation10 + $0x690] sm:$0xff]  ;;  %v5887_v40 = vld [vmem:[#allocation10 + $0x6b8] sm:$0xff]  ;;  %v14351_v51 = vsub.s32 4, %v13860_v62 }
 0x569   :  { %v5597_v59 = vmax.f32 %v15342_v52, %v5592_v32  ;;  %15344 = vst [vmem:[#allocation58_spill] sm:$0xff] %v14275_v42  ;;  %v5888_v52 = vld [vmem:[#allocation10 + $0x6c0] sm:$0xff]  ;;  %v5893_v7 = vld [vmem:[#allocation10 + $0x6e8] sm:$0xff] }
 0x56a   :  { %v9327_v41 = vpop.f32.mrb[20].mxu1  ;;  %15345 = vst [vmem:[#allocation59_spill] sm:$0xff] %v14280_v17  ;;  %v14290_v4 = vpack.c.bf16 %v5888_v52, %v5883_v48  ;;  %15364 = vst [vmem:[#allocation78_spill] sm:$0xff] %v14351_v51 }
 0x56b   :  { %v14272_v63 = vadd.f32 %v5615_v29, %v5597_v59  ;;  %12214 = vmatpush1.bf16.msra.mxu0 %v14259_v25  ;;  %v9328_v27 = vpop.f32.mrb[21].mxu1  ;;  %v14287_v29 = vpack.c.bf16 %v5877_v0, %v5872_v21  ;;  %v5898_v59 = vld [vmem:[#allocation10 + $0x710] sm:$0xff]  ;;  %v5892_v21 = vld [vmem:[#allocation10 + $0x6e0] sm:$0xff]  ;;  %v5897_v0 = vld [vmem:[#allocation10 + $0x708] sm:$0xff] }
 0x56c   :  { %v14277_v15 = vadd.f32 %v9328_v27, %v9327_v41  ;;  %12216 = vmatprep.subr.bf16.mxu0 %v14267_v28  ;;  %15347 = vst [vmem:[#allocation61_spill] sm:$0xff] %v14290_v4  ;;  %v14293_v27 = vpack.c.bf16 %v5887_v40, %v5882_v50  ;;  %v14299_v52 = vpack.c.bf16 %v5897_v0, %v5892_v21  ;;  %v5902_v50 = vld [vmem:[#allocation10 + $0x730] sm:$0xff]  ;;  %v5907_v40 = vld [vmem:[#allocation10 + $0x758] sm:$0xff]  ;;  %v5953_v28 = vld [vmem:[#allocation10 + $0x8c8] sm:$0xff] }
 0x56d   :  { %15343 = vst [vmem:[#allocation57_spill] sm:$0xff] %v14272_v63  ;;  %v15216_v31 = vmax.f32 %v14272_v63, 0.0  ;;  %15346 = vst [vmem:[#allocation60_spill] sm:$0xff] %v14287_v29  ;;  %v5923_v0 = vld [vmem:[#allocation10 + $0x7d8] sm:$0xff]  ;;  %v5958_v25 = vld [vmem:[#allocation10 + $0x8f0] sm:$0xff] }
 0x56e   :  { %15348 = vst [vmem:[#allocation62_spill] sm:$0xff] %v14293_v27  ;;  %15350 = vst [vmem:[#allocation64_spill] sm:$0xff] %v14299_v52 }
 0x56f   :  { %v5657_v32 = vsel %vm5635_vm2, %v15216_v31, 0.0  ;;  %12218 = vmatpush1.bf16.msra.mxu0 %v14275_v42  ;;  %v14296_v31 = vpack.c.bf16 %v5898_v59, %v5893_v7  ;;  %v5903_v42 = vld [vmem:[#allocation10 + $0x738] sm:$0xff]  ;;  %v14305_v7 = vsub.s32 2, %v13860_v62  ;;  %v5913_v59 = vld [vmem:[#allocation10 + $0x788] sm:$0xff]  ;;  %v5619_v62 = vrot.slane %v14206_v58, %v14351_v51 }
 0x570   :  { %v5658_v41 = vrot.slane %v5657_v32, 4  ;;  %12220 = vmatprep.subr.bf16.mxu0 %v14280_v17  ;;  %v5908_v17 = vld [vmem:[#allocation10 + $0x760] sm:$0xff] }
 0x571   :  { %15349 = vst [vmem:[#allocation63_spill] sm:$0xff] %v14296_v31  ;;  %15352 = vst [vmem:[#allocation66_spill] sm:$0xff] %v14305_v7  ;;  %v5611_v21 = vrot.slane %v14206_v58, %v14305_v7 }
 0x572   :  { %v5659_v8 = vadd.f32 %v5658_v41, %v5657_v32  ;;  %v14302_v32 = vpack.c.bf16 %v5908_v17, %v5903_v42  ;;  %v5912_v17 = vld [vmem:[#allocation10 + $0x780] sm:$0xff] }
 0x573   :  { %12222 = vmatpush1.bf16.msra.mxu0 %v14287_v29 }
 0x574   :  { %12224 = vmatprep.subr.bf16.mxu0 %v14290_v4  ;;  %v5660_v63 = vrot.slane %v5659_v8, 2  ;;  %15351 = vst [vmem:[#allocation65_spill] sm:$0xff] %v14302_v32  ;;  %v5918_v4 = vld [vmem:[#allocation10 + $0x7b0] sm:$0xff] }
 0x575   :  { %v14314_v42 = vpack.c.bf16 %v5918_v4, %v5913_v59  ;;  %v14325_v4 = vadd.f32 %v5611_v21, %v14264_v19  ;;  %v5933_v59 = vld [vmem:[#allocation10 + $0x828] sm:$0xff] }
 0x576   :  { %v5661_v48 = vadd.f32 %v5660_v63, %v5659_v8  ;;  %v14310_v63 = vpack.c.bf16 %v5907_v40, %v5902_v50  ;;  %v5917_v8 = vld [vmem:[#allocation10 + $0x7a8] sm:$0xff]  ;;  %v5922_v50 = vld [vmem:[#allocation10 + $0x7d0] sm:$0xff]  ;;  %v5927_v40 = vld [vmem:[#allocation10 + $0x7f8] sm:$0xff] }
 0x577   :  { %12226 = vmatpush1.bf16.msra.mxu0 %v14293_v27  ;;  %15354 = vst [vmem:[#allocation68_spill] sm:$0xff] %v14314_v42  ;;  %15357 = vst [vmem:[#allocation71_spill] sm:$0xff] %v14325_v4  ;;  %v14328_v7 = vpack.c.bf16 %v5927_v40, %v5922_v50  ;;  %v5942_v40 = vld [vmem:[#allocation10 + $0x870] sm:$0xff] }
 0x578   :  { %12228 = vmatprep.subr.bf16.mxu0 %v14296_v31  ;;  %v5662_v41 = vrot.slane %v5661_v48, 1  ;;  %15353 = vst [vmem:[#allocation67_spill] sm:$0xff] %v14310_v63  ;;  %v5928_v31 = vld [vmem:[#allocation10 + $0x800] sm:$0xff] }
 0x579   :  { %15358 = vst [vmem:[#allocation72_spill] sm:$0xff] %v14328_v7 }
 0x57a   :  { %v14307_v29 = vadd.f32 %v5662_v41, %v5661_v48  ;;  %v14319_v48 = vpack.c.bf16 %v5917_v8, %v5912_v17  ;;  %v14322_v41 = vpack.c.bf16 %v5928_v31, %v5923_v0  ;;  %v5932_v17 = vld [vmem:[#allocation10 + $0x820] sm:$0xff]  ;;  %v5937_v8 = vld [vmem:[#allocation10 + $0x848] sm:$0xff]  ;;  %v15236_v31 = vmax.f32 %v14325_v4, 0.0 }
 0x57b   :  { %12230 = vmatpush1.bf16.msra.mxu0 %v14299_v52  ;;  %v5948_v52 = vld [vmem:[#allocation10 + $0x8a0] sm:$0xff]  ;;  %v14335_v21 = vpack.c.bf16 %v5937_v8, %v5932_v17  ;;  %v14348_v8 = vpack.c.bf16 %v5958_v25, %v5953_v28  ;;  %v5962_v25 = vld [vmem:[#allocation10 + $0x910] sm:$0xff]  ;;  %v5967_v28 = vld [vmem:[#allocation10 + $0x938] sm:$0xff] }
 0x57c   :  { %12232 = vmatprep.subr.bf16.mxu0 %v14302_v32  ;;  %6171 = vmatprep.mubr.f32.mxu0 %v14307_v29  ;;  %15355 = vst [vmem:[#allocation69_spill] sm:$0xff] %v14319_v48  ;;  %15356 = vst [vmem:[#allocation70_spill] sm:$0xff] %v14322_v41  ;;  %v5938_v32 = vld [vmem:[#allocation10 + $0x850] sm:$0xff]  ;;  %v5952_v4 = vld [vmem:[#allocation10 + $0x8c0] sm:$0xff] }
 0x57d   :  { %15360 = vst [vmem:[#allocation74_spill] sm:$0xff] %v14335_v21  ;;  %15363 = vst [vmem:[#allocation77_spill] sm:$0xff] %v14348_v8 }
 0x57f   :  { %12234 = vmatpush1.bf16.msra.mxu0 %v14310_v63  ;;  %v14331_v63 = vpack.c.bf16 %v5938_v32, %v5933_v59  ;;  %v5947_v32 = vld [vmem:[#allocation10 + $0x898] sm:$0xff]  ;;  %v5650_v59 = vsel %vm5635_vm2, %v15236_v31, 0.0  ;;  %v5957_v31 = vld [vmem:[#allocation10 + $0x8e8] sm:$0xff] }
 0x580   :  { %12236 = vmatprep.subr.bf16.mxu0 %v14314_v42  ;;  %v5943_v42 = vld [vmem:[#allocation10 + $0x878] sm:$0xff]  ;;  %v14345_v17 = vpack.c.bf16 %v5947_v32, %v5942_v40 }
 0x581   :  { %15359 = vst [vmem:[#allocation73_spill] sm:$0xff] %v14331_v63  ;;  %v14338_v50 = vpack.c.bf16 %v5948_v52, %v5943_v42  ;;  %v5651_v52 = vrot.slane %v5650_v59, 4 }
 0x582   :  { %15362 = vst [vmem:[#allocation76_spill] sm:$0xff] %v14345_v17 }
 0x583   :  { %12238 = vmatpush1.bf16.msra.mxu0 %v14319_v48  ;;  %15361 = vst [vmem:[#allocation75_spill] sm:$0xff] %v14338_v50  ;;  %v5652_v40 = vadd.f32 %v5651_v52, %v5650_v59  ;;  %v5972_v59 = vld [vmem:[#allocation10 + $0x960] sm:$0xff]  ;;  %v5977_v52 = vld [vmem:[#allocation10 + $0x988] sm:$0xff] }
 0x584   :  { %12240 = vmatprep.subr.bf16.mxu0 %v14322_v41  ;;  %v14374_v58 = vpack.c.bf16 %v5977_v52, %v5972_v59  ;;  %v5676_v59 = vld [vmem:[#allocation10 + $0x20] sm:$0xff]  ;;  %v5681_v52 = vld [vmem:[#allocation10 + $0x48] sm:$0xff] }
 0x585   :  { %v9362_v0 = vpop.f32.mrb[20].mxu0  ;;  %v14390_v51 = vpack.c.bf16 %v5681_v52, %v5676_v59  ;;  %v5684_v52 = vld [vmem:[#allocation10 + $0x60] sm:$0xff] }
 0x586   :  { %v9363_v27 = vpop.f32.mrb[21].mxu0  ;;  %15371 = vst [vmem:[#allocation84_spill] sm:$0xff] %v14374_v58 }
 0x587   :  { %v9364_v19 = vadd.f32 %v9363_v27, %v9362_v0  ;;  %12242 = vmatpush1.bf16.msra.mxu0 %v14328_v7  ;;  %15375 = vst [vmem:[#allocation88_spill] sm:$0xff] %v14390_v51 }
 0x588   :  { %12244 = vmatprep.subr.bf16.mxu0 %v14331_v63  ;;  %v5963_v63 = vld [vmem:[#allocation10 + $0x918] sm:$0xff] }
 0x589   :  { %v5446_v41 = vadd.f32 %v9364_v19, %v14277_v15  ;;  %v5585_v48 = vpop.f32.mrb[22].mxu0  ;;  %v5968_v15 = vld [vmem:[#allocation10 + $0x940] sm:$0xff] }
 0x58a   :  { %v9397_v27 = vpop.f32.mrb[22].mxu1  ;;  %v9955_v0 = vpop.f32.mrb[23].mxu0 }
 0x58b   :  { %v9398_v7 = vpop.f32.mrb[23].mxu1  ;;  %12246 = vmatpush1.bf16.msra.mxu0 %v14335_v21  ;;  %v14354_v0 = vpack.c.bf16 %v5957_v31, %v5952_v4  ;;  %v5653_v4 = vrot.slane %v5652_v40, 2 }
 0x58c   :  { %v9399_v42 = vadd.f32 %v9398_v7, %v9397_v27  ;;  %12248 = vmatprep.subr.bf16.mxu0 %v14338_v50  ;;  %v14357_v7 = vpack.c.bf16 %v5968_v15, %v5963_v63  ;;  %v5973_v27 = vld [vmem:[#allocation10 + $0x968] sm:$0xff]  ;;  %v5978_v50 = vld [vmem:[#allocation10 + $0x990] sm:$0xff] }
 0x58d   :  { %15365 = vst [vmem:[#allocation79_spill] sm:$0xff] %v14354_v0  ;;  %v14369_v63 = vpack.c.bf16 %v5978_v50, %v5973_v27  ;;  %v5654_v50 = vadd.f32 %v5653_v4, %v5652_v40  ;;  %v5766_v40 = vld [vmem:[#allocation10 + $0x2f0] sm:$0xff]  ;;  %v5771_v4 = vld [vmem:[#allocation10 + $0x318] sm:$0xff] }
 0x58e   :  { %v5516_v19 = vadd.f32 %v9399_v42, %v5446_v41  ;;  %15366 = vst [vmem:[#allocation80_spill] sm:$0xff] %v14357_v7  ;;  %v14363_v41 = vpack.c.bf16 %v5967_v28, %v5962_v25  ;;  %v5983_v42 = vld [vmem:[#allocation10 + $0x9b8] sm:$0xff]  ;;  %v5761_v25 = vld [vmem:[#allocation10 + $0x2c8] sm:$0xff] }
 0x58f   :  { %12250 = vmatpush1.bf16.msra.mxu0 %v14345_v17  ;;  %15369 = vst [vmem:[#allocation82_spill] sm:$0xff] %v14369_v63 }
 0x590   :  { %v5586_v32 = vadd.f32 %v5585_v48, %v5516_v19  ;;  %12252 = vmatprep.subr.bf16.mxu0 %v14348_v8  ;;  %15367 = vst [vmem:[#allocation81_spill] sm:$0xff] %v14363_v41  ;;  %v15368_v48 = vmax.f32 %v13970_v44, %v14018_v53  ;;  %v5982_v53 = vld [vmem:[#allocation10 + $0x9b0] sm:$0xff]  ;;  %v5816_v8 = vld [vmem:[#allocation10 + $0x480] sm:$0xff] }
 0x592   :  { %v5593_v21 = vmax.f32 %v14067_v36, %v5586_v32  ;;  %v5988_v36 = vld [vmem:[#allocation10 + $0x9e0] sm:$0xff] }
 0x593   :  { %12254 = vmatpush1.bf16.msra.mxu0 %v14354_v0  ;;  %v14378_v44 = vpack.c.bf16 %v5988_v36, %v5983_v42  ;;  %v5756_v32 = vld [vmem:[#allocation10 + $0x2a0] sm:$0xff] }
 0x594   :  { %v5598_v31 = vmax.f32 %v15368_v48, %v5593_v21  ;;  %12256 = vmatprep.subr.bf16.mxu0 %v14357_v7  ;;  %v5987_v21 = vld [vmem:[#allocation10 + $0x9d8] sm:$0xff]  ;;  %v5655_v48 = vrot.slane %v5654_v50, 1 }
 0x595   :  { %15372 = vst [vmem:[#allocation85_spill] sm:$0xff] %v14378_v44  ;;  %v5695_v7 = vld [vmem:[#allocation10 + $0xb8] sm:$0xff] }
 0x596   :  { %v14371_v15 = vadd.f32 %v5619_v62, %v5598_v31  ;;  %v14384_v62 = vpack.c.bf16 %v5987_v21, %v5982_v53  ;;  %v14387_v31 = vpack.c.bf16 %v5761_v25, %v5756_v32  ;;  %v14395_v53 = vpack.c.bf16 %v5771_v4, %v5766_v40  ;;  %v5686_v21 = vld [vmem:[#allocation10 + $0x70] sm:$0xff]  ;;  %v5701_v40 = vld [vmem:[#allocation10 + $0xe8] sm:$0xff] }
 0x597   :  { %12258 = vmatpush1.bf16.msra.mxu0 %v14363_v41  ;;  %v5674_v25 = vld [vmem:[#allocation10 + $0x10] sm:$0xff]  ;;  %v5791_v41 = vld [vmem:[#allocation10 + $0x3b8] sm:$0xff] }
 0x598   :  { %15370 = vst [vmem:[#allocation83_spill] sm:$0xff] %v14371_v15  ;;  %v15243_v19 = vmax.f32 %v14371_v15, 0.0  ;;  %12260 = vmatprep.subr.bf16.mxu0 %v14369_v63  ;;  %15373 = vst [vmem:[#allocation86_spill] sm:$0xff] %v14384_v62  ;;  %v5691_v15 = vld [vmem:[#allocation10 + $0x98] sm:$0xff]  ;;  %v5781_v63 = vld [vmem:[#allocation10 + $0x368] sm:$0xff] }
 0x599   :  { %15374 = vst [vmem:[#allocation87_spill] sm:$0xff] %v14387_v31  ;;  %15376 = vst [vmem:[#allocation89_spill] sm:$0xff] %v14395_v53 }
 0x59a   :  { %v5665_v28 = vsel %vm5664_vm3, %v15243_v19, 0.0  ;;  %v14392_v19 = vadd.f32 %v5655_v48, %v5654_v50  ;;  %v14400_v48 = vpack.c.bf16 %v5691_v15, %v5686_v21  ;;  %v5700_v15 = vld [vmem:[#allocation10 + $0xe0] sm:$0xff]  ;;  %v5694_v21 = vld [vmem:[#allocation10 + $0xb0] sm:$0xff] }
 0x59b   :  { %v5666_v27 = vrot.slane %v5665_v28, 4  ;;  %12262 = vmatpush1.bf16.msra.mxu0 %v14374_v58  ;;  %v5685_v58 = vld [vmem:[#allocation10 + $0x68] sm:$0xff] }
 0x59c   :  { %12264 = vmatprep.subr.bf16.mxu0 %v14378_v44  ;;  %v5679_v44 = vld [vmem:[#allocation10 + $0x38] sm:$0xff]  ;;  %15377 = vst [vmem:[#allocation90_spill] sm:$0xff] %v14400_v48 }
 0x59d   :  { %v5667_v42 = vadd.f32 %v5666_v27, %v5665_v28  ;;  %v5690_v28 = vld [vmem:[#allocation10 + $0x90] sm:$0xff]  ;;  %v5776_v27 = vld [vmem:[#allocation10 + $0x340] sm:$0xff]  ;;  %v14403_v59 = vpack.c.bf16 %v5679_v44, %v5674_v25  ;;  %v5711_v25 = vld [vmem:[#allocation10 + $0x138] sm:$0xff] }
 0x59f   :  { %v5668_v36 = vrot.slane %v5667_v42, 2  ;;  %12266 = vmatpush1.bf16.msra.mxu0 %v14384_v62  ;;  %v5786_v62 = vld [vmem:[#allocation10 + $0x390] sm:$0xff] }
 0x5a0   :  { %12428 = vmatprep.subr.bf16.mxu0 %v14387_v31  ;;  %v14409_v31 = vpack.c.bf16 %v5781_v63, %v5776_v27  ;;  %v14420_v63 = vpack.c.bf16 %v5791_v41, %v5786_v62  ;;  %v5699_v27 = vld [vmem:[#allocation10 + $0xd8] sm:$0xff]  ;;  %v5704_v62 = vld [vmem:[#allocation10 + $0x100] sm:$0xff] }
 0x5a1   :  { %v5669_v32 = vadd.f32 %v5668_v36, %v5667_v42  ;;  %v5696_v42 = vld [vmem:[#allocation10 + $0xc0] sm:$0xff]  ;;  %v14407_v36 = vpack.c.bf16 %v5690_v28, %v5685_v58  ;;  %v14424_v28 = vpack.c.bf16 %v5700_v15, %v5695_v7 }
 0x5a2   :  { %6172 = vmatmul.mubr.f32.vlgmr.msra.gmra.mrb[24].mxu0 %v14392_v19  ;;  %15378 = vst [vmem:[#allocation91_spill] sm:$0xff] %v14409_v31  ;;  %v14414_v44 = vpack.c.bf16 %v5701_v40, %v5696_v42  ;;  %15380 = vst [vmem:[#allocation93_spill] sm:$0xff] %v14420_v63  ;;  %v5801_v42 = vld [vmem:[#allocation10 + $0x408] sm:$0xff]  ;;  %v5716_v7 = vld [vmem:[#allocation10 + $0x160] sm:$0xff] }
 0x5a3   :  { %12430 = vmatpush3.bf16.msra.mxu0 %v14390_v51  ;;  %6526 = vmatprep.mubr.f32.mxu0 %v14235_v57  ;;  %v5670_v50 = vrot.slane %v5669_v32, 1  ;;  %v5689_v51 = vld [vmem:[#allocation10 + $0x88] sm:$0xff] }
 0x5a4   :  { %12432 = vmatprep.subr.bf16.mxu0 %v14395_v53  ;;  %15379 = vst [vmem:[#allocation92_spill] sm:$0xff] %v14414_v44  ;;  %v14418_v58 = vpack.c.bf16 %v5689_v51, %v5684_v52  ;;  %v5705_v40 = vld [vmem:[#allocation10 + $0x108] sm:$0xff]  ;;  %v14431_v51 = vpack.c.bf16 %v5699_v27, %v5694_v21  ;;  %v5806_v53 = vld [vmem:[#allocation10 + $0x430] sm:$0xff] }
 0x5a5   :  { %v14405_v4 = vadd.f32 %v5670_v50, %v5669_v32  ;;  %v5706_v32 = vld [vmem:[#allocation10 + $0x110] sm:$0xff]  ;;  %v5796_v50 = vld [vmem:[#allocation10 + $0x3e0] sm:$0xff]  ;;  %v5721_v52 = vld [vmem:[#allocation10 + $0x188] sm:$0xff] }
 0x5a6   :  { %v14433_v41 = vpack.c.bf16 %v5801_v42, %v5796_v50  ;;  %v14439_v0 = vpack.c.bf16 %v5721_v52, %v5716_v7  ;;  %v5714_v50 = vld [vmem:[#allocation10 + $0x150] sm:$0xff]  ;;  %v5731_v42 = vld [vmem:[#allocation10 + $0x1d8] sm:$0xff]  ;;  %v5725_v7 = vld [vmem:[#allocation10 + $0x1a8] sm:$0xff] }
 0x5a7   :  { %8957 = vmatmul.mubr.msk.f32.vlgmr.msra.gmra.mrb[24].mxu1 %vm6032_vm4, %v14405_v4  ;;  %12434 = vmatpush3.bf16.msra.mxu0 %v14400_v48  ;;  %v5710_v48 = vld [vmem:[#allocation10 + $0x130] sm:$0xff] }
 0x5a8   :  { %12286 = vmatpush1.bf16.msra.mxu1 %v14403_v59  ;;  %6313 = vmatprep.mubr.f32.mxu1 %v14235_v57  ;;  %v14427_v57 = vpack.c.bf16 %v5711_v25, %v5706_v32  ;;  %15382 = vst [vmem:[#allocation95_spill] sm:$0xff] %v14433_v41  ;;  %v14436_v15 = vpack.c.bf16 %v5710_v48, %v5705_v40  ;;  %v5715_v32 = vld [vmem:[#allocation10 + $0x158] sm:$0xff]  ;;  %v5720_v25 = vld [vmem:[#allocation10 + $0x180] sm:$0xff]  ;;  %15383 = vst [vmem:[#allocation96_spill] sm:$0xff] %v14439_v0 }
 0x5a9   :  { %12288 = vmatprep.subr.bf16.mxu1 %v14407_v36  ;;  %12436 = vmatprep.subr.bf16.mxu0 %v14409_v31  ;;  %v5709_v31 = vld [vmem:[#allocation10 + $0x128] sm:$0xff]  ;;  %v5726_v48 = vld [vmem:[#allocation10 + $0x1b0] sm:$0xff]  ;;  %v14448_v40 = vpack.c.bf16 %v5720_v25, %v5715_v32 }
 0x5aa   :  { %15381 = vst [vmem:[#allocation94_spill] sm:$0xff] %v14427_v57  ;;  %v14443_v21 = vpack.c.bf16 %v5709_v31, %v5704_v62  ;;  %v5730_v52 = vld [vmem:[#allocation10 + $0x1d0] sm:$0xff]  ;;  %v14451_v17 = vpack.c.bf16 %v5731_v42, %v5726_v48  ;;  %v5736_v62 = vld [vmem:[#allocation10 + $0x200] sm:$0xff]  ;;  %v5741_v32 = vld [vmem:[#allocation10 + $0x228] sm:$0xff] }
 0x5ab   :  { %12438 = vmatpush3.bf16.msra.mxu0 %v14414_v44  ;;  %v5811_v44 = vld [vmem:[#allocation10 + $0x458] sm:$0xff]  ;;  %v14460_v25 = vpack.c.bf16 %v5730_v52, %v5725_v7  ;;  %v5740_v42 = vld [vmem:[#allocation10 + $0x220] sm:$0xff]  ;;  %v14463_v18 = vpack.c.bf16 %v5741_v32, %v5736_v62  ;;  %v5734_v52 = vld [vmem:[#allocation10 + $0x1f0] sm:$0xff] }
 0x5ac   :  { %12290 = vmatpush1.bf16.msra.mxu1 %v14418_v58  ;;  %12440 = vmatprep.subr.bf16.mxu0 %v14420_v63  ;;  %v14445_v27 = vpack.c.bf16 %v5811_v44, %v5806_v53  ;;  %v5719_v63 = vld [vmem:[#allocation10 + $0x178] sm:$0xff]  ;;  %15385 = vst [vmem:[#allocation98_spill] sm:$0xff] %v14451_v17  ;;  %v5724_v44 = vld [vmem:[#allocation10 + $0x1a0] sm:$0xff] }
 0x5ad   :  { %12292 = vmatprep.subr.bf16.mxu1 %v14424_v28  ;;  %v14455_v31 = vpack.c.bf16 %v5719_v63, %v5714_v50  ;;  %v5735_v48 = vld [vmem:[#allocation10 + $0x1f8] sm:$0xff]  ;;  %15387 = vst [vmem:[#allocation100_spill] sm:$0xff] %v14463_v18  ;;  %v5744_v32 = vld [vmem:[#allocation10 + $0x240] sm:$0xff] }
 0x5ae   :  { %15384 = vst [vmem:[#allocation97_spill] sm:$0xff] %v14445_v27  ;;  %v5751_v50 = vld [vmem:[#allocation10 + $0x278] sm:$0xff]  ;;  %v14472_v7 = vpack.c.bf16 %v5740_v42, %v5735_v48  ;;  %v5749_v48 = vld [vmem:[#allocation10 + $0x268] sm:$0xff] }
 0x5af   :  { %12442 = vmatpush3.bf16.msra.mxu0 %v14427_v57  ;;  %v5821_v57 = vld [vmem:[#allocation10 + $0x4a8] sm:$0xff]  ;;  %v5755_v42 = vld [vmem:[#allocation10 + $0x298] sm:$0xff] }
 0x5b0   :  { %12294 = vmatpush1.bf16.msra.mxu1 %v14431_v51  ;;  %12444 = vmatprep.subr.bf16.mxu0 %v14433_v41  ;;  %v14457_v53 = vpack.c.bf16 %v5821_v57, %v5816_v8  ;;  %v5729_v41 = vld [vmem:[#allocation10 + $0x1c8] sm:$0xff]  ;;  %v5746_v57 = vld [vmem:[#allocation10 + $0x250] sm:$0xff] }
 0x5b1   :  { %12296 = vmatprep.subr.bf16.mxu1 %v14436_v15  ;;  %v14467_v8 = vpack.c.bf16 %v5729_v41, %v5724_v44  ;;  %v14475_v62 = vpack.c.bf16 %v5751_v50, %v5746_v57  ;;  %v6001_v41 = vld [vmem:[#allocation10 + $0xa48] sm:$0xff]  ;;  %v15391_v50 = vmov 0.0|0.0  }
 0x5b2   :  { %15386 = vst [vmem:[#allocation99_spill] sm:$0xff] %v14457_v53 }
 0x5b3   :  { %12446 = vmatpush3.bf16.msra.mxu0 %v14439_v0  ;;  %v5831_v0 = vld [vmem:[#allocation10 + $0x4f8] sm:$0xff]  ;;  %15389 = vst [vmem:[#allocation102_spill] sm:$0xff] %v14475_v62 }
 0x5b4   :  { %12298 = vmatpush1.bf16.msra.mxu1 %v14443_v21  ;;  %12448 = vmatprep.subr.bf16.mxu0 %v14445_v27  ;;  %v14469_v63 = vpack.c.bf16 %v5831_v0, %v5826_v56  ;;  %v5739_v27 = vld [vmem:[#allocation10 + $0x218] sm:$0xff]  ;;  %v5996_v0 = vld [vmem:[#allocation10 + $0xa20] sm:$0xff] }
 0x5b5   :  { %12300 = vmatprep.subr.bf16.mxu1 %v14448_v40  ;;  %v14479_v56 = vpack.c.bf16 %v5739_v27, %v5734_v52  ;;  %v14485_v57 = vpack.c.bf16 %v6001_v41, %v5996_v0  ;;  %v14489_v27 = vpack.c.bf16 %v5749_v48, %v5744_v32  ;;  %v6006_v52 = vld [vmem:[#allocation10 + $0xa70] sm:$0xff]  ;;  %v15393_v41 = vmov 0.0   ;;  %v6021_v48 = vld [vmem:[#allocation10 + $0xae8] sm:$0xff] }
 0x5b6   :  { %15388 = vst [vmem:[#allocation101_spill] sm:$0xff] %v14469_v63 }
 0x5b7   :  { %12450 = vmatpush3.bf16.msra.mxu0 %v14451_v17  ;;  %v5750_v17 = vld [vmem:[#allocation10 + $0x270] sm:$0xff]  ;;  %15390 = vst [vmem:[#allocation103_spill] sm:$0xff] %v14485_v57 }
 0x5b8   :  { %12302 = vmatpush1.bf16.msra.mxu1 %v14455_v31  ;;  %12452 = vmatprep.subr.bf16.mxu0 %v14457_v53  ;;  %v14482_v44 = vpack.c.bf16 %v5750_v17, %v5745_v16  ;;  %v5760_v53 = vld [vmem:[#allocation10 + $0x2c0] sm:$0xff]  ;;  %v5754_v17 = vld [vmem:[#allocation10 + $0x290] sm:$0xff] }
 0x5b9   :  { %12304 = vmatprep.subr.bf16.mxu1 %v14460_v25  ;;  %v14492_v16 = vpack.c.bf16 %v5760_v53, %v5755_v42  ;;  %v6016_v53 = vld [vmem:[#allocation10 + $0xac0] sm:$0xff] }
 0x5bb   :  { %12454 = vmatpush3.bf16.msra.mxu0 %v14463_v18  ;;  %v5759_v18 = vld [vmem:[#allocation10 + $0x2b8] sm:$0xff] }
 0x5bc   :  { %12306 = vmatpush1.bf16.msra.mxu1 %v14467_v8  ;;  %12456 = vmatprep.subr.bf16.mxu0 %v14469_v63  ;;  %v6011_v63 = vld [vmem:[#allocation10 + $0xa98] sm:$0xff]  ;;  %v14502_v32 = vpack.c.bf16 %v5759_v18, %v5754_v17  ;;  %v14512_v18 = vpack.c.bf16 %v5769_v45, %v5764_v61  ;;  %v6026_v17 = vld [vmem:[#allocation10 + $0xb10] sm:$0xff]  ;;  %v14525_v61 = vpack.c.bf16 %v5790_v39, %v5785_v22  ;;  %v5805_v22 = vld [vmem:[#allocation10 + $0x428] sm:$0xff] }
 0x5bd   :  { %12308 = vmatprep.subr.bf16.mxu1 %v14472_v7  ;;  %v14496_v0 = vpack.c.bf16 %v6011_v63, %v6006_v52  ;;  %v5780_v63 = vld [vmem:[#allocation10 + $0x360] sm:$0xff]  ;;  %v14508_v52 = vpack.c.bf16 %v6021_v48, %v6016_v53  ;;  %v14518_v53 = vpack.c.bf16 %v6031_v43, %v6026_v17  ;;  %v5789_v48 = vld [vmem:[#allocation10 + $0x3a8] sm:$0xff]  ;;  %v5794_v17 = vld [vmem:[#allocation10 + $0x3d0] sm:$0xff] }
 0x5be   :  { %v5810_v39 = vld [vmem:[#allocation10 + $0x450] sm:$0xff] }
 0x5bf   :  { %12458 = vmatpush3.bf16.msra.mxu0 %v14475_v62  ;;  %v5770_v62 = vld [vmem:[#allocation10 + $0x310] sm:$0xff]  ;;  %15392 = vst [vmem:[#allocation104_spill] sm:$0xff] %v14496_v0  ;;  %15394 = vst [vmem:[#allocation105_spill] sm:$0xff] %v14508_v52 }
 0x5c0   :  { %12310 = vmatpush1.bf16.msra.mxu1 %v14479_v56  ;;  %12491 = vmatprep.subr.bf16.mxu0 %v15391_v50  ;;  %v14505_v42 = vpack.c.bf16 %v5770_v62, %v5765_v3  ;;  %v5774_v62 = vld [vmem:[#allocation10 + $0x330] sm:$0xff]  ;;  %15395 = vst [vmem:[#allocation106_spill] sm:$0xff] %v14518_v53 }
 0x5c1   :  { %12312 = vmatprep.subr.bf16.mxu1 %v14482_v44  ;;  %v14522_v45 = vpack.c.bf16 %v5779_v38, %v5774_v62  ;;  %v5799_v62 = vld [vmem:[#allocation10 + $0x3f8] sm:$0xff] }
 0x5c2   :  { %6527 = vmatmul.mubr.f32.vlgmr.msra.gmra.mrb[26].mxu0 %v14239_v54 }
 0x5c3   :  { %12493 = vmatpush3.bf16.msra.mxu0 %v14485_v57  ;;  %9972 = vmatprep.mubr.msk.f32.mxu0 %vm13637_vm1, %v15393_v41  ;;  %v5775_v57 = vld [vmem:[#allocation10 + $0x338] sm:$0xff] }
 0x5c4   :  { %12314 = vmatpush1.bf16.msra.mxu1 %v14489_v27  ;;  %12494 = vmatprep.subr.bf16.mxu0 %v15391_v50  ;;  %v14515_v3 = vpack.c.bf16 %v5780_v63, %v5775_v57  ;;  %v5784_v57 = vld [vmem:[#allocation10 + $0x380] sm:$0xff]  ;;  %v5795_v63 = vld [vmem:[#allocation10 + $0x3d8] sm:$0xff] }
 0x5c5   :  { %12316 = vmatprep.subr.bf16.mxu1 %v14492_v16  ;;  %v14529_v43 = vpack.c.bf16 %v5789_v48, %v5784_v57  ;;  %v5809_v57 = vld [vmem:[#allocation10 + $0x448] sm:$0xff]  ;;  %v5815_v48 = vld [vmem:[#allocation10 + $0x478] sm:$0xff] }
 0x5c7   :  { %12496 = vmatpush3.bf16.msra.mxu0 %v14496_v0  ;;  %v5800_v0 = vld [vmem:[#allocation10 + $0x400] sm:$0xff] }
 0x5c8   :  { %12318 = vmatpush1.bf16.msra.mxu1 %v14502_v32  ;;  %12497 = vmatprep.subr.bf16.mxu0 %v15391_v50  ;;  %v14533_v38 = vpack.c.bf16 %v5800_v0, %v5795_v63  ;;  %v5804_v0 = vld [vmem:[#allocation10 + $0x420] sm:$0xff] }
 0x5c9   :  { %12320 = vmatprep.subr.bf16.mxu1 %v14505_v42  ;;  %v5820_v63 = vld [vmem:[#allocation10 + $0x4a0] sm:$0xff] }
 0x5cb   :  { %12499 = vmatpush3.bf16.msra.mxu0 %v14508_v52  ;;  %v14547_v52 = vpack.c.bf16 %v5809_v57, %v5804_v0  ;;  %v5829_v0 = vld [vmem:[#allocation10 + $0x4e8] sm:$0xff]  ;;  %v5835_v57 = vld [vmem:[#allocation10 + $0x518] sm:$0xff] }
 0x5cc   :  { %12322 = vmatpush1.bf16.msra.mxu1 %v14512_v18  ;;  %12500 = vmatprep.subr.bf16.mxu0 %v15391_v50  ;;  %v5974_v50 = vld [vmem:[#allocation10 + $0x970] sm:$0xff] }
 0x5cd   :  { %12324 = vmatprep.subr.bf16.mxu1 %v14515_v3 }
 0x5cf   :  { %12502 = vmatpush3.bf16.msra.mxu0 %v14518_v53  ;;  %v14539_v53 = vpack.c.bf16 %v5799_v62, %v5794_v17  ;;  %v5819_v17 = vld [vmem:[#allocation10 + $0x498] sm:$0xff]  ;;  %v5825_v62 = vld [vmem:[#allocation10 + $0x4c8] sm:$0xff] }
 0x5d0   :  { %12326 = vmatpush1.bf16.msra.mxu1 %v14522_v45  ;;  %12648 = vmatprep.subr.bf16.mxu0 %v14200_v47  ;;  %v14543_v47 = vpack.c.bf16 %v5810_v39, %v5805_v22  ;;  %v5830_v22 = vld [vmem:[#allocation10 + $0x4f0] sm:$0xff] }
 0x5d1   :  { %12328 = vmatprep.subr.bf16.mxu1 %v14525_v61 }
 0x5d2   :  { %9973 = vmatmul.mubr.msk.f32.vlgmr.msra.gmra.mrb[28].mxu0 %vm6032_vm4, %v14405_v4 }
 0x5d3   :  { %12650 = vmatpush1.bf16.msra.mxu0 %v14403_v59  ;;  %v14551_v59 = vpack.c.bf16 %v5820_v63, %v5815_v48  ;;  %v5840_v48 = vld [vmem:[#allocation10 + $0x540] sm:$0xff] }
 0x5d4   :  { %12330 = vmatpush1.bf16.msra.mxu1 %v14529_v43  ;;  %12652 = vmatprep.subr.bf16.mxu0 %v14407_v36  ;;  %v5814_v36 = vld [vmem:[#allocation10 + $0x470] sm:$0xff] }
 0x5d5   :  { %12332 = vmatprep.subr.bf16.mxu1 %v14533_v38  ;;  %v14555_v39 = vpack.c.bf16 %v5819_v17, %v5814_v36  ;;  %v5839_v36 = vld [vmem:[#allocation10 + $0x538] sm:$0xff]  ;;  %v5845_v17 = vld [vmem:[#allocation10 + $0x568] sm:$0xff] }
 0x5d7   :  { %12654 = vmatpush1.bf16.msra.mxu0 %v14418_v58  ;;  %v14559_v58 = vpack.c.bf16 %v5830_v22, %v5825_v62  ;;  %v5850_v62 = vld [vmem:[#allocation10 + $0x590] sm:$0xff] }
 0x5d8   :  { %12334 = vmatpush1.bf16.msra.mxu1 %v14539_v53  ;;  %12656 = vmatprep.subr.bf16.mxu0 %v14424_v28  ;;  %v5824_v28 = vld [vmem:[#allocation10 + $0x4c0] sm:$0xff] }
 0x5d9   :  { %12336 = vmatprep.subr.bf16.mxu1 %v14543_v47  ;;  %v14563_v63 = vpack.c.bf16 %v5829_v0, %v5824_v28  ;;  %v5849_v28 = vld [vmem:[#allocation10 + $0x588] sm:$0xff]  ;;  %v5855_v0 = vld [vmem:[#allocation10 + $0x5b8] sm:$0xff] }
 0x5db   :  { %12658 = vmatpush1.bf16.msra.mxu0 %v14431_v51  ;;  %v14567_v51 = vpack.c.bf16 %v5840_v48, %v5835_v57  ;;  %v5860_v57 = vld [vmem:[#allocation10 + $0x5e0] sm:$0xff]  ;;  %v5854_v48 = vld [vmem:[#allocation10 + $0x5b0] sm:$0xff] }
 0x5dc   :  { %12338 = vmatpush1.bf16.msra.mxu1 %v14547_v52  ;;  %12660 = vmatprep.subr.bf16.mxu0 %v14436_v15  ;;  %v5834_v15 = vld [vmem:[#allocation10 + $0x510] sm:$0xff] }
 0x5dd   :  { %12340 = vmatprep.subr.bf16.mxu1 %v14551_v59  ;;  %v14571_v22 = vpack.c.bf16 %v5839_v36, %v5834_v15  ;;  %v5859_v15 = vld [vmem:[#allocation10 + $0x5d8] sm:$0xff]  ;;  %v5865_v36 = vld [vmem:[#allocation10 + $0x608] sm:$0xff] }
 0x5df   :  { %12662 = vmatpush1.bf16.msra.mxu0 %v14443_v21  ;;  %v14575_v21 = vpack.c.bf16 %v5850_v62, %v5845_v17  ;;  %v5870_v17 = vld [vmem:[#allocation10 + $0x630] sm:$0xff]  ;;  %v5864_v62 = vld [vmem:[#allocation10 + $0x600] sm:$0xff] }
 0x5e0   :  { %12342 = vmatpush1.bf16.msra.mxu1 %v14555_v39  ;;  %12664 = vmatprep.subr.bf16.mxu0 %v14448_v40  ;;  %v5844_v40 = vld [vmem:[#allocation10 + $0x560] sm:$0xff] }
 0x5e1   :  { %12344 = vmatprep.subr.bf16.mxu1 %v14559_v58 }
 0x5e3   :  { %12666 = vmatpush1.bf16.msra.mxu0 %v14455_v31  ;;  %v14581_v31 = vpack.c.bf16 %v5849_v28, %v5844_v40  ;;  %v5869_v40 = vld [vmem:[#allocation10 + $0x628] sm:$0xff]  ;;  %v5875_v28 = vld [vmem:[#allocation10 + $0x658] sm:$0xff] }
 0x5e4   :  { %12346 = vmatpush1.bf16.msra.mxu1 %v14563_v63  ;;  %12668 = vmatprep.subr.bf16.mxu0 %v14460_v25  ;;  %v14584_v25 = vpack.c.bf16 %v5860_v57, %v5855_v0  ;;  %v5880_v0 = vld [vmem:[#allocation10 + $0x680] sm:$0xff]  ;;  %v5879_v57 = vld [vmem:[#allocation10 + $0x678] sm:$0xff] }
 0x5e5   :  { %12348 = vmatprep.subr.bf16.mxu1 %v14567_v51 }
 0x5e7   :  { %6314 = vmatmul.mubr.f32.vlgmr.msra.gmra.mrb[26].mxu1 %v14239_v54  ;;  %12670 = vmatpush1.bf16.msra.mxu0 %v14467_v8  ;;  %v14589_v54 = vpack.c.bf16 %v5859_v15, %v5854_v48  ;;  %v14593_v8 = vpack.c.bf16 %v5870_v17, %v5865_v36  ;;  %v5885_v48 = vld [vmem:[#allocation10 + $0x6a8] sm:$0xff]  ;;  %v5890_v15 = vld [vmem:[#allocation10 + $0x6d0] sm:$0xff] }
 0x5e8   :  { %12350 = vmatpush1.bf16.msra.mxu1 %v14571_v22  ;;  %6384 = vmatprep.mubr.f32.mxu1 %v14307_v29  ;;  %v5889_v17 = vld [vmem:[#allocation10 + $0x6c8] sm:$0xff] }
 0x5e9   :  { %12352 = vmatprep.subr.bf16.mxu1 %v14575_v21  ;;  %12672 = vmatprep.subr.bf16.mxu0 %v14472_v7  ;;  %v14597_v7 = vpack.c.bf16 %v5869_v40, %v5864_v62  ;;  %v5895_v62 = vld [vmem:[#allocation10 + $0x6f8] sm:$0xff]  ;;  %v5900_v40 = vld [vmem:[#allocation10 + $0x720] sm:$0xff] }
 0x5eb   :  { %12674 = vmatpush1.bf16.msra.mxu0 %v14479_v56  ;;  %v14601_v56 = vpack.c.bf16 %v5880_v0, %v5875_v28  ;;  %v5899_v0 = vld [vmem:[#allocation10 + $0x718] sm:$0xff] }
 0x5ec   :  { %12354 = vmatpush1.bf16.msra.mxu1 %v14581_v31  ;;  %12676 = vmatprep.subr.bf16.mxu0 %v14482_v44  ;;  %v5874_v44 = vld [vmem:[#allocation10 + $0x650] sm:$0xff] }
 0x5ed   :  { %12356 = vmatprep.subr.bf16.mxu1 %v14584_v25  ;;  %v14605_v36 = vpack.c.bf16 %v5879_v57, %v5874_v44  ;;  %v5905_v44 = vld [vmem:[#allocation10 + $0x748] sm:$0xff]  ;;  %v5910_v57 = vld [vmem:[#allocation10 + $0x770] sm:$0xff] }
 0x5ef   :  { %12678 = vmatpush1.bf16.msra.mxu0 %v14489_v27  ;;  %v14609_v27 = vpack.c.bf16 %v5890_v15, %v5885_v48  ;;  %v5909_v15 = vld [vmem:[#allocation10 + $0x768] sm:$0xff] }
 0x5f0   :  { %12358 = vmatpush1.bf16.msra.mxu1 %v14589_v54  ;;  %12680 = vmatprep.subr.bf16.mxu0 %v14492_v16  ;;  %v5884_v16 = vld [vmem:[#allocation10 + $0x6a0] sm:$0xff] }
 0x5f1   :  { %12360 = vmatprep.subr.bf16.mxu1 %v14593_v8  ;;  %v14613_v28 = vpack.c.bf16 %v5889_v17, %v5884_v16  ;;  %v5915_v16 = vld [vmem:[#allocation10 + $0x798] sm:$0xff]  ;;  %v5920_v17 = vld [vmem:[#allocation10 + $0x7c0] sm:$0xff] }
 0x5f3   :  { %12682 = vmatpush1.bf16.msra.mxu0 %v14502_v32  ;;  %v14617_v32 = vpack.c.bf16 %v5900_v40, %v5895_v62  ;;  %v5919_v40 = vld [vmem:[#allocation10 + $0x7b8] sm:$0xff] }
 0x5f4   :  { %12362 = vmatpush1.bf16.msra.mxu1 %v14597_v7  ;;  %12684 = vmatprep.subr.bf16.mxu0 %v14505_v42  ;;  %v5894_v42 = vld [vmem:[#allocation10 + $0x6f0] sm:$0xff] }
 0x5f5   :  { %12364 = vmatprep.subr.bf16.mxu1 %v14601_v56  ;;  %v14621_v48 = vpack.c.bf16 %v5899_v0, %v5894_v42  ;;  %v5925_v42 = vld [vmem:[#allocation10 + $0x7e8] sm:$0xff]  ;;  %v5930_v0 = vld [vmem:[#allocation10 + $0x810] sm:$0xff] }
 0x5f7   :  { %12686 = vmatpush1.bf16.msra.mxu0 %v14512_v18  ;;  %v14625_v18 = vpack.c.bf16 %v5910_v57, %v5905_v44  ;;  %v5929_v57 = vld [vmem:[#allocation10 + $0x808] sm:$0xff] }
 0x5f8   :  { %12366 = vmatpush1.bf16.msra.mxu1 %v14605_v36  ;;  %12688 = vmatprep.subr.bf16.mxu0 %v14515_v3  ;;  %v5904_v3 = vld [vmem:[#allocation10 + $0x740] sm:$0xff] }
 0x5f9   :  { %12368 = vmatprep.subr.bf16.mxu1 %v14609_v27  ;;  %v14629_v62 = vpack.c.bf16 %v5909_v15, %v5904_v3  ;;  %v5935_v3 = vld [vmem:[#allocation10 + $0x838] sm:$0xff]  ;;  %v5940_v15 = vld [vmem:[#allocation10 + $0x860] sm:$0xff] }
 0x5fb   :  { %12690 = vmatpush1.bf16.msra.mxu0 %v14522_v45  ;;  %v14633_v45 = vpack.c.bf16 %v5920_v17, %v5915_v16  ;;  %v5939_v17 = vld [vmem:[#allocation10 + $0x858] sm:$0xff] }
 0x5fc   :  { %12370 = vmatpush1.bf16.msra.mxu1 %v14613_v28  ;;  %12692 = vmatprep.subr.bf16.mxu0 %v14525_v61  ;;  %v5914_v61 = vld [vmem:[#allocation10 + $0x790] sm:$0xff] }
 0x5fd   :  { %12372 = vmatprep.subr.bf16.mxu1 %v14617_v32  ;;  %v14637_v44 = vpack.c.bf16 %v5919_v40, %v5914_v61  ;;  %v5945_v61 = vld [vmem:[#allocation10 + $0x888] sm:$0xff]  ;;  %v5950_v40 = vld [vmem:[#allocation10 + $0x8b0] sm:$0xff] }
 0x5ff   :  { %12694 = vmatpush1.bf16.msra.mxu0 %v14529_v43  ;;  %v14641_v43 = vpack.c.bf16 %v5930_v0, %v5925_v42  ;;  %v5949_v0 = vld [vmem:[#allocation10 + $0x8a8] sm:$0xff] }
 0x600   :  { %12374 = vmatpush1.bf16.msra.mxu1 %v14621_v48  ;;  %12696 = vmatprep.subr.bf16.mxu0 %v14533_v38  ;;  %v5924_v38 = vld [vmem:[#allocation10 + $0x7e0] sm:$0xff] }
 0x601   :  { %12376 = vmatprep.subr.bf16.mxu1 %v14625_v18  ;;  %v14645_v16 = vpack.c.bf16 %v5929_v57, %v5924_v38  ;;  %v5955_v38 = vld [vmem:[#allocation10 + $0x8d8] sm:$0xff]  ;;  %v5960_v57 = vld [vmem:[#allocation10 + $0x900] sm:$0xff] }
 0x603   :  { %12698 = vmatpush1.bf16.msra.mxu0 %v14539_v53  ;;  %v14649_v53 = vpack.c.bf16 %v5940_v15, %v5935_v3  ;;  %v5959_v15 = vld [vmem:[#allocation10 + $0x8f8] sm:$0xff] }
 0x604   :  { %12378 = vmatpush1.bf16.msra.mxu1 %v14629_v62  ;;  %12700 = vmatprep.subr.bf16.mxu0 %v14543_v47  ;;  %v5934_v47 = vld [vmem:[#allocation10 + $0x830] sm:$0xff] }
 0x605   :  { %12380 = vmatprep.subr.bf16.mxu1 %v14633_v45  ;;  %v14653_v42 = vpack.c.bf16 %v5939_v17, %v5934_v47  ;;  %v5965_v47 = vld [vmem:[#allocation10 + $0x928] sm:$0xff]  ;;  %v5970_v17 = vld [vmem:[#allocation10 + $0x950] sm:$0xff] }
 0x607   :  { %12702 = vmatpush1.bf16.msra.mxu0 %v14547_v52  ;;  %v14657_v52 = vpack.c.bf16 %v5950_v40, %v5945_v61  ;;  %v5964_v40 = vld [vmem:[#allocation10 + $0x920] sm:$0xff] }
 0x608   :  { %12382 = vmatpush1.bf16.msra.mxu1 %v14637_v44  ;;  %12704 = vmatprep.subr.bf16.mxu0 %v14551_v59  ;;  %v5944_v59 = vld [vmem:[#allocation10 + $0x880] sm:$0xff] }
 0x609   :  { %12384 = vmatprep.subr.bf16.mxu1 %v14641_v43  ;;  %v14661_v3 = vpack.c.bf16 %v5949_v0, %v5944_v59  ;;  %v5969_v59 = vld [vmem:[#allocation10 + $0x948] sm:$0xff]  ;;  %v5975_v0 = vld [vmem:[#allocation10 + $0x978] sm:$0xff] }
 0x60b   :  { %12706 = vmatpush1.bf16.msra.mxu0 %v14555_v39  ;;  %15396 = vst [vmem:[#allocation107_spill] sm:$0xff] %v14661_v3  ;;  %v14665_v39 = vpack.c.bf16 %v5960_v57, %v5955_v38  ;;  %v14674_v38 = vpack.c.bf16 %v5969_v59, %v5964_v40  ;;  %v5995_v40 = vld [vmem:[#allocation10 + $0xa18] sm:$0xff]  ;;  %v6000_v59 = vld [vmem:[#allocation10 + $0xa40] sm:$0xff] }
 0x60c   :  { %12386 = vmatpush1.bf16.msra.mxu1 %v14645_v16  ;;  %12708 = vmatprep.subr.bf16.mxu0 %v14559_v58  ;;  %v5954_v58 = vld [vmem:[#allocation10 + $0x8d0] sm:$0xff] }
 0x60d   :  { %12388 = vmatprep.subr.bf16.mxu1 %v14649_v53  ;;  %15397 = vst [vmem:[#allocation108_spill] sm:$0xff] %v14665_v39  ;;  %v14668_v61 = vpack.c.bf16 %v5959_v15, %v5954_v58  ;;  %15400 = vst [vmem:[#allocation111_spill] sm:$0xff] %v14674_v38  ;;  %v5985_v58 = vld [vmem:[#allocation10 + $0x9c8] sm:$0xff]  ;;  %v5990_v15 = vld [vmem:[#allocation10 + $0x9f0] sm:$0xff] }
 0x60f   :  { %12710 = vmatpush1.bf16.msra.mxu0 %v14563_v63  ;;  %15398 = vst [vmem:[#allocation109_spill] sm:$0xff] %v14668_v61  ;;  %v14671_v63 = vpack.c.bf16 %v5970_v17, %v5965_v47  ;;  %v14683_v17 = vpack.c.bf16 %v5990_v15, %v5985_v58 }
 0x610   :  { %12390 = vmatpush1.bf16.msra.mxu1 %v14653_v42  ;;  %12712 = vmatprep.subr.bf16.mxu0 %v14567_v51  ;;  %v5980_v51 = vld [vmem:[#allocation10 + $0x9a0] sm:$0xff] }
 0x611   :  { %12392 = vmatprep.subr.bf16.mxu1 %v14657_v52  ;;  %15399 = vst [vmem:[#allocation110_spill] sm:$0xff] %v14671_v63  ;;  %v14677_v57 = vpack.c.bf16 %v5980_v51, %v5975_v0  ;;  %v14689_v51 = vpack.c.bf16 %v6000_v59, %v5995_v40  ;;  %v6019_v59 = vld [vmem:[#allocation10 + $0xad8] sm:$0xff] }
 0x613   :  { %15401 = vst [vmem:[#allocation112_spill] sm:$0xff] %v14677_v57  ;;  %15404 = vst [vmem:[#allocation115_spill] sm:$0xff] %v14689_v51 }
 0x614   :  { %12394 = vmatpush1.bf16.msra.mxu1 %v14661_v3  ;;  %v5979_v3 = vld [vmem:[#allocation10 + $0x998] sm:$0xff] }
 0x615   :  { %12396 = vmatprep.subr.bf16.mxu1 %v14665_v39  ;;  %v14680_v47 = vpack.c.bf16 %v5979_v3, %v5974_v50  ;;  %v5984_v39 = vld [vmem:[#allocation10 + $0x9c0] sm:$0xff]  ;;  %v6005_v50 = vld [vmem:[#allocation10 + $0xa68] sm:$0xff]  ;;  %v6010_v3 = vld [vmem:[#allocation10 + $0xa90] sm:$0xff] }
 0x616   :  { %v14695_v15 = vpack.c.bf16 %v6010_v3, %v6005_v50  ;;  %v6025_v50 = vld [vmem:[#allocation10 + $0xb08] sm:$0xff]  ;;  %v6030_v3 = vld [vmem:[#allocation10 + $0xb30] sm:$0xff] }
 0x617   :  { %15402 = vst [vmem:[#allocation113_spill] sm:$0xff] %v14680_v47 }
 0x618   :  { %12398 = vmatpush1.bf16.msra.mxu1 %v14668_v61  ;;  %v5989_v61 = vld [vmem:[#allocation10 + $0x9e8] sm:$0xff]  ;;  %15406 = vst [vmem:[#allocation117_spill] sm:$0xff] %v14695_v15 }
 0x619   :  { %12400 = vmatprep.subr.bf16.mxu1 %v14671_v63  ;;  %v14686_v0 = vpack.c.bf16 %v5989_v61, %v5984_v39  ;;  %v5994_v63 = vld [vmem:[#allocation10 + $0xa10] sm:$0xff]  ;;  %v6015_v39 = vld [vmem:[#allocation10 + $0xab8] sm:$0xff]  ;;  %v6020_v61 = vld [vmem:[#allocation10 + $0xae0] sm:$0xff] }
 0x61b   :  { %15403 = vst [vmem:[#allocation114_spill] sm:$0xff] %v14686_v0 }
 0x61c   :  { %12402 = vmatpush1.bf16.msra.mxu1 %v14674_v38  ;;  %v5999_v38 = vld [vmem:[#allocation10 + $0xa38] sm:$0xff] }
 0x61d   :  { %12404 = vmatprep.subr.bf16.mxu1 %v14677_v57  ;;  %v14692_v58 = vpack.c.bf16 %v5999_v38, %v5994_v63  ;;  %v6004_v57 = vld [vmem:[#allocation10 + $0xa60] sm:$0xff]  ;;  %v14703_v63 = vpack.c.bf16 %v6020_v61, %v6015_v39  ;;  %v6014_v38 = vld [vmem:[#allocation10 + $0xab0] sm:$0xff] }
 0x61f   :  { %15405 = vst [vmem:[#allocation116_spill] sm:$0xff] %v14692_v58  ;;  %15408 = vst [vmem:[#allocation119_spill] sm:$0xff] %v14703_v63 }
 0x620   :  { %12406 = vmatpush1.bf16.msra.mxu1 %v14680_v47  ;;  %v6009_v47 = vld [vmem:[#allocation10 + $0xa88] sm:$0xff] }
 0x621   :  { %12408 = vmatprep.subr.bf16.mxu1 %v14683_v17  ;;  %v14699_v40 = vpack.c.bf16 %v6009_v47, %v6004_v57  ;;  %v6024_v57 = vld [vmem:[#allocation10 + $0xb00] sm:$0xff]  ;;  %v6029_v47 = vld [vmem:[#allocation10 + $0xb28] sm:$0xff] }
 0x622   :  { %v14712_v39 = vpack.c.bf16 %v6029_v47, %v6024_v57  ;;  %v5936_v57 = vld [vmem:[#allocation10 + $0x840] sm:$0xff]  ;;  %v5941_v47 = vld [vmem:[#allocation10 + $0x868] sm:$0xff] }
 0x623   :  { %15407 = vst [vmem:[#allocation118_spill] sm:$0xff] %v14699_v40 }
 0x624   :  { %12410 = vmatpush1.bf16.msra.mxu1 %v14686_v0  ;;  %v14709_v0 = vpack.c.bf16 %v6030_v3, %v6025_v50 }
 0x625   :  { %12412 = vmatprep.subr.bf16.mxu1 %v14689_v51  ;;  %v14706_v51 = vpack.c.bf16 %v6019_v59, %v6014_v38  ;;  %v5926_v38 = vld [vmem:[#allocation10 + $0x7f0] sm:$0xff]  ;;  %v5931_v59 = vld [vmem:[#allocation10 + $0x818] sm:$0xff] }
 0x626   :  { %v14721_v3 = vpack.c.bf16 %v5931_v59, %v5926_v38  ;;  %v5946_v38 = vld [vmem:[#allocation10 + $0x890] sm:$0xff]  ;;  %v5951_v59 = vld [vmem:[#allocation10 + $0x8b8] sm:$0xff] }
 0x627   :  { %6385 = vmatmul.mubr.f32.vlgmr.msra.gmra.mrb[26].mxu1 %v14392_v19  ;;  %15409 = vst [vmem:[#allocation120_spill] sm:$0xff] %v14706_v51 }
 0x628   :  { %12414 = vmatpush1.bf16.msra.mxu1 %v14692_v58  ;;  %6455 = vmatprep.mubr.f32.mxu1 %v15393_v41  ;;  %v5916_v58 = vld [vmem:[#allocation10 + $0x7a0] sm:$0xff]  ;;  %v5921_v41 = vld [vmem:[#allocation10 + $0x7c8] sm:$0xff]  ;;  %15412 = vst [vmem:[#allocation123_spill] sm:$0xff] %v14721_v3 }
 0x629   :  { %12416 = vmatprep.subr.bf16.mxu1 %v14695_v15  ;;  %v14715_v61 = vpack.c.bf16 %v5921_v41, %v5916_v58  ;;  %v5836_v15 = vld [vmem:[#allocation10 + $0x520] sm:$0xff]  ;;  %v14730_v58 = vpack.c.bf16 %v5941_v47, %v5936_v57 }
 0x62b   :  { %15410 = vst [vmem:[#allocation121_spill] sm:$0xff] %v14715_v61  ;;  %15414 = vst [vmem:[#allocation125_spill] sm:$0xff] %v14730_v58 }
 0x62c   :  { %12418 = vmatpush1.bf16.msra.mxu1 %v14699_v40  ;;  %v5841_v40 = vld [vmem:[#allocation10 + $0x548] sm:$0xff] }
 0x62d   :  { %12420 = vmatprep.subr.bf16.mxu1 %v14703_v63  ;;  %v14718_v50 = vpack.c.bf16 %v5841_v40, %v5836_v15  ;;  %v5846_v63 = vld [vmem:[#allocation10 + $0x570] sm:$0xff]  ;;  %v5856_v15 = vld [vmem:[#allocation10 + $0x5c0] sm:$0xff]  ;;  %v5861_v40 = vld [vmem:[#allocation10 + $0x5e8] sm:$0xff] }
 0x62f   :  { %15411 = vst [vmem:[#allocation122_spill] sm:$0xff] %v14718_v50 }
 0x630   :  { %12422 = vmatpush1.bf16.msra.mxu1 %v14706_v51  ;;  %v5851_v51 = vld [vmem:[#allocation10 + $0x598] sm:$0xff] }
 0x631   :  { %12424 = vmatprep.subr.bf16.mxu1 %v14709_v0  ;;  %v14727_v41 = vpack.c.bf16 %v5851_v51, %v5846_v63  ;;  %v5956_v51 = vld [vmem:[#allocation10 + $0x8e0] sm:$0xff]  ;;  %v5961_v63 = vld [vmem:[#allocation10 + $0x908] sm:$0xff] }
 0x632   :  { %v14742_v47 = vpack.c.bf16 %v5961_v63, %v5956_v51 }
 0x633   :  { %15413 = vst [vmem:[#allocation124_spill] sm:$0xff] %v14727_v41 }
 0x634   :  { %12426 = vmatpush1.bf16.msra.mxu1 %v14712_v39  ;;  %15418 = vst [vmem:[#allocation129_spill] sm:$0xff] %v14742_v47 }
 0x635   :  { %12460 = vmatprep.subr.bf16.mxu1 %v14715_v61  ;;  %v14733_v61 = vpack.c.bf16 %v5861_v40, %v5856_v15  ;;  %v5966_v15 = vld [vmem:[#allocation10 + $0x930] sm:$0xff]  ;;  %v5971_v40 = vld [vmem:[#allocation10 + $0x958] sm:$0xff] }
 0x637   :  { %8958 = vmatmul.mubr.msk.f32.vlgmr.msra.gmra.mrb[26].mxu1 %vm6032_vm4, %v14405_v4  ;;  %15415 = vst [vmem:[#allocation126_spill] sm:$0xff] %v14733_v61  ;;  %v14736_v4 = vpack.c.bf16 %v5951_v59, %v5946_v38  ;;  %v14748_v59 = vpack.c.bf16 %v5971_v40, %v5966_v15 }
 0x638   :  { %12462 = vmatpush3.bf16.msra.mxu1 %v14718_v50  ;;  %6596 = vmatprep.mubr.f32.mxu1 %v14307_v29  ;;  %v5866_v50 = vld [vmem:[#allocation10 + $0x610] sm:$0xff]  ;;  %v5871_v29 = vld [vmem:[#allocation10 + $0x638] sm:$0xff] }
 0x639   :  { %12464 = vmatprep.subr.bf16.mxu1 %v14721_v3  ;;  %15416 = vst [vmem:[#allocation127_spill] sm:$0xff] %v14736_v4  ;;  %v14739_v57 = vpack.c.bf16 %v5871_v29, %v5866_v50  ;;  %v5876_v3 = vld [vmem:[#allocation10 + $0x660] sm:$0xff]  ;;  %v5981_v29 = vld [vmem:[#allocation10 + $0x9a8] sm:$0xff] }
 0x63a   :  { %v5976_v50 = vld [vmem:[#allocation10 + $0x980] sm:$0xff] }
 0x63b   :  { %15417 = vst [vmem:[#allocation128_spill] sm:$0xff] %v14739_v57  ;;  %v14754_v63 = vpack.c.bf16 %v5981_v29, %v5976_v50 }
 0x63c   :  { %12466 = vmatpush3.bf16.msra.mxu1 %v14727_v41  ;;  %v5881_v41 = vld [vmem:[#allocation10 + $0x688] sm:$0xff] }
 0x63d   :  { %12468 = vmatprep.subr.bf16.mxu1 %v14730_v58  ;;  %v14745_v38 = vpack.c.bf16 %v5881_v41, %v5876_v3  ;;  %v5886_v58 = vld [vmem:[#allocation10 + $0x6b0] sm:$0xff]  ;;  %v5991_v41 = vld [vmem:[#allocation10 + $0x9f8] sm:$0xff] }
 0x63e   :  { %v5986_v3 = vld [vmem:[#allocation10 + $0x9d0] sm:$0xff] }
 0x63f   :  { %15419 = vst [vmem:[#allocation130_spill] sm:$0xff] %v14745_v38  ;;  %v14760_v40 = vpack.c.bf16 %v5991_v41, %v5986_v3  ;;  %v15429_v41 = vld [vmem:[#allocation33_spill] sm:$0xff] }
 0x640   :  { %12470 = vmatpush3.bf16.msra.mxu1 %v14733_v61  ;;  %v5891_v61 = vld [vmem:[#allocation10 + $0x6d8] sm:$0xff] }
 0x641   :  { %12472 = vmatprep.subr.bf16.mxu1 %v14736_v4  ;;  %v14751_v51 = vpack.c.bf16 %v5891_v61, %v5886_v58  ;;  %v5896_v4 = vld [vmem:[#allocation10 + $0x700] sm:$0xff] }
 0x644   :  { %12474 = vmatpush3.bf16.msra.mxu1 %v14739_v57  ;;  %v5901_v57 = vld [vmem:[#allocation10 + $0x728] sm:$0xff] }
 0x645   :  { %12476 = vmatprep.subr.bf16.mxu1 %v14742_v47  ;;  %v14757_v15 = vpack.c.bf16 %v5901_v57, %v5896_v4  ;;  %v5906_v47 = vld [vmem:[#allocation10 + $0x750] sm:$0xff] }
 0x648   :  { %12478 = vmatpush3.bf16.msra.mxu1 %v14745_v38  ;;  %v5911_v38 = vld [vmem:[#allocation10 + $0x778] sm:$0xff] }
 0x649   :  { %12480 = vmatprep.subr.bf16.mxu1 %v14748_v59  ;;  %v14763_v61 = vpack.c.bf16 %v5911_v38, %v5906_v47  ;;  %v15427_v47 = vld [vmem:[#allocation31_spill] sm:$0xff]  ;;  %v15428_v38 = vld [vmem:[#allocation32_spill] sm:$0xff] }
 0x64c   :  { %12482 = vmatpush3.bf16.msra.mxu1 %v14751_v51 }
 0x64d   :  { %12484 = vmatprep.subr.bf16.mxu1 %v14754_v63 }
 0x650   :  { %12486 = vmatpush3.bf16.msra.mxu1 %v14757_v15 }
 0x651   :  { %12488 = vmatprep.subr.bf16.mxu1 %v14760_v40 }
 0x654   :  { %12490 = vmatpush3.bf16.msra.mxu1 %v14763_v61 }
 0x655   :  { %12504 = vmatprep.subr.bf16.mxu1 %v14070_v49 }
 0x657   :  { %6597 = vmatmul.mubr.f32.vlgmr.msra.gmra.mrb[28].mxu1 %v14392_v19 }
 0x658   :  { %12506 = vmatpush1.bf16.msra.mxu1 %v14075_v9 }
 0x659   :  { %12508 = vmatprep.subr.bf16.mxu1 %v14078_v37 }
 0x65c   :  { %12510 = vmatpush1.bf16.msra.mxu1 %v14084_v26 }
 0x65d   :  { %12512 = vmatprep.subr.bf16.mxu1 %v14087_v60 }
 0x660   :  { %12514 = vmatpush1.bf16.msra.mxu1 %v14091_v1 }
 0x661   :  { %12516 = vmatprep.subr.bf16.mxu1 %v14094_v55 }
 0x664   :  { %12518 = vmatpush1.bf16.msra.mxu1 %v14097_v5 }
 0x665   :  { %12520 = vmatprep.subr.bf16.mxu1 %v14100_v6 }
 0x668   :  { %12522 = vmatpush1.bf16.msra.mxu1 %v14103_v13 }
 0x669   :  { %12524 = vmatprep.subr.bf16.mxu1 %v14106_v14  ;;  %v15420_v14 = vld [vmem:[#allocation48_spill] sm:$0xff] }
 0x66c   :  { %12526 = vmatpush1.bf16.msra.mxu1 %v14109_v20  ;;  %v15421_v20 = vmax.f32 %v15420_v14, 0.0 }
 0x66d   :  { %12528 = vmatprep.subr.bf16.mxu1 %v14112_v23 }
 0x670   :  { %12530 = vmatpush1.bf16.msra.mxu1 %v14115_v33  ;;  %v15422_v33 = vld [vmem:[#allocation28_spill] sm:$0xff] }
 0x671   :  { %12532 = vmatprep.subr.bf16.mxu1 %v14118_v34  ;;  %v15423_v34 = vld [vmem:[#allocation49_spill] sm:$0xff] }
 0x674   :  { %12534 = vmatpush1.bf16.msra.mxu1 %v14121_v11  ;;  %v15424_v11 = vmax.f32 %v15423_v34, 0.0 }
 0x675   :  { %v6173_v49 = vpop.f32.mrb[24].mxu0  ;;  %12536 = vmatprep.subr.bf16.mxu1 %v14124_v46 }
 0x676   :  { %v6175_v9 = vpop.f32.mrb[25].mxu0 }
 0x678   :  { %12538 = vmatpush1.bf16.msra.mxu1 %v14127_v30 }
 0x679   :  { %12540 = vmatprep.subr.bf16.mxu1 %v14130_v2 }
 0x67a   :  { %v6244_v37 = vpop.f32.mrb[24].mxu1 }
 0x67b   :  { %v13243_v26 = vadd.f32 %v6244_v37, %v6173_v49  ;;  %v6246_v60 = vpop.f32.mrb[25].mxu1 }
 0x67c   :  { %v13244_v1 = vadd.f32 %v6246_v60, %v6175_v9  ;;  %12542 = vmatpush1.bf16.msra.mxu1 %v14133_v10  ;;  %v15425_v10 = vld [vmem:[#allocation29_spill] sm:$0xff]  ;;  %v15430_v9 = vld [vmem:[#allocation34_spill] sm:$0xff] }
 0x67d   :  { %v6672_v55 = vmul.f32 0.5, %v13243_v26  ;;  %12544 = vmatprep.subr.bf16.mxu1 %v14136_v12 }
 0x67e   :  { %v6673_v5 = vmul.f32 0.5, %v13244_v1  ;;  %v15431_v1 = vld [vmem:[#allocation35_spill] sm:$0xff] }
 0x67f   :  { %v6680_v6 = vrot.slane %v6672_v55, %v14204_v35  ;;  %v15432_v55 = vld [vmem:[#allocation36_spill] sm:$0xff] }
 0x680   :  { %v6684_v13 = vrot.slane %v6673_v5, %v14204_v35  ;;  %12546 = vmatpush1.bf16.msra.mxu1 %v14139_v24  ;;  %v15426_v24 = vld [vmem:[#allocation30_spill] sm:$0xff] }
 0x681   :  { %v14794_v23 = vsub.f32 %v15421_v20, %v6680_v6  ;;  %12548 = vmatprep.subr.bf16.mxu1 %v15422_v33  ;;  %v15434_v20 = vld [vmem:[#allocation38_spill] sm:$0xff] }
 0x682   :  { %v14799_v46 = vsub.f32 %v15424_v11, %v6684_v13  ;;  %v15433_v13 = vld [vmem:[#allocation37_spill] sm:$0xff]  ;;  %v15435_v11 = vld [vmem:[#allocation50_spill] sm:$0xff] }
 0x683   :  { %v6702_v30 = vmul.f32 %v14794_v23, %v14794_v23 }
 0x684   :  { %v6703_v2 = vmul.f32 %v14799_v46, %v14799_v46  ;;  %12550 = vmatpush1.bf16.msra.mxu1 %v15425_v10  ;;  %v15438_v10 = vld [vmem:[#allocation54_spill] sm:$0xff] }
 0x685   :  { %v6707_v12 = vsel %vm5635_vm2, %v6702_v30, 0.0  ;;  %12552 = vmatprep.subr.bf16.mxu1 %v15426_v24  ;;  %v15436_v30 = vld [vmem:[#allocation51_spill] sm:$0xff] }
 0x686   :  { %v6708_v19 = vrot.slane %v6707_v12, 4  ;;  %v6714_v58 = vsel %vm5635_vm2, %v6703_v2, 0.0  ;;  %v15437_v2 = vld [vmem:[#allocation52_spill] sm:$0xff] }
 0x687   :  { %v6715_v4 = vrot.slane %v6714_v58, 4 }
 0x688   :  { %v6709_v57 = vadd.f32 %v6708_v19, %v6707_v12  ;;  %12554 = vmatpush1.bf16.msra.mxu1 %v15427_v47  ;;  %v15441_v12 = vld [vmem:[#allocation58_spill] sm:$0xff]  ;;  %v15448_v19 = vld [vmem:[#allocation65_spill] sm:$0xff]  ;;  %v15463_v47 = vld [vmem:[#allocation79_spill] sm:$0xff] }
 0x689   :  { %12556 = vmatprep.subr.bf16.mxu1 %v15428_v38  ;;  %v6716_v50 = vadd.f32 %v6715_v4, %v6714_v58  ;;  %v15458_v58 = vld [vmem:[#allocation108_spill] sm:$0xff] }
 0x68a   :  { %v6710_v29 = vrot.slane %v6709_v57, 2  ;;  %v15459_v4 = vld [vmem:[#allocation76_spill] sm:$0xff] }
 0x68b   :  { %v6717_v3 = vrot.slane %v6716_v50, 2  ;;  %v15466_v38 = vld [vmem:[#allocation112_spill] sm:$0xff] }
 0x68c   :  { %12558 = vmatpush1.bf16.msra.mxu1 %v15429_v41  ;;  %v6711_v49 = vadd.f32 %v6710_v29, %v6709_v57  ;;  %v15462_v57 = vld [vmem:[#allocation110_spill] sm:$0xff]  ;;  %v15470_v41 = vld [vmem:[#allocation84_spill] sm:$0xff] }
 0x68d   :  { %12560 = vmatprep.subr.bf16.mxu1 %v15430_v9  ;;  %v6718_v37 = vadd.f32 %v6717_v3, %v6716_v50  ;;  %v15467_v50 = vld [vmem:[#allocation81_spill] sm:$0xff]  ;;  %v15468_v29 = vld [vmem:[#allocation82_spill] sm:$0xff] }
 0x68e   :  { %v6712_v26 = vrot.slane %v6711_v49, 1  ;;  %v15469_v3 = vld [vmem:[#allocation113_spill] sm:$0xff]  ;;  %v15472_v9 = vld [vmem:[#allocation114_spill] sm:$0xff] }
 0x68f   :  { %v6719_v60 = vrot.slane %v6718_v37, 1 }
 0x690   :  { %12562 = vmatpush1.bf16.msra.mxu1 %v15431_v1  ;;  %v14817_v6 = vadd.f32 %v6712_v26, %v6711_v49  ;;  %v15471_v49 = vld [vmem:[#allocation85_spill] sm:$0xff]  ;;  %v15474_v26 = vld [vmem:[#allocation86_spill] sm:$0xff] }
 0x691   :  { %12564 = vmatprep.subr.bf16.mxu1 %v15432_v55  ;;  %v14815_v5 = vadd.f32 %v6719_v60, %v6718_v37  ;;  %v15473_v37 = vld [vmem:[#allocation115_spill] sm:$0xff] }
 0x692   :  { %v15475_v60 = vld [vmem:[#allocation39_spill] sm:$0xff] }
 0x693   :  { %6809 = vmatprep.mubr.f32.mxu1 %v14815_v5  ;;  %7022 = vmatprep.mubr.f32.mxu0 %v14815_v5 }
 0x694   :  { %12566 = vmatpush1.bf16.msra.mxu1 %v15433_v13  ;;  %7023 = vmatmul.mubr.f32.vlgmr.msra.gmra.mrb[30].mxu0 %v14817_v6 }
 0x695   :  { %v9435_v14 = vpop.f32.mrb[26].mxu0  ;;  %12568 = vmatprep.subr.bf16.mxu1 %v15434_v20  ;;  %12714 = vmatpush1.bf16.msra.mxu0 %v14571_v22  ;;  %v15439_v22 = vld [vmem:[#allocation55_spill] sm:$0xff] }
 0x696   :  { %v9436_v33 = vpop.f32.mrb[27].mxu0  ;;  %12716 = vmatprep.subr.bf16.mxu0 %v14575_v21  ;;  %v15440_v21 = vld [vmem:[#allocation56_spill] sm:$0xff] }
 0x697   :  { %v14826_v34 = vadd.f32 %v9436_v33, %v9435_v14  ;;  %6810 = vmatmul.mubr.f32.vlgmr.msra.gmra.mrb[30].mxu1 %v14817_v6  ;;  %v15476_v33 = vld [vmem:[#allocation71_spill] sm:$0xff] }
 0x698   :  { %12570 = vmatpush1.bf16.msra.mxu1 %v15435_v11  ;;  %v15477_v11 = vmax.f32 %v15476_v33, 0.0 }
 0x699   :  { %12572 = vmatprep.subr.bf16.mxu1 %v15436_v30  ;;  %12718 = vmatpush1.bf16.msra.mxu0 %v14581_v31 }
 0x69a   :  { %12720 = vmatprep.subr.bf16.mxu0 %v14584_v25  ;;  %v15442_v25 = vld [vmem:[#allocation59_spill] sm:$0xff] }
 0x69c   :  { %12574 = vmatpush1.bf16.msra.mxu1 %v15437_v2  ;;  %v15478_v2 = vld [vmem:[#allocation57_spill] sm:$0xff] }
 0x69d   :  { %12576 = vmatprep.subr.bf16.mxu1 %v15438_v10  ;;  %12722 = vmatpush1.bf16.msra.mxu0 %v14589_v54  ;;  %v15443_v54 = vld [vmem:[#allocation60_spill] sm:$0xff]  ;;  %v15479_v10 = vmax.f32 %v15478_v2, 0.0 }
 0x69e   :  { %12724 = vmatprep.subr.bf16.mxu0 %v14593_v8  ;;  %v15444_v8 = vld [vmem:[#allocation61_spill] sm:$0xff]  ;;  %v15497_v2 = vld [vmem:[#allocation88_spill] sm:$0xff] }
 0x6a0   :  { %12578 = vmatpush1.bf16.msra.mxu1 %v15439_v22 }
 0x6a1   :  { %12580 = vmatprep.subr.bf16.mxu1 %v15440_v21  ;;  %12726 = vmatpush1.bf16.msra.mxu0 %v14597_v7  ;;  %v15445_v7 = vld [vmem:[#allocation62_spill] sm:$0xff] }
 0x6a2   :  { %12728 = vmatprep.subr.bf16.mxu0 %v14601_v56  ;;  %v15446_v56 = vld [vmem:[#allocation63_spill] sm:$0xff] }
 0x6a4   :  { %12582 = vmatpush1.bf16.msra.mxu1 %v15441_v12 }
 0x6a5   :  { %v14842_v31 = vpop.f32.mrb[28].mxu0  ;;  %12584 = vmatprep.subr.bf16.mxu1 %v15442_v25  ;;  %12730 = vmatpush1.bf16.msra.mxu0 %v14605_v36  ;;  %v15447_v36 = vld [vmem:[#allocation64_spill] sm:$0xff] }
 0x6a6   :  { %v9974_v24 = vpop.f32.mrb[29].mxu0  ;;  %12732 = vmatprep.subr.bf16.mxu0 %v14609_v27  ;;  %v15449_v27 = vld [vmem:[#allocation67_spill] sm:$0xff] }
 0x6a8   :  { %12586 = vmatpush1.bf16.msra.mxu1 %v15443_v54 }
 0x6a9   :  { %12588 = vmatprep.subr.bf16.mxu1 %v15444_v8  ;;  %12734 = vmatpush1.bf16.msra.mxu0 %v14613_v28  ;;  %v15450_v28 = vld [vmem:[#allocation68_spill] sm:$0xff] }
 0x6aa   :  { %12736 = vmatprep.subr.bf16.mxu0 %v14617_v32  ;;  %v15451_v32 = vld [vmem:[#allocation69_spill] sm:$0xff] }
 0x6ac   :  { %12590 = vmatpush1.bf16.msra.mxu1 %v15445_v7 }
 0x6ad   :  { %12592 = vmatprep.subr.bf16.mxu1 %v15446_v56  ;;  %12738 = vmatpush1.bf16.msra.mxu0 %v14621_v48  ;;  %v15452_v48 = vld [vmem:[#allocation70_spill] sm:$0xff] }
 0x6ae   :  { %12740 = vmatprep.subr.bf16.mxu0 %v14625_v18  ;;  %v15453_v18 = vld [vmem:[#allocation72_spill] sm:$0xff] }
 0x6b0   :  { %12594 = vmatpush1.bf16.msra.mxu1 %v15447_v36 }
 0x6b1   :  { %12596 = vmatprep.subr.bf16.mxu1 %v15448_v19  ;;  %12742 = vmatpush1.bf16.msra.mxu0 %v14629_v62  ;;  %v15454_v62 = vld [vmem:[#allocation73_spill] sm:$0xff] }
 0x6b2   :  { %12744 = vmatprep.subr.bf16.mxu0 %v14633_v45  ;;  %v15455_v45 = vld [vmem:[#allocation74_spill] sm:$0xff] }
 0x6b4   :  { %12598 = vmatpush1.bf16.msra.mxu1 %v15449_v27 }
 0x6b5   :  { %12600 = vmatprep.subr.bf16.mxu1 %v15450_v28  ;;  %12746 = vmatpush1.bf16.msra.mxu0 %v14637_v44  ;;  %v15456_v44 = vld [vmem:[#allocation75_spill] sm:$0xff] }
 0x6b6   :  { %12748 = vmatprep.subr.bf16.mxu0 %v14641_v43  ;;  %v15457_v43 = vld [vmem:[#allocation107_spill] sm:$0xff] }
 0x6b8   :  { %12602 = vmatpush1.bf16.msra.mxu1 %v15451_v32 }
 0x6b9   :  { %12604 = vmatprep.subr.bf16.mxu1 %v15452_v48  ;;  %12750 = vmatpush1.bf16.msra.mxu0 %v14645_v16  ;;  %v15460_v16 = vld [vmem:[#allocation77_spill] sm:$0xff] }
 0x6ba   :  { %12752 = vmatprep.subr.bf16.mxu0 %v14649_v53  ;;  %v15461_v53 = vld [vmem:[#allocation109_spill] sm:$0xff] }
 0x6bc   :  { %12606 = vmatpush1.bf16.msra.mxu1 %v15453_v18 }
 0x6bd   :  { %12608 = vmatprep.subr.bf16.mxu1 %v15454_v62  ;;  %12754 = vmatpush1.bf16.msra.mxu0 %v14653_v42  ;;  %v15464_v42 = vld [vmem:[#allocation80_spill] sm:$0xff] }
 0x6be   :  { %12756 = vmatprep.subr.bf16.mxu0 %v14657_v52  ;;  %v15465_v52 = vld [vmem:[#allocation111_spill] sm:$0xff] }
 0x6c0   :  { %12610 = vmatpush1.bf16.msra.mxu1 %v15455_v45  ;;  %v15480_v45 = vld [vmem:[#allocation40_spill] sm:$0xff] }
 0x6c1   :  { %12612 = vmatprep.subr.bf16.mxu1 %v15456_v44  ;;  %12758 = vmatpush1.bf16.msra.mxu0 %v15457_v43  ;;  %v15481_v44 = vld [vmem:[#allocation116_spill] sm:$0xff]  ;;  %v15482_v43 = vld [vmem:[#allocation41_spill] sm:$0xff] }
 0x6c2   :  { %12760 = vmatprep.subr.bf16.mxu0 %v15458_v58  ;;  %v15483_v58 = vld [vmem:[#allocation117_spill] sm:$0xff] }
 0x6c4   :  { %12614 = vmatpush1.bf16.msra.mxu1 %v15459_v4  ;;  %v15484_v4 = vmov 0.0  }
 0x6c5   :  { %12616 = vmatprep.subr.bf16.mxu1 %v15460_v16  ;;  %12762 = vmatpush1.bf16.msra.mxu0 %v15461_v53  ;;  %v15485_v16 = vld [vmem:[#allocation42_spill] sm:$0xff] }
 0x6c6   :  { %12764 = vmatprep.subr.bf16.mxu0 %v15462_v57  ;;  %v15486_v53 = vld [vmem:[#allocation118_spill] sm:$0xff]  ;;  %v15487_v57 = vld [vmem:[#allocation43_spill] sm:$0xff] }
 0x6c8   :  { %12618 = vmatpush1.bf16.msra.mxu1 %v15463_v47  ;;  %v15488_v47 = vld [vmem:[#allocation119_spill] sm:$0xff] }
 0x6c9   :  { %12620 = vmatprep.subr.bf16.mxu1 %v15464_v42  ;;  %12766 = vmatpush1.bf16.msra.mxu0 %v15465_v52 }
 0x6ca   :  { %12768 = vmatprep.subr.bf16.mxu0 %v15466_v38  ;;  %v15489_v38 = vld [vmem:[#allocation44_spill] sm:$0xff] }
 0x6cc   :  { %12622 = vmatpush1.bf16.msra.mxu1 %v15467_v50  ;;  %v15490_v50 = vld [vmem:[#allocation120_spill] sm:$0xff] }
 0x6cd   :  { %12624 = vmatprep.subr.bf16.mxu1 %v15468_v29  ;;  %12770 = vmatpush1.bf16.msra.mxu0 %v15469_v3  ;;  %v15491_v3 = vld [vmem:[#allocation45_spill] sm:$0xff] }
 0x6ce   :  { %12772 = vmatprep.subr.bf16.mxu0 %v14683_v17 }
 0x6d0   :  { %12626 = vmatpush1.bf16.msra.mxu1 %v15470_v41 }
 0x6d1   :  { %12628 = vmatprep.subr.bf16.mxu1 %v15471_v49  ;;  %12774 = vmatpush1.bf16.msra.mxu0 %v15472_v9  ;;  %v15492_v49 = vld [vmem:[#allocation46_spill] sm:$0xff] }
 0x6d2   :  { %12776 = vmatprep.subr.bf16.mxu0 %v15473_v37  ;;  %v15493_v37 = vld [vmem:[#allocation87_spill] sm:$0xff] }
 0x6d4   :  { %12630 = vmatpush1.bf16.msra.mxu1 %v15474_v26  ;;  %v15494_v26 = vld [vmem:[#allocation121_spill] sm:$0xff] }
 0x6d5   :  { %12632 = vmatprep.subr.bf16.mxu1 %v15475_v60 }
 0x70a   :  { %v6457_v1 = vpop.f32.mrb[26].mxu1 }
 0x70b   :  { %v6674_v55 = vmul.f32 0.5, %v6457_v1  ;;  %v6459_v13 = vpop.f32.mrb[27].mxu1 }
 0x70c   :  { %v6675_v14 = vmul.f32 0.5, %v6459_v13 }
 0x70d   :  { %v6688_v20 = vrot.slane %v6674_v55, %v14204_v35  ;;  %v15495_v55 = vld [vmem:[#allocation83_spill] sm:$0xff] }
 0x70e   :  { %v6692_v17 = vrot.slane %v6675_v14, %v14204_v35  ;;  %v15496_v13 = vmax.f32 %v15495_v55, 0.0  ;;  %v15525_v55 = vld [vmem:[#allocation106_spill] sm:$0xff] }
 0x70f   :  { %v14897_v30 = vsub.f32 %v15477_v11, %v6688_v20 }
 0x710   :  { %v14901_v22 = vsub.f32 %v15479_v10, %v6692_v17  ;;  %v15498_v10 = vld [vmem:[#allocation122_spill] sm:$0xff] }
 0x711   :  { %v6704_v21 = vmul.f32 %v14897_v30, %v14897_v30 }
 0x712   :  { %v6705_v12 = vmul.f32 %v14901_v22, %v14901_v22 }
 0x713   :  { %v6721_v25 = vsel %vm5635_vm2, %v6704_v21, 0.0  ;;  %v15499_v21 = vld [vmem:[#allocation89_spill] sm:$0xff] }
 0x714   :  { %v6722_v24 = vrot.slane %v6721_v25, 4  ;;  %v6728_v54 = vsel %vm5635_vm2, %v6705_v12, 0.0  ;;  %v15500_v12 = vld [vmem:[#allocation123_spill] sm:$0xff] }
 0x715   :  { %v6729_v8 = vrot.slane %v6728_v54, 4 }
 0x716   :  { %v6723_v7 = vadd.f32 %v6722_v24, %v6721_v25  ;;  %v15501_v25 = vld [vmem:[#allocation90_spill] sm:$0xff]  ;;  %v15502_v24 = vld [vmem:[#allocation124_spill] sm:$0xff] }
 0x717   :  { %v6730_v56 = vadd.f32 %v6729_v8, %v6728_v54  ;;  %v15503_v54 = vld [vmem:[#allocation91_spill] sm:$0xff]  ;;  %v15504_v8 = vld [vmem:[#allocation125_spill] sm:$0xff] }
 0x718   :  { %v6724_v36 = vrot.slane %v6723_v7, 2 }
 0x719   :  { %v6731_v19 = vrot.slane %v6730_v56, 2 }
 0x71a   :  { %v6725_v27 = vadd.f32 %v6724_v36, %v6723_v7  ;;  %v15505_v7 = vld [vmem:[#allocation92_spill] sm:$0xff]  ;;  %v15507_v36 = vld [vmem:[#allocation93_spill] sm:$0xff] }
 0x71b   :  { %v6732_v28 = vadd.f32 %v6731_v19, %v6730_v56  ;;  %v15506_v56 = vld [vmem:[#allocation126_spill] sm:$0xff] }
 0x71c   :  { %v6726_v32 = vrot.slane %v6725_v27, 1  ;;  %v15509_v19 = vld [vmem:[#allocation94_spill] sm:$0xff] }
 0x71d   :  { %v6733_v48 = vrot.slane %v6732_v28, 1 }
 0x71e   :  { %v14909_v62 = vadd.f32 %v6726_v32, %v6725_v27  ;;  %v15510_v27 = vld [vmem:[#allocation128_spill] sm:$0xff]  ;;  %v15512_v32 = vld [vmem:[#allocation129_spill] sm:$0xff] }
 0x71f   :  { %v6734_v18 = vadd.f32 %v6733_v48, %v6732_v28  ;;  %v15511_v28 = vld [vmem:[#allocation95_spill] sm:$0xff]  ;;  %v15513_v48 = vld [vmem:[#allocation96_spill] sm:$0xff] }
 0x721   :  { %6880 = vmatprep.mubr.f32.mxu1 %v6734_v18  ;;  %7093 = vmatprep.mubr.f32.mxu0 %v6734_v18 }
 0x722   :  { %6881 = vmatmul.mubr.f32.vlgmr.msra.gmra.mrb[30].mxu1 %v14909_v62  ;;  %7094 = vmatmul.mubr.f32.vlgmr.msra.gmra.mrb[30].mxu0 %v14909_v62 }
 0x723   :  { %12634 = vmatpush1.bf16.msra.mxu1 %v15480_v45  ;;  %12778 = vmatpush1.bf16.msra.mxu0 %v15481_v44  ;;  %v15515_v45 = vld [vmem:[#allocation97_spill] sm:$0xff]  ;;  %v15516_v44 = vld [vmem:[#allocation98_spill] sm:$0xff] }
 0x724   :  { %12636 = vmatprep.subr.bf16.mxu1 %v15482_v43  ;;  %12780 = vmatprep.subr.bf16.mxu0 %v15483_v58  ;;  %v15517_v43 = vld [vmem:[#allocation99_spill] sm:$0xff] }
 0x725   :  { %6951 = vmatprep.mubr.f32.mxu1 %v15484_v4  ;;  %7164 = vmatprep.mubr.f32.mxu0 %v15484_v4  ;;  %v7502_v58 = vld [vmem:[#allocation11 + $0x80] sm:$0xff] }
 0x727   :  { %12638 = vmatpush1.bf16.msra.mxu1 %v15485_v16  ;;  %12782 = vmatpush1.bf16.msra.mxu0 %v15486_v53  ;;  %v7503_v16 = vld [vmem:[#allocation11 + $0x88] sm:$0xff] }
 0x728   :  { %12640 = vmatprep.subr.bf16.mxu1 %v15487_v57  ;;  %12784 = vmatprep.subr.bf16.mxu0 %v15488_v47  ;;  %v15518_v53 = vld [vmem:[#allocation100_spill] sm:$0xff]  ;;  %v15519_v57 = vld [vmem:[#allocation101_spill] sm:$0xff]  ;;  %v12867_v47 = vpack.c.bf16 %v7503_v16, %v7502_v58 }
 0x729   :  { %v7543_v58 = vld [vmem:[#allocation11 + $0x1c8] sm:$0xff] }
 0x72a   :  { %v9470_v42 = vpop.f32.mrb[28].mxu1 }
 0x72b   :  { %v9471_v52 = vpop.f32.mrb[29].mxu1  ;;  %12642 = vmatpush1.bf16.msra.mxu1 %v15489_v38  ;;  %12786 = vmatpush1.bf16.msra.mxu0 %v15490_v50  ;;  %v7505_v38 = vld [vmem:[#allocation11 + $0x98] sm:$0xff] }
 0x72c   :  { %v9472_v29 = vadd.f32 %v9471_v52, %v9470_v42  ;;  %12644 = vmatprep.subr.bf16.mxu1 %v15491_v3  ;;  %12788 = vmatprep.subr.bf16.mxu0 %v14709_v0  ;;  %v7487_v42 = vld [vmem:[#allocation11 + $0x8] sm:$0xff]  ;;  %v7504_v52 = vld [vmem:[#allocation11 + $0x90] sm:$0xff] }
 0x72d   :  { %v7488_v3 = vld [vmem:[#allocation11 + $0x10] sm:$0xff] }
 0x72e   :  { %v6599_v41 = vadd.f32 %v9472_v29, %v14826_v34  ;;  %v12871_v29 = vpack.c.bf16 %v7505_v38, %v7504_v52  ;;  %v7494_v52 = vld [vmem:[#allocation11 + $0x40] sm:$0xff]  ;;  %v7495_v38 = vld [vmem:[#allocation11 + $0x48] sm:$0xff] }
 0x72f   :  { %12646 = vmatpush1.bf16.msra.mxu1 %v15492_v49  ;;  %12790 = vmatpush1.bf16.msra.mxu0 %v14712_v39  ;;  %v7534_v49 = vld [vmem:[#allocation11 + $0x180] sm:$0xff] }
 0x730   :  { %v6669_v9 = vadd.f32 %v14842_v31, %v6599_v41  ;;  %12792 = vmatprep.subr.bf16.mxu1 %v15493_v37  ;;  %12824 = vmatprep.subr.bf16.mxu0 %v15494_v26  ;;  %v15523_v41 = vld [vmem:[#allocation104_spill] sm:$0xff]  ;;  %v7518_v37 = vld [vmem:[#allocation11 + $0x100] sm:$0xff] }
 0x731   :  { %v7519_v26 = vld [vmem:[#allocation11 + $0x108] sm:$0xff] }
 0x732   :  { %v6676_v60 = vmul.f32 0.5, %v6669_v9  ;;  %v7535_v9 = vld [vmem:[#allocation11 + $0x188] sm:$0xff] }
 0x734   :  { %v6696_v1 = vrot.slane %v6676_v60, %v14204_v35  ;;  %v7536_v60 = vld [vmem:[#allocation11 + $0x190] sm:$0xff] }
 0x736   :  { %v14936_v14 = vsub.f32 %v15496_v13, %v6696_v1  ;;  %v7537_v1 = vld [vmem:[#allocation11 + $0x198] sm:$0xff]  ;;  %v12901_v13 = vpack.c.bf16 %v7519_v26, %v7518_v37 }
 0x738   :  { %v6706_v0 = vmul.f32 %v14936_v14, %v14936_v14 }
 0x73a   :  { %v6735_v34 = vsel %vm5664_vm3, %v6706_v0, 0.0  ;;  %v12903_v0 = vpack.c.bf16 %v7537_v1, %v7536_v60  ;;  %v7546_v60 = vld [vmem:[#allocation11 + $0x1e0] sm:$0xff]  ;;  %v7547_v1 = vld [vmem:[#allocation11 + $0x1e8] sm:$0xff] }
 0x73b   :  { %v6736_v20 = vrot.slane %v6735_v34, 4 }
 0x73d   :  { %v6737_v39 = vadd.f32 %v6736_v20, %v6735_v34  ;;  %v7520_v34 = vld [vmem:[#allocation11 + $0x110] sm:$0xff]  ;;  %v7521_v20 = vld [vmem:[#allocation11 + $0x118] sm:$0xff] }
 0x73f   :  { %v6738_v17 = vrot.slane %v6737_v39, 2 }
 0x741   :  { %v6739_v31 = vadd.f32 %v6738_v17, %v6737_v39  ;;  %v12905_v39 = vpack.c.bf16 %v7521_v20, %v7520_v34  ;;  %v7538_v17 = vld [vmem:[#allocation11 + $0x1a0] sm:$0xff] }
 0x742   :  { %v7530_v34 = vld [vmem:[#allocation11 + $0x160] sm:$0xff] }
 0x743   :  { %v6740_v33 = vrot.slane %v6739_v31, 1 }
 0x745   :  { %v14941_v11 = vadd.f32 %v6740_v33, %v6739_v31  ;;  %v7539_v31 = vld [vmem:[#allocation11 + $0x1a8] sm:$0xff] }
 0x746   :  { %v12907_v33 = vpack.c.bf16 %v7539_v31, %v7538_v17  ;;  %v7498_v17 = vld [vmem:[#allocation11 + $0x60] sm:$0xff]  ;;  %v7499_v31 = vld [vmem:[#allocation11 + $0x68] sm:$0xff] }
 0x747   :  { %8960 = vmatmul.mubr.msk.f32.vlgmr.msra.gmra.mrb[30].mxu1 %vm6032_vm4, %v14941_v11  ;;  %8961 = vmatmul.mubr.msk.f32.vlgmr.msra.gmra.mrb[30].mxu0 %vm6032_vm4, %v14941_v11 }
 0x748   :  { %12794 = vmatpush3.bf16.msra.mxu1 %v15497_v2  ;;  %12826 = vmatpush3.bf16.msra.mxu0 %v15498_v10  ;;  %v7506_v2 = vld [vmem:[#allocation11 + $0xa0] sm:$0xff]  ;;  %v7507_v10 = vld [vmem:[#allocation11 + $0xa8] sm:$0xff] }
 0x749   :  { %7235 = vmatprep.mubr.f32.mxu1 %v14815_v5  ;;  %7305 = vmatprep.mubr.f32.mxu0 %v6734_v18  ;;  %v15508_v5 = vld [vmem:[#allocation127_spill] sm:$0xff]  ;;  %v15514_v18 = vld [vmem:[#allocation130_spill] sm:$0xff] }
 0x74a   :  { %12796 = vmatprep.subr.bf16.mxu1 %v15499_v21  ;;  %12828 = vmatprep.subr.bf16.mxu0 %v15500_v12  ;;  %v7522_v21 = vld [vmem:[#allocation11 + $0x120] sm:$0xff]  ;;  %v12875_v12 = vpack.c.bf16 %v7507_v10, %v7506_v2  ;;  %v12893_v2 = vpack.c.bf16 %v7499_v31, %v7498_v17  ;;  %v7548_v10 = vld [vmem:[#allocation11 + $0x1f0] sm:$0xff]  ;;  %v7551_v17 = vld [vmem:[#allocation11 + $0x208] sm:$0xff] }
 0x74c   :  { %12798 = vmatpush3.bf16.msra.mxu1 %v15501_v25  ;;  %12830 = vmatpush3.bf16.msra.mxu0 %v15502_v24  ;;  %v7523_v25 = vld [vmem:[#allocation11 + $0x128] sm:$0xff]  ;;  %v7490_v24 = vld [vmem:[#allocation11 + $0x20] sm:$0xff] }
 0x74d   :  { %12800 = vmatprep.subr.bf16.mxu1 %v15503_v54  ;;  %12832 = vmatprep.subr.bf16.mxu0 %v15504_v8  ;;  %v7491_v54 = vld [vmem:[#allocation11 + $0x28] sm:$0xff]  ;;  %v12909_v8 = vpack.c.bf16 %v7523_v25, %v7522_v21  ;;  %v7549_v21 = vld [vmem:[#allocation11 + $0x1f8] sm:$0xff] }
 0x74e   :  { %v12927_v25 = vpack.c.bf16 %v7549_v21, %v7548_v10  ;;  %v7790_v21 = vld [vmem:[#allocation11 + $0x2d0] sm:$0xff] }
 0x750   :  { %12802 = vmatpush3.bf16.msra.mxu1 %v15505_v7  ;;  %12834 = vmatpush3.bf16.msra.mxu0 %v15506_v56  ;;  %v12877_v7 = vpack.c.bf16 %v7491_v54, %v7490_v24  ;;  %v7540_v56 = vld [vmem:[#allocation11 + $0x1b0] sm:$0xff]  ;;  %v7517_v24 = vld [vmem:[#allocation11 + $0xf8] sm:$0xff] }
 0x751   :  { %12804 = vmatprep.subr.bf16.mxu1 %v15507_v36  ;;  %12836 = vmatprep.subr.bf16.mxu0 %v15508_v5  ;;  %v7508_v5 = vld [vmem:[#allocation11 + $0xb0] sm:$0xff] }
 0x752   :  { %v7532_v54 = vld [vmem:[#allocation11 + $0x170] sm:$0xff] }
 0x754   :  { %12806 = vmatpush3.bf16.msra.mxu1 %v15509_v19  ;;  %12838 = vmatpush3.bf16.msra.mxu0 %v15510_v27  ;;  %v7509_v19 = vld [vmem:[#allocation11 + $0xb8] sm:$0xff]  ;;  %v7524_v27 = vld [vmem:[#allocation11 + $0x130] sm:$0xff] }
 0x755   :  { %12808 = vmatprep.subr.bf16.mxu1 %v15511_v28  ;;  %12840 = vmatprep.subr.bf16.mxu0 %v15512_v32  ;;  %v12879_v28 = vpack.c.bf16 %v7509_v19, %v7508_v5  ;;  %v7525_v32 = vld [vmem:[#allocation11 + $0x138] sm:$0xff]  ;;  %v7788_v19 = vld [vmem:[#allocation11 + $0x2c0] sm:$0xff] }
 0x758   :  { %12810 = vmatpush3.bf16.msra.mxu1 %v15513_v48  ;;  %12842 = vmatpush3.bf16.msra.mxu0 %v15514_v18  ;;  %v7492_v48 = vld [vmem:[#allocation11 + $0x30] sm:$0xff]  ;;  %v7493_v18 = vld [vmem:[#allocation11 + $0x38] sm:$0xff] }
 0x759   :  { %12812 = vmatprep.subr.bf16.mxu1 %v15515_v45  ;;  %12844 = vmatprep.subr.bf16.mxu0 %v14748_v59  ;;  %v7486_v59 = vld [vmem:[#allocation11] sm:$0xff]  ;;  %v12913_v45 = vpack.c.bf16 %v7525_v32, %v7524_v27  ;;  %v7789_v27 = vld [vmem:[#allocation11 + $0x2c8] sm:$0xff] }
 0x75a   :  { %v12869_v50 = vpack.c.bf16 %v7487_v42, %v7486_v59  ;;  %v7527_v42 = vld [vmem:[#allocation11 + $0x148] sm:$0xff] }
 0x75c   :  { %12814 = vmatpush3.bf16.msra.mxu1 %v15516_v44  ;;  %12846 = vmatpush3.bf16.msra.mxu0 %v14751_v51  ;;  %v15520_v51 = vld [vmem:[#allocation102_spill] sm:$0xff]  ;;  %v12881_v44 = vpack.c.bf16 %v7493_v18, %v7492_v48 }
 0x75d   :  { %12816 = vmatprep.subr.bf16.mxu1 %v15517_v43  ;;  %12848 = vmatprep.subr.bf16.mxu0 %v14754_v63  ;;  %v15521_v63 = vmov 0.0|0.0   ;;  %v7542_v43 = vld [vmem:[#allocation11 + $0x1c0] sm:$0xff] }
 0x75e   :  { %v12915_v16 = vpack.c.bf16 %v7543_v58, %v7542_v43 }
 0x760   :  { %12818 = vmatpush3.bf16.msra.mxu1 %v15518_v53  ;;  %12850 = vmatpush3.bf16.msra.mxu0 %v14757_v15  ;;  %v7489_v15 = vld [vmem:[#allocation11 + $0x18] sm:$0xff]  ;;  %v7510_v53 = vld [vmem:[#allocation11 + $0xc0] sm:$0xff] }
 0x761   :  { %12820 = vmatprep.subr.bf16.mxu1 %v15519_v57  ;;  %12852 = vmatprep.subr.bf16.mxu0 %v14760_v40  ;;  %v15522_v40 = vld [vmem:[#allocation103_spill] sm:$0xff] }
 0x762   :  { %v7511_v57 = vld [vmem:[#allocation11 + $0xc8] sm:$0xff] }
 0x763   :  { %v12883_v59 = vpack.c.bf16 %v7511_v57, %v7510_v53 }
 0x764   :  { %12822 = vmatpush3.bf16.msra.mxu1 %v15520_v51  ;;  %12854 = vmatpush3.bf16.msra.mxu0 %v14763_v61  ;;  %v12873_v61 = vpack.c.bf16 %v7489_v15, %v7488_v3  ;;  %v7545_v3 = vld [vmem:[#allocation11 + $0x1d8] sm:$0xff] }
 0x765   :  { %12855 = vmatprep.subr.bf16.mxu1 %v15521_v63  ;;  %12868 = vmatprep.subr.bf16.mxu0 %v12867_v47  ;;  %v7526_v47 = vld [vmem:[#allocation11 + $0x140] sm:$0xff] }
 0x766   :  { %v12917_v51 = vpack.c.bf16 %v7527_v42, %v7526_v47  ;;  %v14993_v42 = vld [vmem:[#allocation7] sm:$0x1f] }
 0x767   :  { %7236 = vmatmul.mubr.f32.vlgmr.msra.gmra.mrb[32].mxu1 %v14817_v6  ;;  %7306 = vmatmul.mubr.f32.vlgmr.msra.gmra.mrb[32].mxu0 %v14909_v62  ;;  %v15524_v6 = vld [vmem:[#allocation105_spill] sm:$0xff]  ;;  %v12899_v62 = vpack.c.bf16 %v7535_v9, %v7534_v49 }
 0x768   :  { %12857 = vmatpush3.bf16.msra.mxu1 %v15522_v40  ;;  %9991 = vmatprep.mubr.msk.f32.mxu1 %vm13637_vm1, %v15484_v4  ;;  %v7512_v40 = vld [vmem:[#allocation11 + $0xd0] sm:$0xff]  ;;  %v7529_v9 = vld [vmem:[#allocation11 + $0x158] sm:$0xff] }
 0x769   :  { %12858 = vmatprep.subr.bf16.mxu1 %v15521_v63  ;;  %12870 = vmatpush3.bf16.msra.mxu0 %v12869_v50  ;;  %v12885_v50 = vpack.c.bf16 %v7495_v38, %v7494_v52 }
 0x76a   :  { %12872 = vmatprep.subr.bf16.mxu0 %v12871_v29  ;;  %v7544_v29 = vld [vmem:[#allocation11 + $0x1d0] sm:$0xff] }
 0x76b   :  { %v12919_v15 = vpack.c.bf16 %v7545_v3, %v7544_v29  ;;  %v14997_v3 = vld [vmem:[#allocation8] sm:$0x1f] }
 0x76c   :  { %12860 = vmatpush3.bf16.msra.mxu1 %v15523_v41  ;;  %v7528_v41 = vld [vmem:[#allocation11 + $0x150] sm:$0xff] }
 0x76d   :  { %12861 = vmatprep.subr.bf16.mxu1 %v15521_v63  ;;  %12874 = vmatpush3.bf16.msra.mxu0 %v12873_v61  ;;  %v7513_v61 = vld [vmem:[#allocation11 + $0xd8] sm:$0xff]  ;;  %v12921_v37 = vpack.c.bf16 %v7529_v9, %v7528_v41  ;;  %v15526_v41 = vld [vmem:[#allocation47_spill] sm:$0xff] }
 0x76e   :  { %12876 = vmatprep.subr.bf16.mxu0 %v12875_v12  ;;  %v12887_v49 = vpack.c.bf16 %v7513_v61, %v7512_v40  ;;  %v7516_v12 = vld [vmem:[#allocation11 + $0xf0] sm:$0xff] }
 0x770   :  { %12863 = vmatpush3.bf16.msra.mxu1 %v15524_v6  ;;  %v7496_v6 = vld [vmem:[#allocation11 + $0x50] sm:$0xff] }
 0x771   :  { %12864 = vmatprep.subr.bf16.mxu1 %v15521_v63  ;;  %12878 = vmatpush3.bf16.msra.mxu0 %v12877_v7  ;;  %v12895_v7 = vpack.c.bf16 %v7517_v24, %v7516_v12  ;;  %v7791_v12 = vld [vmem:[#allocation11 + $0x2d8] sm:$0xff] }
 0x772   :  { %12880 = vmatprep.subr.bf16.mxu0 %v12879_v28  ;;  %v12943_v28 = vpack.c.bf16 %v7789_v27, %v7788_v19  ;;  %v7775_v19 = vld [vmem:[#allocation11 + $0x258] sm:$0xff]  ;;  %v7792_v27 = vld [vmem:[#allocation11 + $0x2e0] sm:$0xff] }
 0x774   :  { %12866 = vmatpush3.bf16.msra.mxu1 %v15525_v55  ;;  %v12923_v55 = vpack.c.bf16 %v7547_v1, %v7546_v60 }
 0x775   :  { %12900 = vmatprep.subr.bf16.mxu1 %v12899_v62  ;;  %12882 = vmatpush3.bf16.msra.mxu0 %v12881_v44  ;;  %v7497_v62 = vld [vmem:[#allocation11 + $0x58] sm:$0xff] }
 0x776   :  { %12884 = vmatprep.subr.bf16.mxu0 %v12883_v59  ;;  %v12889_v26 = vpack.c.bf16 %v7497_v62, %v7496_v6  ;;  %v15527_v6 = vld [vmem:[#allocation66_spill] sm:$0xff] }
 0x777   :  { %9992 = vmatmul.mubr.msk.f32.vlgmr.msra.gmra.mrb[34].mxu1 %vm6032_vm4, %v14941_v11  ;;  %v7541_v11 = vld [vmem:[#allocation11 + $0x1b8] sm:$0xff]  ;;  %v7433_v62 = vrot.slane %v14993_v42, %v15527_v6 }
 0x778   :  { %12902 = vmatpush3.bf16.msra.mxu1 %v12901_v13  ;;  %v12911_v36 = vpack.c.bf16 %v7541_v11, %v7540_v56  ;;  %v7514_v13 = vld [vmem:[#allocation11 + $0xe0] sm:$0xff]  ;;  %v7500_v11 = vld [vmem:[#allocation11 + $0x70] sm:$0xff] }
 0x779   :  { %12904 = vmatprep.subr.bf16.mxu1 %v12903_v0  ;;  %12886 = vmatpush3.bf16.msra.mxu0 %v12885_v50  ;;  %v7515_v0 = vld [vmem:[#allocation11 + $0xe8] sm:$0xff] }
 0x77a   :  { %12888 = vmatprep.subr.bf16.mxu0 %v12887_v49  ;;  %v12891_v20 = vpack.c.bf16 %v7515_v0, %v7514_v13  ;;  %v7429_v49 = vrot.slane %v14993_v42, %v15526_v41  ;;  %v7460_v13 = vrot.slane %v14997_v3, %v15526_v41 }
 0x77c   :  { %12906 = vmatpush3.bf16.msra.mxu1 %v12905_v39  ;;  %v7531_v39 = vld [vmem:[#allocation11 + $0x168] sm:$0xff] }
 0x77d   :  { %12908 = vmatprep.subr.bf16.mxu1 %v12907_v33  ;;  %12890 = vmatpush3.bf16.msra.mxu0 %v12889_v26  ;;  %v12925_v33 = vpack.c.bf16 %v7531_v39, %v7530_v34  ;;  %v15528_v26 = vld [vmem:[#allocation53_spill] sm:$0xff]  ;;  %v7550_v39 = vld [vmem:[#allocation11 + $0x200] sm:$0xff] }
 0x77e   :  { %12892 = vmatprep.subr.bf16.mxu0 %v12891_v20  ;;  %v7437_v60 = vrot.slane %v14993_v42, %v15528_v26  ;;  %v7456_v20 = vrot.slane %v14997_v3, %v14204_v35 }
 0x780   :  { %12910 = vmatpush3.bf16.msra.mxu1 %v12909_v8  ;;  %v7533_v8 = vld [vmem:[#allocation11 + $0x178] sm:$0xff] }
 0x781   :  { %12912 = vmatprep.subr.bf16.mxu1 %v12911_v36  ;;  %12894 = vmatpush3.bf16.msra.mxu0 %v12893_v2  ;;  %v12929_v56 = vpack.c.bf16 %v7533_v8, %v7532_v54  ;;  %v7501_v36 = vld [vmem:[#allocation11 + $0x78] sm:$0xff]  ;;  %v7773_v2 = vld [vmem:[#allocation11 + $0x248] sm:$0xff] }
 0x782   :  { %v12897_v5 = vpack.c.bf16 %v7501_v36, %v7500_v11  ;;  %12896 = vmatprep.subr.bf16.mxu0 %v12895_v7  ;;  %v7552_v7 = vld [vmem:[#allocation11 + $0x210] sm:$0xff]  ;;  %v12947_v36 = vpack.c.bf16 %v7791_v12, %v7790_v21  ;;  %v7784_v21 = vld [vmem:[#allocation11 + $0x2a0] sm:$0xff]  ;;  %v7785_v12 = vld [vmem:[#allocation11 + $0x2a8] sm:$0xff] }
 0x784   :  { %12914 = vmatpush3.bf16.msra.mxu1 %v12913_v45 }
 0x785   :  { %12916 = vmatprep.subr.bf16.mxu1 %v12915_v16  ;;  %12898 = vmatpush3.bf16.msra.mxu0 %v12897_v5  ;;  %v7774_v5 = vld [vmem:[#allocation11 + $0x250] sm:$0xff] }
 0x786   :  { %12931 = vmatprep.subr.bf16.mxu0 %v15521_v63 }
 0x788   :  { %12918 = vmatpush3.bf16.msra.mxu1 %v12917_v51 }
 0x789   :  { %12920 = vmatprep.subr.bf16.mxu1 %v12919_v15  ;;  %v7425_v15 = vrot.slane %v14993_v42, %v14204_v35 }
 0x78c   :  { %12922 = vmatpush3.bf16.msra.mxu1 %v12921_v37 }
 0x78d   :  { %12924 = vmatprep.subr.bf16.mxu1 %v12923_v55 }
 0x790   :  { %12926 = vmatpush3.bf16.msra.mxu1 %v12925_v33 }
 0x791   :  { %12928 = vmatprep.subr.bf16.mxu1 %v12927_v25  ;;  %v12932_v25 = vpack.c.bf16 %v7551_v17, %v7550_v39 }
 0x794   :  { %12930 = vmatpush3.bf16.msra.mxu1 %v12929_v56  ;;  %v7553_v56 = vld [vmem:[#allocation11 + $0x218] sm:$0xff] }
 0x795   :  { %12944 = vmatprep.subr.bf16.mxu1 %v12943_v28  ;;  %v7793_v28 = vld [vmem:[#allocation11 + $0x2e8] sm:$0xff] }
 0x81a   :  { %v6953_v32 = vpop.f32.mrb[30].mxu1  ;;  %v7166_v48 = vpop.f32.mrb[30].mxu0 }
 0x81b   :  { %v7381_v18 = vmul.f32 0.5, %v6953_v32  ;;  %v7383_v45 = vmul.f32 0.5, %v7166_v48  ;;  %v6955_v44 = vpop.f32.mrb[31].mxu1  ;;  %v7168_v43 = vpop.f32.mrb[31].mxu0  ;;  %v12935_v32 = vpack.c.bf16 %v7553_v56, %v7552_v7  ;;  %v12949_v48 = vpack.c.bf16 %v7775_v19, %v7774_v5 }
 0x81c   :  { %v7382_v58 = vmul.f32 0.5, %v6955_v44  ;;  %v7384_v16 = vmul.f32 0.5, %v7168_v43  ;;  %v12951_v44 = vpack.c.bf16 %v7793_v28, %v7792_v27  ;;  %v7776_v43 = vld [vmem:[#allocation11 + $0x260] sm:$0xff]  ;;  %v12969_v5 = vpack.c.bf16 %v7785_v12, %v7784_v21  ;;  %v7786_v27 = vld [vmem:[#allocation11 + $0x2b0] sm:$0xff]  ;;  %v7787_v28 = vld [vmem:[#allocation11 + $0x2b8] sm:$0xff] }
 0x81d   :  { %v7386_v53 = vadd.f32 1e-05, %v7381_v18  ;;  %v7388_v57 = vadd.f32 1e-05, %v7383_v45  ;;  %v7554_v18 = vld [vmem:[#allocation11 + $0x220] sm:$0xff]  ;;  %v7555_v45 = vld [vmem:[#allocation11 + $0x228] sm:$0xff] }
 0x81e   :  { %v7387_v47 = vadd.f32 1e-05, %v7382_v58  ;;  %v7389_v59 = vadd.f32 1e-05, %v7384_v16  ;;  %v7777_v58 = vld [vmem:[#allocation11 + $0x268] sm:$0xff]  ;;  %v7794_v16 = vld [vmem:[#allocation11 + $0x2f0] sm:$0xff] }
 0x81f   :  { %13329 = vrsqrt.f32 %v7386_v53  ;;  %v7795_v53 = vld [vmem:[#allocation11 + $0x2f8] sm:$0xff]  ;;  %v8109_v21 = vld [vmem:[#allocation11 + $0x628] sm:$0xff] }
 0x820   :  { %13331 = vrsqrt.f32 %v7388_v57  ;;  %v12955_v41 = vpack.c.bf16 %v7795_v53, %v7794_v16  ;;  %v7839_v16 = vld [vmem:[#allocation11 + $0x458] sm:$0xff] }
 0x821   :  { %13333 = vrsqrt.f32 %v7387_v47 }
 0x822   :  { %13335 = vrsqrt.f32 %v7389_v59  ;;  %v12938_v59 = vpack.c.bf16 %v7555_v45, %v7554_v18  ;;  %v12973_v18 = vpack.c.bf16 %v7787_v28, %v7786_v27  ;;  %v7836_v45 = vld [vmem:[#allocation11 + $0x440] sm:$0xff]  ;;  %v8093_v27 = vld [vmem:[#allocation11 + $0x5a8] sm:$0xff] }
 0x829   :  { %v13330_v52 = vpop.eup %13329 }
 0x82a   :  { %v13332_v38 = vpop.eup %13331  ;;  %v7399_v51 = vrot.slane %v13330_v52, %v14204_v35 }
 0x82b   :  { %v13334_v50 = vpop.eup %13333  ;;  %v7407_v29 = vrot.slane %v13332_v38, %v14204_v35 }
 0x82c   :  { %v13336_v40 = vpop.eup %13335  ;;  %v7403_v61 = vrot.slane %v13334_v50, %v14204_v35  ;;  %v7416_v9 = vmul.f32 %v7399_v51, %v14794_v23  ;;  %v7468_v23 = vrot.slane %v14997_v3, %v15528_v26  ;;  %v12953_v51 = vpack.c.bf16 %v7777_v58, %v7776_v43  ;;  %v7778_v50 = vld [vmem:[#allocation11 + $0x270] sm:$0xff] }
 0x82d   :  { %v7411_v37 = vrot.slane %v13336_v40, %v14204_v35  ;;  %v7418_v1 = vmul.f32 %v7407_v29, %v14897_v30  ;;  %v7464_v30 = vrot.slane %v14997_v3, %v15527_v6  ;;  %v7556_v29 = vld [vmem:[#allocation11 + $0x230] sm:$0xff]  ;;  %v7821_v6 = vld [vmem:[#allocation11 + $0x3c8] sm:$0xff] }
 0x82e   :  { %v7417_v55 = vmul.f32 %v7403_v61, %v14799_v46  ;;  %v7447_v34 = vmul.f32 %v7425_v15, %v7416_v9  ;;  %v7772_v46 = vld [vmem:[#allocation11 + $0x240] sm:$0xff]  ;;  %v7557_v15 = vld [vmem:[#allocation11 + $0x238] sm:$0xff]  ;;  %v7838_v58 = vld [vmem:[#allocation11 + $0x450] sm:$0xff] }
 0x82f   :  { %v7419_v0 = vmul.f32 %v7411_v37, %v14901_v22  ;;  %v7449_v33 = vmul.f32 %v7433_v62, %v7418_v1  ;;  %v12945_v8 = vpack.c.bf16 %v7773_v2, %v7772_v46  ;;  %v7820_v9 = vld [vmem:[#allocation11 + $0x3c0] sm:$0xff]  ;;  %v7797_v37 = vld [vmem:[#allocation11 + $0x308] sm:$0xff]  ;;  %v13011_v53 = vpack.c.bf16 %v7839_v16, %v7838_v58 }
 0x830   :  { %v7448_v31 = vmul.f32 %v7429_v49, %v7417_v55  ;;  %v15025_v54 = vadd.f32 %v7456_v20, %v7447_v34  ;;  %v7779_v49 = vld [vmem:[#allocation11 + $0x278] sm:$0xff]  ;;  %v7796_v62 = vld [vmem:[#allocation11 + $0x300] sm:$0xff]  ;;  %v12975_v55 = vpack.c.bf16 %v7821_v6, %v7820_v9  ;;  %v7798_v34 = vld [vmem:[#allocation11 + $0x310] sm:$0xff] }
 0x831   :  { %v7450_v10 = vmul.f32 %v7437_v60, %v7419_v0  ;;  %v15028_v11 = vadd.f32 %v7464_v30, %v7449_v33  ;;  %v12941_v60 = vpack.c.bf16 %v7557_v15, %v7556_v29  ;;  %v12957_v1 = vpack.c.bf16 %v7779_v49, %v7778_v50  ;;  %v7780_v0 = vld [vmem:[#allocation11 + $0x280] sm:$0xff]  ;;  %v7799_v20 = vld [vmem:[#allocation11 + $0x318] sm:$0xff]  ;;  %v7801_v46 = vld [vmem:[#allocation11 + $0x328] sm:$0xff] }
 0x832   :  { %v15021_v22 = vadd.f32 %v7460_v13, %v7448_v31  ;;  %v12959_v13 = vpack.c.bf16 %v7797_v37, %v7796_v62  ;;  %v12963_v17 = vpack.c.bf16 %v7799_v20, %v7798_v34  ;;  %v7782_v31 = vld [vmem:[#allocation11 + $0x290] sm:$0xff]  ;;  %v7783_v33 = vld [vmem:[#allocation11 + $0x298] sm:$0xff]  ;;  %v7800_v30 = vld [vmem:[#allocation11 + $0x320] sm:$0xff] }
 0x833   :  { %v15023_v24 = vadd.f32 %v7468_v23, %v7450_v10  ;;  %v7781_v23 = vld [vmem:[#allocation11 + $0x288] sm:$0xff]  ;;  %v12965_v2 = vpack.c.bf16 %v7783_v33, %v7782_v31  ;;  %v12967_v10 = vpack.c.bf16 %v7801_v46, %v7800_v30  ;;  %v7843_v50 = vld [vmem:[#allocation11 + $0x478] sm:$0xff]  ;;  %v7804_v9 = vld [vmem:[#allocation11 + $0x340] sm:$0xff] }
 0x834   :  { %7625 = vmatprep.mubr.f32.mxu0 %v15021_v22  ;;  %v12961_v39 = vpack.c.bf16 %v7781_v23, %v7780_v0  ;;  %v15529_v29 = vld [vmem:[#allocation78_spill] sm:$0xff]  ;;  %v7805_v6 = vld [vmem:[#allocation11 + $0x348] sm:$0xff]  ;;  %v7822_v37 = vld [vmem:[#allocation11 + $0x3d0] sm:$0xff] }
 0x835   :  { %7695 = vmatprep.mubr.f32.mxu1 %v15023_v24  ;;  %7626 = vmatmul.mubr.f32.vlgmr.msra.gmra.mrb[34].mxu0 %v15025_v54  ;;  %v7441_v15 = vrot.slane %v14993_v42, %v15529_v29  ;;  %v7472_v49 = vrot.slane %v14997_v3, %v15529_v29  ;;  %v12977_v42 = vpack.c.bf16 %v7805_v6, %v7804_v9  ;;  %v8106_v0 = vld [vmem:[#allocation11 + $0x610] sm:$0xff]  ;;  %v8107_v23 = vld [vmem:[#allocation11 + $0x618] sm:$0xff]  ;;  %v7825_v31 = vld [vmem:[#allocation11 + $0x3e8] sm:$0xff] }
 0x836   :  { %7696 = vmatmul.mubr.f32.vlgmr.msra.gmra.mrb[36].mxu1 %v15028_v11  ;;  %12933 = vmatpush3.bf16.msra.mxu0 %v12932_v25  ;;  %v7802_v25 = vld [vmem:[#allocation11 + $0x330] sm:$0xff]  ;;  %v7807_v3 = vld [vmem:[#allocation11 + $0x358] sm:$0xff]  ;;  %v13055_v33 = vpack.c.bf16 %v8107_v23, %v8106_v0  ;;  %v7828_v58 = vld [vmem:[#allocation11 + $0x400] sm:$0xff] }
 0x837   :  { %12946 = vmatpush3.bf16.msra.mxu1 %v12945_v8  ;;  %7908 = vmatprep.mubr.f32.mxu1 %v15021_v22  ;;  %v7803_v8 = vld [vmem:[#allocation11 + $0x338] sm:$0xff]  ;;  %v7806_v20 = vld [vmem:[#allocation11 + $0x350] sm:$0xff]  ;;  %v7829_v16 = vld [vmem:[#allocation11 + $0x408] sm:$0xff] }
 0x838   :  { %12948 = vmatprep.subr.bf16.mxu1 %v12947_v36  ;;  %12934 = vmatprep.subr.bf16.mxu0 %v15521_v63  ;;  %v12971_v19 = vpack.c.bf16 %v7803_v8, %v7802_v25  ;;  %v8090_v30 = vld [vmem:[#allocation11 + $0x590] sm:$0xff]  ;;  %v8091_v46 = vld [vmem:[#allocation11 + $0x598] sm:$0xff]  ;;  %v7808_v25 = vld [vmem:[#allocation11 + $0x360] sm:$0xff] }
 0x839   :  { %10010 = vmatprep.mubr.msk.f32.mxu0 %vm13637_vm1, %v15484_v4  ;;  %v7809_v8 = vld [vmem:[#allocation11 + $0x368] sm:$0xff]  ;;  %v8098_v23 = vld [vmem:[#allocation11 + $0x5d0] sm:$0xff] }
 0x83a   :  { %v9514_v57 = vpop.f32.mrb[32].mxu1  ;;  %v9549_v47 = vpop.f32.mrb[32].mxu0  ;;  %12936 = vmatpush3.bf16.msra.mxu0 %v12935_v32  ;;  %v12985_v28 = vpack.c.bf16 %v7809_v8, %v7808_v25  ;;  %v7813_v29 = vld [vmem:[#allocation11 + $0x388] sm:$0xff]  ;;  %v8118_v8 = vld [vmem:[#allocation11 + $0x670] sm:$0xff] }
 0x83b   :  { %12950 = vmatpush3.bf16.msra.mxu1 %v12949_v48  ;;  %v9515_v52 = vpop.f32.mrb[33].mxu1  ;;  %v9550_v38 = vpop.f32.mrb[33].mxu0  ;;  %12937 = vmatprep.subr.bf16.mxu0 %v15521_v63  ;;  %v8097_v9 = vld [vmem:[#allocation11 + $0x5c8] sm:$0xff] }
 0x83c   :  { %v9516_v40 = vadd.f32 %v9515_v52, %v9514_v57  ;;  %v9551_v61 = vadd.f32 %v9550_v38, %v9549_v47  ;;  %12952 = vmatprep.subr.bf16.mxu1 %v12951_v44  ;;  %v7837_v44 = vld [vmem:[#allocation11 + $0x448] sm:$0xff]  ;;  %v7840_v57 = vld [vmem:[#allocation11 + $0x460] sm:$0xff] }
 0x83d   :  { %v13008_v43 = vpack.c.bf16 %v7837_v44, %v7836_v45  ;;  %v7841_v47 = vld [vmem:[#allocation11 + $0x468] sm:$0xff]  ;;  %v7810_v45 = vld [vmem:[#allocation11 + $0x370] sm:$0xff]  ;;  %v7811_v44 = vld [vmem:[#allocation11 + $0x378] sm:$0xff] }
 0x83e   :  { %v7308_v26 = vadd.f32 %v9551_v61, %v9516_v40  ;;  %12939 = vmatpush3.bf16.msra.mxu0 %v12938_v59  ;;  %v13014_v52 = vpack.c.bf16 %v7841_v47, %v7840_v57  ;;  %v8104_v40 = vld [vmem:[#allocation11 + $0x600] sm:$0xff]  ;;  %v8105_v61 = vld [vmem:[#allocation11 + $0x608] sm:$0xff]  ;;  %v8094_v57 = vld [vmem:[#allocation11 + $0x5b0] sm:$0xff] }
 0x83f   :  { %12954 = vmatpush3.bf16.msra.mxu1 %v12953_v51  ;;  %12940 = vmatprep.subr.bf16.mxu0 %v15521_v63  ;;  %v7842_v51 = vld [vmem:[#allocation11 + $0x470] sm:$0xff]  ;;  %v8095_v47 = vld [vmem:[#allocation11 + $0x5b8] sm:$0xff] }
 0x840   :  { %12956 = vmatprep.subr.bf16.mxu1 %v12955_v41  ;;  %v13017_v62 = vpack.c.bf16 %v7843_v50, %v7842_v51  ;;  %v12991_v51 = vpack.c.bf16 %v7829_v16, %v7828_v58  ;;  %v7812_v50 = vld [vmem:[#allocation11 + $0x380] sm:$0xff] }
 0x841   :  { %v12993_v6 = vpack.c.bf16 %v7813_v29, %v7812_v50  ;;  %v8056_v16 = vld [vmem:[#allocation11 + $0x480] sm:$0xff]  ;;  %v8357_v29 = vld [vmem:[#allocation11 + $0x750] sm:$0xff] }
 0x842   :  { %12942 = vmatpush3.bf16.msra.mxu0 %v12941_v60 }
 0x843   :  { %12958 = vmatpush3.bf16.msra.mxu1 %v12957_v1  ;;  %12976 = vmatprep.subr.bf16.mxu0 %v12975_v55  ;;  %v13051_v1 = vpack.c.bf16 %v8105_v61, %v8104_v40  ;;  %v8088_v55 = vld [vmem:[#allocation11 + $0x580] sm:$0xff]  ;;  %v7830_v40 = vld [vmem:[#allocation11 + $0x410] sm:$0xff]  ;;  %v7831_v61 = vld [vmem:[#allocation11 + $0x418] sm:$0xff] }
 0x844   :  { %12960 = vmatprep.subr.bf16.mxu1 %v12959_v13  ;;  %v8089_v13 = vld [vmem:[#allocation11 + $0x588] sm:$0xff] }
 0x847   :  { %12962 = vmatpush3.bf16.msra.mxu1 %v12961_v39  ;;  %v13053_v39 = vpack.c.bf16 %v8089_v13, %v8088_v55  ;;  %v7832_v13 = vld [vmem:[#allocation11 + $0x420] sm:$0xff] }
 0x848   :  { %12964 = vmatprep.subr.bf16.mxu1 %v12963_v17  ;;  %v7824_v17 = vld [vmem:[#allocation11 + $0x3e0] sm:$0xff] }
 0x849   :  { %v12983_v12 = vpack.c.bf16 %v7825_v31, %v7824_v17  ;;  %v7816_v31 = vld [vmem:[#allocation11 + $0x3a0] sm:$0xff] }
 0x84a   :  { %v7377_v7 = vpop.f32.mrb[34].mxu1 }
 0x84b   :  { %12966 = vmatpush3.bf16.msra.mxu1 %v12965_v2  ;;  %v7378_v56 = vadd.f32 %v7377_v7, %v7308_v26  ;;  %v9993_v36 = vpop.f32.mrb[35].mxu1  ;;  %v7823_v26 = vld [vmem:[#allocation11 + $0x3d8] sm:$0xff]  ;;  %v12981_v2 = vpack.c.bf16 %v7807_v3, %v7806_v20  ;;  %v13057_v7 = vpack.c.bf16 %v8091_v46, %v8090_v30  ;;  %v8116_v3 = vld [vmem:[#allocation11 + $0x660] sm:$0xff]  ;;  %v7834_v46 = vld [vmem:[#allocation11 + $0x430] sm:$0xff] }
 0x84c   :  { %12968 = vmatprep.subr.bf16.mxu1 %v12967_v10  ;;  %v8108_v10 = vld [vmem:[#allocation11 + $0x620] sm:$0xff]  ;;  %v7827_v36 = vld [vmem:[#allocation11 + $0x3f8] sm:$0xff] }
 0x84d   :  { %v7385_v32 = vmul.f32 0.5, %v7378_v56  ;;  %v7826_v56 = vld [vmem:[#allocation11 + $0x3f0] sm:$0xff] }
 0x84f   :  { %v7390_v48 = vadd.f32 1e-05, %v7385_v32  ;;  %12970 = vmatpush3.bf16.msra.mxu1 %v12969_v5  ;;  %v13059_v5 = vpack.c.bf16 %v8109_v21, %v8108_v10  ;;  %v8110_v32 = vld [vmem:[#allocation11 + $0x630] sm:$0xff]  ;;  %v8100_v21 = vld [vmem:[#allocation11 + $0x5e0] sm:$0xff] }
 0x850   :  { %12972 = vmatprep.subr.bf16.mxu1 %v12971_v19  ;;  %v8092_v19 = vld [vmem:[#allocation11 + $0x5a0] sm:$0xff] }
 0x851   :  { %13337 = vrsqrt.f32 %v7390_v48  ;;  %v8111_v48 = vld [vmem:[#allocation11 + $0x638] sm:$0xff] }
 0x853   :  { %12974 = vmatpush3.bf16.msra.mxu1 %v12973_v18  ;;  %v12987_v18 = vpack.c.bf16 %v7827_v36, %v7826_v56  ;;  %v7818_v36 = vld [vmem:[#allocation11 + $0x3b0] sm:$0xff] }
 0x854   :  { %13007 = vmatprep.subr.bf16.mxu1 %v15521_v63 }
 0x856   :  { %7909 = vmatmul.mubr.f32.vlgmr.msra.gmra.mrb[38].mxu1 %v15025_v54 }
 0x857   :  { %13009 = vmatpush3.bf16.msra.mxu1 %v13008_v43  ;;  %10029 = vmatprep.mubr.msk.f32.mxu1 %vm13637_vm1, %v15484_v4  ;;  %v13061_v43 = vpack.c.bf16 %v8093_v27, %v8092_v19  ;;  %v8072_v27 = vld [vmem:[#allocation11 + $0x500] sm:$0xff] }
 0x858   :  { %13010 = vmatprep.subr.bf16.mxu1 %v15521_v63 }
 0x85b   :  { %v13338_v59 = vpop.eup %13337  ;;  %13012 = vmatpush3.bf16.msra.mxu1 %v13011_v53  ;;  %v13063_v53 = vpack.c.bf16 %v8111_v48, %v8110_v32  ;;  %v8102_v48 = vld [vmem:[#allocation11 + $0x5f0] sm:$0xff] }
 0x85c   :  { %v7415_v38 = vrot.slane %v13338_v59, %v14204_v35  ;;  %13013 = vmatprep.subr.bf16.mxu1 %v15521_v63  ;;  %v12989_v59 = vpack.c.bf16 %v7811_v44, %v7810_v45  ;;  %v8355_v44 = vld [vmem:[#allocation11 + $0x740] sm:$0xff] }
 0x85e   :  { %v7420_v41 = vmul.f32 %v7415_v38, %v14936_v14  ;;  %v12979_v14 = vpack.c.bf16 %v7823_v26, %v7822_v37  ;;  %v8113_v38 = vld [vmem:[#allocation11 + $0x648] sm:$0xff]  ;;  %v8115_v37 = vld [vmem:[#allocation11 + $0x658] sm:$0xff]  ;;  %v12995_v26 = vpack.c.bf16 %v7831_v61, %v7830_v40  ;;  %v8058_v61 = vld [vmem:[#allocation11 + $0x490] sm:$0xff] }
 0x85f   :  { %13015 = vmatpush3.bf16.msra.mxu1 %v13014_v52  ;;  %v8112_v52 = vld [vmem:[#allocation11 + $0x640] sm:$0xff] }
 0x860   :  { %13016 = vmatprep.subr.bf16.mxu1 %v15521_v63  ;;  %v7451_v60 = vmul.f32 %v7441_v15, %v7420_v41  ;;  %v13065_v15 = vpack.c.bf16 %v8095_v47, %v8094_v57  ;;  %v13067_v41 = vpack.c.bf16 %v8113_v38, %v8112_v52  ;;  %v8074_v47 = vld [vmem:[#allocation11 + $0x510] sm:$0xff]  ;;  %v8339_v38 = vld [vmem:[#allocation11 + $0x6c0] sm:$0xff] }
 0x862   :  { %v15052_v34 = vadd.f32 %v7472_v49, %v7451_v60  ;;  %v8096_v49 = vld [vmem:[#allocation11 + $0x5c0] sm:$0xff]  ;;  %v7814_v60 = vld [vmem:[#allocation11 + $0x390] sm:$0xff] }
 0x863   :  { %13018 = vmatpush3.bf16.msra.mxu1 %v13017_v62  ;;  %v8114_v62 = vld [vmem:[#allocation11 + $0x650] sm:$0xff]  ;;  %v13069_v55 = vpack.c.bf16 %v8097_v9, %v8096_v49  ;;  %v8076_v9 = vld [vmem:[#allocation11 + $0x520] sm:$0xff] }
 0x864   :  { %10011 = vmatmul.mubr.msk.f32.vlgmr.msra.gmra.mrb[36].mxu0 %vm6032_vm4, %v15052_v34  ;;  %13052 = vmatprep.subr.bf16.mxu1 %v13051_v1  ;;  %v7815_v1 = vld [vmem:[#allocation11 + $0x398] sm:$0xff]  ;;  %v13071_v0 = vpack.c.bf16 %v8115_v37, %v8114_v62  ;;  %v8341_v37 = vld [vmem:[#allocation11 + $0x6d0] sm:$0xff] }
 0x865   :  { %12978 = vmatpush3.bf16.msra.mxu0 %v12977_v42  ;;  %7978 = vmatprep.mubr.f32.mxu0 %v15023_v24  ;;  %v7833_v42 = vld [vmem:[#allocation11 + $0x428] sm:$0xff]  ;;  %v12997_v20 = vpack.c.bf16 %v7815_v1, %v7814_v60  ;;  %v8359_v1 = vld [vmem:[#allocation11 + $0x760] sm:$0xff] }
 0x866   :  { %10030 = vmatmul.mubr.msk.f32.vlgmr.msra.gmra.mrb[40].mxu1 %vm6032_vm4, %v15052_v34  ;;  %12980 = vmatprep.subr.bf16.mxu0 %v12979_v14  ;;  %v8099_v14 = vld [vmem:[#allocation11 + $0x5d8] sm:$0xff]  ;;  %v12999_v17 = vpack.c.bf16 %v7833_v42, %v7832_v13  ;;  %v8060_v42 = vld [vmem:[#allocation11 + $0x4a0] sm:$0xff] }
 0x867   :  { %13054 = vmatpush3.bf16.msra.mxu1 %v13053_v39  ;;  %8262 = vmatprep.mubr.f32.mxu1 %v15023_v24  ;;  %v8117_v39 = vld [vmem:[#allocation11 + $0x668] sm:$0xff]  ;;  %v13073_v30 = vpack.c.bf16 %v8099_v14, %v8098_v23  ;;  %v8078_v14 = vld [vmem:[#allocation11 + $0x530] sm:$0xff] }
 0x868   :  { %13056 = vmatprep.subr.bf16.mxu1 %v13055_v33  ;;  %v7817_v33 = vld [vmem:[#allocation11 + $0x3a8] sm:$0xff]  ;;  %v13075_v10 = vpack.c.bf16 %v8117_v39, %v8116_v3  ;;  %v8343_v39 = vld [vmem:[#allocation11 + $0x6e0] sm:$0xff] }
 0x869   :  { %12982 = vmatpush3.bf16.msra.mxu0 %v12981_v2  ;;  %v7835_v2 = vld [vmem:[#allocation11 + $0x438] sm:$0xff]  ;;  %v13001_v25 = vpack.c.bf16 %v7817_v33, %v7816_v31  ;;  %v8361_v33 = vld [vmem:[#allocation11 + $0x770] sm:$0xff] }
 0x86a   :  { %12984 = vmatprep.subr.bf16.mxu0 %v12983_v12  ;;  %v8101_v12 = vld [vmem:[#allocation11 + $0x5e8] sm:$0xff]  ;;  %v13003_v56 = vpack.c.bf16 %v7835_v2, %v7834_v46  ;;  %v8062_v2 = vld [vmem:[#allocation11 + $0x4b0] sm:$0xff] }
 0x86b   :  { %13058 = vmatpush3.bf16.msra.mxu1 %v13057_v7  ;;  %v8119_v7 = vld [vmem:[#allocation11 + $0x678] sm:$0xff]  ;;  %v13077_v19 = vpack.c.bf16 %v8101_v12, %v8100_v21  ;;  %v8080_v12 = vld [vmem:[#allocation11 + $0x540] sm:$0xff] }
 0x86c   :  { %13060 = vmatprep.subr.bf16.mxu1 %v13059_v5  ;;  %v7819_v5 = vld [vmem:[#allocation11 + $0x3b8] sm:$0xff]  ;;  %v13079_v32 = vpack.c.bf16 %v8119_v7, %v8118_v8  ;;  %v8345_v8 = vld [vmem:[#allocation11 + $0x6f0] sm:$0xff] }
 0x86d   :  { %12986 = vmatpush3.bf16.msra.mxu0 %v12985_v28  ;;  %v8073_v28 = vld [vmem:[#allocation11 + $0x508] sm:$0xff]  ;;  %v13005_v45 = vpack.c.bf16 %v7819_v5, %v7818_v36  ;;  %v8346_v7 = vld [vmem:[#allocation11 + $0x6f8] sm:$0xff]  ;;  %v8363_v36 = vld [vmem:[#allocation11 + $0x780] sm:$0xff] }
 0x86e   :  { %12988 = vmatprep.subr.bf16.mxu0 %v12987_v18  ;;  %v8103_v18 = vld [vmem:[#allocation11 + $0x5f8] sm:$0xff]  ;;  %v13019_v58 = vpack.c.bf16 %v8073_v28, %v8072_v27  ;;  %v8364_v5 = vld [vmem:[#allocation11 + $0x788] sm:$0xff]  ;;  %v8064_v27 = vld [vmem:[#allocation11 + $0x4c0] sm:$0xff] }
 0x86f   :  { %13062 = vmatpush3.bf16.msra.mxu1 %v13061_v43  ;;  %v8356_v43 = vld [vmem:[#allocation11 + $0x748] sm:$0xff]  ;;  %v13081_v57 = vpack.c.bf16 %v8103_v18, %v8102_v48  ;;  %v8082_v48 = vld [vmem:[#allocation11 + $0x550] sm:$0xff]  ;;  %v8083_v18 = vld [vmem:[#allocation11 + $0x558] sm:$0xff] }
 0x870   :  { %13064 = vmatprep.subr.bf16.mxu1 %v13063_v53  ;;  %v8057_v53 = vld [vmem:[#allocation11 + $0x488] sm:$0xff]  ;;  %v13095_v52 = vpack.c.bf16 %v8356_v43, %v8355_v44  ;;  %v8347_v44 = vld [vmem:[#allocation11 + $0x700] sm:$0xff] }
 0x871   :  { %12990 = vmatpush3.bf16.msra.mxu0 %v12989_v59  ;;  %v8075_v59 = vld [vmem:[#allocation11 + $0x518] sm:$0xff]  ;;  %v13021_v50 = vpack.c.bf16 %v8057_v53, %v8056_v16  ;;  %v8065_v28 = vld [vmem:[#allocation11 + $0x4c8] sm:$0xff]  ;;  %v8365_v16 = vld [vmem:[#allocation11 + $0x790] sm:$0xff] }
 0x872   :  { %12992 = vmatprep.subr.bf16.mxu0 %v12991_v51  ;;  %v8340_v51 = vld [vmem:[#allocation11 + $0x6c8] sm:$0xff]  ;;  %v13023_v40 = vpack.c.bf16 %v8075_v59, %v8074_v47  ;;  %v8366_v53 = vld [vmem:[#allocation11 + $0x798] sm:$0xff]  ;;  %v8066_v47 = vld [vmem:[#allocation11 + $0x4d0] sm:$0xff] }
 0x873   :  { %13066 = vmatpush3.bf16.msra.mxu1 %v13065_v15  ;;  %v8358_v15 = vld [vmem:[#allocation11 + $0x758] sm:$0xff]  ;;  %v13097_v49 = vpack.c.bf16 %v8340_v51, %v8339_v38  ;;  %v8348_v43 = vld [vmem:[#allocation11 + $0x708] sm:$0xff]  ;;  %v8084_v38 = vld [vmem:[#allocation11 + $0x560] sm:$0xff] }
 0x874   :  { %13068 = vmatprep.subr.bf16.mxu1 %v13067_v41  ;;  %v8059_v41 = vld [vmem:[#allocation11 + $0x498] sm:$0xff]  ;;  %v13099_v62 = vpack.c.bf16 %v8358_v15, %v8357_v29  ;;  %v8085_v51 = vld [vmem:[#allocation11 + $0x568] sm:$0xff]  ;;  %v8349_v29 = vld [vmem:[#allocation11 + $0x710] sm:$0xff] }
 0x875   :  { %12994 = vmatpush3.bf16.msra.mxu0 %v12993_v6  ;;  %v8077_v6 = vld [vmem:[#allocation11 + $0x528] sm:$0xff]  ;;  %v13025_v60 = vpack.c.bf16 %v8059_v41, %v8058_v61  ;;  %v8067_v59 = vld [vmem:[#allocation11 + $0x4d8] sm:$0xff]  ;;  %v8367_v61 = vld [vmem:[#allocation11 + $0x7a0] sm:$0xff] }
 0x876   :  { %12996 = vmatprep.subr.bf16.mxu0 %v12995_v26  ;;  %v8342_v26 = vld [vmem:[#allocation11 + $0x6d8] sm:$0xff]  ;;  %v13027_v13 = vpack.c.bf16 %v8077_v6, %v8076_v9  ;;  %v8368_v41 = vld [vmem:[#allocation11 + $0x7a8] sm:$0xff]  ;;  %v8068_v9 = vld [vmem:[#allocation11 + $0x4e0] sm:$0xff] }
 0x877   :  { %13070 = vmatpush3.bf16.msra.mxu1 %v13069_v55  ;;  %v8360_v55 = vld [vmem:[#allocation11 + $0x768] sm:$0xff]  ;;  %v13101_v23 = vpack.c.bf16 %v8342_v26, %v8341_v37  ;;  %v8350_v15 = vld [vmem:[#allocation11 + $0x718] sm:$0xff]  ;;  %v8086_v37 = vld [vmem:[#allocation11 + $0x570] sm:$0xff] }
 0x878   :  { %13072 = vmatprep.subr.bf16.mxu1 %v13071_v0  ;;  %v8061_v0 = vld [vmem:[#allocation11 + $0x4a8] sm:$0xff]  ;;  %v13103_v3 = vpack.c.bf16 %v8360_v55, %v8359_v1  ;;  %v8087_v26 = vld [vmem:[#allocation11 + $0x578] sm:$0xff]  ;;  %v8351_v1 = vld [vmem:[#allocation11 + $0x720] sm:$0xff] }
 0x879   :  { %12998 = vmatpush3.bf16.msra.mxu0 %v12997_v20  ;;  %v8079_v20 = vld [vmem:[#allocation11 + $0x538] sm:$0xff]  ;;  %v13029_v31 = vpack.c.bf16 %v8061_v0, %v8060_v42  ;;  %v8069_v6 = vld [vmem:[#allocation11 + $0x4e8] sm:$0xff]  ;;  %v8369_v42 = vld [vmem:[#allocation11 + $0x7b0] sm:$0xff] }
 0x87a   :  { %13000 = vmatprep.subr.bf16.mxu0 %v12999_v17  ;;  %v8344_v17 = vld [vmem:[#allocation11 + $0x6e8] sm:$0xff]  ;;  %v13031_v46 = vpack.c.bf16 %v8079_v20, %v8078_v14  ;;  %v8370_v0 = vld [vmem:[#allocation11 + $0x7b8] sm:$0xff]  ;;  %v8070_v14 = vld [vmem:[#allocation11 + $0x4f0] sm:$0xff] }
 0x87b   :  { %13074 = vmatpush3.bf16.msra.mxu1 %v13073_v30  ;;  %v8362_v30 = vld [vmem:[#allocation11 + $0x778] sm:$0xff]  ;;  %v13105_v21 = vpack.c.bf16 %v8344_v17, %v8343_v39  ;;  %v8352_v55 = vld [vmem:[#allocation11 + $0x728] sm:$0xff]  ;;  %v13123_v39 = vpack.c.bf16 %v8370_v0, %v8369_v42  ;;  %v8353_v17 = vld [vmem:[#allocation11 + $0x730] sm:$0xff] }
 0x87c   :  { %13076 = vmatprep.subr.bf16.mxu1 %v13075_v10  ;;  %v8063_v10 = vld [vmem:[#allocation11 + $0x4b8] sm:$0xff]  ;;  %v8396_v42 = vld [vmem:[#allocation11 + $0x888] sm:$0xff] }
 0x87d   :  { %13002 = vmatpush3.bf16.msra.mxu0 %v13001_v25  ;;  %v8081_v25 = vld [vmem:[#allocation11 + $0x548] sm:$0xff]  ;;  %v8071_v20 = vld [vmem:[#allocation11 + $0x4f8] sm:$0xff] }
 0x87e   :  { %13004 = vmatprep.subr.bf16.mxu0 %v13003_v56  ;;  %v13033_v56 = vpack.c.bf16 %v8063_v10, %v8062_v2  ;;  %v8403_v10 = vld [vmem:[#allocation11 + $0x8c0] sm:$0xff] }
 0x87f   :  { %13078 = vmatpush3.bf16.msra.mxu1 %v13077_v19  ;;  %v13035_v19 = vpack.c.bf16 %v8081_v25, %v8080_v12  ;;  %v8122_v25 = vld [vmem:[#allocation11 + $0x690] sm:$0xff] }
 0x880   :  { %13080 = vmatprep.subr.bf16.mxu1 %v13079_v32  ;;  %v13109_v32 = vpack.c.bf16 %v8346_v7, %v8345_v8  ;;  %v8405_v7 = vld [vmem:[#allocation11 + $0x8d0] sm:$0xff] }
 0x881   :  { %13006 = vmatpush3.bf16.msra.mxu0 %v13005_v45  ;;  %v13111_v45 = vpack.c.bf16 %v8364_v5, %v8363_v36  ;;  %v8124_v5 = vld [vmem:[#allocation11 + $0x6a0] sm:$0xff] }
 0x882   :  { %13020 = vmatprep.subr.bf16.mxu0 %v13019_v58  ;;  %v13037_v58 = vpack.c.bf16 %v8065_v28, %v8064_v27  ;;  %v8407_v28 = vld [vmem:[#allocation11 + $0x8e0] sm:$0xff] }
 0x883   :  { %13082 = vmatpush3.bf16.msra.mxu1 %v13081_v57  ;;  %v13039_v57 = vpack.c.bf16 %v8083_v18, %v8082_v48  ;;  %v8126_v18 = vld [vmem:[#allocation11 + $0x6b0] sm:$0xff] }
 0x884   :  { %7979 = vmatmul.mubr.f32.vlgmr.msra.gmra.mrb[38].mxu0 %v15028_v11  ;;  %13096 = vmatprep.subr.bf16.mxu1 %v13095_v52  ;;  %v13113_v52 = vpack.c.bf16 %v8348_v43, %v8347_v44  ;;  %v8387_v44 = vld [vmem:[#allocation11 + $0x840] sm:$0xff]  ;;  %v8388_v43 = vld [vmem:[#allocation11 + $0x848] sm:$0xff] }
 0x885   :  { %13022 = vmatpush3.bf16.msra.mxu0 %v13021_v50  ;;  %8192 = vmatprep.mubr.f32.mxu0 %v15021_v22  ;;  %v13115_v50 = vpack.c.bf16 %v8366_v53, %v8365_v16  ;;  %v8410_v16 = vld [vmem:[#allocation11 + $0x8f8] sm:$0xff] }
 0x886   :  { %8263 = vmatmul.mubr.f32.vlgmr.msra.gmra.mrb[42].mxu1 %v15028_v11  ;;  %13024 = vmatprep.subr.bf16.mxu0 %v13023_v40  ;;  %v13041_v40 = vpack.c.bf16 %v8067_v59, %v8066_v47  ;;  %v8371_v47 = vld [vmem:[#allocation11 + $0x7c0] sm:$0xff]  ;;  %v8372_v59 = vld [vmem:[#allocation11 + $0x7c8] sm:$0xff] }
 0x887   :  { %13098 = vmatpush3.bf16.msra.mxu1 %v13097_v49  ;;  %8475 = vmatprep.mubr.f32.mxu1 %v15021_v22  ;;  %v13107_v22 = vpack.c.bf16 %v8362_v30, %v8361_v33  ;;  %v13043_v49 = vpack.c.bf16 %v8085_v51, %v8084_v38  ;;  %v13049_v33 = vpack.c.bf16 %v8071_v20, %v8070_v14  ;;  %v8120_v30 = vld [vmem:[#allocation11 + $0x680] sm:$0xff]  ;;  %v8389_v38 = vld [vmem:[#allocation11 + $0x850] sm:$0xff]  ;;  %v8390_v51 = vld [vmem:[#allocation11 + $0x858] sm:$0xff] }
 0x888   :  { %13100 = vmatprep.subr.bf16.mxu1 %v13099_v62  ;;  %v13117_v62 = vpack.c.bf16 %v8350_v15, %v8349_v29  ;;  %v13131_v29 = vpack.c.bf16 %v8390_v51, %v8389_v38  ;;  %v8373_v15 = vld [vmem:[#allocation11 + $0x7d0] sm:$0xff]  ;;  %v8380_v14 = vld [vmem:[#allocation11 + $0x808] sm:$0xff] }
 0x889   :  { %13026 = vmatpush3.bf16.msra.mxu0 %v13025_v60  ;;  %v13119_v60 = vpack.c.bf16 %v8368_v41, %v8367_v61  ;;  %v8391_v61 = vld [vmem:[#allocation11 + $0x860] sm:$0xff]  ;;  %v8392_v41 = vld [vmem:[#allocation11 + $0x868] sm:$0xff]  ;;  %v8397_v20 = vld [vmem:[#allocation11 + $0x890] sm:$0xff] }
 0x88a   :  { %13028 = vmatprep.subr.bf16.mxu0 %v13027_v13  ;;  %v13045_v13 = vpack.c.bf16 %v8069_v6, %v8068_v9  ;;  %v13135_v9 = vpack.c.bf16 %v8392_v41, %v8391_v61  ;;  %v8375_v6 = vld [vmem:[#allocation11 + $0x7e0] sm:$0xff]  ;;  %v8644_v51 = vld [vmem:[#allocation17 + $0x30] sm:$0xff] }
 0x88b   :  { %13102 = vmatpush3.bf16.msra.mxu1 %v13101_v23  ;;  %v13047_v23 = vpack.c.bf16 %v8087_v26, %v8086_v37  ;;  %v8393_v37 = vld [vmem:[#allocation11 + $0x870] sm:$0xff]  ;;  %v8394_v26 = vld [vmem:[#allocation11 + $0x878] sm:$0xff] }
 0x88c   :  { %13104 = vmatprep.subr.bf16.mxu1 %v13103_v3  ;;  %v13121_v3 = vpack.c.bf16 %v8352_v55, %v8351_v1  ;;  %v13139_v1 = vpack.c.bf16 %v8394_v26, %v8393_v37  ;;  %v8377_v55 = vld [vmem:[#allocation11 + $0x7f0] sm:$0xff] }
 0x88d   :  { %13030 = vmatpush3.bf16.msra.mxu0 %v13029_v31  ;;  %v8354_v31 = vld [vmem:[#allocation11 + $0x738] sm:$0xff]  ;;  %v8651_v37 = vld [vmem:[#allocation17 + $0x68] sm:$0xff] }
 0x88e   :  { %13032 = vmatprep.subr.bf16.mxu0 %v13031_v46  ;;  %v8121_v46 = vld [vmem:[#allocation11 + $0x688] sm:$0xff]  ;;  %v13125_v2 = vpack.c.bf16 %v8354_v31, %v8353_v17  ;;  %v8381_v31 = vld [vmem:[#allocation11 + $0x810] sm:$0xff] }
 0x88f   :  { %13106 = vmatpush3.bf16.msra.mxu1 %v13105_v21  ;;  %v8404_v21 = vld [vmem:[#allocation11 + $0x8c8] sm:$0xff]  ;;  %v13084_v12 = vpack.c.bf16 %v8121_v46, %v8120_v30  ;;  %v8399_v30 = vld [vmem:[#allocation11 + $0x8a0] sm:$0xff]  ;;  %v8648_v41 = vld [vmem:[#allocation17 + $0x50] sm:$0xff] }
 0x890   :  { %13108 = vmatprep.subr.bf16.mxu1 %v13107_v22  ;;  %v8123_v22 = vld [vmem:[#allocation11 + $0x698] sm:$0xff]  ;;  %v13160_v8 = vpack.c.bf16 %v8404_v21, %v8403_v10  ;;  %v8400_v46 = vld [vmem:[#allocation11 + $0x8a8] sm:$0xff]  ;;  %v8383_v21 = vld [vmem:[#allocation11 + $0x820] sm:$0xff] }
 0x891   :  { %13034 = vmatpush3.bf16.msra.mxu0 %v13033_v56  ;;  %v8406_v56 = vld [vmem:[#allocation11 + $0x8d8] sm:$0xff]  ;;  %v13087_v36 = vpack.c.bf16 %v8123_v22, %v8122_v25  ;;  %v13151_v10 = vpack.c.bf16 %v8400_v46, %v8399_v30  ;;  %v8401_v25 = vld [vmem:[#allocation11 + $0x8b0] sm:$0xff] }
 0x892   :  { %13036 = vmatprep.subr.bf16.mxu0 %v13035_v19  ;;  %v8125_v19 = vld [vmem:[#allocation11 + $0x6a8] sm:$0xff]  ;;  %v13163_v27 = vpack.c.bf16 %v8406_v56, %v8405_v7  ;;  %v8402_v22 = vld [vmem:[#allocation11 + $0x8b8] sm:$0xff]  ;;  %v8385_v56 = vld [vmem:[#allocation11 + $0x830] sm:$0xff] }
 0x893   :  { %13110 = vmatpush3.bf16.msra.mxu1 %v13109_v32  ;;  %v8408_v32 = vld [vmem:[#allocation11 + $0x8e8] sm:$0xff]  ;;  %v13090_v48 = vpack.c.bf16 %v8125_v19, %v8124_v5  ;;  %v13155_v7 = vpack.c.bf16 %v8402_v22, %v8401_v25 }
 0x894   :  { %13112 = vmatprep.subr.bf16.mxu1 %v13111_v45  ;;  %v8127_v45 = vld [vmem:[#allocation11 + $0x6b8] sm:$0xff] }
 0x895   :  { %13038 = vmatpush3.bf16.msra.mxu0 %v13037_v58  ;;  %v8409_v58 = vld [vmem:[#allocation11 + $0x8f0] sm:$0xff]  ;;  %v13093_v53 = vpack.c.bf16 %v8127_v45, %v8126_v18  ;;  %v8638_v18 = vld [vmem:[#allocation17] sm:$0xff] }
 0x896   :  { %13040 = vmatprep.subr.bf16.mxu0 %v13039_v57  ;;  %v13127_v57 = vpack.c.bf16 %v8388_v43, %v8387_v44  ;;  %v8639_v45 = vld [vmem:[#allocation17 + $0x8] sm:$0xff] }
 0x897   :  { %13114 = vmatpush3.bf16.msra.mxu1 %v13113_v52  ;;  %v13169_v52 = vpack.c.bf16 %v8410_v16, %v8409_v58  ;;  %v13172_v44 = vpack.c.bf16 %v8639_v45, %v8638_v18  ;;  %v8641_v58 = vld [vmem:[#allocation17 + $0x18] sm:$0xff] }
 0x898   :  { %13116 = vmatprep.subr.bf16.mxu1 %v13115_v50  ;;  %v13129_v50 = vpack.c.bf16 %v8372_v59, %v8371_v47  ;;  %v8642_v59 = vld [vmem:[#allocation17 + $0x20] sm:$0xff]  ;;  %v8967_v18 = vld [vmem:[#allocation13] ss:$0 sm:$0xff] }
 0x899   :  { %13042 = vmatpush3.bf16.msra.mxu0 %v13041_v40  ;;  %v8374_v40 = vld [vmem:[#allocation11 + $0x7d8] sm:$0xff] }
 0x89a   :  { %13044 = vmatprep.subr.bf16.mxu0 %v13043_v49  ;;  %v13133_v49 = vpack.c.bf16 %v8374_v40, %v8373_v15  ;;  %v8646_v15 = vld [vmem:[#allocation17 + $0x40] sm:$0xff]  ;;  %v8647_v40 = vld [vmem:[#allocation17 + $0x48] sm:$0xff] }
 0x89b   :  { %13118 = vmatpush3.bf16.msra.mxu1 %v13117_v62  ;;  %v8376_v62 = vld [vmem:[#allocation11 + $0x7e8] sm:$0xff]  ;;  %v13184_v61 = vpack.c.bf16 %v8647_v40, %v8646_v15 }
 0x89c   :  { %13120 = vmatprep.subr.bf16.mxu1 %v13119_v60  ;;  %v13137_v60 = vpack.c.bf16 %v8376_v62, %v8375_v6  ;;  %v8650_v62 = vld [vmem:[#allocation17 + $0x60] sm:$0xff] }
 0x89d   :  { %13046 = vmatpush3.bf16.msra.mxu0 %v13045_v13  ;;  %v8378_v13 = vld [vmem:[#allocation11 + $0x7f8] sm:$0xff] }
 0x89e   :  { %13048 = vmatprep.subr.bf16.mxu0 %v13047_v23  ;;  %v13141_v0 = vpack.c.bf16 %v8378_v13, %v8377_v55  ;;  %v8379_v23 = vld [vmem:[#allocation11 + $0x800] sm:$0xff]  ;;  %v13190_v13 = vpack.c.bf16 %v8651_v37, %v8650_v62 }
 0x89f   :  { %13122 = vmatpush3.bf16.msra.mxu1 %v13121_v3  ;;  %v8398_v3 = vld [vmem:[#allocation11 + $0x898] sm:$0xff] }
 0x8a0   :  { %13124 = vmatprep.subr.bf16.mxu1 %v13123_v39  ;;  %v13145_v39 = vpack.c.bf16 %v8380_v14, %v8379_v23  ;;  %v13147_v17 = vpack.c.bf16 %v8398_v3, %v8397_v20 }
 0x8a1   :  { %13050 = vmatpush3.bf16.msra.mxu0 %v13049_v33  ;;  %v8382_v33 = vld [vmem:[#allocation11 + $0x818] sm:$0xff] }
 0x8a2   :  { %13083 = vmatprep.subr.bf16.mxu0 %v15521_v63 }
 0x8a3   :  { %13126 = vmatpush3.bf16.msra.mxu1 %v13125_v2  ;;  %v13149_v2 = vpack.c.bf16 %v8382_v33, %v8381_v31 }
 0x8a4   :  { %8193 = vmatmul.mubr.f32.vlgmr.msra.gmra.mrb[40].mxu0 %v15025_v54  ;;  %13159 = vmatprep.subr.bf16.mxu1 %v15521_v63 }
 0x8a5   :  { %13085 = vmatpush3.bf16.msra.mxu0 %v13084_v12  ;;  %10048 = vmatprep.mubr.msk.f32.mxu0 %vm13637_vm1, %v15484_v4  ;;  %v8384_v12 = vld [vmem:[#allocation11 + $0x828] sm:$0xff] }
 0x8a6   :  { %8476 = vmatmul.mubr.f32.vlgmr.msra.gmra.mrb[44].mxu1 %v15025_v54  ;;  %13086 = vmatprep.subr.bf16.mxu0 %v15521_v63  ;;  %v13166_v54 = vpack.c.bf16 %v8408_v32, %v8407_v28 }
 0x8a7   :  { %13161 = vmatpush3.bf16.msra.mxu1 %v13160_v8  ;;  %10067 = vmatprep.mubr.msk.f32.mxu1 %vm13637_vm1, %v15484_v4  ;;  %v13153_v8 = vpack.c.bf16 %v8384_v12, %v8383_v21 }
 0x8a8   :  { %13162 = vmatprep.subr.bf16.mxu1 %v15521_v63 }
 0x8a9   :  { %13088 = vmatpush3.bf16.msra.mxu0 %v13087_v36  ;;  %v8386_v36 = vld [vmem:[#allocation11 + $0x838] sm:$0xff] }
 0x8aa   :  { %13089 = vmatprep.subr.bf16.mxu0 %v15521_v63  ;;  %v13157_v5 = vpack.c.bf16 %v8386_v36, %v8385_v56 }
 0x8ab   :  { %13164 = vmatpush3.bf16.msra.mxu1 %v13163_v27 }
 0x8ac   :  { %13165 = vmatprep.subr.bf16.mxu1 %v15521_v63 }
 0x8ad   :  { %13091 = vmatpush3.bf16.msra.mxu0 %v13090_v48 }
 0x8ae   :  { %13092 = vmatprep.subr.bf16.mxu0 %v15521_v63 }
 0x8af   :  { %13167 = vmatpush3.bf16.msra.mxu1 %v13166_v54 }
 0x8b0   :  { %13168 = vmatprep.subr.bf16.mxu1 %v15521_v63 }
 0x8b1   :  { %13094 = vmatpush3.bf16.msra.mxu0 %v13093_v53 }
 0x8b2   :  { %13128 = vmatprep.subr.bf16.mxu0 %v13127_v57 }
 0x8b3   :  { %13170 = vmatpush3.bf16.msra.mxu1 %v13169_v52  ;;  %v8643_v52 = vld [vmem:[#allocation17 + $0x28] sm:$0xff] }
 0x8b4   :  { %10049 = vmatmul.mubr.msk.f32.vlgmr.msra.gmra.mrb[42].mxu0 %vm6032_vm4, %v15052_v34  ;;  %13195 = vmatprep.subr.bf16.mxu1 %v15521_v63  ;;  %v13178_v38 = vpack.c.bf16 %v8643_v52, %v8642_v59  ;;  %v8830_v59 = vld [vmem:[%s15189_s11] sm:$0xff]  ;;  %v8831_v52 = vld [vmem:[%s15189_s11 + $0x8] sm:$0xff] }
 0x8b5   :  { %13130 = vmatpush3.bf16.msra.mxu0 %v13129_v50  ;;  %8545 = vmatprep.mubr.f32.mxu0 %v15023_v24  ;;  %v8395_v24 = vld [vmem:[#allocation11 + $0x880] sm:$0xff] }
 0x8b6   :  { %10068 = vmatmul.mubr.msk.f32.vlgmr.msra.gmra.mrb[46].mxu1 %vm6032_vm4, %v15052_v34  ;;  %13132 = vmatprep.subr.bf16.mxu0 %v13131_v29  ;;  %v13143_v34 = vpack.c.bf16 %v8396_v42, %v8395_v24  ;;  %v8645_v50 = vld [vmem:[#allocation17 + $0x38] sm:$0xff]  ;;  %v8652_v24 = vld [vmem:[#allocation17 + $0x70] sm:$0xff] }
 0x8b7   :  { %10137 = vmatprep.mubr.msk.f32.mxu1 %vm13637_vm1, %v15484_v4  ;;  %13197 = vmatpush3.bf16.msra.mxu1 %v13172_v44  ;;  %v13181_v29 = vpack.c.bf16 %v8645_v50, %v8644_v51  ;;  %v8653_v42 = vld [vmem:[#allocation17 + $0x78] sm:$0xff]  ;;  %v13220_v51 = vpack.c.bf16 %v8831_v52, %v8830_v59  ;;  %v8833_v50 = vld [vmem:[%s15189_s11 + $0x18] sm:$0xff] }
 0x8b8   :  { %13198 = vmatprep.subr.bf16.mxu1 %v15521_v63 }
 0x8b9   :  { %13134 = vmatpush3.bf16.msra.mxu0 %v13133_v49  ;;  %v8649_v49 = vld [vmem:[#allocation17 + $0x58] sm:$0xff] }
 0x8ba   :  { %13136 = vmatprep.subr.bf16.mxu0 %v13135_v9  ;;  %v13187_v9 = vpack.c.bf16 %v8649_v49, %v8648_v41 }
 0x8bd   :  { %13138 = vmatpush3.bf16.msra.mxu0 %v13137_v60 }
 0x8be   :  { %13140 = vmatprep.subr.bf16.mxu0 %v13139_v1 }
 0x8c1   :  { %13142 = vmatpush3.bf16.msra.mxu0 %v13141_v0  ;;  %v13193_v0 = vpack.c.bf16 %v8653_v42, %v8652_v24  ;;  %v8836_v42 = vld [vmem:[%s15189_s11 + $0x30] sm:$0xff] }
 0x8c2   :  { %13144 = vmatprep.subr.bf16.mxu0 %v13143_v34 }
 0x8c5   :  { %13146 = vmatpush3.bf16.msra.mxu0 %v13145_v39 }
 0x8c6   :  { %13148 = vmatprep.subr.bf16.mxu0 %v13147_v17 }
 0x8c9   :  { %13150 = vmatpush3.bf16.msra.mxu0 %v13149_v2 }
 0x8ca   :  { %13152 = vmatprep.subr.bf16.mxu0 %v13151_v10 }
 0x8cd   :  { %13154 = vmatpush3.bf16.msra.mxu0 %v13153_v8 }
 0x8ce   :  { %13156 = vmatprep.subr.bf16.mxu0 %v13155_v7 }
 0x8d1   :  { %13158 = vmatpush3.bf16.msra.mxu0 %v13157_v5 }
 0x8d2   :  { %13171 = vmatprep.subr.bf16.mxu0 %v15521_v63 }
 0x8d4   :  { %8546 = vmatmul.mubr.f32.vlgmr.msra.gmra.mrb[44].mxu0 %v15028_v11  ;;  %v8640_v11 = vld [vmem:[#allocation17 + $0x10] sm:$0xff] }
 0x8d5   :  { %10102 = vmatprep.mubr.msk.f32.mxu0 %vm13637_vm1, %v15484_v4  ;;  %13173 = vmatpush3.bf16.msra.mxu0 %v13172_v44  ;;  %v13175_v16 = vpack.c.bf16 %v8641_v58, %v8640_v11 }
 0x8d6   :  { %13174 = vmatprep.subr.bf16.mxu0 %v15521_v63 }
 0x8d7   :  { %13200 = vmatpush3.bf16.msra.mxu1 %v13175_v16 }
 0x8d8   :  { %13201 = vmatprep.subr.bf16.mxu1 %v15521_v63 }
 0x8d9   :  { %13176 = vmatpush3.bf16.msra.mxu0 %v13175_v16 }
 0x8da   :  { %13177 = vmatprep.subr.bf16.mxu0 %v15521_v63 }
 0x8db   :  { %13203 = vmatpush3.bf16.msra.mxu1 %v13178_v38 }
 0x8dc   :  { %13204 = vmatprep.subr.bf16.mxu1 %v15521_v63 }
 0x8dd   :  { %13179 = vmatpush3.bf16.msra.mxu0 %v13178_v38  ;;  %v8832_v38 = vld [vmem:[%s15189_s11 + $0x10] sm:$0xff] }
 0x8de   :  { %13180 = vmatprep.subr.bf16.mxu0 %v15521_v63 }
 0x8df   :  { %13206 = vmatpush3.bf16.msra.mxu1 %v13181_v29 }
 0x8e0   :  { %13207 = vmatprep.subr.bf16.mxu1 %v15521_v63 }
 0x8e1   :  { %13182 = vmatpush3.bf16.msra.mxu0 %v13181_v29  ;;  %v13223_v29 = vpack.c.bf16 %v8833_v50, %v8832_v38 }
 0x8e2   :  { %13183 = vmatprep.subr.bf16.mxu0 %v15521_v63 }
 0x8e3   :  { %13209 = vmatpush3.bf16.msra.mxu1 %v13184_v61 }
 0x8e4   :  { %13210 = vmatprep.subr.bf16.mxu1 %v15521_v63 }
 0x8e5   :  { %13185 = vmatpush3.bf16.msra.mxu0 %v13184_v61 }
 0x8e6   :  { %13186 = vmatprep.subr.bf16.mxu0 %v15521_v63 }
 0x8e7   :  { %13212 = vmatpush3.bf16.msra.mxu1 %v13187_v9 }
 0x8e8   :  { %13213 = vmatprep.subr.bf16.mxu1 %v15521_v63 }
 0x8e9   :  { %13188 = vmatpush3.bf16.msra.mxu0 %v13187_v9 }
 0x8ea   :  { %13189 = vmatprep.subr.bf16.mxu0 %v15521_v63 }
 0x8eb   :  { %13215 = vmatpush3.bf16.msra.mxu1 %v13190_v13 }
 0x8ec   :  { %13216 = vmatprep.subr.bf16.mxu1 %v15521_v63 }
 0x8ed   :  { %13191 = vmatpush3.bf16.msra.mxu0 %v13190_v13  ;;  %v8835_v13 = vld [vmem:[%s15189_s11 + $0x28] sm:$0xff] }
 0x8ee   :  { %13192 = vmatprep.subr.bf16.mxu0 %v15521_v63 }
 0x8ef   :  { %13218 = vmatpush3.bf16.msra.mxu1 %v13193_v0 }
 0x8f1   :  { %13194 = vmatpush3.bf16.msra.mxu0 %v13193_v0  ;;  %v8837_v0 = vld [vmem:[%s15189_s11 + $0x38] sm:$0xff] }
 0x8f2   :  { %13219 = vmatprep.subr.bf16.mxu0 %v15521_v63 }
 0x908   :  { %v9593_v19 = vpop.f32.mrb[34].mxu0 }
 0x909   :  { %v9628_v27 = vpop.f32.mrb[36].mxu1  ;;  %v9594_v28 = vpop.f32.mrb[35].mxu0 }
 0x90a   :  { %v9595_v32 = vadd.f32 %v9594_v28, %v9593_v19  ;;  %v9629_v48 = vpop.f32.mrb[37].mxu1 }
 0x90b   :  { %v9630_v54 = vadd.f32 %v9629_v48, %v9628_v27 }
 0x90d   :  { %v7698_v43 = vadd.f32 %v9630_v54, %v9595_v32 }
 0x929   :  { %v9672_v53 = vpop.f32.mrb[38].mxu1 }
 0x92a   :  { %v9673_v57 = vpop.f32.mrb[39].mxu1 }
 0x92b   :  { %v9674_v47 = vadd.f32 %v9673_v57, %v9672_v53 }
 0x937   :  { %v7767_v6 = vpop.f32.mrb[36].mxu0 }
 0x938   :  { %v7768_v26 = vadd.f32 %v7767_v6, %v7698_v43  ;;  %v10012_v60 = vpop.f32.mrb[37].mxu0 }
 0x939   :  { %v8050_v1 = vpop.f32.mrb[40].mxu1 }
 0x93a   :  { %v10031_v55 = vpop.f32.mrb[41].mxu1 }
 0x93b   :  { %v8834_v55 = vld [vmem:[%s15189_s11 + $0x20] sm:$0xff] }
 0x93c   :  { %v13226_v24 = vpack.c.bf16 %v8835_v13, %v8834_v55 }
 0x957   :  { %v9707_v34 = vpop.f32.mrb[38].mxu0 }
 0x958   :  { %v9708_v23 = vpop.f32.mrb[39].mxu0 }
 0x959   :  { %v9709_v14 = vadd.f32 %v9708_v23, %v9707_v34  ;;  %v9786_v20 = vpop.f32.mrb[42].mxu1  ;;  %v13229_v34 = vpack.c.bf16 %v8837_v0, %v8836_v42  ;;  %v8838_v23 = vld [vmem:[%s15189_s11 + $0x40] sm:$0xff] }
 0x95a   :  { %v9787_v3 = vpop.f32.mrb[43].mxu1 }
 0x95b   :  { %v7981_v39 = vadd.f32 %v9709_v14, %v9674_v47  ;;  %v9788_v17 = vadd.f32 %v9787_v3, %v9786_v20  ;;  %v8839_v14 = vld [vmem:[%s15189_s11 + $0x48] sm:$0xff]  ;;  %v8840_v3 = vld [vmem:[%s15189_s11 + $0x50] sm:$0xff] }
 0x95c   :  { %v13232_v20 = vpack.c.bf16 %v8839_v14, %v8838_v23 }
 0x95d   :  { %v8051_v31 = vadd.f32 %v8050_v1, %v7981_v39  ;;  %v8841_v39 = vld [vmem:[%s15189_s11 + $0x58] sm:$0xff] }
 0x95f   :  { %v8054_v33 = vmax.f32 %v7768_v26, %v8051_v31  ;;  %v8842_v31 = vld [vmem:[%s15189_s11 + $0x60] sm:$0xff] }
 0x977   :  { %v9751_v30 = vpop.f32.mrb[40].mxu0 }
 0x978   :  { %v9752_v46 = vpop.f32.mrb[41].mxu0 }
 0x979   :  { %v9753_v2 = vadd.f32 %v9752_v46, %v9751_v30  ;;  %v9830_v10 = vpop.f32.mrb[44].mxu1  ;;  %v8844_v46 = vld [vmem:[%s15189_s11 + $0x70] sm:$0xff] }
 0x97a   :  { %v9831_v21 = vpop.f32.mrb[45].mxu1 }
 0x97b   :  { %v9832_v12 = vadd.f32 %v9831_v21, %v9830_v10  ;;  %v8265_v25 = vadd.f32 %v9788_v17, %v9753_v2  ;;  %v13235_v17 = vpack.c.bf16 %v8841_v39, %v8840_v3  ;;  %v8845_v2 = vld [vmem:[%s15189_s11 + $0x78] sm:$0xff] }
 0x97c   :  { %v13241_v10 = vpack.c.bf16 %v8845_v2, %v8844_v46 }
 0x987   :  { %v8334_v22 = vpop.f32.mrb[42].mxu0 }
 0x988   :  { %v8335_v8 = vadd.f32 %v8334_v22, %v8265_v25  ;;  %v10050_v7 = vpop.f32.mrb[43].mxu0 }
 0x989   :  { %v8617_v56 = vpop.f32.mrb[46].mxu1 }
 0x98a   :  { %v10069_v36 = vpop.f32.mrb[47].mxu1 }
 0x9a7   :  { %v9865_v5 = vpop.f32.mrb[44].mxu0 }
 0x9a8   :  { %v9866_v19 = vpop.f32.mrb[45].mxu0 }
 0x9a9   :  { %v9867_v27 = vadd.f32 %v9866_v19, %v9865_v5  ;;  %v8969_v5 = vld [vmem:[#allocation16] ss:$0 sm:$0xff] }
 0x9ab   :  { %v8548_v28 = vadd.f32 %v9867_v27, %v9832_v12 }
 0x9ad   :  { %v8618_v32 = vadd.f32 %v8617_v56, %v8548_v28  ;;  %v8968_v56 = vld [vmem:[#allocation14] ss:$0 sm:$0xff]  ;;  %v8970_v28 = vld [vmem:[#allocation19] ss:$0 sm:$0xff] }
 0x9af   :  { %v8621_v48 = vmax.f32 %v8335_v8, %v8618_v32 }
 0x9b1   :  { %v8622_v45 = vmax.f32 %v8054_v33, %v8621_v48  ;;  %v8843_v33 = vld [vmem:[%s15189_s11 + $0x68] sm:$0xff]  ;;  %s13638_s11 = smov [#allocation20]  }
 0x9b2   :  { %v13238_v30 = vpack.c.bf16 %v8843_v33, %v8842_v31  ;;  %s8931_s27 = sshll.u32 %s13638_s11, 4  ;;  %s8932_s27 = int_to_ptr.vmem [resolvable:$true] %s8931_s27 }
 0x9b3   :  { %v8629_v54 = vadd.f32 %v8967_v18, %v8622_v45  ;;  %s13583_s29 = scalar_lea.vmem %s8932_s27, 32  ;;  %p13588_p5 = scmp.lt.s32.totalorder %s8932_s27, %s8932_s27 }
 0x9b4   :  { %p13584_p4 = scmp.ne.s32.totalorder %s8932_s27, %s13583_s29  ;;  %p13589_p6 = scmp.lt.s32.totalorder %s13583_s29, %s13583_s29 }
 0x9b5   :  { %v8630_v44 = vmax.f32 %v8629_v54, 0.0 }
 0x9b6   :  { %p13590_p7 = por %p13589_p6, %p13588_p5 }
 0x9b7   :  { %v8631_v43 = vsel %vm5635_vm2, %v8630_v44, 0.0 }
 0x9b8   :  { %v8632_v11 = vrot.slane %v8631_v43, 4  ;;  %p13591_p8 = pnand %p13590_p7, %p13584_p4 }
 0x9ba   :  { %v8633_v58 = vadd.f32 %v8632_v11, %v8631_v43 }
 0x9bc   :  { %v8634_v16 = vrot.slane %v8633_v58, 2 }
 0x9be   :  { %v8635_v53 = vadd.f32 %v8634_v16, %v8633_v58 }
 0x9c0   :  { %v8636_v57 = vrot.slane %v8635_v53, 1 }
 0x9c2   :  { %v8637_v47 = vadd.f32 %v8636_v57, %v8635_v53 }
 0x9c4   :  { %10103 = vmatmul.mubr.f32.vlgmr.msra.gmra.mrb[46].mxu0 %v8637_v47 }
 0x9c5   :  { %10172 = vmatprep.mubr.msk.f32.mxu0 %vm13637_vm1, %v15484_v4  ;;  %13221 = vmatpush3.bf16.msra.mxu0 %v13220_v51 }
 0x9c6   :  { %13222 = vmatprep.subr.bf16.mxu0 %v15521_v63 }
 0x9c9   :  { %13224 = vmatpush3.bf16.msra.mxu0 %v13223_v29 }
 0x9ca   :  { %13225 = vmatprep.subr.bf16.mxu0 %v15521_v63 }
 0x9cd   :  { %13227 = vmatpush3.bf16.msra.mxu0 %v13226_v24 }
 0x9ce   :  { %13228 = vmatprep.subr.bf16.mxu0 %v15521_v63 }
 0x9d1   :  { %13230 = vmatpush3.bf16.msra.mxu0 %v13229_v34 }
 0x9d2   :  { %13231 = vmatprep.subr.bf16.mxu0 %v15521_v63 }
 0x9d5   :  { %13233 = vmatpush3.bf16.msra.mxu0 %v13232_v20 }
 0x9d6   :  { %13234 = vmatprep.subr.bf16.mxu0 %v15521_v63 }
 0x9d9   :  { %13236 = vmatpush3.bf16.msra.mxu0 %v13235_v17 }
 0x9da   :  { %13237 = vmatprep.subr.bf16.mxu0 %v15521_v63 }
 0x9dd   :  { %13239 = vmatpush3.bf16.msra.mxu0 %v13238_v30 }
 0x9de   :  { %13240 = vmatprep.subr.bf16.mxu0 %v15521_v63 }
 0x9e1   :  { %13242 = vmatpush3.bf16.msra.mxu0 %v13241_v10 }
 0xa97   :  { %v8720_v4 = vpop.f32.mrb[46].mxu0 }
 0xa98   :  { %v8724_v15 = vmul.f32 0.5, %v8720_v4  ;;  %v10104_v40 = vpop.f32.mrb[47].mxu0 }
 0xa9a   :  { %v8728_v61 = vrot.slane %v8724_v15, %v14204_v35 }
 0xa9c   :  { %v8729_v41 = vsub.f32 %v8630_v44, %v8728_v61 }
 0xa9e   :  { %v8730_v49 = vmul.f32 %v8729_v41, %v8729_v41 }
 0xaa0   :  { %v8731_v9 = vsel %vm5635_vm2, %v8730_v49, 0.0 }
 0xaa1   :  { %v8732_v6 = vrot.slane %v8731_v9, 4 }
 0xaa3   :  { %v8733_v62 = vadd.f32 %v8732_v6, %v8731_v9 }
 0xaa5   :  { %v8734_v37 = vrot.slane %v8733_v62, 2 }
 0xaa7   :  { %v8735_v26 = vadd.f32 %v8734_v37, %v8733_v62 }
 0xaa9   :  { %v8736_v60 = vrot.slane %v8735_v26, 1 }
 0xaab   :  { %v8737_v1 = vadd.f32 %v8736_v60, %v8735_v26 }
 0xaad   :  { %10138 = vmatmul.mubr.f32.vlgmr.msra.gmra.mrb[48].mxu1 %v8737_v1 }
 0xb80   :  { %v8804_v21 = vpop.f32.mrb[48].mxu1 }
 0xb81   :  { %v8808_v12 = vmul.f32 0.5, %v8804_v21  ;;  %v10139_v25 = vpop.f32.mrb[49].mxu1 }
 0xb83   :  { %v8809_v22 = vadd.f32 1e-05, %v8808_v12 }
 0xb85   :  { %13339 = vrsqrt.f32 %v8809_v22 }
 0xb8f   :  { %v13340_v8 = vpop.eup %13339 }
 0xb90   :  { %v8814_v7 = vrot.slane %v13340_v8, %v14204_v35 }
 0xb92   :  { %v8815_v36 = vmul.f32 %v8814_v7, %v8729_v41 }
 0xb94   :  { %v8822_v19 = vmul.f32 %v8968_v56, %v8815_v36 }
 0xb96   :  { %v8829_v27 = vadd.f32 %v8969_v5, %v8822_v19 }
 0xb98   :  { %10173 = vmatmul.mubr.f32.vlgmr.msra.gmra.mrb[48].mxu0 %v8829_v27 }
 0xc6b   :  { %v8919_v32 = vpop.f32.mrb[48].mxu0 }
 0xc6c   :  { %v8920_v63 = vadd.f32 %v8970_v28, %v8919_v32  ;;  %v10174_v48 = vpop.f32.mrb[49].mxu0 }
 0xc6e   :  { %8924 = vst.msk [vmem:[#allocation20] sm:$0x3] %vm8923_vm5, %v8920_v63 }
 0xc6f   :  { %13594 = shalt.err (!%p13591_p8)
}
 0xc70   :  { %s13595_s30 = scalar_lea.hbm %s15191_s13, 32 }
 0xc71   :  { %p13596_p9 = scmp.ne.s32.totalorder %s15191_s13, %s13595_s30  ;;  %p13599_p10 = scmp.lt.u32.totalorder %s13595_s30, %s15191_s13 }
 0xc73   :  { %p13601_p11 = pnand %p13599_p10, %p13596_p9 }
 0xc75   :  { %13604 = shalt.err (!%p13601_p11)
}
 0xc76   :  { %8934 = dma.vmem_to_hbm [thread:$0]  %s8932_s27, 32, %s15191_s13, [#allocation4]  }
 0xc77   :  { %13617 = dma.done.wait [#allocation4], 32  }
 0xc78   :  { %13618 = vsyncadd [#allocation4], 4294967264 }
 0xc79   :  { %8938 = vsyncpa [#allocation3], 1 }
 0xc7a   :  { %8939 = vsyncpa [#allocation6], 1 }
 0xc7b   :  { %8940 = vsyncpa [#allocation9], 1 }
 0xc7c   :  { %8941 = vsyncpa [#allocation12], 1 }
 0xc7d   :  { %8942 = vsyncpa [#allocation15], 1 }
 0xc7e   :  { %8943 = vsyncpa [#allocation18], 1 }
 0xc7f   :  { %8944 = vsyncpa [#allocation4], 1 }

</bundles_post_ra>
